<compile_context>
chip_gen: v7x
topology: tpu7x:2x2x1
jax: 0.10.0
libtpu: 0.0.40
codegen_flags: <defaults>
</compile_context>

<pallas_src>
import numpy as np
import jax
import jax.numpy as jnp
from jax.experimental import pallas as pl
from jax.experimental.pallas import tpu as pltpu


# ---------------------------------------------------------------------------
# Host-side constant builders (tap validity masks, pool selection matrices)
# ---------------------------------------------------------------------------

def _make_tap_masks(H, W):
    """(9, H*W) f32 validity masks for the 9 taps of a 3x3 SAME conv.

    Flat spatial index p = y*W + x.  mask[t, p] == 1 iff the neighbour
    (y+dy-1, x+dx-1) of output position p lies inside the image (t = dy*3+dx).
    """
    ys, xs = np.meshgrid(np.arange(H), np.arange(W), indexing="ij")
    ys, xs = ys.reshape(-1), xs.reshape(-1)
    m = np.zeros((9, H * W), np.float32)
    for dy in range(3):
        for dx in range(3):
            ok = ((ys + dy - 1 >= 0) & (ys + dy - 1 < H) &
                  (xs + dx - 1 >= 0) & (xs + dx - 1 < W))
            m[dy * 3 + dx] = ok.astype(np.float32)
    return jnp.asarray(m)


def _make_pool_selector(H, W):
    """(H*W, Ho*Wo) 0/1 matrix selecting the top-left corner of every 2x2 window."""
    Ho, Wo = H // 2, W // 2
    s = np.zeros((H * W, Ho * Wo), np.float32)
    for yo in range(Ho):
        for xo in range(Wo):
            s[(2 * yo) * W + 2 * xo, yo * Wo + xo] = 1.0
    return jnp.asarray(s)


# ---------------------------------------------------------------------------
# In-kernel building blocks (channels-first, spatial flattened on lanes)
# ---------------------------------------------------------------------------

def _conv3x3_bias_flat(act, w_ref, b_ref, mask_ref, W):
    """3x3 SAME conv + bias for one sample.

    act:      (Cin, H*W)      value, spatial flattened on the lane axis
    w_ref:    (9, Cout, Cin)  VMEM ref, tap-major, each tap already (Cout, Cin)
    b_ref:    (Cout, 1)       VMEM ref
    mask_ref: (9, H*W)        VMEM ref, f32 0/1 tap validity masks
    """
    Cin, HW = act.shape
    Cout = w_ref.shape[1]
    P = W + 1                                   # enough zero-pad for any tap offset
    zpad = jnp.zeros((Cin, P), act.dtype)
    padded = jnp.concatenate([zpad, act, zpad], axis=1)        # (Cin, HW + 2P)

    acc = jnp.zeros((Cout, HW), jnp.float32)
    for dy in range(3):
        for dx in range(3):
            t = dy * 3 + dx
            start = P + (dy - 1) * W + (dx - 1)                # static, in [0, 2P]
            tap = padded[:, start:start + HW]                  # lane shift only
            if not (dy == 1 and dx == 1):                      # centre always valid
                tap = tap * mask_ref[t:t + 1, :]               # zero SAME-pad reads
            # per-tap accumulating dot; N = H*W is the lane-dense MXU dim
            acc = acc + jnp.dot(w_ref[t], tap,
                                preferred_element_type=jnp.float32)
    return acc + b_ref[...]                                     # (Cout, HW)


def _maxpool2x2_flat(act, W, sel_ref):
    """2x2 / stride-2 max pool for one sample.

    act: (C, H*W);  sel_ref: (H*W, Ho*Wo) 0/1 top-left-corner selection matrix.
    """
    C, HW = act.shape
    # max with the right neighbour (x+1) and then with the row below (y+1):
    right = jnp.concatenate([act[:, 1:], jnp.zeros((C, 1), act.dtype)], axis=1)
    t = jnp.maximum(act, right)
    below = jnp.concatenate([t[:, W:], jnp.zeros((C, W), t.dtype)], axis=1)
    t = jnp.maximum(t, below)
    # t[:, p] now holds the 2x2-window max whose top-left corner is p; compact to
    # the stride-2 grid with one exact 0/1 selection matmul (lane-dense output).
    return jnp.dot(t, sel_ref[...], preferred_element_type=jnp.float32)


# ---------------------------------------------------------------------------
# Whole-network fused forward (one pallas_call)
# ---------------------------------------------------------------------------

def fused_truncated_vgg_flat(layers, indices, x_flat, spatial):
    """Run the full layer list in one pallas_call over grid=(N,).

    x_flat: (N, C0, H0*W0).  Returns ([captured (N,C,H*W) arrays], [(C,H,W)...]).
    """
    N, C0, HW0 = x_flat.shape
    H0, W0 = spatial
    assert HW0 == H0 * W0
    L = len(layers)

    cap = sorted({i for i in indices if 0 <= i < L})
    if (L - 1) not in cap:
        cap.append(L - 1)                      # "last layer if not already captured"
    cap_set = set(cap)

    # ---- static shape walk; weight repack; mask / selector constants ----
    prog, shapes = [], []
    conv_args = []                             # interleaved [w9, bias2d] per conv
    mask_arrays, mask_slot = [], {}
    sel_arrays = []
    c, h, w = C0, H0, W0
    for layer in layers:
        kind = layer[0]
        if kind == "conv":
            wgt, bias = layer[1], layer[2]
            kh, kw, cin, cout = wgt.shape
            assert (kh, kw) == (3, 3) and cin == c
            if (h, w) not in mask_slot:
                mask_slot[(h, w)] = len(mask_arrays)
                mask_arrays.append(_make_tap_masks(h, w))
            # (3,3,Cin,Cout) -> (9, Cout, Cin): tap-major, each tap transposed so the
            # in-kernel dot is (Cout,Cin) @ (Cin,HW).  Tap order dy-major, dx-minor,
            # matching the in-kernel loop.
            w9 = jnp.transpose(wgt, (0, 1, 3, 2)).reshape(9, cout, cin)
            prog.append(("conv", len(conv_args) // 2, mask_slot[(h, w)], w))
            conv_args += [w9, bias.reshape(cout, 1)]
            c = cout
        elif kind == "relu":
            prog.append(("relu",))
        elif kind == "maxpool":
            assert h % 2 == 0 and w % 2 == 0   # VGG-style even spatial dims
            prog.append(("maxpool", len(sel_arrays), w))
            sel_arrays.append(_make_pool_selector(h, w))
            h, w = h // 2, w // 2
        else:
            raise ValueError(f"unsupported layer kind {kind!r}")
        shapes.append((c, h, w))               # activation shape AFTER layer i

    n_conv = len(conv_args) // 2
    n_mask, n_sel = len(mask_arrays), len(sel_arrays)

    def kernel(*refs):
        x_ref = refs[0]
        wb = refs[1:1 + 2 * n_conv]
        masks = refs[1 + 2 * n_conv:1 + 2 * n_conv + n_mask]
        sels = refs[1 + 2 * n_conv + n_mask:1 + 2 * n_conv + n_mask + n_sel]
        outs = refs[1 + 2 * n_conv + n_mask + n_sel:]

        act = x_ref[0]                          # (C0, H0*W0), this sample
        oi = 0
        for i, op in enumerate(prog):
            if op[0] == "conv":
                _, ci, ms, ww = op
                act = _conv3x3_bias_flat(act, wb[2 * ci], wb[2 * ci + 1],
                                         masks[ms], ww)
            elif op[0] == "relu":
                act = jnp.maximum(act, 0.0)
            else:                               # maxpool
                _, si, ww = op
                act = _maxpool2x2_flat(act, ww, sels[si])
            if i in cap_set:
                outs[oi][0] = act.astype(outs[oi].dtype)
                oi += 1

    in_specs = [pl.BlockSpec((1, C0, HW0), lambda n: (n, 0, 0))]
    flat_inputs = []
    for arr in list(conv_args) + mask_arrays + sel_arrays:
        in_specs.append(pl.BlockSpec(arr.shape, lambda n, nd=arr.ndim: (0,) * nd))
        flat_inputs.append(arr)

    cap_shapes = [shapes[i] for i in cap]
    out_shape = tuple(jax.ShapeDtypeStruct((N, cc, hh * ww), x_flat.dtype)
                      for cc, hh, ww in cap_shapes)
    out_specs = tuple(pl.BlockSpec((1, cc, hh * ww), lambda n: (n, 0, 0))
                      for cc, hh, ww in cap_shapes)

    feats = pl.pallas_call(
        kernel,
        out_shape=out_shape,
        grid=(N,),
        in_specs=in_specs,
        out_specs=out_specs,
        compiler_params=pltpu.CompilerParams(
            dimension_semantics=("parallel",)),   # batch axis -> megacore / 2 TCs
    )(x_flat, *flat_inputs)
    return list(feats), cap_shapes


# ---------------------------------------------------------------------------
# TruncatedVGG (JAX/Pallas port of the PyTorch module, forward only)
# ---------------------------------------------------------------------------

class TruncatedVGG:
    def __init__(self, pretrainedModel, indices=(9, 16, 22, 29)):
        self.model = pretrainedModel          # list of layer specs
        self.indices = list(indices)

    def __call__(self, x_nchw):
        N, C, H, W = x_nchw.shape
        # Channels-first + flattened spatial is the kernel's native layout, so
        # NCHW needs only reshapes in and out (no transposes).
        x_flat = x_nchw.reshape(N, C, H * W)
        feats, cap_shapes = fused_truncated_vgg_flat(
            self.model, self.indices, x_flat, (H, W))
        return [f.reshape(N, cc, hh, ww)
                for f, (cc, hh, ww) in zip(feats, cap_shapes)]


def make_vgg16_features(key, in_ch=3, widths=(4, 8, 8, 16, 16)):
    """Tiny VGG16-features clone: 13 convs + 5 pools = 31 layers (indices 0..30)."""
    cfg = [widths[0], widths[0], "M",
           widths[1], widths[1], "M",
           widths[2], widths[2], widths[2], "M",
           widths[3], widths[3], widths[3], "M",
           widths[4], widths[4], widths[4], "M"]
    layers = []
    c_in = in_ch
    for v in cfg:
        if v == "M":
            layers.append(("maxpool",))
        else:
            key, kw, kb = jax.random.split(key, 3)
            std = (2.0 / (9 * c_in)) ** 0.5
            w = (std * jax.random.normal(kw, (3, 3, c_in, v))).astype(jnp.float32)
            b = (0.01 * jax.random.normal(kb, (v,))).astype(jnp.float32)
            layers.append(("conv", w, b))
            layers.append(("relu",))
            c_in = v
    return layers


# ---------------------------------------------------------------------------
# Pure-JAX reference (validation only)
# ---------------------------------------------------------------------------

def forward_ref(layers, x_nchw, indices):
    x = jnp.transpose(x_nchw, (0, 2, 3, 1))
    outs = []
    n_layers = len(layers)
    for i, layer in enumerate(layers):
        if layer[0] == "conv":
            _, w, b = layer
            x = jax.lax.conv_general_dilated(
                x, w, (1, 1), "SAME",
                dimension_numbers=("NHWC", "HWIO", "NHWC"),
                precision=jax.lax.Precision.HIGHEST) + b
        elif layer[0] == "relu":
            x = jnp.maximum(x, 0.0)
        else:
            x = jax.lax.reduce_window(x, -jnp.inf, jax.lax.max,
                                      (1, 2, 2, 1), (1, 2, 2, 1), "VALID")
        if i in indices or (i == n_layers - 1 and i not in indices):
            outs.append(jnp.transpose(x, (0, 3, 1, 2)))
    return outs


# ---------------------------------------------------------------------------

if __name__ == "__main__":
    key = jax.random.PRNGKey(0)
    k_x, k_p = jax.random.split(key)

    layers = make_vgg16_features(k_p)
    model = TruncatedVGG(layers)                       # default indices [9, 16, 22, 29]

    # NCHW input like the PyTorch module; 32x32 so the 5 pools end at 1x1.
    x = jax.random.normal(k_x, (2, 3, 32, 32), jnp.float32)

    fwd = jax.jit(lambda v: model(v))
    outs = jax.block_until_ready(fwd(x))

    refs = forward_ref(layers, x, model.indices)

    assert len(outs) == 5
    for o, r in zip(outs, refs):
        assert o.shape == r.shape, (o.shape, r.shape)
        np.testing.assert_allclose(np.asarray(o), np.asarray(r),
                                   rtol=5e-4, atol=5e-4)

    print("KERNEL_OK")
</pallas_src>

<mosaic_0001>
module attributes {stable_mosaic.version = 11 : i64} {
  func.func @kernel(%arg0: i32, %arg1: memref<1x3x1024xf32, #tpu.memory_space<vmem>>, %arg2: memref<9x4x3xf32, #tpu.memory_space<vmem>>, %arg3: memref<4x1xf32, #tpu.memory_space<vmem>>, %arg4: memref<9x4x4xf32, #tpu.memory_space<vmem>>, %arg5: memref<4x1xf32, #tpu.memory_space<vmem>>, %arg6: memref<9x8x4xf32, #tpu.memory_space<vmem>>, %arg7: memref<8x1xf32, #tpu.memory_space<vmem>>, %arg8: memref<9x8x8xf32, #tpu.memory_space<vmem>>, %arg9: memref<8x1xf32, #tpu.memory_space<vmem>>, %arg10: memref<9x8x8xf32, #tpu.memory_space<vmem>>, %arg11: memref<8x1xf32, #tpu.memory_space<vmem>>, %arg12: memref<9x8x8xf32, #tpu.memory_space<vmem>>, %arg13: memref<8x1xf32, #tpu.memory_space<vmem>>, %arg14: memref<9x8x8xf32, #tpu.memory_space<vmem>>, %arg15: memref<8x1xf32, #tpu.memory_space<vmem>>, %arg16: memref<9x16x8xf32, #tpu.memory_space<vmem>>, %arg17: memref<16x1xf32, #tpu.memory_space<vmem>>, %arg18: memref<9x16x16xf32, #tpu.memory_space<vmem>>, %arg19: memref<16x1xf32, #tpu.memory_space<vmem>>, %arg20: memref<9x16x16xf32, #tpu.memory_space<vmem>>, %arg21: memref<16x1xf32, #tpu.memory_space<vmem>>, %arg22: memref<9x16x16xf32, #tpu.memory_space<vmem>>, %arg23: memref<16x1xf32, #tpu.memory_space<vmem>>, %arg24: memref<9x16x16xf32, #tpu.memory_space<vmem>>, %arg25: memref<16x1xf32, #tpu.memory_space<vmem>>, %arg26: memref<9x16x16xf32, #tpu.memory_space<vmem>>, %arg27: memref<16x1xf32, #tpu.memory_space<vmem>>, %arg28: memref<9x1024xf32, #tpu.memory_space<vmem>>, %arg29: memref<9x256xf32, #tpu.memory_space<vmem>>, %arg30: memref<9x64xf32, #tpu.memory_space<vmem>>, %arg31: memref<9x16xf32, #tpu.memory_space<vmem>>, %arg32: memref<9x4xf32, #tpu.memory_space<vmem>>, %arg33: memref<1024x256xf32, #tpu.memory_space<vmem>>, %arg34: memref<256x64xf32, #tpu.memory_space<vmem>>, %arg35: memref<64x16xf32, #tpu.memory_space<vmem>>, %arg36: memref<16x4xf32, #tpu.memory_space<vmem>>, %arg37: memref<4x1xf32, #tpu.memory_space<vmem>>, %arg38: memref<1x8x64xf32, #tpu.memory_space<vmem>>, %arg39: memref<1x8x16xf32, #tpu.memory_space<vmem>>, %arg40: memref<1x16x16xf32, #tpu.memory_space<vmem>>, %arg41: memref<1x16x4xf32, #tpu.memory_space<vmem>>, %arg42: memref<1x16x1xf32, #tpu.memory_space<vmem>>) attributes {dimension_semantics = [#tpu.dimension_semantics<parallel>], iteration_bounds = array<i64: 2>, scalar_prefetch = 0 : i64, scratch_operands = 0 : i64, tpu.core_type = #tpu.core_type<tc>, window_params = [{transform_indices = @transform_0, window_bounds = array<i64: 1, 3, 1024>}, {pipeline_mode = #tpu.pipeline_mode<synchronous>, transform_indices = @transform_1, window_bounds = array<i64: 9, 4, 3>}, {pipeline_mode = #tpu.pipeline_mode<synchronous>, transform_indices = @transform_2, window_bounds = array<i64: 4, 1>}, {pipeline_mode = #tpu.pipeline_mode<synchronous>, transform_indices = @transform_3, window_bounds = array<i64: 9, 4, 4>}, {pipeline_mode = #tpu.pipeline_mode<synchronous>, transform_indices = @transform_4, window_bounds = array<i64: 4, 1>}, {pipeline_mode = #tpu.pipeline_mode<synchronous>, transform_indices = @transform_5, window_bounds = array<i64: 9, 8, 4>}, {pipeline_mode = #tpu.pipeline_mode<synchronous>, transform_indices = @transform_6, window_bounds = array<i64: 8, 1>}, {pipeline_mode = #tpu.pipeline_mode<synchronous>, transform_indices = @transform_7, window_bounds = array<i64: 9, 8, 8>}, {pipeline_mode = #tpu.pipeline_mode<synchronous>, transform_indices = @transform_8, window_bounds = array<i64: 8, 1>}, {pipeline_mode = #tpu.pipeline_mode<synchronous>, transform_indices = @transform_9, window_bounds = array<i64: 9, 8, 8>}, {pipeline_mode = #tpu.pipeline_mode<synchronous>, transform_indices = @transform_10, window_bounds = array<i64: 8, 1>}, {pipeline_mode = #tpu.pipeline_mode<synchronous>, transform_indices = @transform_11, window_bounds = array<i64: 9, 8, 8>}, {pipeline_mode = #tpu.pipeline_mode<synchronous>, transform_indices = @transform_12, window_bounds = array<i64: 8, 1>}, {pipeline_mode = #tpu.pipeline_mode<synchronous>, transform_indices = @transform_13, window_bounds = array<i64: 9, 8, 8>}, {pipeline_mode = #tpu.pipeline_mode<synchronous>, transform_indices = @transform_14, window_bounds = array<i64: 8, 1>}, {pipeline_mode = #tpu.pipeline_mode<synchronous>, transform_indices = @transform_15, window_bounds = array<i64: 9, 16, 8>}, {pipeline_mode = #tpu.pipeline_mode<synchronous>, transform_indices = @transform_16, window_bounds = array<i64: 16, 1>}, {pipeline_mode = #tpu.pipeline_mode<synchronous>, transform_indices = @transform_17, window_bounds = array<i64: 9, 16, 16>}, {pipeline_mode = #tpu.pipeline_mode<synchronous>, transform_indices = @transform_18, window_bounds = array<i64: 16, 1>}, {pipeline_mode = #tpu.pipeline_mode<synchronous>, transform_indices = @transform_19, window_bounds = array<i64: 9, 16, 16>}, {pipeline_mode = #tpu.pipeline_mode<synchronous>, transform_indices = @transform_20, window_bounds = array<i64: 16, 1>}, {pipeline_mode = #tpu.pipeline_mode<synchronous>, transform_indices = @transform_21, window_bounds = array<i64: 9, 16, 16>}, {pipeline_mode = #tpu.pipeline_mode<synchronous>, transform_indices = @transform_22, window_bounds = array<i64: 16, 1>}, {pipeline_mode = #tpu.pipeline_mode<synchronous>, transform_indices = @transform_23, window_bounds = array<i64: 9, 16, 16>}, {pipeline_mode = #tpu.pipeline_mode<synchronous>, transform_indices = @transform_24, window_bounds = array<i64: 16, 1>}, {pipeline_mode = #tpu.pipeline_mode<synchronous>, transform_indices = @transform_25, window_bounds = array<i64: 9, 16, 16>}, {pipeline_mode = #tpu.pipeline_mode<synchronous>, transform_indices = @transform_26, window_bounds = array<i64: 16, 1>}, {pipeline_mode = #tpu.pipeline_mode<synchronous>, transform_indices = @transform_27, window_bounds = array<i64: 9, 1024>}, {pipeline_mode = #tpu.pipeline_mode<synchronous>, transform_indices = @transform_28, window_bounds = array<i64: 9, 256>}, {pipeline_mode = #tpu.pipeline_mode<synchronous>, transform_indices = @transform_29, window_bounds = array<i64: 9, 64>}, {pipeline_mode = #tpu.pipeline_mode<synchronous>, transform_indices = @transform_30, window_bounds = array<i64: 9, 16>}, {pipeline_mode = #tpu.pipeline_mode<synchronous>, transform_indices = @transform_31, window_bounds = array<i64: 9, 4>}, {pipeline_mode = #tpu.pipeline_mode<synchronous>, transform_indices = @transform_32, window_bounds = array<i64: 1024, 256>}, {pipeline_mode = #tpu.pipeline_mode<synchronous>, transform_indices = @transform_33, window_bounds = array<i64: 256, 64>}, {pipeline_mode = #tpu.pipeline_mode<synchronous>, transform_indices = @transform_34, window_bounds = array<i64: 64, 16>}, {pipeline_mode = #tpu.pipeline_mode<synchronous>, transform_indices = @transform_35, window_bounds = array<i64: 16, 4>}, {pipeline_mode = #tpu.pipeline_mode<synchronous>, transform_indices = @transform_36, window_bounds = array<i64: 4, 1>}, {transform_indices = @transform_37, window_bounds = array<i64: 1, 8, 64>}, {transform_indices = @transform_38, window_bounds = array<i64: 1, 8, 16>}, {transform_indices = @transform_39, window_bounds = array<i64: 1, 16, 16>}, {transform_indices = @transform_40, window_bounds = array<i64: 1, 16, 4>}, {transform_indices = @transform_41, window_bounds = array<i64: 1, 16, 1>}]} {
    %c0 = arith.constant 0 : index
    %c0_0 = arith.constant 0 : index
    %c0_1 = arith.constant 0 : index
    %0 = vector.load %arg1[%c0, %c0_0, %c0_1] : memref<1x3x1024xf32, #tpu.memory_space<vmem>>, vector<1x3x1024xf32>
    %1 = vector.shape_cast %0 : vector<1x3x1024xf32> to vector<3x1024xf32>
    %cst = arith.constant 0.000000e+00 : f32
    %2 = vector.broadcast %cst : f32 to vector<3x33xf32>
    %3 = tpu.concatenate %2, %1, %2 in 1 : vector<3x33xf32>, vector<3x1024xf32>, vector<3x33xf32> -> vector<3x1090xf32>
    %cst_2 = arith.constant 0.000000e+00 : f32
    %4 = vector.broadcast %cst_2 : f32 to vector<4x1024xf32>
    %5 = vector.extract_strided_slice %3 {offsets = [0, 0], sizes = [3, 1024], strides = [1, 1]} : vector<3x1090xf32> to vector<3x1024xf32>
    %c0_3 = arith.constant 0 : index
    %c0_4 = arith.constant 0 : index
    %6 = vector.load %arg28[%c0_3, %c0_4] : memref<9x1024xf32, #tpu.memory_space<vmem>>, vector<1x1024xf32>
    %7 = vector.broadcast %6 : vector<1x1024xf32> to vector<3x1024xf32>
    %8 = arith.mulf %5, %7 : vector<3x1024xf32>
    %c0_5 = arith.constant 0 : index
    %c0_6 = arith.constant 0 : index
    %c0_7 = arith.constant 0 : index
    %9 = vector.load %arg2[%c0_5, %c0_6, %c0_7] : memref<9x4x3xf32, #tpu.memory_space<vmem>>, vector<1x4x3xf32>
    %10 = vector.shape_cast %9 : vector<1x4x3xf32> to vector<4x3xf32>
    %cst_8 = arith.constant dense<0.000000e+00> : vector<4x1024xf32>
    %11 = tpu.matmul %10, %8, %cst_8 {dimension_numbers = #tpu.dot_dimension_numbers<[1], [0], [0], [1], [0, 0, 1, 1], [], []>} : vector<4x3xf32>, vector<3x1024xf32>, vector<4x1024xf32> -> vector<4x1024xf32>
    %12 = arith.addf %4, %11 : vector<4x1024xf32>
    %13 = vector.extract_strided_slice %3 {offsets = [0, 1], sizes = [3, 1024], strides = [1, 1]} : vector<3x1090xf32> to vector<3x1024xf32>
    %c1 = arith.constant 1 : index
    %c0_9 = arith.constant 0 : index
    %14 = vector.load %arg28[%c1, %c0_9] : memref<9x1024xf32, #tpu.memory_space<vmem>>, vector<1x1024xf32>
    %15 = vector.broadcast %14 : vector<1x1024xf32> to vector<3x1024xf32>
    %16 = arith.mulf %13, %15 : vector<3x1024xf32>
    %c1_10 = arith.constant 1 : index
    %c0_11 = arith.constant 0 : index
    %c0_12 = arith.constant 0 : index
    %17 = vector.load %arg2[%c1_10, %c0_11, %c0_12] : memref<9x4x3xf32, #tpu.memory_space<vmem>>, vector<1x4x3xf32>
    %18 = vector.shape_cast %17 : vector<1x4x3xf32> to vector<4x3xf32>
    %cst_13 = arith.constant dense<0.000000e+00> : vector<4x1024xf32>
    %19 = tpu.matmul %18, %16, %cst_13 {dimension_numbers = #tpu.dot_dimension_numbers<[1], [0], [0], [1], [0, 0, 1, 1], [], []>} : vector<4x3xf32>, vector<3x1024xf32>, vector<4x1024xf32> -> vector<4x1024xf32>
    %20 = arith.addf %12, %19 : vector<4x1024xf32>
    %21 = vector.extract_strided_slice %3 {offsets = [0, 2], sizes = [3, 1024], strides = [1, 1]} : vector<3x1090xf32> to vector<3x1024xf32>
    %c2 = arith.constant 2 : index
    %c0_14 = arith.constant 0 : index
    %22 = vector.load %arg28[%c2, %c0_14] : memref<9x1024xf32, #tpu.memory_space<vmem>>, vector<1x1024xf32>
    %23 = vector.broadcast %22 : vector<1x1024xf32> to vector<3x1024xf32>
    %24 = arith.mulf %21, %23 : vector<3x1024xf32>
    %c2_15 = arith.constant 2 : index
    %c0_16 = arith.constant 0 : index
    %c0_17 = arith.constant 0 : index
    %25 = vector.load %arg2[%c2_15, %c0_16, %c0_17] : memref<9x4x3xf32, #tpu.memory_space<vmem>>, vector<1x4x3xf32>
    %26 = vector.shape_cast %25 : vector<1x4x3xf32> to vector<4x3xf32>
    %cst_18 = arith.constant dense<0.000000e+00> : vector<4x1024xf32>
    %27 = tpu.matmul %26, %24, %cst_18 {dimension_numbers = #tpu.dot_dimension_numbers<[1], [0], [0], [1], [0, 0, 1, 1], [], []>} : vector<4x3xf32>, vector<3x1024xf32>, vector<4x1024xf32> -> vector<4x1024xf32>
    %28 = arith.addf %20, %27 : vector<4x1024xf32>
    %29 = vector.extract_strided_slice %3 {offsets = [0, 32], sizes = [3, 1024], strides = [1, 1]} : vector<3x1090xf32> to vector<3x1024xf32>
    %c3 = arith.constant 3 : index
    %c0_19 = arith.constant 0 : index
    %30 = vector.load %arg28[%c3, %c0_19] : memref<9x1024xf32, #tpu.memory_space<vmem>>, vector<1x1024xf32>
    %31 = vector.broadcast %30 : vector<1x1024xf32> to vector<3x1024xf32>
    %32 = arith.mulf %29, %31 : vector<3x1024xf32>
    %c3_20 = arith.constant 3 : index
    %c0_21 = arith.constant 0 : index
    %c0_22 = arith.constant 0 : index
    %33 = vector.load %arg2[%c3_20, %c0_21, %c0_22] : memref<9x4x3xf32, #tpu.memory_space<vmem>>, vector<1x4x3xf32>
    %34 = vector.shape_cast %33 : vector<1x4x3xf32> to vector<4x3xf32>
    %cst_23 = arith.constant dense<0.000000e+00> : vector<4x1024xf32>
    %35 = tpu.matmul %34, %32, %cst_23 {dimension_numbers = #tpu.dot_dimension_numbers<[1], [0], [0], [1], [0, 0, 1, 1], [], []>} : vector<4x3xf32>, vector<3x1024xf32>, vector<4x1024xf32> -> vector<4x1024xf32>
    %36 = arith.addf %28, %35 : vector<4x1024xf32>
    %37 = vector.extract_strided_slice %3 {offsets = [0, 33], sizes = [3, 1024], strides = [1, 1]} : vector<3x1090xf32> to vector<3x1024xf32>
    %c4 = arith.constant 4 : index
    %c0_24 = arith.constant 0 : index
    %c0_25 = arith.constant 0 : index
    %38 = vector.load %arg2[%c4, %c0_24, %c0_25] : memref<9x4x3xf32, #tpu.memory_space<vmem>>, vector<1x4x3xf32>
    %39 = vector.shape_cast %38 : vector<1x4x3xf32> to vector<4x3xf32>
    %cst_26 = arith.constant dense<0.000000e+00> : vector<4x1024xf32>
    %40 = tpu.matmul %39, %37, %cst_26 {dimension_numbers = #tpu.dot_dimension_numbers<[1], [0], [0], [1], [0, 0, 1, 1], [], []>} : vector<4x3xf32>, vector<3x1024xf32>, vector<4x1024xf32> -> vector<4x1024xf32>
    %41 = arith.addf %36, %40 : vector<4x1024xf32>
    %42 = vector.extract_strided_slice %3 {offsets = [0, 34], sizes = [3, 1024], strides = [1, 1]} : vector<3x1090xf32> to vector<3x1024xf32>
    %c5 = arith.constant 5 : index
    %c0_27 = arith.constant 0 : index
    %43 = vector.load %arg28[%c5, %c0_27] : memref<9x1024xf32, #tpu.memory_space<vmem>>, vector<1x1024xf32>
    %44 = vector.broadcast %43 : vector<1x1024xf32> to vector<3x1024xf32>
    %45 = arith.mulf %42, %44 : vector<3x1024xf32>
    %c5_28 = arith.constant 5 : index
    %c0_29 = arith.constant 0 : index
    %c0_30 = arith.constant 0 : index
    %46 = vector.load %arg2[%c5_28, %c0_29, %c0_30] : memref<9x4x3xf32, #tpu.memory_space<vmem>>, vector<1x4x3xf32>
    %47 = vector.shape_cast %46 : vector<1x4x3xf32> to vector<4x3xf32>
    %cst_31 = arith.constant dense<0.000000e+00> : vector<4x1024xf32>
    %48 = tpu.matmul %47, %45, %cst_31 {dimension_numbers = #tpu.dot_dimension_numbers<[1], [0], [0], [1], [0, 0, 1, 1], [], []>} : vector<4x3xf32>, vector<3x1024xf32>, vector<4x1024xf32> -> vector<4x1024xf32>
    %49 = arith.addf %41, %48 : vector<4x1024xf32>
    %50 = vector.extract_strided_slice %3 {offsets = [0, 64], sizes = [3, 1024], strides = [1, 1]} : vector<3x1090xf32> to vector<3x1024xf32>
    %c6 = arith.constant 6 : index
    %c0_32 = arith.constant 0 : index
    %51 = vector.load %arg28[%c6, %c0_32] : memref<9x1024xf32, #tpu.memory_space<vmem>>, vector<1x1024xf32>
    %52 = vector.broadcast %51 : vector<1x1024xf32> to vector<3x1024xf32>
    %53 = arith.mulf %50, %52 : vector<3x1024xf32>
    %c6_33 = arith.constant 6 : index
    %c0_34 = arith.constant 0 : index
    %c0_35 = arith.constant 0 : index
    %54 = vector.load %arg2[%c6_33, %c0_34, %c0_35] : memref<9x4x3xf32, #tpu.memory_space<vmem>>, vector<1x4x3xf32>
    %55 = vector.shape_cast %54 : vector<1x4x3xf32> to vector<4x3xf32>
    %cst_36 = arith.constant dense<0.000000e+00> : vector<4x1024xf32>
    %56 = tpu.matmul %55, %53, %cst_36 {dimension_numbers = #tpu.dot_dimension_numbers<[1], [0], [0], [1], [0, 0, 1, 1], [], []>} : vector<4x3xf32>, vector<3x1024xf32>, vector<4x1024xf32> -> vector<4x1024xf32>
    %57 = arith.addf %49, %56 : vector<4x1024xf32>
    %58 = vector.extract_strided_slice %3 {offsets = [0, 65], sizes = [3, 1024], strides = [1, 1]} : vector<3x1090xf32> to vector<3x1024xf32>
    %c7 = arith.constant 7 : index
    %c0_37 = arith.constant 0 : index
    %59 = vector.load %arg28[%c7, %c0_37] : memref<9x1024xf32, #tpu.memory_space<vmem>>, vector<1x1024xf32>
    %60 = vector.broadcast %59 : vector<1x1024xf32> to vector<3x1024xf32>
    %61 = arith.mulf %58, %60 : vector<3x1024xf32>
    %c7_38 = arith.constant 7 : index
    %c0_39 = arith.constant 0 : index
    %c0_40 = arith.constant 0 : index
    %62 = vector.load %arg2[%c7_38, %c0_39, %c0_40] : memref<9x4x3xf32, #tpu.memory_space<vmem>>, vector<1x4x3xf32>
    %63 = vector.shape_cast %62 : vector<1x4x3xf32> to vector<4x3xf32>
    %cst_41 = arith.constant dense<0.000000e+00> : vector<4x1024xf32>
    %64 = tpu.matmul %63, %61, %cst_41 {dimension_numbers = #tpu.dot_dimension_numbers<[1], [0], [0], [1], [0, 0, 1, 1], [], []>} : vector<4x3xf32>, vector<3x1024xf32>, vector<4x1024xf32> -> vector<4x1024xf32>
    %65 = arith.addf %57, %64 : vector<4x1024xf32>
    %66 = vector.extract_strided_slice %3 {offsets = [0, 66], sizes = [3, 1024], strides = [1, 1]} : vector<3x1090xf32> to vector<3x1024xf32>
    %c8 = arith.constant 8 : index
    %c0_42 = arith.constant 0 : index
    %67 = vector.load %arg28[%c8, %c0_42] : memref<9x1024xf32, #tpu.memory_space<vmem>>, vector<1x1024xf32>
    %68 = vector.broadcast %67 : vector<1x1024xf32> to vector<3x1024xf32>
    %69 = arith.mulf %66, %68 : vector<3x1024xf32>
    %c8_43 = arith.constant 8 : index
    %c0_44 = arith.constant 0 : index
    %c0_45 = arith.constant 0 : index
    %70 = vector.load %arg2[%c8_43, %c0_44, %c0_45] : memref<9x4x3xf32, #tpu.memory_space<vmem>>, vector<1x4x3xf32>
    %71 = vector.shape_cast %70 : vector<1x4x3xf32> to vector<4x3xf32>
    %cst_46 = arith.constant dense<0.000000e+00> : vector<4x1024xf32>
    %72 = tpu.matmul %71, %69, %cst_46 {dimension_numbers = #tpu.dot_dimension_numbers<[1], [0], [0], [1], [0, 0, 1, 1], [], []>} : vector<4x3xf32>, vector<3x1024xf32>, vector<4x1024xf32> -> vector<4x1024xf32>
    %73 = arith.addf %65, %72 : vector<4x1024xf32>
    %c0_47 = arith.constant 0 : index
    %c0_48 = arith.constant 0 : index
    %74 = vector.load %arg3[%c0_47, %c0_48] : memref<4x1xf32, #tpu.memory_space<vmem>>, vector<4x1xf32>
    %75 = vector.broadcast %74 : vector<4x1xf32> to vector<4x1024xf32>
    %76 = arith.addf %73, %75 : vector<4x1024xf32>
    %cst_49 = arith.constant 0.000000e+00 : f32
    %77 = vector.broadcast %cst_49 : f32 to vector<4x1024xf32>
    %78 = arith.maximumf %76, %77 : vector<4x1024xf32>
    %cst_50 = arith.constant 0.000000e+00 : f32
    %79 = vector.broadcast %cst_50 : f32 to vector<4x33xf32>
    %80 = tpu.concatenate %79, %78, %79 in 1 : vector<4x33xf32>, vector<4x1024xf32>, vector<4x33xf32> -> vector<4x1090xf32>
    %cst_51 = arith.constant 0.000000e+00 : f32
    %81 = vector.broadcast %cst_51 : f32 to vector<4x1024xf32>
    %82 = vector.extract_strided_slice %80 {offsets = [0, 0], sizes = [4, 1024], strides = [1, 1]} : vector<4x1090xf32> to vector<4x1024xf32>
    %c0_52 = arith.constant 0 : index
    %c0_53 = arith.constant 0 : index
    %83 = vector.load %arg28[%c0_52, %c0_53] : memref<9x1024xf32, #tpu.memory_space<vmem>>, vector<1x1024xf32>
    %84 = vector.broadcast %83 : vector<1x1024xf32> to vector<4x1024xf32>
    %85 = arith.mulf %82, %84 : vector<4x1024xf32>
    %c0_54 = arith.constant 0 : index
    %c0_55 = arith.constant 0 : index
    %c0_56 = arith.constant 0 : index
    %86 = vector.load %arg4[%c0_54, %c0_55, %c0_56] : memref<9x4x4xf32, #tpu.memory_space<vmem>>, vector<1x4x4xf32>
    %87 = vector.shape_cast %86 : vector<1x4x4xf32> to vector<4x4xf32>
    %cst_57 = arith.constant dense<0.000000e+00> : vector<4x1024xf32>
    %88 = tpu.matmul %87, %85, %cst_57 {dimension_numbers = #tpu.dot_dimension_numbers<[1], [0], [0], [1], [0, 0, 1, 1], [], []>} : vector<4x4xf32>, vector<4x1024xf32>, vector<4x1024xf32> -> vector<4x1024xf32>
    %89 = arith.addf %81, %88 : vector<4x1024xf32>
    %90 = vector.extract_strided_slice %80 {offsets = [0, 1], sizes = [4, 1024], strides = [1, 1]} : vector<4x1090xf32> to vector<4x1024xf32>
    %c1_58 = arith.constant 1 : index
    %c0_59 = arith.constant 0 : index
    %91 = vector.load %arg28[%c1_58, %c0_59] : memref<9x1024xf32, #tpu.memory_space<vmem>>, vector<1x1024xf32>
    %92 = vector.broadcast %91 : vector<1x1024xf32> to vector<4x1024xf32>
    %93 = arith.mulf %90, %92 : vector<4x1024xf32>
    %c1_60 = arith.constant 1 : index
    %c0_61 = arith.constant 0 : index
    %c0_62 = arith.constant 0 : index
    %94 = vector.load %arg4[%c1_60, %c0_61, %c0_62] : memref<9x4x4xf32, #tpu.memory_space<vmem>>, vector<1x4x4xf32>
    %95 = vector.shape_cast %94 : vector<1x4x4xf32> to vector<4x4xf32>
    %cst_63 = arith.constant dense<0.000000e+00> : vector<4x1024xf32>
    %96 = tpu.matmul %95, %93, %cst_63 {dimension_numbers = #tpu.dot_dimension_numbers<[1], [0], [0], [1], [0, 0, 1, 1], [], []>} : vector<4x4xf32>, vector<4x1024xf32>, vector<4x1024xf32> -> vector<4x1024xf32>
    %97 = arith.addf %89, %96 : vector<4x1024xf32>
    %98 = vector.extract_strided_slice %80 {offsets = [0, 2], sizes = [4, 1024], strides = [1, 1]} : vector<4x1090xf32> to vector<4x1024xf32>
    %c2_64 = arith.constant 2 : index
    %c0_65 = arith.constant 0 : index
    %99 = vector.load %arg28[%c2_64, %c0_65] : memref<9x1024xf32, #tpu.memory_space<vmem>>, vector<1x1024xf32>
    %100 = vector.broadcast %99 : vector<1x1024xf32> to vector<4x1024xf32>
    %101 = arith.mulf %98, %100 : vector<4x1024xf32>
    %c2_66 = arith.constant 2 : index
    %c0_67 = arith.constant 0 : index
    %c0_68 = arith.constant 0 : index
    %102 = vector.load %arg4[%c2_66, %c0_67, %c0_68] : memref<9x4x4xf32, #tpu.memory_space<vmem>>, vector<1x4x4xf32>
    %103 = vector.shape_cast %102 : vector<1x4x4xf32> to vector<4x4xf32>
    %cst_69 = arith.constant dense<0.000000e+00> : vector<4x1024xf32>
    %104 = tpu.matmul %103, %101, %cst_69 {dimension_numbers = #tpu.dot_dimension_numbers<[1], [0], [0], [1], [0, 0, 1, 1], [], []>} : vector<4x4xf32>, vector<4x1024xf32>, vector<4x1024xf32> -> vector<4x1024xf32>
    %105 = arith.addf %97, %104 : vector<4x1024xf32>
    %106 = vector.extract_strided_slice %80 {offsets = [0, 32], sizes = [4, 1024], strides = [1, 1]} : vector<4x1090xf32> to vector<4x1024xf32>
    %c3_70 = arith.constant 3 : index
    %c0_71 = arith.constant 0 : index
    %107 = vector.load %arg28[%c3_70, %c0_71] : memref<9x1024xf32, #tpu.memory_space<vmem>>, vector<1x1024xf32>
    %108 = vector.broadcast %107 : vector<1x1024xf32> to vector<4x1024xf32>
    %109 = arith.mulf %106, %108 : vector<4x1024xf32>
    %c3_72 = arith.constant 3 : index
    %c0_73 = arith.constant 0 : index
    %c0_74 = arith.constant 0 : index
    %110 = vector.load %arg4[%c3_72, %c0_73, %c0_74] : memref<9x4x4xf32, #tpu.memory_space<vmem>>, vector<1x4x4xf32>
    %111 = vector.shape_cast %110 : vector<1x4x4xf32> to vector<4x4xf32>
    %cst_75 = arith.constant dense<0.000000e+00> : vector<4x1024xf32>
    %112 = tpu.matmul %111, %109, %cst_75 {dimension_numbers = #tpu.dot_dimension_numbers<[1], [0], [0], [1], [0, 0, 1, 1], [], []>} : vector<4x4xf32>, vector<4x1024xf32>, vector<4x1024xf32> -> vector<4x1024xf32>
    %113 = arith.addf %105, %112 : vector<4x1024xf32>
    %114 = vector.extract_strided_slice %80 {offsets = [0, 33], sizes = [4, 1024], strides = [1, 1]} : vector<4x1090xf32> to vector<4x1024xf32>
    %c4_76 = arith.constant 4 : index
    %c0_77 = arith.constant 0 : index
    %c0_78 = arith.constant 0 : index
    %115 = vector.load %arg4[%c4_76, %c0_77, %c0_78] : memref<9x4x4xf32, #tpu.memory_space<vmem>>, vector<1x4x4xf32>
    %116 = vector.shape_cast %115 : vector<1x4x4xf32> to vector<4x4xf32>
    %cst_79 = arith.constant dense<0.000000e+00> : vector<4x1024xf32>
    %117 = tpu.matmul %116, %114, %cst_79 {dimension_numbers = #tpu.dot_dimension_numbers<[1], [0], [0], [1], [0, 0, 1, 1], [], []>} : vector<4x4xf32>, vector<4x1024xf32>, vector<4x1024xf32> -> vector<4x1024xf32>
    %118 = arith.addf %113, %117 : vector<4x1024xf32>
    %119 = vector.extract_strided_slice %80 {offsets = [0, 34], sizes = [4, 1024], strides = [1, 1]} : vector<4x1090xf32> to vector<4x1024xf32>
    %c5_80 = arith.constant 5 : index
    %c0_81 = arith.constant 0 : index
    %120 = vector.load %arg28[%c5_80, %c0_81] : memref<9x1024xf32, #tpu.memory_space<vmem>>, vector<1x1024xf32>
    %121 = vector.broadcast %120 : vector<1x1024xf32> to vector<4x1024xf32>
    %122 = arith.mulf %119, %121 : vector<4x1024xf32>
    %c5_82 = arith.constant 5 : index
    %c0_83 = arith.constant 0 : index
    %c0_84 = arith.constant 0 : index
    %123 = vector.load %arg4[%c5_82, %c0_83, %c0_84] : memref<9x4x4xf32, #tpu.memory_space<vmem>>, vector<1x4x4xf32>
    %124 = vector.shape_cast %123 : vector<1x4x4xf32> to vector<4x4xf32>
    %cst_85 = arith.constant dense<0.000000e+00> : vector<4x1024xf32>
    %125 = tpu.matmul %124, %122, %cst_85 {dimension_numbers = #tpu.dot_dimension_numbers<[1], [0], [0], [1], [0, 0, 1, 1], [], []>} : vector<4x4xf32>, vector<4x1024xf32>, vector<4x1024xf32> -> vector<4x1024xf32>
    %126 = arith.addf %118, %125 : vector<4x1024xf32>
    %127 = vector.extract_strided_slice %80 {offsets = [0, 64], sizes = [4, 1024], strides = [1, 1]} : vector<4x1090xf32> to vector<4x1024xf32>
    %c6_86 = arith.constant 6 : index
    %c0_87 = arith.constant 0 : index
    %128 = vector.load %arg28[%c6_86, %c0_87] : memref<9x1024xf32, #tpu.memory_space<vmem>>, vector<1x1024xf32>
    %129 = vector.broadcast %128 : vector<1x1024xf32> to vector<4x1024xf32>
    %130 = arith.mulf %127, %129 : vector<4x1024xf32>
    %c6_88 = arith.constant 6 : index
    %c0_89 = arith.constant 0 : index
    %c0_90 = arith.constant 0 : index
    %131 = vector.load %arg4[%c6_88, %c0_89, %c0_90] : memref<9x4x4xf32, #tpu.memory_space<vmem>>, vector<1x4x4xf32>
    %132 = vector.shape_cast %131 : vector<1x4x4xf32> to vector<4x4xf32>
    %cst_91 = arith.constant dense<0.000000e+00> : vector<4x1024xf32>
    %133 = tpu.matmul %132, %130, %cst_91 {dimension_numbers = #tpu.dot_dimension_numbers<[1], [0], [0], [1], [0, 0, 1, 1], [], []>} : vector<4x4xf32>, vector<4x1024xf32>, vector<4x1024xf32> -> vector<4x1024xf32>
    %134 = arith.addf %126, %133 : vector<4x1024xf32>
    %135 = vector.extract_strided_slice %80 {offsets = [0, 65], sizes = [4, 1024], strides = [1, 1]} : vector<4x1090xf32> to vector<4x1024xf32>
    %c7_92 = arith.constant 7 : index
    %c0_93 = arith.constant 0 : index
    %136 = vector.load %arg28[%c7_92, %c0_93] : memref<9x1024xf32, #tpu.memory_space<vmem>>, vector<1x1024xf32>
    %137 = vector.broadcast %136 : vector<1x1024xf32> to vector<4x1024xf32>
    %138 = arith.mulf %135, %137 : vector<4x1024xf32>
    %c7_94 = arith.constant 7 : index
    %c0_95 = arith.constant 0 : index
    %c0_96 = arith.constant 0 : index
    %139 = vector.load %arg4[%c7_94, %c0_95, %c0_96] : memref<9x4x4xf32, #tpu.memory_space<vmem>>, vector<1x4x4xf32>
    %140 = vector.shape_cast %139 : vector<1x4x4xf32> to vector<4x4xf32>
    %cst_97 = arith.constant dense<0.000000e+00> : vector<4x1024xf32>
    %141 = tpu.matmul %140, %138, %cst_97 {dimension_numbers = #tpu.dot_dimension_numbers<[1], [0], [0], [1], [0, 0, 1, 1], [], []>} : vector<4x4xf32>, vector<4x1024xf32>, vector<4x1024xf32> -> vector<4x1024xf32>
    %142 = arith.addf %134, %141 : vector<4x1024xf32>
    %143 = vector.extract_strided_slice %80 {offsets = [0, 66], sizes = [4, 1024], strides = [1, 1]} : vector<4x1090xf32> to vector<4x1024xf32>
    %c8_98 = arith.constant 8 : index
    %c0_99 = arith.constant 0 : index
    %144 = vector.load %arg28[%c8_98, %c0_99] : memref<9x1024xf32, #tpu.memory_space<vmem>>, vector<1x1024xf32>
    %145 = vector.broadcast %144 : vector<1x1024xf32> to vector<4x1024xf32>
    %146 = arith.mulf %143, %145 : vector<4x1024xf32>
    %c8_100 = arith.constant 8 : index
    %c0_101 = arith.constant 0 : index
    %c0_102 = arith.constant 0 : index
    %147 = vector.load %arg4[%c8_100, %c0_101, %c0_102] : memref<9x4x4xf32, #tpu.memory_space<vmem>>, vector<1x4x4xf32>
    %148 = vector.shape_cast %147 : vector<1x4x4xf32> to vector<4x4xf32>
    %cst_103 = arith.constant dense<0.000000e+00> : vector<4x1024xf32>
    %149 = tpu.matmul %148, %146, %cst_103 {dimension_numbers = #tpu.dot_dimension_numbers<[1], [0], [0], [1], [0, 0, 1, 1], [], []>} : vector<4x4xf32>, vector<4x1024xf32>, vector<4x1024xf32> -> vector<4x1024xf32>
    %150 = arith.addf %142, %149 : vector<4x1024xf32>
    %c0_104 = arith.constant 0 : index
    %c0_105 = arith.constant 0 : index
    %151 = vector.load %arg5[%c0_104, %c0_105] : memref<4x1xf32, #tpu.memory_space<vmem>>, vector<4x1xf32>
    %152 = vector.broadcast %151 : vector<4x1xf32> to vector<4x1024xf32>
    %153 = arith.addf %150, %152 : vector<4x1024xf32>
    %cst_106 = arith.constant 0.000000e+00 : f32
    %154 = vector.broadcast %cst_106 : f32 to vector<4x1024xf32>
    %155 = arith.maximumf %153, %154 : vector<4x1024xf32>
    %156 = vector.extract_strided_slice %155 {offsets = [0, 1], sizes = [4, 1023], strides = [1, 1]} : vector<4x1024xf32> to vector<4x1023xf32>
    %cst_107 = arith.constant 0.000000e+00 : f32
    %157 = vector.broadcast %cst_107 : f32 to vector<4x1xf32>
    %158 = tpu.concatenate %156, %157 in 1 : vector<4x1023xf32>, vector<4x1xf32> -> vector<4x1024xf32>
    %159 = arith.maximumf %155, %158 : vector<4x1024xf32>
    %160 = vector.extract_strided_slice %159 {offsets = [0, 32], sizes = [4, 992], strides = [1, 1]} : vector<4x1024xf32> to vector<4x992xf32>
    %cst_108 = arith.constant 0.000000e+00 : f32
    %161 = vector.broadcast %cst_108 : f32 to vector<4x32xf32>
    %162 = tpu.concatenate %160, %161 in 1 : vector<4x992xf32>, vector<4x32xf32> -> vector<4x1024xf32>
    %163 = arith.maximumf %159, %162 : vector<4x1024xf32>
    %c0_109 = arith.constant 0 : index
    %c0_110 = arith.constant 0 : index
    %164 = vector.load %arg33[%c0_109, %c0_110] : memref<1024x256xf32, #tpu.memory_space<vmem>>, vector<1024x256xf32>
    %cst_111 = arith.constant dense<0.000000e+00> : vector<4x256xf32>
    %165 = tpu.matmul %163, %164, %cst_111 {dimension_numbers = #tpu.dot_dimension_numbers<[1], [0], [0], [1], [0, 0, 1, 1], [], []>} : vector<4x1024xf32>, vector<1024x256xf32>, vector<4x256xf32> -> vector<4x256xf32>
    %cst_112 = arith.constant 0.000000e+00 : f32
    %166 = vector.broadcast %cst_112 : f32 to vector<4x17xf32>
    %167 = tpu.concatenate %166, %165, %166 in 1 : vector<4x17xf32>, vector<4x256xf32>, vector<4x17xf32> -> vector<4x290xf32>
    %cst_113 = arith.constant 0.000000e+00 : f32
    %168 = vector.broadcast %cst_113 : f32 to vector<8x256xf32>
    %169 = vector.extract_strided_slice %167 {offsets = [0, 0], sizes = [4, 256], strides = [1, 1]} : vector<4x290xf32> to vector<4x256xf32>
    %c0_114 = arith.constant 0 : index
    %c0_115 = arith.constant 0 : index
    %170 = vector.load %arg29[%c0_114, %c0_115] : memref<9x256xf32, #tpu.memory_space<vmem>>, vector<1x256xf32>
    %171 = vector.broadcast %170 : vector<1x256xf32> to vector<4x256xf32>
    %172 = arith.mulf %169, %171 : vector<4x256xf32>
    %c0_116 = arith.constant 0 : index
    %c0_117 = arith.constant 0 : index
    %c0_118 = arith.constant 0 : index
    %173 = vector.load %arg6[%c0_116, %c0_117, %c0_118] : memref<9x8x4xf32, #tpu.memory_space<vmem>>, vector<1x8x4xf32>
    %174 = vector.shape_cast %173 : vector<1x8x4xf32> to vector<8x4xf32>
    %cst_119 = arith.constant dense<0.000000e+00> : vector<8x256xf32>
    %175 = tpu.matmul %174, %172, %cst_119 {dimension_numbers = #tpu.dot_dimension_numbers<[1], [0], [0], [1], [0, 0, 1, 1], [], []>} : vector<8x4xf32>, vector<4x256xf32>, vector<8x256xf32> -> vector<8x256xf32>
    %176 = arith.addf %168, %175 : vector<8x256xf32>
    %177 = vector.extract_strided_slice %167 {offsets = [0, 1], sizes = [4, 256], strides = [1, 1]} : vector<4x290xf32> to vector<4x256xf32>
    %c1_120 = arith.constant 1 : index
    %c0_121 = arith.constant 0 : index
    %178 = vector.load %arg29[%c1_120, %c0_121] : memref<9x256xf32, #tpu.memory_space<vmem>>, vector<1x256xf32>
    %179 = vector.broadcast %178 : vector<1x256xf32> to vector<4x256xf32>
    %180 = arith.mulf %177, %179 : vector<4x256xf32>
    %c1_122 = arith.constant 1 : index
    %c0_123 = arith.constant 0 : index
    %c0_124 = arith.constant 0 : index
    %181 = vector.load %arg6[%c1_122, %c0_123, %c0_124] : memref<9x8x4xf32, #tpu.memory_space<vmem>>, vector<1x8x4xf32>
    %182 = vector.shape_cast %181 : vector<1x8x4xf32> to vector<8x4xf32>
    %cst_125 = arith.constant dense<0.000000e+00> : vector<8x256xf32>
    %183 = tpu.matmul %182, %180, %cst_125 {dimension_numbers = #tpu.dot_dimension_numbers<[1], [0], [0], [1], [0, 0, 1, 1], [], []>} : vector<8x4xf32>, vector<4x256xf32>, vector<8x256xf32> -> vector<8x256xf32>
    %184 = arith.addf %176, %183 : vector<8x256xf32>
    %185 = vector.extract_strided_slice %167 {offsets = [0, 2], sizes = [4, 256], strides = [1, 1]} : vector<4x290xf32> to vector<4x256xf32>
    %c2_126 = arith.constant 2 : index
    %c0_127 = arith.constant 0 : index
    %186 = vector.load %arg29[%c2_126, %c0_127] : memref<9x256xf32, #tpu.memory_space<vmem>>, vector<1x256xf32>
    %187 = vector.broadcast %186 : vector<1x256xf32> to vector<4x256xf32>
    %188 = arith.mulf %185, %187 : vector<4x256xf32>
    %c2_128 = arith.constant 2 : index
    %c0_129 = arith.constant 0 : index
    %c0_130 = arith.constant 0 : index
    %189 = vector.load %arg6[%c2_128, %c0_129, %c0_130] : memref<9x8x4xf32, #tpu.memory_space<vmem>>, vector<1x8x4xf32>
    %190 = vector.shape_cast %189 : vector<1x8x4xf32> to vector<8x4xf32>
    %cst_131 = arith.constant dense<0.000000e+00> : vector<8x256xf32>
    %191 = tpu.matmul %190, %188, %cst_131 {dimension_numbers = #tpu.dot_dimension_numbers<[1], [0], [0], [1], [0, 0, 1, 1], [], []>} : vector<8x4xf32>, vector<4x256xf32>, vector<8x256xf32> -> vector<8x256xf32>
    %192 = arith.addf %184, %191 : vector<8x256xf32>
    %193 = vector.extract_strided_slice %167 {offsets = [0, 16], sizes = [4, 256], strides = [1, 1]} : vector<4x290xf32> to vector<4x256xf32>
    %c3_132 = arith.constant 3 : index
    %c0_133 = arith.constant 0 : index
    %194 = vector.load %arg29[%c3_132, %c0_133] : memref<9x256xf32, #tpu.memory_space<vmem>>, vector<1x256xf32>
    %195 = vector.broadcast %194 : vector<1x256xf32> to vector<4x256xf32>
    %196 = arith.mulf %193, %195 : vector<4x256xf32>
    %c3_134 = arith.constant 3 : index
    %c0_135 = arith.constant 0 : index
    %c0_136 = arith.constant 0 : index
    %197 = vector.load %arg6[%c3_134, %c0_135, %c0_136] : memref<9x8x4xf32, #tpu.memory_space<vmem>>, vector<1x8x4xf32>
    %198 = vector.shape_cast %197 : vector<1x8x4xf32> to vector<8x4xf32>
    %cst_137 = arith.constant dense<0.000000e+00> : vector<8x256xf32>
    %199 = tpu.matmul %198, %196, %cst_137 {dimension_numbers = #tpu.dot_dimension_numbers<[1], [0], [0], [1], [0, 0, 1, 1], [], []>} : vector<8x4xf32>, vector<4x256xf32>, vector<8x256xf32> -> vector<8x256xf32>
    %200 = arith.addf %192, %199 : vector<8x256xf32>
    %201 = vector.extract_strided_slice %167 {offsets = [0, 17], sizes = [4, 256], strides = [1, 1]} : vector<4x290xf32> to vector<4x256xf32>
    %c4_138 = arith.constant 4 : index
    %c0_139 = arith.constant 0 : index
    %c0_140 = arith.constant 0 : index
    %202 = vector.load %arg6[%c4_138, %c0_139, %c0_140] : memref<9x8x4xf32, #tpu.memory_space<vmem>>, vector<1x8x4xf32>
    %203 = vector.shape_cast %202 : vector<1x8x4xf32> to vector<8x4xf32>
    %cst_141 = arith.constant dense<0.000000e+00> : vector<8x256xf32>
    %204 = tpu.matmul %203, %201, %cst_141 {dimension_numbers = #tpu.dot_dimension_numbers<[1], [0], [0], [1], [0, 0, 1, 1], [], []>} : vector<8x4xf32>, vector<4x256xf32>, vector<8x256xf32> -> vector<8x256xf32>
    %205 = arith.addf %200, %204 : vector<8x256xf32>
    %206 = vector.extract_strided_slice %167 {offsets = [0, 18], sizes = [4, 256], strides = [1, 1]} : vector<4x290xf32> to vector<4x256xf32>
    %c5_142 = arith.constant 5 : index
    %c0_143 = arith.constant 0 : index
    %207 = vector.load %arg29[%c5_142, %c0_143] : memref<9x256xf32, #tpu.memory_space<vmem>>, vector<1x256xf32>
    %208 = vector.broadcast %207 : vector<1x256xf32> to vector<4x256xf32>
    %209 = arith.mulf %206, %208 : vector<4x256xf32>
    %c5_144 = arith.constant 5 : index
    %c0_145 = arith.constant 0 : index
    %c0_146 = arith.constant 0 : index
    %210 = vector.load %arg6[%c5_144, %c0_145, %c0_146] : memref<9x8x4xf32, #tpu.memory_space<vmem>>, vector<1x8x4xf32>
    %211 = vector.shape_cast %210 : vector<1x8x4xf32> to vector<8x4xf32>
    %cst_147 = arith.constant dense<0.000000e+00> : vector<8x256xf32>
    %212 = tpu.matmul %211, %209, %cst_147 {dimension_numbers = #tpu.dot_dimension_numbers<[1], [0], [0], [1], [0, 0, 1, 1], [], []>} : vector<8x4xf32>, vector<4x256xf32>, vector<8x256xf32> -> vector<8x256xf32>
    %213 = arith.addf %205, %212 : vector<8x256xf32>
    %214 = vector.extract_strided_slice %167 {offsets = [0, 32], sizes = [4, 256], strides = [1, 1]} : vector<4x290xf32> to vector<4x256xf32>
    %c6_148 = arith.constant 6 : index
    %c0_149 = arith.constant 0 : index
    %215 = vector.load %arg29[%c6_148, %c0_149] : memref<9x256xf32, #tpu.memory_space<vmem>>, vector<1x256xf32>
    %216 = vector.broadcast %215 : vector<1x256xf32> to vector<4x256xf32>
    %217 = arith.mulf %214, %216 : vector<4x256xf32>
    %c6_150 = arith.constant 6 : index
    %c0_151 = arith.constant 0 : index
    %c0_152 = arith.constant 0 : index
    %218 = vector.load %arg6[%c6_150, %c0_151, %c0_152] : memref<9x8x4xf32, #tpu.memory_space<vmem>>, vector<1x8x4xf32>
    %219 = vector.shape_cast %218 : vector<1x8x4xf32> to vector<8x4xf32>
    %cst_153 = arith.constant dense<0.000000e+00> : vector<8x256xf32>
    %220 = tpu.matmul %219, %217, %cst_153 {dimension_numbers = #tpu.dot_dimension_numbers<[1], [0], [0], [1], [0, 0, 1, 1], [], []>} : vector<8x4xf32>, vector<4x256xf32>, vector<8x256xf32> -> vector<8x256xf32>
    %221 = arith.addf %213, %220 : vector<8x256xf32>
    %222 = vector.extract_strided_slice %167 {offsets = [0, 33], sizes = [4, 256], strides = [1, 1]} : vector<4x290xf32> to vector<4x256xf32>
    %c7_154 = arith.constant 7 : index
    %c0_155 = arith.constant 0 : index
    %223 = vector.load %arg29[%c7_154, %c0_155] : memref<9x256xf32, #tpu.memory_space<vmem>>, vector<1x256xf32>
    %224 = vector.broadcast %223 : vector<1x256xf32> to vector<4x256xf32>
    %225 = arith.mulf %222, %224 : vector<4x256xf32>
    %c7_156 = arith.constant 7 : index
    %c0_157 = arith.constant 0 : index
    %c0_158 = arith.constant 0 : index
    %226 = vector.load %arg6[%c7_156, %c0_157, %c0_158] : memref<9x8x4xf32, #tpu.memory_space<vmem>>, vector<1x8x4xf32>
    %227 = vector.shape_cast %226 : vector<1x8x4xf32> to vector<8x4xf32>
    %cst_159 = arith.constant dense<0.000000e+00> : vector<8x256xf32>
    %228 = tpu.matmul %227, %225, %cst_159 {dimension_numbers = #tpu.dot_dimension_numbers<[1], [0], [0], [1], [0, 0, 1, 1], [], []>} : vector<8x4xf32>, vector<4x256xf32>, vector<8x256xf32> -> vector<8x256xf32>
    %229 = arith.addf %221, %228 : vector<8x256xf32>
    %230 = vector.extract_strided_slice %167 {offsets = [0, 34], sizes = [4, 256], strides = [1, 1]} : vector<4x290xf32> to vector<4x256xf32>
    %c8_160 = arith.constant 8 : index
    %c0_161 = arith.constant 0 : index
    %231 = vector.load %arg29[%c8_160, %c0_161] : memref<9x256xf32, #tpu.memory_space<vmem>>, vector<1x256xf32>
    %232 = vector.broadcast %231 : vector<1x256xf32> to vector<4x256xf32>
    %233 = arith.mulf %230, %232 : vector<4x256xf32>
    %c8_162 = arith.constant 8 : index
    %c0_163 = arith.constant 0 : index
    %c0_164 = arith.constant 0 : index
    %234 = vector.load %arg6[%c8_162, %c0_163, %c0_164] : memref<9x8x4xf32, #tpu.memory_space<vmem>>, vector<1x8x4xf32>
    %235 = vector.shape_cast %234 : vector<1x8x4xf32> to vector<8x4xf32>
    %cst_165 = arith.constant dense<0.000000e+00> : vector<8x256xf32>
    %236 = tpu.matmul %235, %233, %cst_165 {dimension_numbers = #tpu.dot_dimension_numbers<[1], [0], [0], [1], [0, 0, 1, 1], [], []>} : vector<8x4xf32>, vector<4x256xf32>, vector<8x256xf32> -> vector<8x256xf32>
    %237 = arith.addf %229, %236 : vector<8x256xf32>
    %c0_166 = arith.constant 0 : index
    %c0_167 = arith.constant 0 : index
    %238 = vector.load %arg7[%c0_166, %c0_167] : memref<8x1xf32, #tpu.memory_space<vmem>>, vector<8x1xf32>
    %239 = vector.broadcast %238 : vector<8x1xf32> to vector<8x256xf32>
    %240 = arith.addf %237, %239 : vector<8x256xf32>
    %cst_168 = arith.constant 0.000000e+00 : f32
    %241 = vector.broadcast %cst_168 : f32 to vector<8x256xf32>
    %242 = arith.maximumf %240, %241 : vector<8x256xf32>
    %cst_169 = arith.constant 0.000000e+00 : f32
    %243 = vector.broadcast %cst_169 : f32 to vector<8x17xf32>
    %244 = tpu.concatenate %243, %242, %243 in 1 : vector<8x17xf32>, vector<8x256xf32>, vector<8x17xf32> -> vector<8x290xf32>
    %cst_170 = arith.constant 0.000000e+00 : f32
    %245 = vector.broadcast %cst_170 : f32 to vector<8x256xf32>
    %246 = vector.extract_strided_slice %244 {offsets = [0, 0], sizes = [8, 256], strides = [1, 1]} : vector<8x290xf32> to vector<8x256xf32>
    %c0_171 = arith.constant 0 : index
    %c0_172 = arith.constant 0 : index
    %247 = vector.load %arg29[%c0_171, %c0_172] : memref<9x256xf32, #tpu.memory_space<vmem>>, vector<1x256xf32>
    %248 = vector.broadcast %247 : vector<1x256xf32> to vector<8x256xf32>
    %249 = arith.mulf %246, %248 : vector<8x256xf32>
    %c0_173 = arith.constant 0 : index
    %c0_174 = arith.constant 0 : index
    %c0_175 = arith.constant 0 : index
    %250 = vector.load %arg8[%c0_173, %c0_174, %c0_175] : memref<9x8x8xf32, #tpu.memory_space<vmem>>, vector<1x8x8xf32>
    %251 = vector.shape_cast %250 : vector<1x8x8xf32> to vector<8x8xf32>
    %cst_176 = arith.constant dense<0.000000e+00> : vector<8x256xf32>
    %252 = tpu.matmul %251, %249, %cst_176 {dimension_numbers = #tpu.dot_dimension_numbers<[1], [0], [0], [1], [0, 0, 1, 1], [], []>} : vector<8x8xf32>, vector<8x256xf32>, vector<8x256xf32> -> vector<8x256xf32>
    %253 = arith.addf %245, %252 : vector<8x256xf32>
    %254 = vector.extract_strided_slice %244 {offsets = [0, 1], sizes = [8, 256], strides = [1, 1]} : vector<8x290xf32> to vector<8x256xf32>
    %c1_177 = arith.constant 1 : index
    %c0_178 = arith.constant 0 : index
    %255 = vector.load %arg29[%c1_177, %c0_178] : memref<9x256xf32, #tpu.memory_space<vmem>>, vector<1x256xf32>
    %256 = vector.broadcast %255 : vector<1x256xf32> to vector<8x256xf32>
    %257 = arith.mulf %254, %256 : vector<8x256xf32>
    %c1_179 = arith.constant 1 : index
    %c0_180 = arith.constant 0 : index
    %c0_181 = arith.constant 0 : index
    %258 = vector.load %arg8[%c1_179, %c0_180, %c0_181] : memref<9x8x8xf32, #tpu.memory_space<vmem>>, vector<1x8x8xf32>
    %259 = vector.shape_cast %258 : vector<1x8x8xf32> to vector<8x8xf32>
    %cst_182 = arith.constant dense<0.000000e+00> : vector<8x256xf32>
    %260 = tpu.matmul %259, %257, %cst_182 {dimension_numbers = #tpu.dot_dimension_numbers<[1], [0], [0], [1], [0, 0, 1, 1], [], []>} : vector<8x8xf32>, vector<8x256xf32>, vector<8x256xf32> -> vector<8x256xf32>
    %261 = arith.addf %253, %260 : vector<8x256xf32>
    %262 = vector.extract_strided_slice %244 {offsets = [0, 2], sizes = [8, 256], strides = [1, 1]} : vector<8x290xf32> to vector<8x256xf32>
    %c2_183 = arith.constant 2 : index
    %c0_184 = arith.constant 0 : index
    %263 = vector.load %arg29[%c2_183, %c0_184] : memref<9x256xf32, #tpu.memory_space<vmem>>, vector<1x256xf32>
    %264 = vector.broadcast %263 : vector<1x256xf32> to vector<8x256xf32>
    %265 = arith.mulf %262, %264 : vector<8x256xf32>
    %c2_185 = arith.constant 2 : index
    %c0_186 = arith.constant 0 : index
    %c0_187 = arith.constant 0 : index
    %266 = vector.load %arg8[%c2_185, %c0_186, %c0_187] : memref<9x8x8xf32, #tpu.memory_space<vmem>>, vector<1x8x8xf32>
    %267 = vector.shape_cast %266 : vector<1x8x8xf32> to vector<8x8xf32>
    %cst_188 = arith.constant dense<0.000000e+00> : vector<8x256xf32>
    %268 = tpu.matmul %267, %265, %cst_188 {dimension_numbers = #tpu.dot_dimension_numbers<[1], [0], [0], [1], [0, 0, 1, 1], [], []>} : vector<8x8xf32>, vector<8x256xf32>, vector<8x256xf32> -> vector<8x256xf32>
    %269 = arith.addf %261, %268 : vector<8x256xf32>
    %270 = vector.extract_strided_slice %244 {offsets = [0, 16], sizes = [8, 256], strides = [1, 1]} : vector<8x290xf32> to vector<8x256xf32>
    %c3_189 = arith.constant 3 : index
    %c0_190 = arith.constant 0 : index
    %271 = vector.load %arg29[%c3_189, %c0_190] : memref<9x256xf32, #tpu.memory_space<vmem>>, vector<1x256xf32>
    %272 = vector.broadcast %271 : vector<1x256xf32> to vector<8x256xf32>
    %273 = arith.mulf %270, %272 : vector<8x256xf32>
    %c3_191 = arith.constant 3 : index
    %c0_192 = arith.constant 0 : index
    %c0_193 = arith.constant 0 : index
    %274 = vector.load %arg8[%c3_191, %c0_192, %c0_193] : memref<9x8x8xf32, #tpu.memory_space<vmem>>, vector<1x8x8xf32>
    %275 = vector.shape_cast %274 : vector<1x8x8xf32> to vector<8x8xf32>
    %cst_194 = arith.constant dense<0.000000e+00> : vector<8x256xf32>
    %276 = tpu.matmul %275, %273, %cst_194 {dimension_numbers = #tpu.dot_dimension_numbers<[1], [0], [0], [1], [0, 0, 1, 1], [], []>} : vector<8x8xf32>, vector<8x256xf32>, vector<8x256xf32> -> vector<8x256xf32>
    %277 = arith.addf %269, %276 : vector<8x256xf32>
    %278 = vector.extract_strided_slice %244 {offsets = [0, 17], sizes = [8, 256], strides = [1, 1]} : vector<8x290xf32> to vector<8x256xf32>
    %c4_195 = arith.constant 4 : index
    %c0_196 = arith.constant 0 : index
    %c0_197 = arith.constant 0 : index
    %279 = vector.load %arg8[%c4_195, %c0_196, %c0_197] : memref<9x8x8xf32, #tpu.memory_space<vmem>>, vector<1x8x8xf32>
    %280 = vector.shape_cast %279 : vector<1x8x8xf32> to vector<8x8xf32>
    %cst_198 = arith.constant dense<0.000000e+00> : vector<8x256xf32>
    %281 = tpu.matmul %280, %278, %cst_198 {dimension_numbers = #tpu.dot_dimension_numbers<[1], [0], [0], [1], [0, 0, 1, 1], [], []>} : vector<8x8xf32>, vector<8x256xf32>, vector<8x256xf32> -> vector<8x256xf32>
    %282 = arith.addf %277, %281 : vector<8x256xf32>
    %283 = vector.extract_strided_slice %244 {offsets = [0, 18], sizes = [8, 256], strides = [1, 1]} : vector<8x290xf32> to vector<8x256xf32>
    %c5_199 = arith.constant 5 : index
    %c0_200 = arith.constant 0 : index
    %284 = vector.load %arg29[%c5_199, %c0_200] : memref<9x256xf32, #tpu.memory_space<vmem>>, vector<1x256xf32>
    %285 = vector.broadcast %284 : vector<1x256xf32> to vector<8x256xf32>
    %286 = arith.mulf %283, %285 : vector<8x256xf32>
    %c5_201 = arith.constant 5 : index
    %c0_202 = arith.constant 0 : index
    %c0_203 = arith.constant 0 : index
    %287 = vector.load %arg8[%c5_201, %c0_202, %c0_203] : memref<9x8x8xf32, #tpu.memory_space<vmem>>, vector<1x8x8xf32>
    %288 = vector.shape_cast %287 : vector<1x8x8xf32> to vector<8x8xf32>
    %cst_204 = arith.constant dense<0.000000e+00> : vector<8x256xf32>
    %289 = tpu.matmul %288, %286, %cst_204 {dimension_numbers = #tpu.dot_dimension_numbers<[1], [0], [0], [1], [0, 0, 1, 1], [], []>} : vector<8x8xf32>, vector<8x256xf32>, vector<8x256xf32> -> vector<8x256xf32>
    %290 = arith.addf %282, %289 : vector<8x256xf32>
    %291 = vector.extract_strided_slice %244 {offsets = [0, 32], sizes = [8, 256], strides = [1, 1]} : vector<8x290xf32> to vector<8x256xf32>
    %c6_205 = arith.constant 6 : index
    %c0_206 = arith.constant 0 : index
    %292 = vector.load %arg29[%c6_205, %c0_206] : memref<9x256xf32, #tpu.memory_space<vmem>>, vector<1x256xf32>
    %293 = vector.broadcast %292 : vector<1x256xf32> to vector<8x256xf32>
    %294 = arith.mulf %291, %293 : vector<8x256xf32>
    %c6_207 = arith.constant 6 : index
    %c0_208 = arith.constant 0 : index
    %c0_209 = arith.constant 0 : index
    %295 = vector.load %arg8[%c6_207, %c0_208, %c0_209] : memref<9x8x8xf32, #tpu.memory_space<vmem>>, vector<1x8x8xf32>
    %296 = vector.shape_cast %295 : vector<1x8x8xf32> to vector<8x8xf32>
    %cst_210 = arith.constant dense<0.000000e+00> : vector<8x256xf32>
    %297 = tpu.matmul %296, %294, %cst_210 {dimension_numbers = #tpu.dot_dimension_numbers<[1], [0], [0], [1], [0, 0, 1, 1], [], []>} : vector<8x8xf32>, vector<8x256xf32>, vector<8x256xf32> -> vector<8x256xf32>
    %298 = arith.addf %290, %297 : vector<8x256xf32>
    %299 = vector.extract_strided_slice %244 {offsets = [0, 33], sizes = [8, 256], strides = [1, 1]} : vector<8x290xf32> to vector<8x256xf32>
    %c7_211 = arith.constant 7 : index
    %c0_212 = arith.constant 0 : index
    %300 = vector.load %arg29[%c7_211, %c0_212] : memref<9x256xf32, #tpu.memory_space<vmem>>, vector<1x256xf32>
    %301 = vector.broadcast %300 : vector<1x256xf32> to vector<8x256xf32>
    %302 = arith.mulf %299, %301 : vector<8x256xf32>
    %c7_213 = arith.constant 7 : index
    %c0_214 = arith.constant 0 : index
    %c0_215 = arith.constant 0 : index
    %303 = vector.load %arg8[%c7_213, %c0_214, %c0_215] : memref<9x8x8xf32, #tpu.memory_space<vmem>>, vector<1x8x8xf32>
    %304 = vector.shape_cast %303 : vector<1x8x8xf32> to vector<8x8xf32>
    %cst_216 = arith.constant dense<0.000000e+00> : vector<8x256xf32>
    %305 = tpu.matmul %304, %302, %cst_216 {dimension_numbers = #tpu.dot_dimension_numbers<[1], [0], [0], [1], [0, 0, 1, 1], [], []>} : vector<8x8xf32>, vector<8x256xf32>, vector<8x256xf32> -> vector<8x256xf32>
    %306 = arith.addf %298, %305 : vector<8x256xf32>
    %307 = vector.extract_strided_slice %244 {offsets = [0, 34], sizes = [8, 256], strides = [1, 1]} : vector<8x290xf32> to vector<8x256xf32>
    %c8_217 = arith.constant 8 : index
    %c0_218 = arith.constant 0 : index
    %308 = vector.load %arg29[%c8_217, %c0_218] : memref<9x256xf32, #tpu.memory_space<vmem>>, vector<1x256xf32>
    %309 = vector.broadcast %308 : vector<1x256xf32> to vector<8x256xf32>
    %310 = arith.mulf %307, %309 : vector<8x256xf32>
    %c8_219 = arith.constant 8 : index
    %c0_220 = arith.constant 0 : index
    %c0_221 = arith.constant 0 : index
    %311 = vector.load %arg8[%c8_219, %c0_220, %c0_221] : memref<9x8x8xf32, #tpu.memory_space<vmem>>, vector<1x8x8xf32>
    %312 = vector.shape_cast %311 : vector<1x8x8xf32> to vector<8x8xf32>
    %cst_222 = arith.constant dense<0.000000e+00> : vector<8x256xf32>
    %313 = tpu.matmul %312, %310, %cst_222 {dimension_numbers = #tpu.dot_dimension_numbers<[1], [0], [0], [1], [0, 0, 1, 1], [], []>} : vector<8x8xf32>, vector<8x256xf32>, vector<8x256xf32> -> vector<8x256xf32>
    %314 = arith.addf %306, %313 : vector<8x256xf32>
    %c0_223 = arith.constant 0 : index
    %c0_224 = arith.constant 0 : index
    %315 = vector.load %arg9[%c0_223, %c0_224] : memref<8x1xf32, #tpu.memory_space<vmem>>, vector<8x1xf32>
    %316 = vector.broadcast %315 : vector<8x1xf32> to vector<8x256xf32>
    %317 = arith.addf %314, %316 : vector<8x256xf32>
    %cst_225 = arith.constant 0.000000e+00 : f32
    %318 = vector.broadcast %cst_225 : f32 to vector<8x256xf32>
    %319 = arith.maximumf %317, %318 : vector<8x256xf32>
    %320 = vector.extract_strided_slice %319 {offsets = [0, 1], sizes = [8, 255], strides = [1, 1]} : vector<8x256xf32> to vector<8x255xf32>
    %cst_226 = arith.constant 0.000000e+00 : f32
    %321 = vector.broadcast %cst_226 : f32 to vector<8x1xf32>
    %322 = tpu.concatenate %320, %321 in 1 : vector<8x255xf32>, vector<8x1xf32> -> vector<8x256xf32>
    %323 = arith.maximumf %319, %322 : vector<8x256xf32>
    %324 = vector.extract_strided_slice %323 {offsets = [0, 16], sizes = [8, 240], strides = [1, 1]} : vector<8x256xf32> to vector<8x240xf32>
    %cst_227 = arith.constant 0.000000e+00 : f32
    %325 = vector.broadcast %cst_227 : f32 to vector<8x16xf32>
    %326 = tpu.concatenate %324, %325 in 1 : vector<8x240xf32>, vector<8x16xf32> -> vector<8x256xf32>
    %327 = arith.maximumf %323, %326 : vector<8x256xf32>
    %c0_228 = arith.constant 0 : index
    %c0_229 = arith.constant 0 : index
    %328 = vector.load %arg34[%c0_228, %c0_229] : memref<256x64xf32, #tpu.memory_space<vmem>>, vector<256x64xf32>
    %cst_230 = arith.constant dense<0.000000e+00> : vector<8x64xf32>
    %329 = tpu.matmul %327, %328, %cst_230 {dimension_numbers = #tpu.dot_dimension_numbers<[1], [0], [0], [1], [0, 0, 1, 1], [], []>} : vector<8x256xf32>, vector<256x64xf32>, vector<8x64xf32> -> vector<8x64xf32>
    %c0_231 = arith.constant 0 : index
    %c0_232 = arith.constant 0 : index
    %c0_233 = arith.constant 0 : index
    %330 = vector.load %arg38[%c0_231, %c0_232, %c0_233] : memref<1x8x64xf32, #tpu.memory_space<vmem>>, vector<1x8x64xf32>
    %331 = vector.shape_cast %330 : vector<1x8x64xf32> to vector<8x64xf32>
    %332 = vector.shape_cast %329 : vector<8x64xf32> to vector<1x8x64xf32>
    tpu.vector_store %arg38[%c0_231, %c0_232, %c0_233], %332 {strides = array<i32>} : memref<1x8x64xf32, #tpu.memory_space<vmem>>, vector<1x8x64xf32>,
    %cst_234 = arith.constant 0.000000e+00 : f32
    %333 = vector.broadcast %cst_234 : f32 to vector<8x9xf32>
    %334 = tpu.concatenate %333, %329, %333 in 1 : vector<8x9xf32>, vector<8x64xf32>, vector<8x9xf32> -> vector<8x82xf32>
    %cst_235 = arith.constant 0.000000e+00 : f32
    %335 = vector.broadcast %cst_235 : f32 to vector<8x64xf32>
    %336 = vector.extract_strided_slice %334 {offsets = [0, 0], sizes = [8, 64], strides = [1, 1]} : vector<8x82xf32> to vector<8x64xf32>
    %c0_236 = arith.constant 0 : index
    %c0_237 = arith.constant 0 : index
    %337 = vector.load %arg30[%c0_236, %c0_237] : memref<9x64xf32, #tpu.memory_space<vmem>>, vector<1x64xf32>
    %338 = vector.broadcast %337 : vector<1x64xf32> to vector<8x64xf32>
    %339 = arith.mulf %336, %338 : vector<8x64xf32>
    %c0_238 = arith.constant 0 : index
    %c0_239 = arith.constant 0 : index
    %c0_240 = arith.constant 0 : index
    %340 = vector.load %arg10[%c0_238, %c0_239, %c0_240] : memref<9x8x8xf32, #tpu.memory_space<vmem>>, vector<1x8x8xf32>
    %341 = vector.shape_cast %340 : vector<1x8x8xf32> to vector<8x8xf32>
    %cst_241 = arith.constant dense<0.000000e+00> : vector<8x64xf32>
    %342 = tpu.matmul %341, %339, %cst_241 {dimension_numbers = #tpu.dot_dimension_numbers<[1], [0], [0], [1], [0, 0, 1, 1], [], []>} : vector<8x8xf32>, vector<8x64xf32>, vector<8x64xf32> -> vector<8x64xf32>
    %343 = arith.addf %335, %342 : vector<8x64xf32>
    %344 = vector.extract_strided_slice %334 {offsets = [0, 1], sizes = [8, 64], strides = [1, 1]} : vector<8x82xf32> to vector<8x64xf32>
    %c1_242 = arith.constant 1 : index
    %c0_243 = arith.constant 0 : index
    %345 = vector.load %arg30[%c1_242, %c0_243] : memref<9x64xf32, #tpu.memory_space<vmem>>, vector<1x64xf32>
    %346 = vector.broadcast %345 : vector<1x64xf32> to vector<8x64xf32>
    %347 = arith.mulf %344, %346 : vector<8x64xf32>
    %c1_244 = arith.constant 1 : index
    %c0_245 = arith.constant 0 : index
    %c0_246 = arith.constant 0 : index
    %348 = vector.load %arg10[%c1_244, %c0_245, %c0_246] : memref<9x8x8xf32, #tpu.memory_space<vmem>>, vector<1x8x8xf32>
    %349 = vector.shape_cast %348 : vector<1x8x8xf32> to vector<8x8xf32>
    %cst_247 = arith.constant dense<0.000000e+00> : vector<8x64xf32>
    %350 = tpu.matmul %349, %347, %cst_247 {dimension_numbers = #tpu.dot_dimension_numbers<[1], [0], [0], [1], [0, 0, 1, 1], [], []>} : vector<8x8xf32>, vector<8x64xf32>, vector<8x64xf32> -> vector<8x64xf32>
    %351 = arith.addf %343, %350 : vector<8x64xf32>
    %352 = vector.extract_strided_slice %334 {offsets = [0, 2], sizes = [8, 64], strides = [1, 1]} : vector<8x82xf32> to vector<8x64xf32>
    %c2_248 = arith.constant 2 : index
    %c0_249 = arith.constant 0 : index
    %353 = vector.load %arg30[%c2_248, %c0_249] : memref<9x64xf32, #tpu.memory_space<vmem>>, vector<1x64xf32>
    %354 = vector.broadcast %353 : vector<1x64xf32> to vector<8x64xf32>
    %355 = arith.mulf %352, %354 : vector<8x64xf32>
    %c2_250 = arith.constant 2 : index
    %c0_251 = arith.constant 0 : index
    %c0_252 = arith.constant 0 : index
    %356 = vector.load %arg10[%c2_250, %c0_251, %c0_252] : memref<9x8x8xf32, #tpu.memory_space<vmem>>, vector<1x8x8xf32>
    %357 = vector.shape_cast %356 : vector<1x8x8xf32> to vector<8x8xf32>
    %cst_253 = arith.constant dense<0.000000e+00> : vector<8x64xf32>
    %358 = tpu.matmul %357, %355, %cst_253 {dimension_numbers = #tpu.dot_dimension_numbers<[1], [0], [0], [1], [0, 0, 1, 1], [], []>} : vector<8x8xf32>, vector<8x64xf32>, vector<8x64xf32> -> vector<8x64xf32>
    %359 = arith.addf %351, %358 : vector<8x64xf32>
    %360 = vector.extract_strided_slice %334 {offsets = [0, 8], sizes = [8, 64], strides = [1, 1]} : vector<8x82xf32> to vector<8x64xf32>
    %c3_254 = arith.constant 3 : index
    %c0_255 = arith.constant 0 : index
    %361 = vector.load %arg30[%c3_254, %c0_255] : memref<9x64xf32, #tpu.memory_space<vmem>>, vector<1x64xf32>
    %362 = vector.broadcast %361 : vector<1x64xf32> to vector<8x64xf32>
    %363 = arith.mulf %360, %362 : vector<8x64xf32>
    %c3_256 = arith.constant 3 : index
    %c0_257 = arith.constant 0 : index
    %c0_258 = arith.constant 0 : index
    %364 = vector.load %arg10[%c3_256, %c0_257, %c0_258] : memref<9x8x8xf32, #tpu.memory_space<vmem>>, vector<1x8x8xf32>
    %365 = vector.shape_cast %364 : vector<1x8x8xf32> to vector<8x8xf32>
    %cst_259 = arith.constant dense<0.000000e+00> : vector<8x64xf32>
    %366 = tpu.matmul %365, %363, %cst_259 {dimension_numbers = #tpu.dot_dimension_numbers<[1], [0], [0], [1], [0, 0, 1, 1], [], []>} : vector<8x8xf32>, vector<8x64xf32>, vector<8x64xf32> -> vector<8x64xf32>
    %367 = arith.addf %359, %366 : vector<8x64xf32>
    %368 = vector.extract_strided_slice %334 {offsets = [0, 9], sizes = [8, 64], strides = [1, 1]} : vector<8x82xf32> to vector<8x64xf32>
    %c4_260 = arith.constant 4 : index
    %c0_261 = arith.constant 0 : index
    %c0_262 = arith.constant 0 : index
    %369 = vector.load %arg10[%c4_260, %c0_261, %c0_262] : memref<9x8x8xf32, #tpu.memory_space<vmem>>, vector<1x8x8xf32>
    %370 = vector.shape_cast %369 : vector<1x8x8xf32> to vector<8x8xf32>
    %cst_263 = arith.constant dense<0.000000e+00> : vector<8x64xf32>
    %371 = tpu.matmul %370, %368, %cst_263 {dimension_numbers = #tpu.dot_dimension_numbers<[1], [0], [0], [1], [0, 0, 1, 1], [], []>} : vector<8x8xf32>, vector<8x64xf32>, vector<8x64xf32> -> vector<8x64xf32>
    %372 = arith.addf %367, %371 : vector<8x64xf32>
    %373 = vector.extract_strided_slice %334 {offsets = [0, 10], sizes = [8, 64], strides = [1, 1]} : vector<8x82xf32> to vector<8x64xf32>
    %c5_264 = arith.constant 5 : index
    %c0_265 = arith.constant 0 : index
    %374 = vector.load %arg30[%c5_264, %c0_265] : memref<9x64xf32, #tpu.memory_space<vmem>>, vector<1x64xf32>
    %375 = vector.broadcast %374 : vector<1x64xf32> to vector<8x64xf32>
    %376 = arith.mulf %373, %375 : vector<8x64xf32>
    %c5_266 = arith.constant 5 : index
    %c0_267 = arith.constant 0 : index
    %c0_268 = arith.constant 0 : index
    %377 = vector.load %arg10[%c5_266, %c0_267, %c0_268] : memref<9x8x8xf32, #tpu.memory_space<vmem>>, vector<1x8x8xf32>
    %378 = vector.shape_cast %377 : vector<1x8x8xf32> to vector<8x8xf32>
    %cst_269 = arith.constant dense<0.000000e+00> : vector<8x64xf32>
    %379 = tpu.matmul %378, %376, %cst_269 {dimension_numbers = #tpu.dot_dimension_numbers<[1], [0], [0], [1], [0, 0, 1, 1], [], []>} : vector<8x8xf32>, vector<8x64xf32>, vector<8x64xf32> -> vector<8x64xf32>
    %380 = arith.addf %372, %379 : vector<8x64xf32>
    %381 = vector.extract_strided_slice %334 {offsets = [0, 16], sizes = [8, 64], strides = [1, 1]} : vector<8x82xf32> to vector<8x64xf32>
    %c6_270 = arith.constant 6 : index
    %c0_271 = arith.constant 0 : index
    %382 = vector.load %arg30[%c6_270, %c0_271] : memref<9x64xf32, #tpu.memory_space<vmem>>, vector<1x64xf32>
    %383 = vector.broadcast %382 : vector<1x64xf32> to vector<8x64xf32>
    %384 = arith.mulf %381, %383 : vector<8x64xf32>
    %c6_272 = arith.constant 6 : index
    %c0_273 = arith.constant 0 : index
    %c0_274 = arith.constant 0 : index
    %385 = vector.load %arg10[%c6_272, %c0_273, %c0_274] : memref<9x8x8xf32, #tpu.memory_space<vmem>>, vector<1x8x8xf32>
    %386 = vector.shape_cast %385 : vector<1x8x8xf32> to vector<8x8xf32>
    %cst_275 = arith.constant dense<0.000000e+00> : vector<8x64xf32>
    %387 = tpu.matmul %386, %384, %cst_275 {dimension_numbers = #tpu.dot_dimension_numbers<[1], [0], [0], [1], [0, 0, 1, 1], [], []>} : vector<8x8xf32>, vector<8x64xf32>, vector<8x64xf32> -> vector<8x64xf32>
    %388 = arith.addf %380, %387 : vector<8x64xf32>
    %389 = vector.extract_strided_slice %334 {offsets = [0, 17], sizes = [8, 64], strides = [1, 1]} : vector<8x82xf32> to vector<8x64xf32>
    %c7_276 = arith.constant 7 : index
    %c0_277 = arith.constant 0 : index
    %390 = vector.load %arg30[%c7_276, %c0_277] : memref<9x64xf32, #tpu.memory_space<vmem>>, vector<1x64xf32>
    %391 = vector.broadcast %390 : vector<1x64xf32> to vector<8x64xf32>
    %392 = arith.mulf %389, %391 : vector<8x64xf32>
    %c7_278 = arith.constant 7 : index
    %c0_279 = arith.constant 0 : index
    %c0_280 = arith.constant 0 : index
    %393 = vector.load %arg10[%c7_278, %c0_279, %c0_280] : memref<9x8x8xf32, #tpu.memory_space<vmem>>, vector<1x8x8xf32>
    %394 = vector.shape_cast %393 : vector<1x8x8xf32> to vector<8x8xf32>
    %cst_281 = arith.constant dense<0.000000e+00> : vector<8x64xf32>
    %395 = tpu.matmul %394, %392, %cst_281 {dimension_numbers = #tpu.dot_dimension_numbers<[1], [0], [0], [1], [0, 0, 1, 1], [], []>} : vector<8x8xf32>, vector<8x64xf32>, vector<8x64xf32> -> vector<8x64xf32>
    %396 = arith.addf %388, %395 : vector<8x64xf32>
    %397 = vector.extract_strided_slice %334 {offsets = [0, 18], sizes = [8, 64], strides = [1, 1]} : vector<8x82xf32> to vector<8x64xf32>
    %c8_282 = arith.constant 8 : index
    %c0_283 = arith.constant 0 : index
    %398 = vector.load %arg30[%c8_282, %c0_283] : memref<9x64xf32, #tpu.memory_space<vmem>>, vector<1x64xf32>
    %399 = vector.broadcast %398 : vector<1x64xf32> to vector<8x64xf32>
    %400 = arith.mulf %397, %399 : vector<8x64xf32>
    %c8_284 = arith.constant 8 : index
    %c0_285 = arith.constant 0 : index
    %c0_286 = arith.constant 0 : index
    %401 = vector.load %arg10[%c8_284, %c0_285, %c0_286] : memref<9x8x8xf32, #tpu.memory_space<vmem>>, vector<1x8x8xf32>
    %402 = vector.shape_cast %401 : vector<1x8x8xf32> to vector<8x8xf32>
    %cst_287 = arith.constant dense<0.000000e+00> : vector<8x64xf32>
    %403 = tpu.matmul %402, %400, %cst_287 {dimension_numbers = #tpu.dot_dimension_numbers<[1], [0], [0], [1], [0, 0, 1, 1], [], []>} : vector<8x8xf32>, vector<8x64xf32>, vector<8x64xf32> -> vector<8x64xf32>
    %404 = arith.addf %396, %403 : vector<8x64xf32>
    %c0_288 = arith.constant 0 : index
    %c0_289 = arith.constant 0 : index
    %405 = vector.load %arg11[%c0_288, %c0_289] : memref<8x1xf32, #tpu.memory_space<vmem>>, vector<8x1xf32>
    %406 = vector.broadcast %405 : vector<8x1xf32> to vector<8x64xf32>
    %407 = arith.addf %404, %406 : vector<8x64xf32>
    %cst_290 = arith.constant 0.000000e+00 : f32
    %408 = vector.broadcast %cst_290 : f32 to vector<8x64xf32>
    %409 = arith.maximumf %407, %408 : vector<8x64xf32>
    %cst_291 = arith.constant 0.000000e+00 : f32
    %410 = vector.broadcast %cst_291 : f32 to vector<8x9xf32>
    %411 = tpu.concatenate %410, %409, %410 in 1 : vector<8x9xf32>, vector<8x64xf32>, vector<8x9xf32> -> vector<8x82xf32>
    %cst_292 = arith.constant 0.000000e+00 : f32
    %412 = vector.broadcast %cst_292 : f32 to vector<8x64xf32>
    %413 = vector.extract_strided_slice %411 {offsets = [0, 0], sizes = [8, 64], strides = [1, 1]} : vector<8x82xf32> to vector<8x64xf32>
    %c0_293 = arith.constant 0 : index
    %c0_294 = arith.constant 0 : index
    %414 = vector.load %arg30[%c0_293, %c0_294] : memref<9x64xf32, #tpu.memory_space<vmem>>, vector<1x64xf32>
    %415 = vector.broadcast %414 : vector<1x64xf32> to vector<8x64xf32>
    %416 = arith.mulf %413, %415 : vector<8x64xf32>
    %c0_295 = arith.constant 0 : index
    %c0_296 = arith.constant 0 : index
    %c0_297 = arith.constant 0 : index
    %417 = vector.load %arg12[%c0_295, %c0_296, %c0_297] : memref<9x8x8xf32, #tpu.memory_space<vmem>>, vector<1x8x8xf32>
    %418 = vector.shape_cast %417 : vector<1x8x8xf32> to vector<8x8xf32>
    %cst_298 = arith.constant dense<0.000000e+00> : vector<8x64xf32>
    %419 = tpu.matmul %418, %416, %cst_298 {dimension_numbers = #tpu.dot_dimension_numbers<[1], [0], [0], [1], [0, 0, 1, 1], [], []>} : vector<8x8xf32>, vector<8x64xf32>, vector<8x64xf32> -> vector<8x64xf32>
    %420 = arith.addf %412, %419 : vector<8x64xf32>
    %421 = vector.extract_strided_slice %411 {offsets = [0, 1], sizes = [8, 64], strides = [1, 1]} : vector<8x82xf32> to vector<8x64xf32>
    %c1_299 = arith.constant 1 : index
    %c0_300 = arith.constant 0 : index
    %422 = vector.load %arg30[%c1_299, %c0_300] : memref<9x64xf32, #tpu.memory_space<vmem>>, vector<1x64xf32>
    %423 = vector.broadcast %422 : vector<1x64xf32> to vector<8x64xf32>
    %424 = arith.mulf %421, %423 : vector<8x64xf32>
    %c1_301 = arith.constant 1 : index
    %c0_302 = arith.constant 0 : index
    %c0_303 = arith.constant 0 : index
    %425 = vector.load %arg12[%c1_301, %c0_302, %c0_303] : memref<9x8x8xf32, #tpu.memory_space<vmem>>, vector<1x8x8xf32>
    %426 = vector.shape_cast %425 : vector<1x8x8xf32> to vector<8x8xf32>
    %cst_304 = arith.constant dense<0.000000e+00> : vector<8x64xf32>
    %427 = tpu.matmul %426, %424, %cst_304 {dimension_numbers = #tpu.dot_dimension_numbers<[1], [0], [0], [1], [0, 0, 1, 1], [], []>} : vector<8x8xf32>, vector<8x64xf32>, vector<8x64xf32> -> vector<8x64xf32>
    %428 = arith.addf %420, %427 : vector<8x64xf32>
    %429 = vector.extract_strided_slice %411 {offsets = [0, 2], sizes = [8, 64], strides = [1, 1]} : vector<8x82xf32> to vector<8x64xf32>
    %c2_305 = arith.constant 2 : index
    %c0_306 = arith.constant 0 : index
    %430 = vector.load %arg30[%c2_305, %c0_306] : memref<9x64xf32, #tpu.memory_space<vmem>>, vector<1x64xf32>
    %431 = vector.broadcast %430 : vector<1x64xf32> to vector<8x64xf32>
    %432 = arith.mulf %429, %431 : vector<8x64xf32>
    %c2_307 = arith.constant 2 : index
    %c0_308 = arith.constant 0 : index
    %c0_309 = arith.constant 0 : index
    %433 = vector.load %arg12[%c2_307, %c0_308, %c0_309] : memref<9x8x8xf32, #tpu.memory_space<vmem>>, vector<1x8x8xf32>
    %434 = vector.shape_cast %433 : vector<1x8x8xf32> to vector<8x8xf32>
    %cst_310 = arith.constant dense<0.000000e+00> : vector<8x64xf32>
    %435 = tpu.matmul %434, %432, %cst_310 {dimension_numbers = #tpu.dot_dimension_numbers<[1], [0], [0], [1], [0, 0, 1, 1], [], []>} : vector<8x8xf32>, vector<8x64xf32>, vector<8x64xf32> -> vector<8x64xf32>
    %436 = arith.addf %428, %435 : vector<8x64xf32>
    %437 = vector.extract_strided_slice %411 {offsets = [0, 8], sizes = [8, 64], strides = [1, 1]} : vector<8x82xf32> to vector<8x64xf32>
    %c3_311 = arith.constant 3 : index
    %c0_312 = arith.constant 0 : index
    %438 = vector.load %arg30[%c3_311, %c0_312] : memref<9x64xf32, #tpu.memory_space<vmem>>, vector<1x64xf32>
    %439 = vector.broadcast %438 : vector<1x64xf32> to vector<8x64xf32>
    %440 = arith.mulf %437, %439 : vector<8x64xf32>
    %c3_313 = arith.constant 3 : index
    %c0_314 = arith.constant 0 : index
    %c0_315 = arith.constant 0 : index
    %441 = vector.load %arg12[%c3_313, %c0_314, %c0_315] : memref<9x8x8xf32, #tpu.memory_space<vmem>>, vector<1x8x8xf32>
    %442 = vector.shape_cast %441 : vector<1x8x8xf32> to vector<8x8xf32>
    %cst_316 = arith.constant dense<0.000000e+00> : vector<8x64xf32>
    %443 = tpu.matmul %442, %440, %cst_316 {dimension_numbers = #tpu.dot_dimension_numbers<[1], [0], [0], [1], [0, 0, 1, 1], [], []>} : vector<8x8xf32>, vector<8x64xf32>, vector<8x64xf32> -> vector<8x64xf32>
    %444 = arith.addf %436, %443 : vector<8x64xf32>
    %445 = vector.extract_strided_slice %411 {offsets = [0, 9], sizes = [8, 64], strides = [1, 1]} : vector<8x82xf32> to vector<8x64xf32>
    %c4_317 = arith.constant 4 : index
    %c0_318 = arith.constant 0 : index
    %c0_319 = arith.constant 0 : index
    %446 = vector.load %arg12[%c4_317, %c0_318, %c0_319] : memref<9x8x8xf32, #tpu.memory_space<vmem>>, vector<1x8x8xf32>
    %447 = vector.shape_cast %446 : vector<1x8x8xf32> to vector<8x8xf32>
    %cst_320 = arith.constant dense<0.000000e+00> : vector<8x64xf32>
    %448 = tpu.matmul %447, %445, %cst_320 {dimension_numbers = #tpu.dot_dimension_numbers<[1], [0], [0], [1], [0, 0, 1, 1], [], []>} : vector<8x8xf32>, vector<8x64xf32>, vector<8x64xf32> -> vector<8x64xf32>
    %449 = arith.addf %444, %448 : vector<8x64xf32>
    %450 = vector.extract_strided_slice %411 {offsets = [0, 10], sizes = [8, 64], strides = [1, 1]} : vector<8x82xf32> to vector<8x64xf32>
    %c5_321 = arith.constant 5 : index
    %c0_322 = arith.constant 0 : index
    %451 = vector.load %arg30[%c5_321, %c0_322] : memref<9x64xf32, #tpu.memory_space<vmem>>, vector<1x64xf32>
    %452 = vector.broadcast %451 : vector<1x64xf32> to vector<8x64xf32>
    %453 = arith.mulf %450, %452 : vector<8x64xf32>
    %c5_323 = arith.constant 5 : index
    %c0_324 = arith.constant 0 : index
    %c0_325 = arith.constant 0 : index
    %454 = vector.load %arg12[%c5_323, %c0_324, %c0_325] : memref<9x8x8xf32, #tpu.memory_space<vmem>>, vector<1x8x8xf32>
    %455 = vector.shape_cast %454 : vector<1x8x8xf32> to vector<8x8xf32>
    %cst_326 = arith.constant dense<0.000000e+00> : vector<8x64xf32>
    %456 = tpu.matmul %455, %453, %cst_326 {dimension_numbers = #tpu.dot_dimension_numbers<[1], [0], [0], [1], [0, 0, 1, 1], [], []>} : vector<8x8xf32>, vector<8x64xf32>, vector<8x64xf32> -> vector<8x64xf32>
    %457 = arith.addf %449, %456 : vector<8x64xf32>
    %458 = vector.extract_strided_slice %411 {offsets = [0, 16], sizes = [8, 64], strides = [1, 1]} : vector<8x82xf32> to vector<8x64xf32>
    %c6_327 = arith.constant 6 : index
    %c0_328 = arith.constant 0 : index
    %459 = vector.load %arg30[%c6_327, %c0_328] : memref<9x64xf32, #tpu.memory_space<vmem>>, vector<1x64xf32>
    %460 = vector.broadcast %459 : vector<1x64xf32> to vector<8x64xf32>
    %461 = arith.mulf %458, %460 : vector<8x64xf32>
    %c6_329 = arith.constant 6 : index
    %c0_330 = arith.constant 0 : index
    %c0_331 = arith.constant 0 : index
    %462 = vector.load %arg12[%c6_329, %c0_330, %c0_331] : memref<9x8x8xf32, #tpu.memory_space<vmem>>, vector<1x8x8xf32>
    %463 = vector.shape_cast %462 : vector<1x8x8xf32> to vector<8x8xf32>
    %cst_332 = arith.constant dense<0.000000e+00> : vector<8x64xf32>
    %464 = tpu.matmul %463, %461, %cst_332 {dimension_numbers = #tpu.dot_dimension_numbers<[1], [0], [0], [1], [0, 0, 1, 1], [], []>} : vector<8x8xf32>, vector<8x64xf32>, vector<8x64xf32> -> vector<8x64xf32>
    %465 = arith.addf %457, %464 : vector<8x64xf32>
    %466 = vector.extract_strided_slice %411 {offsets = [0, 17], sizes = [8, 64], strides = [1, 1]} : vector<8x82xf32> to vector<8x64xf32>
    %c7_333 = arith.constant 7 : index
    %c0_334 = arith.constant 0 : index
    %467 = vector.load %arg30[%c7_333, %c0_334] : memref<9x64xf32, #tpu.memory_space<vmem>>, vector<1x64xf32>
    %468 = vector.broadcast %467 : vector<1x64xf32> to vector<8x64xf32>
    %469 = arith.mulf %466, %468 : vector<8x64xf32>
    %c7_335 = arith.constant 7 : index
    %c0_336 = arith.constant 0 : index
    %c0_337 = arith.constant 0 : index
    %470 = vector.load %arg12[%c7_335, %c0_336, %c0_337] : memref<9x8x8xf32, #tpu.memory_space<vmem>>, vector<1x8x8xf32>
    %471 = vector.shape_cast %470 : vector<1x8x8xf32> to vector<8x8xf32>
    %cst_338 = arith.constant dense<0.000000e+00> : vector<8x64xf32>
    %472 = tpu.matmul %471, %469, %cst_338 {dimension_numbers = #tpu.dot_dimension_numbers<[1], [0], [0], [1], [0, 0, 1, 1], [], []>} : vector<8x8xf32>, vector<8x64xf32>, vector<8x64xf32> -> vector<8x64xf32>
    %473 = arith.addf %465, %472 : vector<8x64xf32>
    %474 = vector.extract_strided_slice %411 {offsets = [0, 18], sizes = [8, 64], strides = [1, 1]} : vector<8x82xf32> to vector<8x64xf32>
    %c8_339 = arith.constant 8 : index
    %c0_340 = arith.constant 0 : index
    %475 = vector.load %arg30[%c8_339, %c0_340] : memref<9x64xf32, #tpu.memory_space<vmem>>, vector<1x64xf32>
    %476 = vector.broadcast %475 : vector<1x64xf32> to vector<8x64xf32>
    %477 = arith.mulf %474, %476 : vector<8x64xf32>
    %c8_341 = arith.constant 8 : index
    %c0_342 = arith.constant 0 : index
    %c0_343 = arith.constant 0 : index
    %478 = vector.load %arg12[%c8_341, %c0_342, %c0_343] : memref<9x8x8xf32, #tpu.memory_space<vmem>>, vector<1x8x8xf32>
    %479 = vector.shape_cast %478 : vector<1x8x8xf32> to vector<8x8xf32>
    %cst_344 = arith.constant dense<0.000000e+00> : vector<8x64xf32>
    %480 = tpu.matmul %479, %477, %cst_344 {dimension_numbers = #tpu.dot_dimension_numbers<[1], [0], [0], [1], [0, 0, 1, 1], [], []>} : vector<8x8xf32>, vector<8x64xf32>, vector<8x64xf32> -> vector<8x64xf32>
    %481 = arith.addf %473, %480 : vector<8x64xf32>
    %c0_345 = arith.constant 0 : index
    %c0_346 = arith.constant 0 : index
    %482 = vector.load %arg13[%c0_345, %c0_346] : memref<8x1xf32, #tpu.memory_space<vmem>>, vector<8x1xf32>
    %483 = vector.broadcast %482 : vector<8x1xf32> to vector<8x64xf32>
    %484 = arith.addf %481, %483 : vector<8x64xf32>
    %cst_347 = arith.constant 0.000000e+00 : f32
    %485 = vector.broadcast %cst_347 : f32 to vector<8x64xf32>
    %486 = arith.maximumf %484, %485 : vector<8x64xf32>
    %cst_348 = arith.constant 0.000000e+00 : f32
    %487 = vector.broadcast %cst_348 : f32 to vector<8x9xf32>
    %488 = tpu.concatenate %487, %486, %487 in 1 : vector<8x9xf32>, vector<8x64xf32>, vector<8x9xf32> -> vector<8x82xf32>
    %cst_349 = arith.constant 0.000000e+00 : f32
    %489 = vector.broadcast %cst_349 : f32 to vector<8x64xf32>
    %490 = vector.extract_strided_slice %488 {offsets = [0, 0], sizes = [8, 64], strides = [1, 1]} : vector<8x82xf32> to vector<8x64xf32>
    %c0_350 = arith.constant 0 : index
    %c0_351 = arith.constant 0 : index
    %491 = vector.load %arg30[%c0_350, %c0_351] : memref<9x64xf32, #tpu.memory_space<vmem>>, vector<1x64xf32>
    %492 = vector.broadcast %491 : vector<1x64xf32> to vector<8x64xf32>
    %493 = arith.mulf %490, %492 : vector<8x64xf32>
    %c0_352 = arith.constant 0 : index
    %c0_353 = arith.constant 0 : index
    %c0_354 = arith.constant 0 : index
    %494 = vector.load %arg14[%c0_352, %c0_353, %c0_354] : memref<9x8x8xf32, #tpu.memory_space<vmem>>, vector<1x8x8xf32>
    %495 = vector.shape_cast %494 : vector<1x8x8xf32> to vector<8x8xf32>
    %cst_355 = arith.constant dense<0.000000e+00> : vector<8x64xf32>
    %496 = tpu.matmul %495, %493, %cst_355 {dimension_numbers = #tpu.dot_dimension_numbers<[1], [0], [0], [1], [0, 0, 1, 1], [], []>} : vector<8x8xf32>, vector<8x64xf32>, vector<8x64xf32> -> vector<8x64xf32>
    %497 = arith.addf %489, %496 : vector<8x64xf32>
    %498 = vector.extract_strided_slice %488 {offsets = [0, 1], sizes = [8, 64], strides = [1, 1]} : vector<8x82xf32> to vector<8x64xf32>
    %c1_356 = arith.constant 1 : index
    %c0_357 = arith.constant 0 : index
    %499 = vector.load %arg30[%c1_356, %c0_357] : memref<9x64xf32, #tpu.memory_space<vmem>>, vector<1x64xf32>
    %500 = vector.broadcast %499 : vector<1x64xf32> to vector<8x64xf32>
    %501 = arith.mulf %498, %500 : vector<8x64xf32>
    %c1_358 = arith.constant 1 : index
    %c0_359 = arith.constant 0 : index
    %c0_360 = arith.constant 0 : index
    %502 = vector.load %arg14[%c1_358, %c0_359, %c0_360] : memref<9x8x8xf32, #tpu.memory_space<vmem>>, vector<1x8x8xf32>
    %503 = vector.shape_cast %502 : vector<1x8x8xf32> to vector<8x8xf32>
    %cst_361 = arith.constant dense<0.000000e+00> : vector<8x64xf32>
    %504 = tpu.matmul %503, %501, %cst_361 {dimension_numbers = #tpu.dot_dimension_numbers<[1], [0], [0], [1], [0, 0, 1, 1], [], []>} : vector<8x8xf32>, vector<8x64xf32>, vector<8x64xf32> -> vector<8x64xf32>
    %505 = arith.addf %497, %504 : vector<8x64xf32>
    %506 = vector.extract_strided_slice %488 {offsets = [0, 2], sizes = [8, 64], strides = [1, 1]} : vector<8x82xf32> to vector<8x64xf32>
    %c2_362 = arith.constant 2 : index
    %c0_363 = arith.constant 0 : index
    %507 = vector.load %arg30[%c2_362, %c0_363] : memref<9x64xf32, #tpu.memory_space<vmem>>, vector<1x64xf32>
    %508 = vector.broadcast %507 : vector<1x64xf32> to vector<8x64xf32>
    %509 = arith.mulf %506, %508 : vector<8x64xf32>
    %c2_364 = arith.constant 2 : index
    %c0_365 = arith.constant 0 : index
    %c0_366 = arith.constant 0 : index
    %510 = vector.load %arg14[%c2_364, %c0_365, %c0_366] : memref<9x8x8xf32, #tpu.memory_space<vmem>>, vector<1x8x8xf32>
    %511 = vector.shape_cast %510 : vector<1x8x8xf32> to vector<8x8xf32>
    %cst_367 = arith.constant dense<0.000000e+00> : vector<8x64xf32>
    %512 = tpu.matmul %511, %509, %cst_367 {dimension_numbers = #tpu.dot_dimension_numbers<[1], [0], [0], [1], [0, 0, 1, 1], [], []>} : vector<8x8xf32>, vector<8x64xf32>, vector<8x64xf32> -> vector<8x64xf32>
    %513 = arith.addf %505, %512 : vector<8x64xf32>
    %514 = vector.extract_strided_slice %488 {offsets = [0, 8], sizes = [8, 64], strides = [1, 1]} : vector<8x82xf32> to vector<8x64xf32>
    %c3_368 = arith.constant 3 : index
    %c0_369 = arith.constant 0 : index
    %515 = vector.load %arg30[%c3_368, %c0_369] : memref<9x64xf32, #tpu.memory_space<vmem>>, vector<1x64xf32>
    %516 = vector.broadcast %515 : vector<1x64xf32> to vector<8x64xf32>
    %517 = arith.mulf %514, %516 : vector<8x64xf32>
    %c3_370 = arith.constant 3 : index
    %c0_371 = arith.constant 0 : index
    %c0_372 = arith.constant 0 : index
    %518 = vector.load %arg14[%c3_370, %c0_371, %c0_372] : memref<9x8x8xf32, #tpu.memory_space<vmem>>, vector<1x8x8xf32>
    %519 = vector.shape_cast %518 : vector<1x8x8xf32> to vector<8x8xf32>
    %cst_373 = arith.constant dense<0.000000e+00> : vector<8x64xf32>
    %520 = tpu.matmul %519, %517, %cst_373 {dimension_numbers = #tpu.dot_dimension_numbers<[1], [0], [0], [1], [0, 0, 1, 1], [], []>} : vector<8x8xf32>, vector<8x64xf32>, vector<8x64xf32> -> vector<8x64xf32>
    %521 = arith.addf %513, %520 : vector<8x64xf32>
    %522 = vector.extract_strided_slice %488 {offsets = [0, 9], sizes = [8, 64], strides = [1, 1]} : vector<8x82xf32> to vector<8x64xf32>
    %c4_374 = arith.constant 4 : index
    %c0_375 = arith.constant 0 : index
    %c0_376 = arith.constant 0 : index
    %523 = vector.load %arg14[%c4_374, %c0_375, %c0_376] : memref<9x8x8xf32, #tpu.memory_space<vmem>>, vector<1x8x8xf32>
    %524 = vector.shape_cast %523 : vector<1x8x8xf32> to vector<8x8xf32>
    %cst_377 = arith.constant dense<0.000000e+00> : vector<8x64xf32>
    %525 = tpu.matmul %524, %522, %cst_377 {dimension_numbers = #tpu.dot_dimension_numbers<[1], [0], [0], [1], [0, 0, 1, 1], [], []>} : vector<8x8xf32>, vector<8x64xf32>, vector<8x64xf32> -> vector<8x64xf32>
    %526 = arith.addf %521, %525 : vector<8x64xf32>
    %527 = vector.extract_strided_slice %488 {offsets = [0, 10], sizes = [8, 64], strides = [1, 1]} : vector<8x82xf32> to vector<8x64xf32>
    %c5_378 = arith.constant 5 : index
    %c0_379 = arith.constant 0 : index
    %528 = vector.load %arg30[%c5_378, %c0_379] : memref<9x64xf32, #tpu.memory_space<vmem>>, vector<1x64xf32>
    %529 = vector.broadcast %528 : vector<1x64xf32> to vector<8x64xf32>
    %530 = arith.mulf %527, %529 : vector<8x64xf32>
    %c5_380 = arith.constant 5 : index
    %c0_381 = arith.constant 0 : index
    %c0_382 = arith.constant 0 : index
    %531 = vector.load %arg14[%c5_380, %c0_381, %c0_382] : memref<9x8x8xf32, #tpu.memory_space<vmem>>, vector<1x8x8xf32>
    %532 = vector.shape_cast %531 : vector<1x8x8xf32> to vector<8x8xf32>
    %cst_383 = arith.constant dense<0.000000e+00> : vector<8x64xf32>
    %533 = tpu.matmul %532, %530, %cst_383 {dimension_numbers = #tpu.dot_dimension_numbers<[1], [0], [0], [1], [0, 0, 1, 1], [], []>} : vector<8x8xf32>, vector<8x64xf32>, vector<8x64xf32> -> vector<8x64xf32>
    %534 = arith.addf %526, %533 : vector<8x64xf32>
    %535 = vector.extract_strided_slice %488 {offsets = [0, 16], sizes = [8, 64], strides = [1, 1]} : vector<8x82xf32> to vector<8x64xf32>
    %c6_384 = arith.constant 6 : index
    %c0_385 = arith.constant 0 : index
    %536 = vector.load %arg30[%c6_384, %c0_385] : memref<9x64xf32, #tpu.memory_space<vmem>>, vector<1x64xf32>
    %537 = vector.broadcast %536 : vector<1x64xf32> to vector<8x64xf32>
    %538 = arith.mulf %535, %537 : vector<8x64xf32>
    %c6_386 = arith.constant 6 : index
    %c0_387 = arith.constant 0 : index
    %c0_388 = arith.constant 0 : index
    %539 = vector.load %arg14[%c6_386, %c0_387, %c0_388] : memref<9x8x8xf32, #tpu.memory_space<vmem>>, vector<1x8x8xf32>
    %540 = vector.shape_cast %539 : vector<1x8x8xf32> to vector<8x8xf32>
    %cst_389 = arith.constant dense<0.000000e+00> : vector<8x64xf32>
    %541 = tpu.matmul %540, %538, %cst_389 {dimension_numbers = #tpu.dot_dimension_numbers<[1], [0], [0], [1], [0, 0, 1, 1], [], []>} : vector<8x8xf32>, vector<8x64xf32>, vector<8x64xf32> -> vector<8x64xf32>
    %542 = arith.addf %534, %541 : vector<8x64xf32>
    %543 = vector.extract_strided_slice %488 {offsets = [0, 17], sizes = [8, 64], strides = [1, 1]} : vector<8x82xf32> to vector<8x64xf32>
    %c7_390 = arith.constant 7 : index
    %c0_391 = arith.constant 0 : index
    %544 = vector.load %arg30[%c7_390, %c0_391] : memref<9x64xf32, #tpu.memory_space<vmem>>, vector<1x64xf32>
    %545 = vector.broadcast %544 : vector<1x64xf32> to vector<8x64xf32>
    %546 = arith.mulf %543, %545 : vector<8x64xf32>
    %c7_392 = arith.constant 7 : index
    %c0_393 = arith.constant 0 : index
    %c0_394 = arith.constant 0 : index
    %547 = vector.load %arg14[%c7_392, %c0_393, %c0_394] : memref<9x8x8xf32, #tpu.memory_space<vmem>>, vector<1x8x8xf32>
    %548 = vector.shape_cast %547 : vector<1x8x8xf32> to vector<8x8xf32>
    %cst_395 = arith.constant dense<0.000000e+00> : vector<8x64xf32>
    %549 = tpu.matmul %548, %546, %cst_395 {dimension_numbers = #tpu.dot_dimension_numbers<[1], [0], [0], [1], [0, 0, 1, 1], [], []>} : vector<8x8xf32>, vector<8x64xf32>, vector<8x64xf32> -> vector<8x64xf32>
    %550 = arith.addf %542, %549 : vector<8x64xf32>
    %551 = vector.extract_strided_slice %488 {offsets = [0, 18], sizes = [8, 64], strides = [1, 1]} : vector<8x82xf32> to vector<8x64xf32>
    %c8_396 = arith.constant 8 : index
    %c0_397 = arith.constant 0 : index
    %552 = vector.load %arg30[%c8_396, %c0_397] : memref<9x64xf32, #tpu.memory_space<vmem>>, vector<1x64xf32>
    %553 = vector.broadcast %552 : vector<1x64xf32> to vector<8x64xf32>
    %554 = arith.mulf %551, %553 : vector<8x64xf32>
    %c8_398 = arith.constant 8 : index
    %c0_399 = arith.constant 0 : index
    %c0_400 = arith.constant 0 : index
    %555 = vector.load %arg14[%c8_398, %c0_399, %c0_400] : memref<9x8x8xf32, #tpu.memory_space<vmem>>, vector<1x8x8xf32>
    %556 = vector.shape_cast %555 : vector<1x8x8xf32> to vector<8x8xf32>
    %cst_401 = arith.constant dense<0.000000e+00> : vector<8x64xf32>
    %557 = tpu.matmul %556, %554, %cst_401 {dimension_numbers = #tpu.dot_dimension_numbers<[1], [0], [0], [1], [0, 0, 1, 1], [], []>} : vector<8x8xf32>, vector<8x64xf32>, vector<8x64xf32> -> vector<8x64xf32>
    %558 = arith.addf %550, %557 : vector<8x64xf32>
    %c0_402 = arith.constant 0 : index
    %c0_403 = arith.constant 0 : index
    %559 = vector.load %arg15[%c0_402, %c0_403] : memref<8x1xf32, #tpu.memory_space<vmem>>, vector<8x1xf32>
    %560 = vector.broadcast %559 : vector<8x1xf32> to vector<8x64xf32>
    %561 = arith.addf %558, %560 : vector<8x64xf32>
    %cst_404 = arith.constant 0.000000e+00 : f32
    %562 = vector.broadcast %cst_404 : f32 to vector<8x64xf32>
    %563 = arith.maximumf %561, %562 : vector<8x64xf32>
    %564 = vector.extract_strided_slice %563 {offsets = [0, 1], sizes = [8, 63], strides = [1, 1]} : vector<8x64xf32> to vector<8x63xf32>
    %cst_405 = arith.constant 0.000000e+00 : f32
    %565 = vector.broadcast %cst_405 : f32 to vector<8x1xf32>
    %566 = tpu.concatenate %564, %565 in 1 : vector<8x63xf32>, vector<8x1xf32> -> vector<8x64xf32>
    %567 = arith.maximumf %563, %566 : vector<8x64xf32>
    %568 = vector.extract_strided_slice %567 {offsets = [0, 8], sizes = [8, 56], strides = [1, 1]} : vector<8x64xf32> to vector<8x56xf32>
    %cst_406 = arith.constant 0.000000e+00 : f32
    %569 = vector.broadcast %cst_406 : f32 to vector<8x8xf32>
    %570 = tpu.concatenate %568, %569 in 1 : vector<8x56xf32>, vector<8x8xf32> -> vector<8x64xf32>
    %571 = arith.maximumf %567, %570 : vector<8x64xf32>
    %c0_407 = arith.constant 0 : index
    %c0_408 = arith.constant 0 : index
    %572 = vector.load %arg35[%c0_407, %c0_408] : memref<64x16xf32, #tpu.memory_space<vmem>>, vector<64x16xf32>
    %cst_409 = arith.constant dense<0.000000e+00> : vector<8x16xf32>
    %573 = tpu.matmul %571, %572, %cst_409 {dimension_numbers = #tpu.dot_dimension_numbers<[1], [0], [0], [1], [0, 0, 1, 1], [], []>} : vector<8x64xf32>, vector<64x16xf32>, vector<8x16xf32> -> vector<8x16xf32>
    %c0_410 = arith.constant 0 : index
    %c0_411 = arith.constant 0 : index
    %c0_412 = arith.constant 0 : index
    %574 = vector.load %arg39[%c0_410, %c0_411, %c0_412] : memref<1x8x16xf32, #tpu.memory_space<vmem>>, vector<1x8x16xf32>
    %575 = vector.shape_cast %574 : vector<1x8x16xf32> to vector<8x16xf32>
    %576 = vector.shape_cast %573 : vector<8x16xf32> to vector<1x8x16xf32>
    tpu.vector_store %arg39[%c0_410, %c0_411, %c0_412], %576 {strides = array<i32>} : memref<1x8x16xf32, #tpu.memory_space<vmem>>, vector<1x8x16xf32>,
    %cst_413 = arith.constant 0.000000e+00 : f32
    %577 = vector.broadcast %cst_413 : f32 to vector<8x5xf32>
    %578 = tpu.concatenate %577, %573, %577 in 1 : vector<8x5xf32>, vector<8x16xf32>, vector<8x5xf32> -> vector<8x26xf32>
    %cst_414 = arith.constant 0.000000e+00 : f32
    %579 = vector.broadcast %cst_414 : f32 to vector<16x16xf32>
    %580 = vector.extract_strided_slice %578 {offsets = [0, 0], sizes = [8, 16], strides = [1, 1]} : vector<8x26xf32> to vector<8x16xf32>
    %c0_415 = arith.constant 0 : index
    %c0_416 = arith.constant 0 : index
    %581 = vector.load %arg31[%c0_415, %c0_416] : memref<9x16xf32, #tpu.memory_space<vmem>>, vector<1x16xf32>
    %582 = vector.broadcast %581 : vector<1x16xf32> to vector<8x16xf32>
    %583 = arith.mulf %580, %582 : vector<8x16xf32>
    %c0_417 = arith.constant 0 : index
    %c0_418 = arith.constant 0 : index
    %c0_419 = arith.constant 0 : index
    %584 = vector.load %arg16[%c0_417, %c0_418, %c0_419] : memref<9x16x8xf32, #tpu.memory_space<vmem>>, vector<1x16x8xf32>
    %585 = vector.shape_cast %584 : vector<1x16x8xf32> to vector<16x8xf32>
    %cst_420 = arith.constant dense<0.000000e+00> : vector<16x16xf32>
    %586 = tpu.matmul %585, %583, %cst_420 {dimension_numbers = #tpu.dot_dimension_numbers<[1], [0], [0], [1], [0, 0, 1, 1], [], []>} : vector<16x8xf32>, vector<8x16xf32>, vector<16x16xf32> -> vector<16x16xf32>
    %587 = arith.addf %579, %586 : vector<16x16xf32>
    %588 = vector.extract_strided_slice %578 {offsets = [0, 1], sizes = [8, 16], strides = [1, 1]} : vector<8x26xf32> to vector<8x16xf32>
    %c1_421 = arith.constant 1 : index
    %c0_422 = arith.constant 0 : index
    %589 = vector.load %arg31[%c1_421, %c0_422] : memref<9x16xf32, #tpu.memory_space<vmem>>, vector<1x16xf32>
    %590 = vector.broadcast %589 : vector<1x16xf32> to vector<8x16xf32>
    %591 = arith.mulf %588, %590 : vector<8x16xf32>
    %c1_423 = arith.constant 1 : index
    %c0_424 = arith.constant 0 : index
    %c0_425 = arith.constant 0 : index
    %592 = vector.load %arg16[%c1_423, %c0_424, %c0_425] : memref<9x16x8xf32, #tpu.memory_space<vmem>>, vector<1x16x8xf32>
    %593 = vector.shape_cast %592 : vector<1x16x8xf32> to vector<16x8xf32>
    %cst_426 = arith.constant dense<0.000000e+00> : vector<16x16xf32>
    %594 = tpu.matmul %593, %591, %cst_426 {dimension_numbers = #tpu.dot_dimension_numbers<[1], [0], [0], [1], [0, 0, 1, 1], [], []>} : vector<16x8xf32>, vector<8x16xf32>, vector<16x16xf32> -> vector<16x16xf32>
    %595 = arith.addf %587, %594 : vector<16x16xf32>
    %596 = vector.extract_strided_slice %578 {offsets = [0, 2], sizes = [8, 16], strides = [1, 1]} : vector<8x26xf32> to vector<8x16xf32>
    %c2_427 = arith.constant 2 : index
    %c0_428 = arith.constant 0 : index
    %597 = vector.load %arg31[%c2_427, %c0_428] : memref<9x16xf32, #tpu.memory_space<vmem>>, vector<1x16xf32>
    %598 = vector.broadcast %597 : vector<1x16xf32> to vector<8x16xf32>
    %599 = arith.mulf %596, %598 : vector<8x16xf32>
    %c2_429 = arith.constant 2 : index
    %c0_430 = arith.constant 0 : index
    %c0_431 = arith.constant 0 : index
    %600 = vector.load %arg16[%c2_429, %c0_430, %c0_431] : memref<9x16x8xf32, #tpu.memory_space<vmem>>, vector<1x16x8xf32>
    %601 = vector.shape_cast %600 : vector<1x16x8xf32> to vector<16x8xf32>
    %cst_432 = arith.constant dense<0.000000e+00> : vector<16x16xf32>
    %602 = tpu.matmul %601, %599, %cst_432 {dimension_numbers = #tpu.dot_dimension_numbers<[1], [0], [0], [1], [0, 0, 1, 1], [], []>} : vector<16x8xf32>, vector<8x16xf32>, vector<16x16xf32> -> vector<16x16xf32>
    %603 = arith.addf %595, %602 : vector<16x16xf32>
    %604 = vector.extract_strided_slice %578 {offsets = [0, 4], sizes = [8, 16], strides = [1, 1]} : vector<8x26xf32> to vector<8x16xf32>
    %c3_433 = arith.constant 3 : index
    %c0_434 = arith.constant 0 : index
    %605 = vector.load %arg31[%c3_433, %c0_434] : memref<9x16xf32, #tpu.memory_space<vmem>>, vector<1x16xf32>
    %606 = vector.broadcast %605 : vector<1x16xf32> to vector<8x16xf32>
    %607 = arith.mulf %604, %606 : vector<8x16xf32>
    %c3_435 = arith.constant 3 : index
    %c0_436 = arith.constant 0 : index
    %c0_437 = arith.constant 0 : index
    %608 = vector.load %arg16[%c3_435, %c0_436, %c0_437] : memref<9x16x8xf32, #tpu.memory_space<vmem>>, vector<1x16x8xf32>
    %609 = vector.shape_cast %608 : vector<1x16x8xf32> to vector<16x8xf32>
    %cst_438 = arith.constant dense<0.000000e+00> : vector<16x16xf32>
    %610 = tpu.matmul %609, %607, %cst_438 {dimension_numbers = #tpu.dot_dimension_numbers<[1], [0], [0], [1], [0, 0, 1, 1], [], []>} : vector<16x8xf32>, vector<8x16xf32>, vector<16x16xf32> -> vector<16x16xf32>
    %611 = arith.addf %603, %610 : vector<16x16xf32>
    %612 = vector.extract_strided_slice %578 {offsets = [0, 5], sizes = [8, 16], strides = [1, 1]} : vector<8x26xf32> to vector<8x16xf32>
    %c4_439 = arith.constant 4 : index
    %c0_440 = arith.constant 0 : index
    %c0_441 = arith.constant 0 : index
    %613 = vector.load %arg16[%c4_439, %c0_440, %c0_441] : memref<9x16x8xf32, #tpu.memory_space<vmem>>, vector<1x16x8xf32>
    %614 = vector.shape_cast %613 : vector<1x16x8xf32> to vector<16x8xf32>
    %cst_442 = arith.constant dense<0.000000e+00> : vector<16x16xf32>
    %615 = tpu.matmul %614, %612, %cst_442 {dimension_numbers = #tpu.dot_dimension_numbers<[1], [0], [0], [1], [0, 0, 1, 1], [], []>} : vector<16x8xf32>, vector<8x16xf32>, vector<16x16xf32> -> vector<16x16xf32>
    %616 = arith.addf %611, %615 : vector<16x16xf32>
    %617 = vector.extract_strided_slice %578 {offsets = [0, 6], sizes = [8, 16], strides = [1, 1]} : vector<8x26xf32> to vector<8x16xf32>
    %c5_443 = arith.constant 5 : index
    %c0_444 = arith.constant 0 : index
    %618 = vector.load %arg31[%c5_443, %c0_444] : memref<9x16xf32, #tpu.memory_space<vmem>>, vector<1x16xf32>
    %619 = vector.broadcast %618 : vector<1x16xf32> to vector<8x16xf32>
    %620 = arith.mulf %617, %619 : vector<8x16xf32>
    %c5_445 = arith.constant 5 : index
    %c0_446 = arith.constant 0 : index
    %c0_447 = arith.constant 0 : index
    %621 = vector.load %arg16[%c5_445, %c0_446, %c0_447] : memref<9x16x8xf32, #tpu.memory_space<vmem>>, vector<1x16x8xf32>
    %622 = vector.shape_cast %621 : vector<1x16x8xf32> to vector<16x8xf32>
    %cst_448 = arith.constant dense<0.000000e+00> : vector<16x16xf32>
    %623 = tpu.matmul %622, %620, %cst_448 {dimension_numbers = #tpu.dot_dimension_numbers<[1], [0], [0], [1], [0, 0, 1, 1], [], []>} : vector<16x8xf32>, vector<8x16xf32>, vector<16x16xf32> -> vector<16x16xf32>
    %624 = arith.addf %616, %623 : vector<16x16xf32>
    %625 = vector.extract_strided_slice %578 {offsets = [0, 8], sizes = [8, 16], strides = [1, 1]} : vector<8x26xf32> to vector<8x16xf32>
    %c6_449 = arith.constant 6 : index
    %c0_450 = arith.constant 0 : index
    %626 = vector.load %arg31[%c6_449, %c0_450] : memref<9x16xf32, #tpu.memory_space<vmem>>, vector<1x16xf32>
    %627 = vector.broadcast %626 : vector<1x16xf32> to vector<8x16xf32>
    %628 = arith.mulf %625, %627 : vector<8x16xf32>
    %c6_451 = arith.constant 6 : index
    %c0_452 = arith.constant 0 : index
    %c0_453 = arith.constant 0 : index
    %629 = vector.load %arg16[%c6_451, %c0_452, %c0_453] : memref<9x16x8xf32, #tpu.memory_space<vmem>>, vector<1x16x8xf32>
    %630 = vector.shape_cast %629 : vector<1x16x8xf32> to vector<16x8xf32>
    %cst_454 = arith.constant dense<0.000000e+00> : vector<16x16xf32>
    %631 = tpu.matmul %630, %628, %cst_454 {dimension_numbers = #tpu.dot_dimension_numbers<[1], [0], [0], [1], [0, 0, 1, 1], [], []>} : vector<16x8xf32>, vector<8x16xf32>, vector<16x16xf32> -> vector<16x16xf32>
    %632 = arith.addf %624, %631 : vector<16x16xf32>
    %633 = vector.extract_strided_slice %578 {offsets = [0, 9], sizes = [8, 16], strides = [1, 1]} : vector<8x26xf32> to vector<8x16xf32>
    %c7_455 = arith.constant 7 : index
    %c0_456 = arith.constant 0 : index
    %634 = vector.load %arg31[%c7_455, %c0_456] : memref<9x16xf32, #tpu.memory_space<vmem>>, vector<1x16xf32>
    %635 = vector.broadcast %634 : vector<1x16xf32> to vector<8x16xf32>
    %636 = arith.mulf %633, %635 : vector<8x16xf32>
    %c7_457 = arith.constant 7 : index
    %c0_458 = arith.constant 0 : index
    %c0_459 = arith.constant 0 : index
    %637 = vector.load %arg16[%c7_457, %c0_458, %c0_459] : memref<9x16x8xf32, #tpu.memory_space<vmem>>, vector<1x16x8xf32>
    %638 = vector.shape_cast %637 : vector<1x16x8xf32> to vector<16x8xf32>
    %cst_460 = arith.constant dense<0.000000e+00> : vector<16x16xf32>
    %639 = tpu.matmul %638, %636, %cst_460 {dimension_numbers = #tpu.dot_dimension_numbers<[1], [0], [0], [1], [0, 0, 1, 1], [], []>} : vector<16x8xf32>, vector<8x16xf32>, vector<16x16xf32> -> vector<16x16xf32>
    %640 = arith.addf %632, %639 : vector<16x16xf32>
    %641 = vector.extract_strided_slice %578 {offsets = [0, 10], sizes = [8, 16], strides = [1, 1]} : vector<8x26xf32> to vector<8x16xf32>
    %c8_461 = arith.constant 8 : index
    %c0_462 = arith.constant 0 : index
    %642 = vector.load %arg31[%c8_461, %c0_462] : memref<9x16xf32, #tpu.memory_space<vmem>>, vector<1x16xf32>
    %643 = vector.broadcast %642 : vector<1x16xf32> to vector<8x16xf32>
    %644 = arith.mulf %641, %643 : vector<8x16xf32>
    %c8_463 = arith.constant 8 : index
    %c0_464 = arith.constant 0 : index
    %c0_465 = arith.constant 0 : index
    %645 = vector.load %arg16[%c8_463, %c0_464, %c0_465] : memref<9x16x8xf32, #tpu.memory_space<vmem>>, vector<1x16x8xf32>
    %646 = vector.shape_cast %645 : vector<1x16x8xf32> to vector<16x8xf32>
    %cst_466 = arith.constant dense<0.000000e+00> : vector<16x16xf32>
    %647 = tpu.matmul %646, %644, %cst_466 {dimension_numbers = #tpu.dot_dimension_numbers<[1], [0], [0], [1], [0, 0, 1, 1], [], []>} : vector<16x8xf32>, vector<8x16xf32>, vector<16x16xf32> -> vector<16x16xf32>
    %648 = arith.addf %640, %647 : vector<16x16xf32>
    %c0_467 = arith.constant 0 : index
    %c0_468 = arith.constant 0 : index
    %649 = vector.load %arg17[%c0_467, %c0_468] : memref<16x1xf32, #tpu.memory_space<vmem>>, vector<16x1xf32>
    %650 = vector.broadcast %649 : vector<16x1xf32> to vector<16x16xf32>
    %651 = arith.addf %648, %650 : vector<16x16xf32>
    %cst_469 = arith.constant 0.000000e+00 : f32
    %652 = vector.broadcast %cst_469 : f32 to vector<16x16xf32>
    %653 = arith.maximumf %651, %652 : vector<16x16xf32>
    %cst_470 = arith.constant 0.000000e+00 : f32
    %654 = vector.broadcast %cst_470 : f32 to vector<16x5xf32>
    %655 = tpu.concatenate %654, %653, %654 in 1 : vector<16x5xf32>, vector<16x16xf32>, vector<16x5xf32> -> vector<16x26xf32>
    %cst_471 = arith.constant 0.000000e+00 : f32
    %656 = vector.broadcast %cst_471 : f32 to vector<16x16xf32>
    %657 = vector.extract_strided_slice %655 {offsets = [0, 0], sizes = [16, 16], strides = [1, 1]} : vector<16x26xf32> to vector<16x16xf32>
    %c0_472 = arith.constant 0 : index
    %c0_473 = arith.constant 0 : index
    %658 = vector.load %arg31[%c0_472, %c0_473] : memref<9x16xf32, #tpu.memory_space<vmem>>, vector<1x16xf32>
    %659 = vector.broadcast %658 : vector<1x16xf32> to vector<16x16xf32>
    %660 = arith.mulf %657, %659 : vector<16x16xf32>
    %c0_474 = arith.constant 0 : index
    %c0_475 = arith.constant 0 : index
    %c0_476 = arith.constant 0 : index
    %661 = vector.load %arg18[%c0_474, %c0_475, %c0_476] : memref<9x16x16xf32, #tpu.memory_space<vmem>>, vector<1x16x16xf32>
    %662 = vector.shape_cast %661 : vector<1x16x16xf32> to vector<16x16xf32>
    %cst_477 = arith.constant dense<0.000000e+00> : vector<16x16xf32>
    %663 = tpu.matmul %662, %660, %cst_477 {dimension_numbers = #tpu.dot_dimension_numbers<[1], [0], [0], [1], [0, 0, 1, 1], [], []>} : vector<16x16xf32>, vector<16x16xf32>, vector<16x16xf32> -> vector<16x16xf32>
    %664 = arith.addf %656, %663 : vector<16x16xf32>
    %665 = vector.extract_strided_slice %655 {offsets = [0, 1], sizes = [16, 16], strides = [1, 1]} : vector<16x26xf32> to vector<16x16xf32>
    %c1_478 = arith.constant 1 : index
    %c0_479 = arith.constant 0 : index
    %666 = vector.load %arg31[%c1_478, %c0_479] : memref<9x16xf32, #tpu.memory_space<vmem>>, vector<1x16xf32>
    %667 = vector.broadcast %666 : vector<1x16xf32> to vector<16x16xf32>
    %668 = arith.mulf %665, %667 : vector<16x16xf32>
    %c1_480 = arith.constant 1 : index
    %c0_481 = arith.constant 0 : index
    %c0_482 = arith.constant 0 : index
    %669 = vector.load %arg18[%c1_480, %c0_481, %c0_482] : memref<9x16x16xf32, #tpu.memory_space<vmem>>, vector<1x16x16xf32>
    %670 = vector.shape_cast %669 : vector<1x16x16xf32> to vector<16x16xf32>
    %cst_483 = arith.constant dense<0.000000e+00> : vector<16x16xf32>
    %671 = tpu.matmul %670, %668, %cst_483 {dimension_numbers = #tpu.dot_dimension_numbers<[1], [0], [0], [1], [0, 0, 1, 1], [], []>} : vector<16x16xf32>, vector<16x16xf32>, vector<16x16xf32> -> vector<16x16xf32>
    %672 = arith.addf %664, %671 : vector<16x16xf32>
    %673 = vector.extract_strided_slice %655 {offsets = [0, 2], sizes = [16, 16], strides = [1, 1]} : vector<16x26xf32> to vector<16x16xf32>
    %c2_484 = arith.constant 2 : index
    %c0_485 = arith.constant 0 : index
    %674 = vector.load %arg31[%c2_484, %c0_485] : memref<9x16xf32, #tpu.memory_space<vmem>>, vector<1x16xf32>
    %675 = vector.broadcast %674 : vector<1x16xf32> to vector<16x16xf32>
    %676 = arith.mulf %673, %675 : vector<16x16xf32>
    %c2_486 = arith.constant 2 : index
    %c0_487 = arith.constant 0 : index
    %c0_488 = arith.constant 0 : index
    %677 = vector.load %arg18[%c2_486, %c0_487, %c0_488] : memref<9x16x16xf32, #tpu.memory_space<vmem>>, vector<1x16x16xf32>
    %678 = vector.shape_cast %677 : vector<1x16x16xf32> to vector<16x16xf32>
    %cst_489 = arith.constant dense<0.000000e+00> : vector<16x16xf32>
    %679 = tpu.matmul %678, %676, %cst_489 {dimension_numbers = #tpu.dot_dimension_numbers<[1], [0], [0], [1], [0, 0, 1, 1], [], []>} : vector<16x16xf32>, vector<16x16xf32>, vector<16x16xf32> -> vector<16x16xf32>
    %680 = arith.addf %672, %679 : vector<16x16xf32>
    %681 = vector.extract_strided_slice %655 {offsets = [0, 4], sizes = [16, 16], strides = [1, 1]} : vector<16x26xf32> to vector<16x16xf32>
    %c3_490 = arith.constant 3 : index
    %c0_491 = arith.constant 0 : index
    %682 = vector.load %arg31[%c3_490, %c0_491] : memref<9x16xf32, #tpu.memory_space<vmem>>, vector<1x16xf32>
    %683 = vector.broadcast %682 : vector<1x16xf32> to vector<16x16xf32>
    %684 = arith.mulf %681, %683 : vector<16x16xf32>
    %c3_492 = arith.constant 3 : index
    %c0_493 = arith.constant 0 : index
    %c0_494 = arith.constant 0 : index
    %685 = vector.load %arg18[%c3_492, %c0_493, %c0_494] : memref<9x16x16xf32, #tpu.memory_space<vmem>>, vector<1x16x16xf32>
    %686 = vector.shape_cast %685 : vector<1x16x16xf32> to vector<16x16xf32>
    %cst_495 = arith.constant dense<0.000000e+00> : vector<16x16xf32>
    %687 = tpu.matmul %686, %684, %cst_495 {dimension_numbers = #tpu.dot_dimension_numbers<[1], [0], [0], [1], [0, 0, 1, 1], [], []>} : vector<16x16xf32>, vector<16x16xf32>, vector<16x16xf32> -> vector<16x16xf32>
    %688 = arith.addf %680, %687 : vector<16x16xf32>
    %689 = vector.extract_strided_slice %655 {offsets = [0, 5], sizes = [16, 16], strides = [1, 1]} : vector<16x26xf32> to vector<16x16xf32>
    %c4_496 = arith.constant 4 : index
    %c0_497 = arith.constant 0 : index
    %c0_498 = arith.constant 0 : index
    %690 = vector.load %arg18[%c4_496, %c0_497, %c0_498] : memref<9x16x16xf32, #tpu.memory_space<vmem>>, vector<1x16x16xf32>
    %691 = vector.shape_cast %690 : vector<1x16x16xf32> to vector<16x16xf32>
    %cst_499 = arith.constant dense<0.000000e+00> : vector<16x16xf32>
    %692 = tpu.matmul %691, %689, %cst_499 {dimension_numbers = #tpu.dot_dimension_numbers<[1], [0], [0], [1], [0, 0, 1, 1], [], []>} : vector<16x16xf32>, vector<16x16xf32>, vector<16x16xf32> -> vector<16x16xf32>
    %693 = arith.addf %688, %692 : vector<16x16xf32>
    %694 = vector.extract_strided_slice %655 {offsets = [0, 6], sizes = [16, 16], strides = [1, 1]} : vector<16x26xf32> to vector<16x16xf32>
    %c5_500 = arith.constant 5 : index
    %c0_501 = arith.constant 0 : index
    %695 = vector.load %arg31[%c5_500, %c0_501] : memref<9x16xf32, #tpu.memory_space<vmem>>, vector<1x16xf32>
    %696 = vector.broadcast %695 : vector<1x16xf32> to vector<16x16xf32>
    %697 = arith.mulf %694, %696 : vector<16x16xf32>
    %c5_502 = arith.constant 5 : index
    %c0_503 = arith.constant 0 : index
    %c0_504 = arith.constant 0 : index
    %698 = vector.load %arg18[%c5_502, %c0_503, %c0_504] : memref<9x16x16xf32, #tpu.memory_space<vmem>>, vector<1x16x16xf32>
    %699 = vector.shape_cast %698 : vector<1x16x16xf32> to vector<16x16xf32>
    %cst_505 = arith.constant dense<0.000000e+00> : vector<16x16xf32>
    %700 = tpu.matmul %699, %697, %cst_505 {dimension_numbers = #tpu.dot_dimension_numbers<[1], [0], [0], [1], [0, 0, 1, 1], [], []>} : vector<16x16xf32>, vector<16x16xf32>, vector<16x16xf32> -> vector<16x16xf32>
    %701 = arith.addf %693, %700 : vector<16x16xf32>
    %702 = vector.extract_strided_slice %655 {offsets = [0, 8], sizes = [16, 16], strides = [1, 1]} : vector<16x26xf32> to vector<16x16xf32>
    %c6_506 = arith.constant 6 : index
    %c0_507 = arith.constant 0 : index
    %703 = vector.load %arg31[%c6_506, %c0_507] : memref<9x16xf32, #tpu.memory_space<vmem>>, vector<1x16xf32>
    %704 = vector.broadcast %703 : vector<1x16xf32> to vector<16x16xf32>
    %705 = arith.mulf %702, %704 : vector<16x16xf32>
    %c6_508 = arith.constant 6 : index
    %c0_509 = arith.constant 0 : index
    %c0_510 = arith.constant 0 : index
    %706 = vector.load %arg18[%c6_508, %c0_509, %c0_510] : memref<9x16x16xf32, #tpu.memory_space<vmem>>, vector<1x16x16xf32>
    %707 = vector.shape_cast %706 : vector<1x16x16xf32> to vector<16x16xf32>
    %cst_511 = arith.constant dense<0.000000e+00> : vector<16x16xf32>
    %708 = tpu.matmul %707, %705, %cst_511 {dimension_numbers = #tpu.dot_dimension_numbers<[1], [0], [0], [1], [0, 0, 1, 1], [], []>} : vector<16x16xf32>, vector<16x16xf32>, vector<16x16xf32> -> vector<16x16xf32>
    %709 = arith.addf %701, %708 : vector<16x16xf32>
    %710 = vector.extract_strided_slice %655 {offsets = [0, 9], sizes = [16, 16], strides = [1, 1]} : vector<16x26xf32> to vector<16x16xf32>
    %c7_512 = arith.constant 7 : index
    %c0_513 = arith.constant 0 : index
    %711 = vector.load %arg31[%c7_512, %c0_513] : memref<9x16xf32, #tpu.memory_space<vmem>>, vector<1x16xf32>
    %712 = vector.broadcast %711 : vector<1x16xf32> to vector<16x16xf32>
    %713 = arith.mulf %710, %712 : vector<16x16xf32>
    %c7_514 = arith.constant 7 : index
    %c0_515 = arith.constant 0 : index
    %c0_516 = arith.constant 0 : index
    %714 = vector.load %arg18[%c7_514, %c0_515, %c0_516] : memref<9x16x16xf32, #tpu.memory_space<vmem>>, vector<1x16x16xf32>
    %715 = vector.shape_cast %714 : vector<1x16x16xf32> to vector<16x16xf32>
    %cst_517 = arith.constant dense<0.000000e+00> : vector<16x16xf32>
    %716 = tpu.matmul %715, %713, %cst_517 {dimension_numbers = #tpu.dot_dimension_numbers<[1], [0], [0], [1], [0, 0, 1, 1], [], []>} : vector<16x16xf32>, vector<16x16xf32>, vector<16x16xf32> -> vector<16x16xf32>
    %717 = arith.addf %709, %716 : vector<16x16xf32>
    %718 = vector.extract_strided_slice %655 {offsets = [0, 10], sizes = [16, 16], strides = [1, 1]} : vector<16x26xf32> to vector<16x16xf32>
    %c8_518 = arith.constant 8 : index
    %c0_519 = arith.constant 0 : index
    %719 = vector.load %arg31[%c8_518, %c0_519] : memref<9x16xf32, #tpu.memory_space<vmem>>, vector<1x16xf32>
    %720 = vector.broadcast %719 : vector<1x16xf32> to vector<16x16xf32>
    %721 = arith.mulf %718, %720 : vector<16x16xf32>
    %c8_520 = arith.constant 8 : index
    %c0_521 = arith.constant 0 : index
    %c0_522 = arith.constant 0 : index
    %722 = vector.load %arg18[%c8_520, %c0_521, %c0_522] : memref<9x16x16xf32, #tpu.memory_space<vmem>>, vector<1x16x16xf32>
    %723 = vector.shape_cast %722 : vector<1x16x16xf32> to vector<16x16xf32>
    %cst_523 = arith.constant dense<0.000000e+00> : vector<16x16xf32>
    %724 = tpu.matmul %723, %721, %cst_523 {dimension_numbers = #tpu.dot_dimension_numbers<[1], [0], [0], [1], [0, 0, 1, 1], [], []>} : vector<16x16xf32>, vector<16x16xf32>, vector<16x16xf32> -> vector<16x16xf32>
    %725 = arith.addf %717, %724 : vector<16x16xf32>
    %c0_524 = arith.constant 0 : index
    %c0_525 = arith.constant 0 : index
    %726 = vector.load %arg19[%c0_524, %c0_525] : memref<16x1xf32, #tpu.memory_space<vmem>>, vector<16x1xf32>
    %727 = vector.broadcast %726 : vector<16x1xf32> to vector<16x16xf32>
    %728 = arith.addf %725, %727 : vector<16x16xf32>
    %cst_526 = arith.constant 0.000000e+00 : f32
    %729 = vector.broadcast %cst_526 : f32 to vector<16x16xf32>
    %730 = arith.maximumf %728, %729 : vector<16x16xf32>
    %cst_527 = arith.constant 0.000000e+00 : f32
    %731 = vector.broadcast %cst_527 : f32 to vector<16x5xf32>
    %732 = tpu.concatenate %731, %730, %731 in 1 : vector<16x5xf32>, vector<16x16xf32>, vector<16x5xf32> -> vector<16x26xf32>
    %cst_528 = arith.constant 0.000000e+00 : f32
    %733 = vector.broadcast %cst_528 : f32 to vector<16x16xf32>
    %734 = vector.extract_strided_slice %732 {offsets = [0, 0], sizes = [16, 16], strides = [1, 1]} : vector<16x26xf32> to vector<16x16xf32>
    %c0_529 = arith.constant 0 : index
    %c0_530 = arith.constant 0 : index
    %735 = vector.load %arg31[%c0_529, %c0_530] : memref<9x16xf32, #tpu.memory_space<vmem>>, vector<1x16xf32>
    %736 = vector.broadcast %735 : vector<1x16xf32> to vector<16x16xf32>
    %737 = arith.mulf %734, %736 : vector<16x16xf32>
    %c0_531 = arith.constant 0 : index
    %c0_532 = arith.constant 0 : index
    %c0_533 = arith.constant 0 : index
    %738 = vector.load %arg20[%c0_531, %c0_532, %c0_533] : memref<9x16x16xf32, #tpu.memory_space<vmem>>, vector<1x16x16xf32>
    %739 = vector.shape_cast %738 : vector<1x16x16xf32> to vector<16x16xf32>
    %cst_534 = arith.constant dense<0.000000e+00> : vector<16x16xf32>
    %740 = tpu.matmul %739, %737, %cst_534 {dimension_numbers = #tpu.dot_dimension_numbers<[1], [0], [0], [1], [0, 0, 1, 1], [], []>} : vector<16x16xf32>, vector<16x16xf32>, vector<16x16xf32> -> vector<16x16xf32>
    %741 = arith.addf %733, %740 : vector<16x16xf32>
    %742 = vector.extract_strided_slice %732 {offsets = [0, 1], sizes = [16, 16], strides = [1, 1]} : vector<16x26xf32> to vector<16x16xf32>
    %c1_535 = arith.constant 1 : index
    %c0_536 = arith.constant 0 : index
    %743 = vector.load %arg31[%c1_535, %c0_536] : memref<9x16xf32, #tpu.memory_space<vmem>>, vector<1x16xf32>
    %744 = vector.broadcast %743 : vector<1x16xf32> to vector<16x16xf32>
    %745 = arith.mulf %742, %744 : vector<16x16xf32>
    %c1_537 = arith.constant 1 : index
    %c0_538 = arith.constant 0 : index
    %c0_539 = arith.constant 0 : index
    %746 = vector.load %arg20[%c1_537, %c0_538, %c0_539] : memref<9x16x16xf32, #tpu.memory_space<vmem>>, vector<1x16x16xf32>
    %747 = vector.shape_cast %746 : vector<1x16x16xf32> to vector<16x16xf32>
    %cst_540 = arith.constant dense<0.000000e+00> : vector<16x16xf32>
    %748 = tpu.matmul %747, %745, %cst_540 {dimension_numbers = #tpu.dot_dimension_numbers<[1], [0], [0], [1], [0, 0, 1, 1], [], []>} : vector<16x16xf32>, vector<16x16xf32>, vector<16x16xf32> -> vector<16x16xf32>
    %749 = arith.addf %741, %748 : vector<16x16xf32>
    %750 = vector.extract_strided_slice %732 {offsets = [0, 2], sizes = [16, 16], strides = [1, 1]} : vector<16x26xf32> to vector<16x16xf32>
    %c2_541 = arith.constant 2 : index
    %c0_542 = arith.constant 0 : index
    %751 = vector.load %arg31[%c2_541, %c0_542] : memref<9x16xf32, #tpu.memory_space<vmem>>, vector<1x16xf32>
    %752 = vector.broadcast %751 : vector<1x16xf32> to vector<16x16xf32>
    %753 = arith.mulf %750, %752 : vector<16x16xf32>
    %c2_543 = arith.constant 2 : index
    %c0_544 = arith.constant 0 : index
    %c0_545 = arith.constant 0 : index
    %754 = vector.load %arg20[%c2_543, %c0_544, %c0_545] : memref<9x16x16xf32, #tpu.memory_space<vmem>>, vector<1x16x16xf32>
    %755 = vector.shape_cast %754 : vector<1x16x16xf32> to vector<16x16xf32>
    %cst_546 = arith.constant dense<0.000000e+00> : vector<16x16xf32>
    %756 = tpu.matmul %755, %753, %cst_546 {dimension_numbers = #tpu.dot_dimension_numbers<[1], [0], [0], [1], [0, 0, 1, 1], [], []>} : vector<16x16xf32>, vector<16x16xf32>, vector<16x16xf32> -> vector<16x16xf32>
    %757 = arith.addf %749, %756 : vector<16x16xf32>
    %758 = vector.extract_strided_slice %732 {offsets = [0, 4], sizes = [16, 16], strides = [1, 1]} : vector<16x26xf32> to vector<16x16xf32>
    %c3_547 = arith.constant 3 : index
    %c0_548 = arith.constant 0 : index
    %759 = vector.load %arg31[%c3_547, %c0_548] : memref<9x16xf32, #tpu.memory_space<vmem>>, vector<1x16xf32>
    %760 = vector.broadcast %759 : vector<1x16xf32> to vector<16x16xf32>
    %761 = arith.mulf %758, %760 : vector<16x16xf32>
    %c3_549 = arith.constant 3 : index
    %c0_550 = arith.constant 0 : index
    %c0_551 = arith.constant 0 : index
    %762 = vector.load %arg20[%c3_549, %c0_550, %c0_551] : memref<9x16x16xf32, #tpu.memory_space<vmem>>, vector<1x16x16xf32>
    %763 = vector.shape_cast %762 : vector<1x16x16xf32> to vector<16x16xf32>
    %cst_552 = arith.constant dense<0.000000e+00> : vector<16x16xf32>
    %764 = tpu.matmul %763, %761, %cst_552 {dimension_numbers = #tpu.dot_dimension_numbers<[1], [0], [0], [1], [0, 0, 1, 1], [], []>} : vector<16x16xf32>, vector<16x16xf32>, vector<16x16xf32> -> vector<16x16xf32>
    %765 = arith.addf %757, %764 : vector<16x16xf32>
    %766 = vector.extract_strided_slice %732 {offsets = [0, 5], sizes = [16, 16], strides = [1, 1]} : vector<16x26xf32> to vector<16x16xf32>
    %c4_553 = arith.constant 4 : index
    %c0_554 = arith.constant 0 : index
    %c0_555 = arith.constant 0 : index
    %767 = vector.load %arg20[%c4_553, %c0_554, %c0_555] : memref<9x16x16xf32, #tpu.memory_space<vmem>>, vector<1x16x16xf32>
    %768 = vector.shape_cast %767 : vector<1x16x16xf32> to vector<16x16xf32>
    %cst_556 = arith.constant dense<0.000000e+00> : vector<16x16xf32>
    %769 = tpu.matmul %768, %766, %cst_556 {dimension_numbers = #tpu.dot_dimension_numbers<[1], [0], [0], [1], [0, 0, 1, 1], [], []>} : vector<16x16xf32>, vector<16x16xf32>, vector<16x16xf32> -> vector<16x16xf32>
    %770 = arith.addf %765, %769 : vector<16x16xf32>
    %771 = vector.extract_strided_slice %732 {offsets = [0, 6], sizes = [16, 16], strides = [1, 1]} : vector<16x26xf32> to vector<16x16xf32>
    %c5_557 = arith.constant 5 : index
    %c0_558 = arith.constant 0 : index
    %772 = vector.load %arg31[%c5_557, %c0_558] : memref<9x16xf32, #tpu.memory_space<vmem>>, vector<1x16xf32>
    %773 = vector.broadcast %772 : vector<1x16xf32> to vector<16x16xf32>
    %774 = arith.mulf %771, %773 : vector<16x16xf32>
    %c5_559 = arith.constant 5 : index
    %c0_560 = arith.constant 0 : index
    %c0_561 = arith.constant 0 : index
    %775 = vector.load %arg20[%c5_559, %c0_560, %c0_561] : memref<9x16x16xf32, #tpu.memory_space<vmem>>, vector<1x16x16xf32>
    %776 = vector.shape_cast %775 : vector<1x16x16xf32> to vector<16x16xf32>
    %cst_562 = arith.constant dense<0.000000e+00> : vector<16x16xf32>
    %777 = tpu.matmul %776, %774, %cst_562 {dimension_numbers = #tpu.dot_dimension_numbers<[1], [0], [0], [1], [0, 0, 1, 1], [], []>} : vector<16x16xf32>, vector<16x16xf32>, vector<16x16xf32> -> vector<16x16xf32>
    %778 = arith.addf %770, %777 : vector<16x16xf32>
    %779 = vector.extract_strided_slice %732 {offsets = [0, 8], sizes = [16, 16], strides = [1, 1]} : vector<16x26xf32> to vector<16x16xf32>
    %c6_563 = arith.constant 6 : index
    %c0_564 = arith.constant 0 : index
    %780 = vector.load %arg31[%c6_563, %c0_564] : memref<9x16xf32, #tpu.memory_space<vmem>>, vector<1x16xf32>
    %781 = vector.broadcast %780 : vector<1x16xf32> to vector<16x16xf32>
    %782 = arith.mulf %779, %781 : vector<16x16xf32>
    %c6_565 = arith.constant 6 : index
    %c0_566 = arith.constant 0 : index
    %c0_567 = arith.constant 0 : index
    %783 = vector.load %arg20[%c6_565, %c0_566, %c0_567] : memref<9x16x16xf32, #tpu.memory_space<vmem>>, vector<1x16x16xf32>
    %784 = vector.shape_cast %783 : vector<1x16x16xf32> to vector<16x16xf32>
    %cst_568 = arith.constant dense<0.000000e+00> : vector<16x16xf32>
    %785 = tpu.matmul %784, %782, %cst_568 {dimension_numbers = #tpu.dot_dimension_numbers<[1], [0], [0], [1], [0, 0, 1, 1], [], []>} : vector<16x16xf32>, vector<16x16xf32>, vector<16x16xf32> -> vector<16x16xf32>
    %786 = arith.addf %778, %785 : vector<16x16xf32>
    %787 = vector.extract_strided_slice %732 {offsets = [0, 9], sizes = [16, 16], strides = [1, 1]} : vector<16x26xf32> to vector<16x16xf32>
    %c7_569 = arith.constant 7 : index
    %c0_570 = arith.constant 0 : index
    %788 = vector.load %arg31[%c7_569, %c0_570] : memref<9x16xf32, #tpu.memory_space<vmem>>, vector<1x16xf32>
    %789 = vector.broadcast %788 : vector<1x16xf32> to vector<16x16xf32>
    %790 = arith.mulf %787, %789 : vector<16x16xf32>
    %c7_571 = arith.constant 7 : index
    %c0_572 = arith.constant 0 : index
    %c0_573 = arith.constant 0 : index
    %791 = vector.load %arg20[%c7_571, %c0_572, %c0_573] : memref<9x16x16xf32, #tpu.memory_space<vmem>>, vector<1x16x16xf32>
    %792 = vector.shape_cast %791 : vector<1x16x16xf32> to vector<16x16xf32>
    %cst_574 = arith.constant dense<0.000000e+00> : vector<16x16xf32>
    %793 = tpu.matmul %792, %790, %cst_574 {dimension_numbers = #tpu.dot_dimension_numbers<[1], [0], [0], [1], [0, 0, 1, 1], [], []>} : vector<16x16xf32>, vector<16x16xf32>, vector<16x16xf32> -> vector<16x16xf32>
    %794 = arith.addf %786, %793 : vector<16x16xf32>
    %795 = vector.extract_strided_slice %732 {offsets = [0, 10], sizes = [16, 16], strides = [1, 1]} : vector<16x26xf32> to vector<16x16xf32>
    %c8_575 = arith.constant 8 : index
    %c0_576 = arith.constant 0 : index
    %796 = vector.load %arg31[%c8_575, %c0_576] : memref<9x16xf32, #tpu.memory_space<vmem>>, vector<1x16xf32>
    %797 = vector.broadcast %796 : vector<1x16xf32> to vector<16x16xf32>
    %798 = arith.mulf %795, %797 : vector<16x16xf32>
    %c8_577 = arith.constant 8 : index
    %c0_578 = arith.constant 0 : index
    %c0_579 = arith.constant 0 : index
    %799 = vector.load %arg20[%c8_577, %c0_578, %c0_579] : memref<9x16x16xf32, #tpu.memory_space<vmem>>, vector<1x16x16xf32>
    %800 = vector.shape_cast %799 : vector<1x16x16xf32> to vector<16x16xf32>
    %cst_580 = arith.constant dense<0.000000e+00> : vector<16x16xf32>
    %801 = tpu.matmul %800, %798, %cst_580 {dimension_numbers = #tpu.dot_dimension_numbers<[1], [0], [0], [1], [0, 0, 1, 1], [], []>} : vector<16x16xf32>, vector<16x16xf32>, vector<16x16xf32> -> vector<16x16xf32>
    %802 = arith.addf %794, %801 : vector<16x16xf32>
    %c0_581 = arith.constant 0 : index
    %c0_582 = arith.constant 0 : index
    %803 = vector.load %arg21[%c0_581, %c0_582] : memref<16x1xf32, #tpu.memory_space<vmem>>, vector<16x1xf32>
    %804 = vector.broadcast %803 : vector<16x1xf32> to vector<16x16xf32>
    %805 = arith.addf %802, %804 : vector<16x16xf32>
    %cst_583 = arith.constant 0.000000e+00 : f32
    %806 = vector.broadcast %cst_583 : f32 to vector<16x16xf32>
    %807 = arith.maximumf %805, %806 : vector<16x16xf32>
    %c0_584 = arith.constant 0 : index
    %c0_585 = arith.constant 0 : index
    %c0_586 = arith.constant 0 : index
    %808 = vector.load %arg40[%c0_584, %c0_585, %c0_586] : memref<1x16x16xf32, #tpu.memory_space<vmem>>, vector<1x16x16xf32>
    %809 = vector.shape_cast %808 : vector<1x16x16xf32> to vector<16x16xf32>
    %810 = vector.shape_cast %807 : vector<16x16xf32> to vector<1x16x16xf32>
    tpu.vector_store %arg40[%c0_584, %c0_585, %c0_586], %810 {strides = array<i32>} : memref<1x16x16xf32, #tpu.memory_space<vmem>>, vector<1x16x16xf32>,
    %811 = vector.extract_strided_slice %807 {offsets = [0, 1], sizes = [16, 15], strides = [1, 1]} : vector<16x16xf32> to vector<16x15xf32>
    %cst_587 = arith.constant 0.000000e+00 : f32
    %812 = vector.broadcast %cst_587 : f32 to vector<16x1xf32>
    %813 = tpu.concatenate %811, %812 in 1 : vector<16x15xf32>, vector<16x1xf32> -> vector<16x16xf32>
    %814 = arith.maximumf %807, %813 : vector<16x16xf32>
    %815 = vector.extract_strided_slice %814 {offsets = [0, 4], sizes = [16, 12], strides = [1, 1]} : vector<16x16xf32> to vector<16x12xf32>
    %cst_588 = arith.constant 0.000000e+00 : f32
    %816 = vector.broadcast %cst_588 : f32 to vector<16x4xf32>
    %817 = tpu.concatenate %815, %816 in 1 : vector<16x12xf32>, vector<16x4xf32> -> vector<16x16xf32>
    %818 = arith.maximumf %814, %817 : vector<16x16xf32>
    %c0_589 = arith.constant 0 : index
    %c0_590 = arith.constant 0 : index
    %819 = vector.load %arg36[%c0_589, %c0_590] : memref<16x4xf32, #tpu.memory_space<vmem>>, vector<16x4xf32>
    %cst_591 = arith.constant dense<0.000000e+00> : vector<16x4xf32>
    %820 = tpu.matmul %818, %819, %cst_591 {dimension_numbers = #tpu.dot_dimension_numbers<[1], [0], [0], [1], [0, 0, 1, 1], [], []>} : vector<16x16xf32>, vector<16x4xf32>, vector<16x4xf32> -> vector<16x4xf32>
    %cst_592 = arith.constant 0.000000e+00 : f32
    %821 = vector.broadcast %cst_592 : f32 to vector<16x3xf32>
    %822 = tpu.concatenate %821, %820, %821 in 1 : vector<16x3xf32>, vector<16x4xf32>, vector<16x3xf32> -> vector<16x10xf32>
    %cst_593 = arith.constant 0.000000e+00 : f32
    %823 = vector.broadcast %cst_593 : f32 to vector<16x4xf32>
    %824 = vector.extract_strided_slice %822 {offsets = [0, 0], sizes = [16, 4], strides = [1, 1]} : vector<16x10xf32> to vector<16x4xf32>
    %c0_594 = arith.constant 0 : index
    %c0_595 = arith.constant 0 : index
    %825 = vector.load %arg32[%c0_594, %c0_595] : memref<9x4xf32, #tpu.memory_space<vmem>>, vector<1x4xf32>
    %826 = vector.broadcast %825 : vector<1x4xf32> to vector<16x4xf32>
    %827 = arith.mulf %824, %826 : vector<16x4xf32>
    %c0_596 = arith.constant 0 : index
    %c0_597 = arith.constant 0 : index
    %c0_598 = arith.constant 0 : index
    %828 = vector.load %arg22[%c0_596, %c0_597, %c0_598] : memref<9x16x16xf32, #tpu.memory_space<vmem>>, vector<1x16x16xf32>
    %829 = vector.shape_cast %828 : vector<1x16x16xf32> to vector<16x16xf32>
    %cst_599 = arith.constant dense<0.000000e+00> : vector<16x4xf32>
    %830 = tpu.matmul %829, %827, %cst_599 {dimension_numbers = #tpu.dot_dimension_numbers<[1], [0], [0], [1], [0, 0, 1, 1], [], []>} : vector<16x16xf32>, vector<16x4xf32>, vector<16x4xf32> -> vector<16x4xf32>
    %831 = arith.addf %823, %830 : vector<16x4xf32>
    %832 = vector.extract_strided_slice %822 {offsets = [0, 1], sizes = [16, 4], strides = [1, 1]} : vector<16x10xf32> to vector<16x4xf32>
    %c1_600 = arith.constant 1 : index
    %c0_601 = arith.constant 0 : index
    %833 = vector.load %arg32[%c1_600, %c0_601] : memref<9x4xf32, #tpu.memory_space<vmem>>, vector<1x4xf32>
    %834 = vector.broadcast %833 : vector<1x4xf32> to vector<16x4xf32>
    %835 = arith.mulf %832, %834 : vector<16x4xf32>
    %c1_602 = arith.constant 1 : index
    %c0_603 = arith.constant 0 : index
    %c0_604 = arith.constant 0 : index
    %836 = vector.load %arg22[%c1_602, %c0_603, %c0_604] : memref<9x16x16xf32, #tpu.memory_space<vmem>>, vector<1x16x16xf32>
    %837 = vector.shape_cast %836 : vector<1x16x16xf32> to vector<16x16xf32>
    %cst_605 = arith.constant dense<0.000000e+00> : vector<16x4xf32>
    %838 = tpu.matmul %837, %835, %cst_605 {dimension_numbers = #tpu.dot_dimension_numbers<[1], [0], [0], [1], [0, 0, 1, 1], [], []>} : vector<16x16xf32>, vector<16x4xf32>, vector<16x4xf32> -> vector<16x4xf32>
    %839 = arith.addf %831, %838 : vector<16x4xf32>
    %840 = vector.extract_strided_slice %822 {offsets = [0, 2], sizes = [16, 4], strides = [1, 1]} : vector<16x10xf32> to vector<16x4xf32>
    %c2_606 = arith.constant 2 : index
    %c0_607 = arith.constant 0 : index
    %841 = vector.load %arg32[%c2_606, %c0_607] : memref<9x4xf32, #tpu.memory_space<vmem>>, vector<1x4xf32>
    %842 = vector.broadcast %841 : vector<1x4xf32> to vector<16x4xf32>
    %843 = arith.mulf %840, %842 : vector<16x4xf32>
    %c2_608 = arith.constant 2 : index
    %c0_609 = arith.constant 0 : index
    %c0_610 = arith.constant 0 : index
    %844 = vector.load %arg22[%c2_608, %c0_609, %c0_610] : memref<9x16x16xf32, #tpu.memory_space<vmem>>, vector<1x16x16xf32>
    %845 = vector.shape_cast %844 : vector<1x16x16xf32> to vector<16x16xf32>
    %cst_611 = arith.constant dense<0.000000e+00> : vector<16x4xf32>
    %846 = tpu.matmul %845, %843, %cst_611 {dimension_numbers = #tpu.dot_dimension_numbers<[1], [0], [0], [1], [0, 0, 1, 1], [], []>} : vector<16x16xf32>, vector<16x4xf32>, vector<16x4xf32> -> vector<16x4xf32>
    %847 = arith.addf %839, %846 : vector<16x4xf32>
    %848 = vector.extract_strided_slice %822 {offsets = [0, 2], sizes = [16, 4], strides = [1, 1]} : vector<16x10xf32> to vector<16x4xf32>
    %c3_612 = arith.constant 3 : index
    %c0_613 = arith.constant 0 : index
    %849 = vector.load %arg32[%c3_612, %c0_613] : memref<9x4xf32, #tpu.memory_space<vmem>>, vector<1x4xf32>
    %850 = vector.broadcast %849 : vector<1x4xf32> to vector<16x4xf32>
    %851 = arith.mulf %848, %850 : vector<16x4xf32>
    %c3_614 = arith.constant 3 : index
    %c0_615 = arith.constant 0 : index
    %c0_616 = arith.constant 0 : index
    %852 = vector.load %arg22[%c3_614, %c0_615, %c0_616] : memref<9x16x16xf32, #tpu.memory_space<vmem>>, vector<1x16x16xf32>
    %853 = vector.shape_cast %852 : vector<1x16x16xf32> to vector<16x16xf32>
    %cst_617 = arith.constant dense<0.000000e+00> : vector<16x4xf32>
    %854 = tpu.matmul %853, %851, %cst_617 {dimension_numbers = #tpu.dot_dimension_numbers<[1], [0], [0], [1], [0, 0, 1, 1], [], []>} : vector<16x16xf32>, vector<16x4xf32>, vector<16x4xf32> -> vector<16x4xf32>
    %855 = arith.addf %847, %854 : vector<16x4xf32>
    %856 = vector.extract_strided_slice %822 {offsets = [0, 3], sizes = [16, 4], strides = [1, 1]} : vector<16x10xf32> to vector<16x4xf32>
    %c4_618 = arith.constant 4 : index
    %c0_619 = arith.constant 0 : index
    %c0_620 = arith.constant 0 : index
    %857 = vector.load %arg22[%c4_618, %c0_619, %c0_620] : memref<9x16x16xf32, #tpu.memory_space<vmem>>, vector<1x16x16xf32>
    %858 = vector.shape_cast %857 : vector<1x16x16xf32> to vector<16x16xf32>
    %cst_621 = arith.constant dense<0.000000e+00> : vector<16x4xf32>
    %859 = tpu.matmul %858, %856, %cst_621 {dimension_numbers = #tpu.dot_dimension_numbers<[1], [0], [0], [1], [0, 0, 1, 1], [], []>} : vector<16x16xf32>, vector<16x4xf32>, vector<16x4xf32> -> vector<16x4xf32>
    %860 = arith.addf %855, %859 : vector<16x4xf32>
    %861 = vector.extract_strided_slice %822 {offsets = [0, 4], sizes = [16, 4], strides = [1, 1]} : vector<16x10xf32> to vector<16x4xf32>
    %c5_622 = arith.constant 5 : index
    %c0_623 = arith.constant 0 : index
    %862 = vector.load %arg32[%c5_622, %c0_623] : memref<9x4xf32, #tpu.memory_space<vmem>>, vector<1x4xf32>
    %863 = vector.broadcast %862 : vector<1x4xf32> to vector<16x4xf32>
    %864 = arith.mulf %861, %863 : vector<16x4xf32>
    %c5_624 = arith.constant 5 : index
    %c0_625 = arith.constant 0 : index
    %c0_626 = arith.constant 0 : index
    %865 = vector.load %arg22[%c5_624, %c0_625, %c0_626] : memref<9x16x16xf32, #tpu.memory_space<vmem>>, vector<1x16x16xf32>
    %866 = vector.shape_cast %865 : vector<1x16x16xf32> to vector<16x16xf32>
    %cst_627 = arith.constant dense<0.000000e+00> : vector<16x4xf32>
    %867 = tpu.matmul %866, %864, %cst_627 {dimension_numbers = #tpu.dot_dimension_numbers<[1], [0], [0], [1], [0, 0, 1, 1], [], []>} : vector<16x16xf32>, vector<16x4xf32>, vector<16x4xf32> -> vector<16x4xf32>
    %868 = arith.addf %860, %867 : vector<16x4xf32>
    %869 = vector.extract_strided_slice %822 {offsets = [0, 4], sizes = [16, 4], strides = [1, 1]} : vector<16x10xf32> to vector<16x4xf32>
    %c6_628 = arith.constant 6 : index
    %c0_629 = arith.constant 0 : index
    %870 = vector.load %arg32[%c6_628, %c0_629] : memref<9x4xf32, #tpu.memory_space<vmem>>, vector<1x4xf32>
    %871 = vector.broadcast %870 : vector<1x4xf32> to vector<16x4xf32>
    %872 = arith.mulf %869, %871 : vector<16x4xf32>
    %c6_630 = arith.constant 6 : index
    %c0_631 = arith.constant 0 : index
    %c0_632 = arith.constant 0 : index
    %873 = vector.load %arg22[%c6_630, %c0_631, %c0_632] : memref<9x16x16xf32, #tpu.memory_space<vmem>>, vector<1x16x16xf32>
    %874 = vector.shape_cast %873 : vector<1x16x16xf32> to vector<16x16xf32>
    %cst_633 = arith.constant dense<0.000000e+00> : vector<16x4xf32>
    %875 = tpu.matmul %874, %872, %cst_633 {dimension_numbers = #tpu.dot_dimension_numbers<[1], [0], [0], [1], [0, 0, 1, 1], [], []>} : vector<16x16xf32>, vector<16x4xf32>, vector<16x4xf32> -> vector<16x4xf32>
    %876 = arith.addf %868, %875 : vector<16x4xf32>
    %877 = vector.extract_strided_slice %822 {offsets = [0, 5], sizes = [16, 4], strides = [1, 1]} : vector<16x10xf32> to vector<16x4xf32>
    %c7_634 = arith.constant 7 : index
    %c0_635 = arith.constant 0 : index
    %878 = vector.load %arg32[%c7_634, %c0_635] : memref<9x4xf32, #tpu.memory_space<vmem>>, vector<1x4xf32>
    %879 = vector.broadcast %878 : vector<1x4xf32> to vector<16x4xf32>
    %880 = arith.mulf %877, %879 : vector<16x4xf32>
    %c7_636 = arith.constant 7 : index
    %c0_637 = arith.constant 0 : index
    %c0_638 = arith.constant 0 : index
    %881 = vector.load %arg22[%c7_636, %c0_637, %c0_638] : memref<9x16x16xf32, #tpu.memory_space<vmem>>, vector<1x16x16xf32>
    %882 = vector.shape_cast %881 : vector<1x16x16xf32> to vector<16x16xf32>
    %cst_639 = arith.constant dense<0.000000e+00> : vector<16x4xf32>
    %883 = tpu.matmul %882, %880, %cst_639 {dimension_numbers = #tpu.dot_dimension_numbers<[1], [0], [0], [1], [0, 0, 1, 1], [], []>} : vector<16x16xf32>, vector<16x4xf32>, vector<16x4xf32> -> vector<16x4xf32>
    %884 = arith.addf %876, %883 : vector<16x4xf32>
    %885 = vector.extract_strided_slice %822 {offsets = [0, 6], sizes = [16, 4], strides = [1, 1]} : vector<16x10xf32> to vector<16x4xf32>
    %c8_640 = arith.constant 8 : index
    %c0_641 = arith.constant 0 : index
    %886 = vector.load %arg32[%c8_640, %c0_641] : memref<9x4xf32, #tpu.memory_space<vmem>>, vector<1x4xf32>
    %887 = vector.broadcast %886 : vector<1x4xf32> to vector<16x4xf32>
    %888 = arith.mulf %885, %887 : vector<16x4xf32>
    %c8_642 = arith.constant 8 : index
    %c0_643 = arith.constant 0 : index
    %c0_644 = arith.constant 0 : index
    %889 = vector.load %arg22[%c8_642, %c0_643, %c0_644] : memref<9x16x16xf32, #tpu.memory_space<vmem>>, vector<1x16x16xf32>
    %890 = vector.shape_cast %889 : vector<1x16x16xf32> to vector<16x16xf32>
    %cst_645 = arith.constant dense<0.000000e+00> : vector<16x4xf32>
    %891 = tpu.matmul %890, %888, %cst_645 {dimension_numbers = #tpu.dot_dimension_numbers<[1], [0], [0], [1], [0, 0, 1, 1], [], []>} : vector<16x16xf32>, vector<16x4xf32>, vector<16x4xf32> -> vector<16x4xf32>
    %892 = arith.addf %884, %891 : vector<16x4xf32>
    %c0_646 = arith.constant 0 : index
    %c0_647 = arith.constant 0 : index
    %893 = vector.load %arg23[%c0_646, %c0_647] : memref<16x1xf32, #tpu.memory_space<vmem>>, vector<16x1xf32>
    %894 = vector.broadcast %893 : vector<16x1xf32> to vector<16x4xf32>
    %895 = arith.addf %892, %894 : vector<16x4xf32>
    %cst_648 = arith.constant 0.000000e+00 : f32
    %896 = vector.broadcast %cst_648 : f32 to vector<16x4xf32>
    %897 = arith.maximumf %895, %896 : vector<16x4xf32>
    %cst_649 = arith.constant 0.000000e+00 : f32
    %898 = vector.broadcast %cst_649 : f32 to vector<16x3xf32>
    %899 = tpu.concatenate %898, %897, %898 in 1 : vector<16x3xf32>, vector<16x4xf32>, vector<16x3xf32> -> vector<16x10xf32>
    %cst_650 = arith.constant 0.000000e+00 : f32
    %900 = vector.broadcast %cst_650 : f32 to vector<16x4xf32>
    %901 = vector.extract_strided_slice %899 {offsets = [0, 0], sizes = [16, 4], strides = [1, 1]} : vector<16x10xf32> to vector<16x4xf32>
    %c0_651 = arith.constant 0 : index
    %c0_652 = arith.constant 0 : index
    %902 = vector.load %arg32[%c0_651, %c0_652] : memref<9x4xf32, #tpu.memory_space<vmem>>, vector<1x4xf32>
    %903 = vector.broadcast %902 : vector<1x4xf32> to vector<16x4xf32>
    %904 = arith.mulf %901, %903 : vector<16x4xf32>
    %c0_653 = arith.constant 0 : index
    %c0_654 = arith.constant 0 : index
    %c0_655 = arith.constant 0 : index
    %905 = vector.load %arg24[%c0_653, %c0_654, %c0_655] : memref<9x16x16xf32, #tpu.memory_space<vmem>>, vector<1x16x16xf32>
    %906 = vector.shape_cast %905 : vector<1x16x16xf32> to vector<16x16xf32>
    %cst_656 = arith.constant dense<0.000000e+00> : vector<16x4xf32>
    %907 = tpu.matmul %906, %904, %cst_656 {dimension_numbers = #tpu.dot_dimension_numbers<[1], [0], [0], [1], [0, 0, 1, 1], [], []>} : vector<16x16xf32>, vector<16x4xf32>, vector<16x4xf32> -> vector<16x4xf32>
    %908 = arith.addf %900, %907 : vector<16x4xf32>
    %909 = vector.extract_strided_slice %899 {offsets = [0, 1], sizes = [16, 4], strides = [1, 1]} : vector<16x10xf32> to vector<16x4xf32>
    %c1_657 = arith.constant 1 : index
    %c0_658 = arith.constant 0 : index
    %910 = vector.load %arg32[%c1_657, %c0_658] : memref<9x4xf32, #tpu.memory_space<vmem>>, vector<1x4xf32>
    %911 = vector.broadcast %910 : vector<1x4xf32> to vector<16x4xf32>
    %912 = arith.mulf %909, %911 : vector<16x4xf32>
    %c1_659 = arith.constant 1 : index
    %c0_660 = arith.constant 0 : index
    %c0_661 = arith.constant 0 : index
    %913 = vector.load %arg24[%c1_659, %c0_660, %c0_661] : memref<9x16x16xf32, #tpu.memory_space<vmem>>, vector<1x16x16xf32>
    %914 = vector.shape_cast %913 : vector<1x16x16xf32> to vector<16x16xf32>
    %cst_662 = arith.constant dense<0.000000e+00> : vector<16x4xf32>
    %915 = tpu.matmul %914, %912, %cst_662 {dimension_numbers = #tpu.dot_dimension_numbers<[1], [0], [0], [1], [0, 0, 1, 1], [], []>} : vector<16x16xf32>, vector<16x4xf32>, vector<16x4xf32> -> vector<16x4xf32>
    %916 = arith.addf %908, %915 : vector<16x4xf32>
    %917 = vector.extract_strided_slice %899 {offsets = [0, 2], sizes = [16, 4], strides = [1, 1]} : vector<16x10xf32> to vector<16x4xf32>
    %c2_663 = arith.constant 2 : index
    %c0_664 = arith.constant 0 : index
    %918 = vector.load %arg32[%c2_663, %c0_664] : memref<9x4xf32, #tpu.memory_space<vmem>>, vector<1x4xf32>
    %919 = vector.broadcast %918 : vector<1x4xf32> to vector<16x4xf32>
    %920 = arith.mulf %917, %919 : vector<16x4xf32>
    %c2_665 = arith.constant 2 : index
    %c0_666 = arith.constant 0 : index
    %c0_667 = arith.constant 0 : index
    %921 = vector.load %arg24[%c2_665, %c0_666, %c0_667] : memref<9x16x16xf32, #tpu.memory_space<vmem>>, vector<1x16x16xf32>
    %922 = vector.shape_cast %921 : vector<1x16x16xf32> to vector<16x16xf32>
    %cst_668 = arith.constant dense<0.000000e+00> : vector<16x4xf32>
    %923 = tpu.matmul %922, %920, %cst_668 {dimension_numbers = #tpu.dot_dimension_numbers<[1], [0], [0], [1], [0, 0, 1, 1], [], []>} : vector<16x16xf32>, vector<16x4xf32>, vector<16x4xf32> -> vector<16x4xf32>
    %924 = arith.addf %916, %923 : vector<16x4xf32>
    %925 = vector.extract_strided_slice %899 {offsets = [0, 2], sizes = [16, 4], strides = [1, 1]} : vector<16x10xf32> to vector<16x4xf32>
    %c3_669 = arith.constant 3 : index
    %c0_670 = arith.constant 0 : index
    %926 = vector.load %arg32[%c3_669, %c0_670] : memref<9x4xf32, #tpu.memory_space<vmem>>, vector<1x4xf32>
    %927 = vector.broadcast %926 : vector<1x4xf32> to vector<16x4xf32>
    %928 = arith.mulf %925, %927 : vector<16x4xf32>
    %c3_671 = arith.constant 3 : index
    %c0_672 = arith.constant 0 : index
    %c0_673 = arith.constant 0 : index
    %929 = vector.load %arg24[%c3_671, %c0_672, %c0_673] : memref<9x16x16xf32, #tpu.memory_space<vmem>>, vector<1x16x16xf32>
    %930 = vector.shape_cast %929 : vector<1x16x16xf32> to vector<16x16xf32>
    %cst_674 = arith.constant dense<0.000000e+00> : vector<16x4xf32>
    %931 = tpu.matmul %930, %928, %cst_674 {dimension_numbers = #tpu.dot_dimension_numbers<[1], [0], [0], [1], [0, 0, 1, 1], [], []>} : vector<16x16xf32>, vector<16x4xf32>, vector<16x4xf32> -> vector<16x4xf32>
    %932 = arith.addf %924, %931 : vector<16x4xf32>
    %933 = vector.extract_strided_slice %899 {offsets = [0, 3], sizes = [16, 4], strides = [1, 1]} : vector<16x10xf32> to vector<16x4xf32>
    %c4_675 = arith.constant 4 : index
    %c0_676 = arith.constant 0 : index
    %c0_677 = arith.constant 0 : index
    %934 = vector.load %arg24[%c4_675, %c0_676, %c0_677] : memref<9x16x16xf32, #tpu.memory_space<vmem>>, vector<1x16x16xf32>
    %935 = vector.shape_cast %934 : vector<1x16x16xf32> to vector<16x16xf32>
    %cst_678 = arith.constant dense<0.000000e+00> : vector<16x4xf32>
    %936 = tpu.matmul %935, %933, %cst_678 {dimension_numbers = #tpu.dot_dimension_numbers<[1], [0], [0], [1], [0, 0, 1, 1], [], []>} : vector<16x16xf32>, vector<16x4xf32>, vector<16x4xf32> -> vector<16x4xf32>
    %937 = arith.addf %932, %936 : vector<16x4xf32>
    %938 = vector.extract_strided_slice %899 {offsets = [0, 4], sizes = [16, 4], strides = [1, 1]} : vector<16x10xf32> to vector<16x4xf32>
    %c5_679 = arith.constant 5 : index
    %c0_680 = arith.constant 0 : index
    %939 = vector.load %arg32[%c5_679, %c0_680] : memref<9x4xf32, #tpu.memory_space<vmem>>, vector<1x4xf32>
    %940 = vector.broadcast %939 : vector<1x4xf32> to vector<16x4xf32>
    %941 = arith.mulf %938, %940 : vector<16x4xf32>
    %c5_681 = arith.constant 5 : index
    %c0_682 = arith.constant 0 : index
    %c0_683 = arith.constant 0 : index
    %942 = vector.load %arg24[%c5_681, %c0_682, %c0_683] : memref<9x16x16xf32, #tpu.memory_space<vmem>>, vector<1x16x16xf32>
    %943 = vector.shape_cast %942 : vector<1x16x16xf32> to vector<16x16xf32>
    %cst_684 = arith.constant dense<0.000000e+00> : vector<16x4xf32>
    %944 = tpu.matmul %943, %941, %cst_684 {dimension_numbers = #tpu.dot_dimension_numbers<[1], [0], [0], [1], [0, 0, 1, 1], [], []>} : vector<16x16xf32>, vector<16x4xf32>, vector<16x4xf32> -> vector<16x4xf32>
    %945 = arith.addf %937, %944 : vector<16x4xf32>
    %946 = vector.extract_strided_slice %899 {offsets = [0, 4], sizes = [16, 4], strides = [1, 1]} : vector<16x10xf32> to vector<16x4xf32>
    %c6_685 = arith.constant 6 : index
    %c0_686 = arith.constant 0 : index
    %947 = vector.load %arg32[%c6_685, %c0_686] : memref<9x4xf32, #tpu.memory_space<vmem>>, vector<1x4xf32>
    %948 = vector.broadcast %947 : vector<1x4xf32> to vector<16x4xf32>
    %949 = arith.mulf %946, %948 : vector<16x4xf32>
    %c6_687 = arith.constant 6 : index
    %c0_688 = arith.constant 0 : index
    %c0_689 = arith.constant 0 : index
    %950 = vector.load %arg24[%c6_687, %c0_688, %c0_689] : memref<9x16x16xf32, #tpu.memory_space<vmem>>, vector<1x16x16xf32>
    %951 = vector.shape_cast %950 : vector<1x16x16xf32> to vector<16x16xf32>
    %cst_690 = arith.constant dense<0.000000e+00> : vector<16x4xf32>
    %952 = tpu.matmul %951, %949, %cst_690 {dimension_numbers = #tpu.dot_dimension_numbers<[1], [0], [0], [1], [0, 0, 1, 1], [], []>} : vector<16x16xf32>, vector<16x4xf32>, vector<16x4xf32> -> vector<16x4xf32>
    %953 = arith.addf %945, %952 : vector<16x4xf32>
    %954 = vector.extract_strided_slice %899 {offsets = [0, 5], sizes = [16, 4], strides = [1, 1]} : vector<16x10xf32> to vector<16x4xf32>
    %c7_691 = arith.constant 7 : index
    %c0_692 = arith.constant 0 : index
    %955 = vector.load %arg32[%c7_691, %c0_692] : memref<9x4xf32, #tpu.memory_space<vmem>>, vector<1x4xf32>
    %956 = vector.broadcast %955 : vector<1x4xf32> to vector<16x4xf32>
    %957 = arith.mulf %954, %956 : vector<16x4xf32>
    %c7_693 = arith.constant 7 : index
    %c0_694 = arith.constant 0 : index
    %c0_695 = arith.constant 0 : index
    %958 = vector.load %arg24[%c7_693, %c0_694, %c0_695] : memref<9x16x16xf32, #tpu.memory_space<vmem>>, vector<1x16x16xf32>
    %959 = vector.shape_cast %958 : vector<1x16x16xf32> to vector<16x16xf32>
    %cst_696 = arith.constant dense<0.000000e+00> : vector<16x4xf32>
    %960 = tpu.matmul %959, %957, %cst_696 {dimension_numbers = #tpu.dot_dimension_numbers<[1], [0], [0], [1], [0, 0, 1, 1], [], []>} : vector<16x16xf32>, vector<16x4xf32>, vector<16x4xf32> -> vector<16x4xf32>
    %961 = arith.addf %953, %960 : vector<16x4xf32>
    %962 = vector.extract_strided_slice %899 {offsets = [0, 6], sizes = [16, 4], strides = [1, 1]} : vector<16x10xf32> to vector<16x4xf32>
    %c8_697 = arith.constant 8 : index
    %c0_698 = arith.constant 0 : index
    %963 = vector.load %arg32[%c8_697, %c0_698] : memref<9x4xf32, #tpu.memory_space<vmem>>, vector<1x4xf32>
    %964 = vector.broadcast %963 : vector<1x4xf32> to vector<16x4xf32>
    %965 = arith.mulf %962, %964 : vector<16x4xf32>
    %c8_699 = arith.constant 8 : index
    %c0_700 = arith.constant 0 : index
    %c0_701 = arith.constant 0 : index
    %966 = vector.load %arg24[%c8_699, %c0_700, %c0_701] : memref<9x16x16xf32, #tpu.memory_space<vmem>>, vector<1x16x16xf32>
    %967 = vector.shape_cast %966 : vector<1x16x16xf32> to vector<16x16xf32>
    %cst_702 = arith.constant dense<0.000000e+00> : vector<16x4xf32>
    %968 = tpu.matmul %967, %965, %cst_702 {dimension_numbers = #tpu.dot_dimension_numbers<[1], [0], [0], [1], [0, 0, 1, 1], [], []>} : vector<16x16xf32>, vector<16x4xf32>, vector<16x4xf32> -> vector<16x4xf32>
    %969 = arith.addf %961, %968 : vector<16x4xf32>
    %c0_703 = arith.constant 0 : index
    %c0_704 = arith.constant 0 : index
    %970 = vector.load %arg25[%c0_703, %c0_704] : memref<16x1xf32, #tpu.memory_space<vmem>>, vector<16x1xf32>
    %971 = vector.broadcast %970 : vector<16x1xf32> to vector<16x4xf32>
    %972 = arith.addf %969, %971 : vector<16x4xf32>
    %cst_705 = arith.constant 0.000000e+00 : f32
    %973 = vector.broadcast %cst_705 : f32 to vector<16x4xf32>
    %974 = arith.maximumf %972, %973 : vector<16x4xf32>
    %cst_706 = arith.constant 0.000000e+00 : f32
    %975 = vector.broadcast %cst_706 : f32 to vector<16x3xf32>
    %976 = tpu.concatenate %975, %974, %975 in 1 : vector<16x3xf32>, vector<16x4xf32>, vector<16x3xf32> -> vector<16x10xf32>
    %cst_707 = arith.constant 0.000000e+00 : f32
    %977 = vector.broadcast %cst_707 : f32 to vector<16x4xf32>
    %978 = vector.extract_strided_slice %976 {offsets = [0, 0], sizes = [16, 4], strides = [1, 1]} : vector<16x10xf32> to vector<16x4xf32>
    %c0_708 = arith.constant 0 : index
    %c0_709 = arith.constant 0 : index
    %979 = vector.load %arg32[%c0_708, %c0_709] : memref<9x4xf32, #tpu.memory_space<vmem>>, vector<1x4xf32>
    %980 = vector.broadcast %979 : vector<1x4xf32> to vector<16x4xf32>
    %981 = arith.mulf %978, %980 : vector<16x4xf32>
    %c0_710 = arith.constant 0 : index
    %c0_711 = arith.constant 0 : index
    %c0_712 = arith.constant 0 : index
    %982 = vector.load %arg26[%c0_710, %c0_711, %c0_712] : memref<9x16x16xf32, #tpu.memory_space<vmem>>, vector<1x16x16xf32>
    %983 = vector.shape_cast %982 : vector<1x16x16xf32> to vector<16x16xf32>
    %cst_713 = arith.constant dense<0.000000e+00> : vector<16x4xf32>
    %984 = tpu.matmul %983, %981, %cst_713 {dimension_numbers = #tpu.dot_dimension_numbers<[1], [0], [0], [1], [0, 0, 1, 1], [], []>} : vector<16x16xf32>, vector<16x4xf32>, vector<16x4xf32> -> vector<16x4xf32>
    %985 = arith.addf %977, %984 : vector<16x4xf32>
    %986 = vector.extract_strided_slice %976 {offsets = [0, 1], sizes = [16, 4], strides = [1, 1]} : vector<16x10xf32> to vector<16x4xf32>
    %c1_714 = arith.constant 1 : index
    %c0_715 = arith.constant 0 : index
    %987 = vector.load %arg32[%c1_714, %c0_715] : memref<9x4xf32, #tpu.memory_space<vmem>>, vector<1x4xf32>
    %988 = vector.broadcast %987 : vector<1x4xf32> to vector<16x4xf32>
    %989 = arith.mulf %986, %988 : vector<16x4xf32>
    %c1_716 = arith.constant 1 : index
    %c0_717 = arith.constant 0 : index
    %c0_718 = arith.constant 0 : index
    %990 = vector.load %arg26[%c1_716, %c0_717, %c0_718] : memref<9x16x16xf32, #tpu.memory_space<vmem>>, vector<1x16x16xf32>
    %991 = vector.shape_cast %990 : vector<1x16x16xf32> to vector<16x16xf32>
    %cst_719 = arith.constant dense<0.000000e+00> : vector<16x4xf32>
    %992 = tpu.matmul %991, %989, %cst_719 {dimension_numbers = #tpu.dot_dimension_numbers<[1], [0], [0], [1], [0, 0, 1, 1], [], []>} : vector<16x16xf32>, vector<16x4xf32>, vector<16x4xf32> -> vector<16x4xf32>
    %993 = arith.addf %985, %992 : vector<16x4xf32>
    %994 = vector.extract_strided_slice %976 {offsets = [0, 2], sizes = [16, 4], strides = [1, 1]} : vector<16x10xf32> to vector<16x4xf32>
    %c2_720 = arith.constant 2 : index
    %c0_721 = arith.constant 0 : index
    %995 = vector.load %arg32[%c2_720, %c0_721] : memref<9x4xf32, #tpu.memory_space<vmem>>, vector<1x4xf32>
    %996 = vector.broadcast %995 : vector<1x4xf32> to vector<16x4xf32>
    %997 = arith.mulf %994, %996 : vector<16x4xf32>
    %c2_722 = arith.constant 2 : index
    %c0_723 = arith.constant 0 : index
    %c0_724 = arith.constant 0 : index
    %998 = vector.load %arg26[%c2_722, %c0_723, %c0_724] : memref<9x16x16xf32, #tpu.memory_space<vmem>>, vector<1x16x16xf32>
    %999 = vector.shape_cast %998 : vector<1x16x16xf32> to vector<16x16xf32>
    %cst_725 = arith.constant dense<0.000000e+00> : vector<16x4xf32>
    %1000 = tpu.matmul %999, %997, %cst_725 {dimension_numbers = #tpu.dot_dimension_numbers<[1], [0], [0], [1], [0, 0, 1, 1], [], []>} : vector<16x16xf32>, vector<16x4xf32>, vector<16x4xf32> -> vector<16x4xf32>
    %1001 = arith.addf %993, %1000 : vector<16x4xf32>
    %1002 = vector.extract_strided_slice %976 {offsets = [0, 2], sizes = [16, 4], strides = [1, 1]} : vector<16x10xf32> to vector<16x4xf32>
    %c3_726 = arith.constant 3 : index
    %c0_727 = arith.constant 0 : index
    %1003 = vector.load %arg32[%c3_726, %c0_727] : memref<9x4xf32, #tpu.memory_space<vmem>>, vector<1x4xf32>
    %1004 = vector.broadcast %1003 : vector<1x4xf32> to vector<16x4xf32>
    %1005 = arith.mulf %1002, %1004 : vector<16x4xf32>
    %c3_728 = arith.constant 3 : index
    %c0_729 = arith.constant 0 : index
    %c0_730 = arith.constant 0 : index
    %1006 = vector.load %arg26[%c3_728, %c0_729, %c0_730] : memref<9x16x16xf32, #tpu.memory_space<vmem>>, vector<1x16x16xf32>
    %1007 = vector.shape_cast %1006 : vector<1x16x16xf32> to vector<16x16xf32>
    %cst_731 = arith.constant dense<0.000000e+00> : vector<16x4xf32>
    %1008 = tpu.matmul %1007, %1005, %cst_731 {dimension_numbers = #tpu.dot_dimension_numbers<[1], [0], [0], [1], [0, 0, 1, 1], [], []>} : vector<16x16xf32>, vector<16x4xf32>, vector<16x4xf32> -> vector<16x4xf32>
    %1009 = arith.addf %1001, %1008 : vector<16x4xf32>
    %1010 = vector.extract_strided_slice %976 {offsets = [0, 3], sizes = [16, 4], strides = [1, 1]} : vector<16x10xf32> to vector<16x4xf32>
    %c4_732 = arith.constant 4 : index
    %c0_733 = arith.constant 0 : index
    %c0_734 = arith.constant 0 : index
    %1011 = vector.load %arg26[%c4_732, %c0_733, %c0_734] : memref<9x16x16xf32, #tpu.memory_space<vmem>>, vector<1x16x16xf32>
    %1012 = vector.shape_cast %1011 : vector<1x16x16xf32> to vector<16x16xf32>
    %cst_735 = arith.constant dense<0.000000e+00> : vector<16x4xf32>
    %1013 = tpu.matmul %1012, %1010, %cst_735 {dimension_numbers = #tpu.dot_dimension_numbers<[1], [0], [0], [1], [0, 0, 1, 1], [], []>} : vector<16x16xf32>, vector<16x4xf32>, vector<16x4xf32> -> vector<16x4xf32>
    %1014 = arith.addf %1009, %1013 : vector<16x4xf32>
    %1015 = vector.extract_strided_slice %976 {offsets = [0, 4], sizes = [16, 4], strides = [1, 1]} : vector<16x10xf32> to vector<16x4xf32>
    %c5_736 = arith.constant 5 : index
    %c0_737 = arith.constant 0 : index
    %1016 = vector.load %arg32[%c5_736, %c0_737] : memref<9x4xf32, #tpu.memory_space<vmem>>, vector<1x4xf32>
    %1017 = vector.broadcast %1016 : vector<1x4xf32> to vector<16x4xf32>
    %1018 = arith.mulf %1015, %1017 : vector<16x4xf32>
    %c5_738 = arith.constant 5 : index
    %c0_739 = arith.constant 0 : index
    %c0_740 = arith.constant 0 : index
    %1019 = vector.load %arg26[%c5_738, %c0_739, %c0_740] : memref<9x16x16xf32, #tpu.memory_space<vmem>>, vector<1x16x16xf32>
    %1020 = vector.shape_cast %1019 : vector<1x16x16xf32> to vector<16x16xf32>
    %cst_741 = arith.constant dense<0.000000e+00> : vector<16x4xf32>
    %1021 = tpu.matmul %1020, %1018, %cst_741 {dimension_numbers = #tpu.dot_dimension_numbers<[1], [0], [0], [1], [0, 0, 1, 1], [], []>} : vector<16x16xf32>, vector<16x4xf32>, vector<16x4xf32> -> vector<16x4xf32>
    %1022 = arith.addf %1014, %1021 : vector<16x4xf32>
    %1023 = vector.extract_strided_slice %976 {offsets = [0, 4], sizes = [16, 4], strides = [1, 1]} : vector<16x10xf32> to vector<16x4xf32>
    %c6_742 = arith.constant 6 : index
    %c0_743 = arith.constant 0 : index
    %1024 = vector.load %arg32[%c6_742, %c0_743] : memref<9x4xf32, #tpu.memory_space<vmem>>, vector<1x4xf32>
    %1025 = vector.broadcast %1024 : vector<1x4xf32> to vector<16x4xf32>
    %1026 = arith.mulf %1023, %1025 : vector<16x4xf32>
    %c6_744 = arith.constant 6 : index
    %c0_745 = arith.constant 0 : index
    %c0_746 = arith.constant 0 : index
    %1027 = vector.load %arg26[%c6_744, %c0_745, %c0_746] : memref<9x16x16xf32, #tpu.memory_space<vmem>>, vector<1x16x16xf32>
    %1028 = vector.shape_cast %1027 : vector<1x16x16xf32> to vector<16x16xf32>
    %cst_747 = arith.constant dense<0.000000e+00> : vector<16x4xf32>
    %1029 = tpu.matmul %1028, %1026, %cst_747 {dimension_numbers = #tpu.dot_dimension_numbers<[1], [0], [0], [1], [0, 0, 1, 1], [], []>} : vector<16x16xf32>, vector<16x4xf32>, vector<16x4xf32> -> vector<16x4xf32>
    %1030 = arith.addf %1022, %1029 : vector<16x4xf32>
    %1031 = vector.extract_strided_slice %976 {offsets = [0, 5], sizes = [16, 4], strides = [1, 1]} : vector<16x10xf32> to vector<16x4xf32>
    %c7_748 = arith.constant 7 : index
    %c0_749 = arith.constant 0 : index
    %1032 = vector.load %arg32[%c7_748, %c0_749] : memref<9x4xf32, #tpu.memory_space<vmem>>, vector<1x4xf32>
    %1033 = vector.broadcast %1032 : vector<1x4xf32> to vector<16x4xf32>
    %1034 = arith.mulf %1031, %1033 : vector<16x4xf32>
    %c7_750 = arith.constant 7 : index
    %c0_751 = arith.constant 0 : index
    %c0_752 = arith.constant 0 : index
    %1035 = vector.load %arg26[%c7_750, %c0_751, %c0_752] : memref<9x16x16xf32, #tpu.memory_space<vmem>>, vector<1x16x16xf32>
    %1036 = vector.shape_cast %1035 : vector<1x16x16xf32> to vector<16x16xf32>
    %cst_753 = arith.constant dense<0.000000e+00> : vector<16x4xf32>
    %1037 = tpu.matmul %1036, %1034, %cst_753 {dimension_numbers = #tpu.dot_dimension_numbers<[1], [0], [0], [1], [0, 0, 1, 1], [], []>} : vector<16x16xf32>, vector<16x4xf32>, vector<16x4xf32> -> vector<16x4xf32>
    %1038 = arith.addf %1030, %1037 : vector<16x4xf32>
    %1039 = vector.extract_strided_slice %976 {offsets = [0, 6], sizes = [16, 4], strides = [1, 1]} : vector<16x10xf32> to vector<16x4xf32>
    %c8_754 = arith.constant 8 : index
    %c0_755 = arith.constant 0 : index
    %1040 = vector.load %arg32[%c8_754, %c0_755] : memref<9x4xf32, #tpu.memory_space<vmem>>, vector<1x4xf32>
    %1041 = vector.broadcast %1040 : vector<1x4xf32> to vector<16x4xf32>
    %1042 = arith.mulf %1039, %1041 : vector<16x4xf32>
    %c8_756 = arith.constant 8 : index
    %c0_757 = arith.constant 0 : index
    %c0_758 = arith.constant 0 : index
    %1043 = vector.load %arg26[%c8_756, %c0_757, %c0_758] : memref<9x16x16xf32, #tpu.memory_space<vmem>>, vector<1x16x16xf32>
    %1044 = vector.shape_cast %1043 : vector<1x16x16xf32> to vector<16x16xf32>
    %cst_759 = arith.constant dense<0.000000e+00> : vector<16x4xf32>
    %1045 = tpu.matmul %1044, %1042, %cst_759 {dimension_numbers = #tpu.dot_dimension_numbers<[1], [0], [0], [1], [0, 0, 1, 1], [], []>} : vector<16x16xf32>, vector<16x4xf32>, vector<16x4xf32> -> vector<16x4xf32>
    %1046 = arith.addf %1038, %1045 : vector<16x4xf32>
    %c0_760 = arith.constant 0 : index
    %c0_761 = arith.constant 0 : index
    %1047 = vector.load %arg27[%c0_760, %c0_761] : memref<16x1xf32, #tpu.memory_space<vmem>>, vector<16x1xf32>
    %1048 = vector.broadcast %1047 : vector<16x1xf32> to vector<16x4xf32>
    %1049 = arith.addf %1046, %1048 : vector<16x4xf32>
    %cst_762 = arith.constant 0.000000e+00 : f32
    %1050 = vector.broadcast %cst_762 : f32 to vector<16x4xf32>
    %1051 = arith.maximumf %1049, %1050 : vector<16x4xf32>
    %c0_763 = arith.constant 0 : index
    %c0_764 = arith.constant 0 : index
    %c0_765 = arith.constant 0 : index
    %1052 = vector.load %arg41[%c0_763, %c0_764, %c0_765] : memref<1x16x4xf32, #tpu.memory_space<vmem>>, vector<1x16x4xf32>
    %1053 = vector.shape_cast %1052 : vector<1x16x4xf32> to vector<16x4xf32>
    %1054 = vector.shape_cast %1051 : vector<16x4xf32> to vector<1x16x4xf32>
    tpu.vector_store %arg41[%c0_763, %c0_764, %c0_765], %1054 {strides = array<i32>} : memref<1x16x4xf32, #tpu.memory_space<vmem>>, vector<1x16x4xf32>,
    %1055 = vector.extract_strided_slice %1051 {offsets = [0, 1], sizes = [16, 3], strides = [1, 1]} : vector<16x4xf32> to vector<16x3xf32>
    %cst_766 = arith.constant 0.000000e+00 : f32
    %1056 = vector.broadcast %cst_766 : f32 to vector<16x1xf32>
    %1057 = tpu.concatenate %1055, %1056 in 1 : vector<16x3xf32>, vector<16x1xf32> -> vector<16x4xf32>
    %1058 = arith.maximumf %1051, %1057 : vector<16x4xf32>
    %1059 = vector.extract_strided_slice %1058 {offsets = [0, 2], sizes = [16, 2], strides = [1, 1]} : vector<16x4xf32> to vector<16x2xf32>
    %cst_767 = arith.constant 0.000000e+00 : f32
    %1060 = vector.broadcast %cst_767 : f32 to vector<16x2xf32>
    %1061 = tpu.concatenate %1059, %1060 in 1 : vector<16x2xf32>, vector<16x2xf32> -> vector<16x4xf32>
    %1062 = arith.maximumf %1058, %1061 : vector<16x4xf32>
    %c0_768 = arith.constant 0 : index
    %c0_769 = arith.constant 0 : index
    %1063 = vector.load %arg37[%c0_768, %c0_769] : memref<4x1xf32, #tpu.memory_space<vmem>>, vector<4x1xf32>
    %cst_770 = arith.constant dense<0.000000e+00> : vector<16x1xf32>
    %1064 = tpu.matmul %1062, %1063, %cst_770 {dimension_numbers = #tpu.dot_dimension_numbers<[1], [0], [0], [1], [0, 0, 1, 1], [], []>} : vector<16x4xf32>, vector<4x1xf32>, vector<16x1xf32> -> vector<16x1xf32>
    %c0_771 = arith.constant 0 : index
    %c0_772 = arith.constant 0 : index
    %c0_773 = arith.constant 0 : index
    %1065 = vector.load %arg42[%c0_771, %c0_772, %c0_773] : memref<1x16x1xf32, #tpu.memory_space<vmem>>, vector<1x16x1xf32>
    %1066 = vector.shape_cast %1065 : vector<1x16x1xf32> to vector<16x1xf32>
    %1067 = vector.shape_cast %1064 : vector<16x1xf32> to vector<1x16x1xf32>
    tpu.vector_store %arg42[%c0_771, %c0_772, %c0_773], %1067 {strides = array<i32>} : memref<1x16x1xf32, #tpu.memory_space<vmem>>, vector<1x16x1xf32>,
    return
  }
  func.func @transform_0(%arg0: i32) -> (i32, i32, i32) {
    %c0_i32 = arith.constant 0 : i32
    %c0_i32_0 = arith.constant 0 : i32
    %c0_i32_1 = arith.constant 0 : i32
    return %arg0, %c0_i32, %c0_i32_0 : i32, i32, i32
  }
  func.func @transform_1(%arg0: i32) -> (i32, i32, i32) {
    %c0_i32 = arith.constant 0 : i32
    %c0_i32_0 = arith.constant 0 : i32
    %c0_i32_1 = arith.constant 0 : i32
    %c0_i32_2 = arith.constant 0 : i32
    return %c0_i32, %c0_i32_0, %c0_i32_1 : i32, i32, i32
  }
  func.func @transform_2(%arg0: i32) -> (i32, i32) {
    %c0_i32 = arith.constant 0 : i32
    %c0_i32_0 = arith.constant 0 : i32
    %c0_i32_1 = arith.constant 0 : i32
    return %c0_i32, %c0_i32_0 : i32, i32
  }
  func.func @transform_3(%arg0: i32) -> (i32, i32, i32) {
    %c0_i32 = arith.constant 0 : i32
    %c0_i32_0 = arith.constant 0 : i32
    %c0_i32_1 = arith.constant 0 : i32
    %c0_i32_2 = arith.constant 0 : i32
    return %c0_i32, %c0_i32_0, %c0_i32_1 : i32, i32, i32
  }
  func.func @transform_4(%arg0: i32) -> (i32, i32) {
    %c0_i32 = arith.constant 0 : i32
    %c0_i32_0 = arith.constant 0 : i32
    %c0_i32_1 = arith.constant 0 : i32
    return %c0_i32, %c0_i32_0 : i32, i32
  }
  func.func @transform_5(%arg0: i32) -> (i32, i32, i32) {
    %c0_i32 = arith.constant 0 : i32
    %c0_i32_0 = arith.constant 0 : i32
    %c0_i32_1 = arith.constant 0 : i32
    %c0_i32_2 = arith.constant 0 : i32
    return %c0_i32, %c0_i32_0, %c0_i32_1 : i32, i32, i32
  }
  func.func @transform_6(%arg0: i32) -> (i32, i32) {
    %c0_i32 = arith.constant 0 : i32
    %c0_i32_0 = arith.constant 0 : i32
    %c0_i32_1 = arith.constant 0 : i32
    return %c0_i32, %c0_i32_0 : i32, i32
  }
  func.func @transform_7(%arg0: i32) -> (i32, i32, i32) {
    %c0_i32 = arith.constant 0 : i32
    %c0_i32_0 = arith.constant 0 : i32
    %c0_i32_1 = arith.constant 0 : i32
    %c0_i32_2 = arith.constant 0 : i32
    return %c0_i32, %c0_i32_0, %c0_i32_1 : i32, i32, i32
  }
  func.func @transform_8(%arg0: i32) -> (i32, i32) {
    %c0_i32 = arith.constant 0 : i32
    %c0_i32_0 = arith.constant 0 : i32
    %c0_i32_1 = arith.constant 0 : i32
    return %c0_i32, %c0_i32_0 : i32, i32
  }
  func.func @transform_9(%arg0: i32) -> (i32, i32, i32) {
    %c0_i32 = arith.constant 0 : i32
    %c0_i32_0 = arith.constant 0 : i32
    %c0_i32_1 = arith.constant 0 : i32
    %c0_i32_2 = arith.constant 0 : i32
    return %c0_i32, %c0_i32_0, %c0_i32_1 : i32, i32, i32
  }
  func.func @transform_10(%arg0: i32) -> (i32, i32) {
    %c0_i32 = arith.constant 0 : i32
    %c0_i32_0 = arith.constant 0 : i32
    %c0_i32_1 = arith.constant 0 : i32
    return %c0_i32, %c0_i32_0 : i32, i32
  }
  func.func @transform_11(%arg0: i32) -> (i32, i32, i32) {
    %c0_i32 = arith.constant 0 : i32
    %c0_i32_0 = arith.constant 0 : i32
    %c0_i32_1 = arith.constant 0 : i32
    %c0_i32_2 = arith.constant 0 : i32
    return %c0_i32, %c0_i32_0, %c0_i32_1 : i32, i32, i32
  }
  func.func @transform_12(%arg0: i32) -> (i32, i32) {
    %c0_i32 = arith.constant 0 : i32
    %c0_i32_0 = arith.constant 0 : i32
    %c0_i32_1 = arith.constant 0 : i32
    return %c0_i32, %c0_i32_0 : i32, i32
  }
  func.func @transform_13(%arg0: i32) -> (i32, i32, i32) {
    %c0_i32 = arith.constant 0 : i32
    %c0_i32_0 = arith.constant 0 : i32
    %c0_i32_1 = arith.constant 0 : i32
    %c0_i32_2 = arith.constant 0 : i32
    return %c0_i32, %c0_i32_0, %c0_i32_1 : i32, i32, i32
  }
  func.func @transform_14(%arg0: i32) -> (i32, i32) {
    %c0_i32 = arith.constant 0 : i32
    %c0_i32_0 = arith.constant 0 : i32
    %c0_i32_1 = arith.constant 0 : i32
    return %c0_i32, %c0_i32_0 : i32, i32
  }
  func.func @transform_15(%arg0: i32) -> (i32, i32, i32) {
    %c0_i32 = arith.constant 0 : i32
    %c0_i32_0 = arith.constant 0 : i32
    %c0_i32_1 = arith.constant 0 : i32
    %c0_i32_2 = arith.constant 0 : i32
    return %c0_i32, %c0_i32_0, %c0_i32_1 : i32, i32, i32
  }
  func.func @transform_16(%arg0: i32) -> (i32, i32) {
    %c0_i32 = arith.constant 0 : i32
    %c0_i32_0 = arith.constant 0 : i32
    %c0_i32_1 = arith.constant 0 : i32
    return %c0_i32, %c0_i32_0 : i32, i32
  }
  func.func @transform_17(%arg0: i32) -> (i32, i32, i32) {
    %c0_i32 = arith.constant 0 : i32
    %c0_i32_0 = arith.constant 0 : i32
    %c0_i32_1 = arith.constant 0 : i32
    %c0_i32_2 = arith.constant 0 : i32
    return %c0_i32, %c0_i32_0, %c0_i32_1 : i32, i32, i32
  }
  func.func @transform_18(%arg0: i32) -> (i32, i32) {
    %c0_i32 = arith.constant 0 : i32
    %c0_i32_0 = arith.constant 0 : i32
    %c0_i32_1 = arith.constant 0 : i32
    return %c0_i32, %c0_i32_0 : i32, i32
  }
  func.func @transform_19(%arg0: i32) -> (i32, i32, i32) {
    %c0_i32 = arith.constant 0 : i32
    %c0_i32_0 = arith.constant 0 : i32
    %c0_i32_1 = arith.constant 0 : i32
    %c0_i32_2 = arith.constant 0 : i32
    return %c0_i32, %c0_i32_0, %c0_i32_1 : i32, i32, i32
  }
  func.func @transform_20(%arg0: i32) -> (i32, i32) {
    %c0_i32 = arith.constant 0 : i32
    %c0_i32_0 = arith.constant 0 : i32
    %c0_i32_1 = arith.constant 0 : i32
    return %c0_i32, %c0_i32_0 : i32, i32
  }
  func.func @transform_21(%arg0: i32) -> (i32, i32, i32) {
    %c0_i32 = arith.constant 0 : i32
    %c0_i32_0 = arith.constant 0 : i32
    %c0_i32_1 = arith.constant 0 : i32
    %c0_i32_2 = arith.constant 0 : i32
    return %c0_i32, %c0_i32_0, %c0_i32_1 : i32, i32, i32
  }
  func.func @transform_22(%arg0: i32) -> (i32, i32) {
    %c0_i32 = arith.constant 0 : i32
    %c0_i32_0 = arith.constant 0 : i32
    %c0_i32_1 = arith.constant 0 : i32
    return %c0_i32, %c0_i32_0 : i32, i32
  }
  func.func @transform_23(%arg0: i32) -> (i32, i32, i32) {
    %c0_i32 = arith.constant 0 : i32
    %c0_i32_0 = arith.constant 0 : i32
    %c0_i32_1 = arith.constant 0 : i32
    %c0_i32_2 = arith.constant 0 : i32
    return %c0_i32, %c0_i32_0, %c0_i32_1 : i32, i32, i32
  }
  func.func @transform_24(%arg0: i32) -> (i32, i32) {
    %c0_i32 = arith.constant 0 : i32
    %c0_i32_0 = arith.constant 0 : i32
    %c0_i32_1 = arith.constant 0 : i32
    return %c0_i32, %c0_i32_0 : i32, i32
  }
  func.func @transform_25(%arg0: i32) -> (i32, i32, i32) {
    %c0_i32 = arith.constant 0 : i32
    %c0_i32_0 = arith.constant 0 : i32
    %c0_i32_1 = arith.constant 0 : i32
    %c0_i32_2 = arith.constant 0 : i32
    return %c0_i32, %c0_i32_0, %c0_i32_1 : i32, i32, i32
  }
  func.func @transform_26(%arg0: i32) -> (i32, i32) {
    %c0_i32 = arith.constant 0 : i32
    %c0_i32_0 = arith.constant 0 : i32
    %c0_i32_1 = arith.constant 0 : i32
    return %c0_i32, %c0_i32_0 : i32, i32
  }
  func.func @transform_27(%arg0: i32) -> (i32, i32) {
    %c0_i32 = arith.constant 0 : i32
    %c0_i32_0 = arith.constant 0 : i32
    %c0_i32_1 = arith.constant 0 : i32
    return %c0_i32, %c0_i32_0 : i32, i32
  }
  func.func @transform_28(%arg0: i32) -> (i32, i32) {
    %c0_i32 = arith.constant 0 : i32
    %c0_i32_0 = arith.constant 0 : i32
    %c0_i32_1 = arith.constant 0 : i32
    return %c0_i32, %c0_i32_0 : i32, i32
  }
  func.func @transform_29(%arg0: i32) -> (i32, i32) {
    %c0_i32 = arith.constant 0 : i32
    %c0_i32_0 = arith.constant 0 : i32
    %c0_i32_1 = arith.constant 0 : i32
    return %c0_i32, %c0_i32_0 : i32, i32
  }
  func.func @transform_30(%arg0: i32) -> (i32, i32) {
    %c0_i32 = arith.constant 0 : i32
    %c0_i32_0 = arith.constant 0 : i32
    %c0_i32_1 = arith.constant 0 : i32
    return %c0_i32, %c0_i32_0 : i32, i32
  }
  func.func @transform_31(%arg0: i32) -> (i32, i32) {
    %c0_i32 = arith.constant 0 : i32
    %c0_i32_0 = arith.constant 0 : i32
    %c0_i32_1 = arith.constant 0 : i32
    return %c0_i32, %c0_i32_0 : i32, i32
  }
  func.func @transform_32(%arg0: i32) -> (i32, i32) {
    %c0_i32 = arith.constant 0 : i32
    %c0_i32_0 = arith.constant 0 : i32
    %c0_i32_1 = arith.constant 0 : i32
    return %c0_i32, %c0_i32_0 : i32, i32
  }
  func.func @transform_33(%arg0: i32) -> (i32, i32) {
    %c0_i32 = arith.constant 0 : i32
    %c0_i32_0 = arith.constant 0 : i32
    %c0_i32_1 = arith.constant 0 : i32
    return %c0_i32, %c0_i32_0 : i32, i32
  }
  func.func @transform_34(%arg0: i32) -> (i32, i32) {
    %c0_i32 = arith.constant 0 : i32
    %c0_i32_0 = arith.constant 0 : i32
    %c0_i32_1 = arith.constant 0 : i32
    return %c0_i32, %c0_i32_0 : i32, i32
  }
  func.func @transform_35(%arg0: i32) -> (i32, i32) {
    %c0_i32 = arith.constant 0 : i32
    %c0_i32_0 = arith.constant 0 : i32
    %c0_i32_1 = arith.constant 0 : i32
    return %c0_i32, %c0_i32_0 : i32, i32
  }
  func.func @transform_36(%arg0: i32) -> (i32, i32) {
    %c0_i32 = arith.constant 0 : i32
    %c0_i32_0 = arith.constant 0 : i32
    %c0_i32_1 = arith.constant 0 : i32
    return %c0_i32, %c0_i32_0 : i32, i32
  }
  func.func @transform_37(%arg0: i32) -> (i32, i32, i32) {
    %c0_i32 = arith.constant 0 : i32
    %c0_i32_0 = arith.constant 0 : i32
    %c0_i32_1 = arith.constant 0 : i32
    return %arg0, %c0_i32, %c0_i32_0 : i32, i32, i32
  }
  func.func @transform_38(%arg0: i32) -> (i32, i32, i32) {
    %c0_i32 = arith.constant 0 : i32
    %c0_i32_0 = arith.constant 0 : i32
    %c0_i32_1 = arith.constant 0 : i32
    return %arg0, %c0_i32, %c0_i32_0 : i32, i32, i32
  }
  func.func @transform_39(%arg0: i32) -> (i32, i32, i32) {
    %c0_i32 = arith.constant 0 : i32
    %c0_i32_0 = arith.constant 0 : i32
    %c0_i32_1 = arith.constant 0 : i32
    return %arg0, %c0_i32, %c0_i32_0 : i32, i32, i32
  }
  func.func @transform_40(%arg0: i32) -> (i32, i32, i32) {
    %c0_i32 = arith.constant 0 : i32
    %c0_i32_0 = arith.constant 0 : i32
    %c0_i32_1 = arith.constant 0 : i32
    return %arg0, %c0_i32, %c0_i32_0 : i32, i32, i32
  }
  func.func @transform_41(%arg0: i32) -> (i32, i32, i32) {
    %c0_i32 = arith.constant 0 : i32
    %c0_i32_0 = arith.constant 0 : i32
    %c0_i32_1 = arith.constant 0 : i32
    return %arg0, %c0_i32, %c0_i32_0 : i32, i32, i32
  }
}

</mosaic_0001>

<bundles_post_ra>
// kernel: _lambda_.1
= control target key start
LH: loop header
LB: loop body
LE: loop exit
PB: predicated region body
PF: predicated region fallthrough
CT: control target
= control target key end

     0   :  { %s23496_s6 = smov 1   ;;  %s23497_s10 = smov 2   ;;  %s26960_s0 = inlined_call_operand.smem [shape: u32[42], index: -1, kind: input, shape index: {}] }
   0x1   :  { %s23622_s5 = sld [smem:[%s26960_s0]]   ;;  %s23498_s14 = smov 3  }
   0x2   :  { %s23627_s9 = sld [smem:[%s26960_s0 + %s23496_s6]]   ;;  %s23499_s18 = smov 4  }
   0x3   :  { %s23632_s13 = sld [smem:[%s26960_s0 + %s23497_s10]]   ;;  %s23500_s22 = smov 5  }
   0x4   :  { %s23637_s17 = sld [smem:[%s26960_s0 + %s23498_s14]]   ;;  %s23501_s26 = smov 6  }
   0x5   :  { %s23642_s21 = sld [smem:[%s26960_s0 + %s23499_s18]]   ;;  %s23502_s30 = smov 7  }
   0x6   :  { %s23647_s25 = sld [smem:[%s26960_s0 + %s23500_s22]]   ;;  %s23503_s4 = smov 8  }
   0x7   :  { %27084 = sst [smem:[#allocation65_spill]] %s23622_s5  ;;  %s23504_s10 = smov 9  }
   0x8   :  { %27085 = sst [smem:[#allocation66_spill]] %s23627_s9  ;;  %s23505_s15 = smov 10  }
   0x9   :  { %27086 = sst [smem:[#allocation67_spill]] %s23632_s13  ;;  %s23506_s20 = smov 11  }
   0xa   :  { %27087 = sst [smem:[#allocation68_spill]] %s23637_s17  ;;  %s23508_s1 = smov 13  }
   0xb   :  { %27088 = sst [smem:[#allocation69_spill]] %s23642_s21  ;;  %s23509_s7 = smov 14  }
   0xc   :  { %27089 = sst [smem:[#allocation70_spill]] %s23647_s25  ;;  %s23511_s22 = smov 16  }
   0xd   :  { %s23652_s29 = sld [smem:[%s26960_s0 + %s23501_s26]]   ;;  %s23507_s26 = smov 12  }
   0xe   :  { %s23657_s3 = sld [smem:[%s26960_s0 + %s23502_s30]]   ;;  %s23512_s28 = smov 17  }
   0xf   :  { %s23662_s8 = sld [smem:[%s26960_s0 + %s23503_s4]]  }
  0x10   :  { %s23667_s14 = sld [smem:[%s26960_s0 + %s23504_s10]]  }
  0x11   :  { %s23672_s19 = sld [smem:[%s26960_s0 + %s23505_s15]]   ;;  %s23510_s15 = smov 15  }
  0x12   :  { %s23677_s24 = sld [smem:[%s26960_s0 + %s23506_s20]]  }
  0x13   :  { %s23682_s30 = sld [smem:[%s26960_s0 + %s23507_s26]]  }
  0x14   :  { %27090 = sst [smem:[#allocation71_spill]] %s23657_s3 }
  0x15   :  { %27091 = sst [smem:[#allocation72_spill]] %s23662_s8 }
  0x16   :  { %27092 = sst [smem:[#allocation73_spill]] %s23667_s14 }
  0x17   :  { %s23687_s6 = sld [smem:[%s26960_s0 + %s23508_s1]]  }
  0x18   :  { %27093 = sst [smem:[#allocation74_spill]] %s23677_s24 }
  0x19   :  { %s23692_s12 = sld [smem:[%s26960_s0 + %s23509_s7]]   ;;  %s23513_s7 = smov 18  }
  0x1a   :  { %s23697_s20 = sld [smem:[%s26960_s0 + %s23510_s15]]   ;;  %s23514_s15 = smov 19  }
  0x1b   :  { %s23702_s27 = sld [smem:[%s26960_s0 + %s23511_s22]]   ;;  %s23515_s22 = smov 20  }
  0x1c   :  { %s23707_s4 = sld [smem:[%s26960_s0 + %s23512_s28]]   ;;  %s23516_s28 = smov 21  }
  0x1d   :  { %27094 = sst [smem:[#allocation75_spill]] %s23687_s6 }
  0x1e   :  { %s23712_s25 = sld [smem:[%s26960_s0 + %s23513_s7]]   ;;  %s23517_s7 = smov 22  }
  0x1f   :  { %27095 = sst [smem:[#allocation76_spill]] %s23692_s12 }
  0x20   :  { %27096 = sst [smem:[#allocation77_spill]] %s23697_s20 }
  0x21   :  { %s23717_s9 = sld [smem:[%s26960_s0 + %s23514_s15]]   ;;  %s23518_s15 = smov 23  }
  0x22   :  { %27097 = sst [smem:[#allocation78_spill]] %s23707_s4 }
  0x23   :  { %s23722_s5 = sld [smem:[%s26960_s0 + %s23515_s22]]   ;;  %s23519_s22 = smov 24  }
  0x24   :  { %s23727_s4 = sld [smem:[%s26960_s0 + %s23516_s28]]   ;;  %s23520_s28 = smov 25  }
  0x25   :  { %s23732_s20 = sld [smem:[%s26960_s0 + %s23517_s7]]   ;;  %s23521_s7 = smov 26  }
  0x26   :  { %s23742_s6 = sld [smem:[%s26960_s0 + %s23519_s22]]   ;;  %s23523_s22 = smov 28  }
  0x27   :  { %27098 = sst [smem:[#allocation79_spill]] %s23717_s9 }
  0x28   :  { %s23737_s9 = sld [smem:[%s26960_s0 + %s23518_s15]]   ;;  %s23522_s15 = smov 27  }
  0x29   :  { %27099 = sst [smem:[#allocation80_spill]] %s23722_s5 }
  0x2a   :  { %27100 = sst [smem:[#allocation81_spill]] %s23727_s4 }
  0x2b   :  { %s23747_s4 = sld [smem:[%s26960_s0 + %s23520_s28]]   ;;  %s23524_s28 = smov 29  }
  0x2c   :  { %27102 = sst [smem:[#allocation83_spill]] %s23742_s6 }
  0x2d   :  { %s23752_s24 = sld [smem:[%s26960_s0 + %s23521_s7]]   ;;  %s23525_s7 = smov 30  }
  0x2e   :  { %27101 = sst [smem:[#allocation82_spill]] %s23737_s9 }
  0x2f   :  { %s23757_s9 = sld [smem:[%s26960_s0 + %s23522_s15]]   ;;  %s23526_s15 = smov 31  }
  0x30   :  { %s23762_s14 = sld [smem:[%s26960_s0 + %s23523_s22]]   ;;  %s23527_s22 = smov 32  }
  0x31   :  { %27103 = sst [smem:[#allocation84_spill]] %s23747_s4 }
  0x32   :  { %s23767_s4 = sld [smem:[%s26960_s0 + %s23524_s28]]   ;;  %s23528_s28 = smov 33  }
  0x33   :  { %s23772_s3 = sld [smem:[%s26960_s0 + %s23525_s7]]   ;;  %s23529_s7 = smov 34  }
  0x34   :  { %s23782_s21 = sld [smem:[%s26960_s0 + %s23527_s22]]   ;;  %s23531_s22 = smov 36  }
  0x35   :  { %27104 = sst [smem:[#allocation85_spill]] %s23757_s9 }
  0x36   :  { %27105 = sst [smem:[#allocation86_spill]] %s23762_s14 }
  0x37   :  { %s23777_s9 = sld [smem:[%s26960_s0 + %s23526_s15]]   ;;  %s23530_s15 = smov 35  }
  0x38   :  { %27106 = sst [smem:[#allocation87_spill]] %s23767_s4 }
  0x39   :  { %27107 = sst [smem:[#allocation88_spill]] %s23772_s3 }
  0x3a   :  { %27109 = sst [smem:[#allocation90_spill]] %s23782_s21 }
  0x3b   :  { %s23787_s4 = sld [smem:[%s26960_s0 + %s23528_s28]]   ;;  %s23532_s28 = smov 37  }
  0x3c   :  { %s23792_s13 = sld [smem:[%s26960_s0 + %s23529_s7]]   ;;  %s23533_s7 = smov 38  }
  0x3d   :  { %27108 = sst [smem:[#allocation89_spill]] %s23777_s9 }
  0x3e   :  { %s23797_s9 = sld [smem:[%s26960_s0 + %s23530_s15]]   ;;  %s23534_s15 = smov 39  }
  0x3f   :  { %s23802_s21 = sld [smem:[%s26960_s0 + %s23531_s22]]   ;;  %s23535_s22 = smov 40  }
  0x41   :  { %27110 = sst [smem:[#allocation91_spill]] %s23787_s4 }
  0x42   :  { %27111 = sst [smem:[#allocation92_spill]] %s23792_s13 }
  0x43   :  { %s23807_s4 = sld [smem:[%s26960_s0 + %s23532_s28]]   ;;  %s23536_s28 = smov 41  }
  0x44   :  { %27112 = sst [smem:[#allocation93_spill]] %s23797_s9 }
  0x45   :  { %27113 = sst [smem:[#allocation94_spill]] %s23802_s21 }
  0x46   :  { %s23812_s13 = sld [smem:[%s26960_s0 + %s23533_s7]]  }
  0x47   :  { %s23817_s9 = sld [smem:[%s26960_s0 + %s23534_s15]]  }
  0x48   :  { %s23822_s21 = sld [smem:[%s26960_s0 + %s23535_s22]]  }
  0x49   :  { %27114 = sst [smem:[#allocation95_spill]] %s23807_s4 }
  0x4a   :  { %s23827_s4 = sld [smem:[%s26960_s0 + %s23536_s28]]  }
  0x4b   :  { %89 = vsyncpa [#allocation3], 0 }
  0x4c   :  { %90 = vsyncpa [#allocation5], 0 }
  0x4d   :  { %91 = vsyncpa [#allocation8], 0 }
  0x4e   :  { %92 = vsyncpa [#allocation11], 0 }
  0x4f   :  { %93 = vsyncpa [#allocation14], 0 }
  0x50   :  { %94 = vsyncpa [#allocation17], 0 }
  0x51   :  { %95 = vsyncpa [#allocation20], 0 }
  0x52   :  { %96 = vsyncpa [#allocation23], 0 }
  0x53   :  { %97 = vsyncpa [#allocation26], 0 }
  0x54   :  { %98 = vsyncpa [#allocation29], 0 }
  0x55   :  { %99 = vsyncpa [#allocation32], 0 }
  0x56   :  { %100 = vsyncpa [#allocation35], 0 }
  0x57   :  { %101 = vsyncpa [#allocation38], 0 }
  0x58   :  { %102 = vsyncpa [#allocation41], 0 }
  0x59   :  { %103 = vsyncpa [#allocation44], 0 }
  0x5a   :  { %104 = vsyncpa [#allocation47], 0  ;;  %s23829_s7 = smov 0  }
  0x5b LB: > { %s27115_s17 = sld [smem:[#allocation68_spill]]  ;;  %s27116_s14 = sld [smem:[#allocation86_spill]]  ;;  %s23494_s7 = sphi %s23829_s7, %s110_s7  }
  0x5c   : > { %s27117_s12 = sld [smem:[#allocation76_spill]]  ;;  %s27118_s6 = sld [smem:[#allocation83_spill]] }
  0x5d   : > { %s27119_s5 = sld [smem:[#allocation80_spill]]  ;;  %s23537_s0 = smov [#allocation4]  }
  0x5e   : > { %s27120_s3 = sld [smem:[#allocation88_spill]]  ;;  %s1053_s10 = sshll.u32 %s23537_s0, 4  ;;  %s23840_s10 = int_to_ptr.vmem [resolvable:$true] %s1053_s10 }
  0x5f   : > { %s27121_s8 = sld [smem:[#allocation72_spill]]  ;;  %s23835_s11 = sadd.s32 4294967295, %s23494_s7  }
  0x60   : > { %p19801_p0 = scmp.ge.s32.totalorder %s23494_s7, 1  ;;  %p1027_p1 = scmp.lt.s32.totalorder %s23494_s7, 3 }
  0x61   : > { %p26982_p2 = scmp.eq.s32.totalorder %s23835_s11, 0  ;;  %s23538_s16 = smov [#allocation7]  }
  0x62   : > { %p23842_p3 = pnand %p19801_p0, %p1027_p1  ;;  %s1081_s18 = sshll.u32 %s23538_s16, 4  ;;  %s23848_s18 = int_to_ptr.vmem [resolvable:$true] %s1081_s18 }
  0x63   : > { %s23539_s23 = smov [#allocation10]   ;;  %s22556_s28 = scalar_lea.hbm %s27115_s17, 576 }
  0x64   : > { %s27122_s15 = scalar_select %p23842_p3, 1, 0 }
  0x65   : > { %p22023_p4 = pneg %p23842_p3  ;;  %s1105_s26 = sshll.u32 %s23539_s23, 4  ;;  %s23856_s26 = int_to_ptr.vmem [resolvable:$true] %s1105_s26 }
  0x66   : > { %p22557_p6 = scmp.ne.s32.totalorder %s27115_s17, %s22556_s28  ;;  %p22563_p10 = scmp.lt.u32.totalorder %s22556_s28, %s27115_s17 }
  0x67   : > { %p23852_p5 = pnand %p26982_p2, %p22023_p4 }
  0x69   : > { %p23862_p7 = pneg %p23852_p5 }
  0x6b   : > { %p22559_p8 = pnand %p23862_p7, %p22557_p6 }
  0x6d   : > { %p22560_p9 = pneg %p22559_p8 }
  0x6f   : > { %p22565_p11 = pnand %p22563_p10, %p22560_p9 }
  0x71   : > { %22568 = shalt.err (!%p22565_p11)
}
  0x72   : > { %s22569_s2 = scalar_lea.vmem %s23840_s10, 576  ;;  %p22577_p1 = scmp.lt.s32.totalorder %s23840_s10, %s23840_s10 }
  0x73   : > { %p22570_p12 = scmp.ne.s32.totalorder %s23840_s10, %s22569_s2  ;;  %p22578_p4 = scmp.lt.s32.totalorder %s22569_s2, %s22569_s2 }
  0x75   : > { %p22572_p13 = pnand %p22570_p12, %p23862_p7  ;;  %p22579_p2 = por %p22578_p4, %p22577_p1 }
  0x77   : > { %p22573_p0 = pneg %p22572_p13 }
  0x79   : > { %p22580_p3 = pnand %p22579_p2, %p22573_p0 }
  0x7b   : > { %22583 = shalt.err (!%p22580_p3)
}
  0x7c   : > { %s26984_s0 = smov 64   ;;  %s23541_s16 = smov 4  }
  0x7d   : > { %22029 = dma.hbm_to_vmem [thread:$0]  (!%p23852_p5), %s27115_s17, 576, %s23840_s10, [#allocation5], %s26984_s0, %s26984_s0, %s23541_s16  }
  0x7e   : > { %s22584_s23 = scalar_lea.hbm %s23652_s29, 128 }
  0x7f   : > { %p22585_p6 = scmp.ne.s32.totalorder %s23652_s29, %s22584_s23  ;;  %p22591_p2 = scmp.lt.u32.totalorder %s22584_s23, %s23652_s29 }
  0x81   : > { %p22587_p8 = pnand %p22585_p6, %p23862_p7 }
  0x83   : > { %p22588_p9 = pneg %p22587_p8 }
  0x85   : > { %p22593_p3 = pnand %p22591_p2, %p22588_p9 }
  0x87   : > { %22596 = shalt.err (!%p22593_p3)
}
  0x88   : > { %s22597_s28 = scalar_lea.vmem %s23848_s18, 128  ;;  %p22605_p13 = scmp.lt.s32.totalorder %s23848_s18, %s23848_s18 }
  0x89   : > { %p22598_p10 = scmp.ne.s32.totalorder %s23848_s18, %s22597_s28  ;;  %p22606_p0 = scmp.lt.s32.totalorder %s22597_s28, %s22597_s28 }
  0x8b   : > { %p22600_p11 = pnand %p22598_p10, %p23862_p7  ;;  %p22607_p1 = por %p22606_p0, %p22605_p13 }
  0x8d   : > { %p22601_p12 = pneg %p22600_p11 }
  0x8f   : > { %p22608_p4 = pnand %p22607_p1, %p22601_p12 }
  0x91   : > { %22611 = shalt.err (!%p22608_p4)
}
  0x92   : > { %22035 = dma.hbm_to_vmem [thread:$0]  (!%p23852_p5), %s23652_s29, 128, %s23848_s18, [#allocation8]  }
  0x93   : > { %s22612_s10 = scalar_lea.hbm %s27121_s8, 128 }
  0x94   : > { %p22613_p6 = scmp.ne.s32.totalorder %s27121_s8, %s22612_s10  ;;  %p22619_p2 = scmp.lt.u32.totalorder %s22612_s10, %s27121_s8 }
  0x96   : > { %p22615_p8 = pnand %p22613_p6, %p23862_p7 }
  0x98   : > { %p22616_p9 = pneg %p22615_p8 }
  0x9a   : > { %p22621_p3 = pnand %p22619_p2, %p22616_p9 }
  0x9c   : > { %22624 = shalt.err (!%p22621_p3)
}
  0x9d   : > { %s22625_s2 = scalar_lea.vmem %s23856_s26, 128  ;;  %p22633_p13 = scmp.lt.s32.totalorder %s23856_s26, %s23856_s26 }
  0x9e   : > { %p22626_p10 = scmp.ne.s32.totalorder %s23856_s26, %s22625_s2  ;;  %p22634_p0 = scmp.lt.s32.totalorder %s22625_s2, %s22625_s2 }
  0xa0   : > { %p22628_p11 = pnand %p22626_p10, %p23862_p7  ;;  %p22635_p1 = por %p22634_p0, %p22633_p13 }
  0xa2   : > { %p22629_p12 = pneg %p22628_p11 }
  0xa4   : > { %p22636_p4 = pnand %p22635_p1, %p22629_p12 }
  0xa6   : > { %22639 = shalt.err (!%p22636_p4)
}
  0xa7   : > { %22041 = dma.hbm_to_vmem [thread:$0]  (!%p23852_p5), %s27121_s8, 128, %s23856_s26, [#allocation11]  }
  0xa8   : > { %s23542_s18 = smov [#allocation13]   ;;  %s23543_s23 = smov [#allocation16]  }
  0xa9   : > { %s1129_s16 = sshll.u32 %s23542_s18, 4  ;;  %s1153_s28 = sshll.u32 %s23543_s23, 4  ;;  %s1130_s16 = int_to_ptr.vmem [resolvable:$true] %s1129_s16  ;;  %s1154_s28 = int_to_ptr.vmem [resolvable:$true] %s1153_s28 }
  0xaa   : > { %s22640_s10 = scalar_lea.hbm %s23672_s19, 128 }
  0xab   : > { %p22641_p6 = scmp.ne.s32.totalorder %s23672_s19, %s22640_s10  ;;  %p22647_p2 = scmp.lt.u32.totalorder %s22640_s10, %s23672_s19 }
  0xad   : > { %p22643_p8 = pnand %p22641_p6, %p23862_p7 }
  0xaf   : > { %p22644_p9 = pneg %p22643_p8 }
  0xb1   : > { %p22649_p3 = pnand %p22647_p2, %p22644_p9 }
  0xb3   : > { %22652 = shalt.err (!%p22649_p3)
}
  0xb4   : > { %s22653_s2 = scalar_lea.vmem %s1130_s16, 128  ;;  %p22661_p13 = scmp.lt.s32.totalorder %s1130_s16, %s1130_s16 }
  0xb5   : > { %p22654_p10 = scmp.ne.s32.totalorder %s1130_s16, %s22653_s2  ;;  %p22662_p0 = scmp.lt.s32.totalorder %s22653_s2, %s22653_s2 }
  0xb7   : > { %p22656_p11 = pnand %p22654_p10, %p23862_p7  ;;  %p22663_p1 = por %p22662_p0, %p22661_p13 }
  0xb9   : > { %p22657_p12 = pneg %p22656_p11 }
  0xbb   : > { %p22664_p4 = pnand %p22663_p1, %p22657_p12 }
  0xbd   : > { %22667 = shalt.err (!%p22664_p4)
}
  0xbe   : > { %22047 = dma.hbm_to_vmem [thread:$0]  (!%p23852_p5), %s23672_s19, 128, %s1130_s16, [#allocation14]  }
  0xbf   : > { %s22668_s26 = scalar_lea.hbm %s23682_s30, 128 }
  0xc0   : > { %p22669_p6 = scmp.ne.s32.totalorder %s23682_s30, %s22668_s26  ;;  %p22675_p2 = scmp.lt.u32.totalorder %s22668_s26, %s23682_s30 }
  0xc2   : > { %p22671_p8 = pnand %p22669_p6, %p23862_p7 }
  0xc4   : > { %p22672_p9 = pneg %p22671_p8 }
  0xc6   : > { %p22677_p3 = pnand %p22675_p2, %p22672_p9 }
  0xc8   : > { %22680 = shalt.err (!%p22677_p3)
}
  0xc9   : > { %s22681_s18 = scalar_lea.vmem %s1154_s28, 128  ;;  %p22689_p13 = scmp.lt.s32.totalorder %s1154_s28, %s1154_s28 }
  0xca   : > { %p22682_p10 = scmp.ne.s32.totalorder %s1154_s28, %s22681_s18  ;;  %p22690_p0 = scmp.lt.s32.totalorder %s22681_s18, %s22681_s18 }
  0xcc   : > { %p22684_p11 = pnand %p22682_p10, %p23862_p7  ;;  %p22691_p1 = por %p22690_p0, %p22689_p13 }
  0xce   : > { %p22685_p12 = pneg %p22684_p11 }
  0xd0   : > { %p22692_p4 = pnand %p22691_p1, %p22685_p12 }
  0xd2   : > { %22695 = shalt.err (!%p22692_p4)
}
  0xd3   : > { %22053 = dma.hbm_to_vmem [thread:$0]  (!%p23852_p5), %s23682_s30, 128, %s1154_s28, [#allocation17]  }
  0xd4   : > { %s23544_s16 = smov [#allocation19]   ;;  %s22696_s10 = scalar_lea.hbm %s27117_s12, 128 }
  0xd5   : > { %s1177_s23 = sshll.u32 %s23544_s16, 4  ;;  %p22697_p6 = scmp.ne.s32.totalorder %s27117_s12, %s22696_s10  ;;  %s1178_s23 = int_to_ptr.vmem [resolvable:$true] %s1177_s23 }
  0xd6   : > { %p22703_p2 = scmp.lt.u32.totalorder %s22696_s10, %s27117_s12 }
  0xd7   : > { %p22699_p8 = pnand %p22697_p6, %p23862_p7 }
  0xd9   : > { %p22700_p9 = pneg %p22699_p8 }
  0xdb   : > { %p22705_p3 = pnand %p22703_p2, %p22700_p9 }
  0xdd   : > { %22708 = shalt.err (!%p22705_p3)
}
  0xde   : > { %s22709_s2 = scalar_lea.vmem %s1178_s23, 128  ;;  %p22717_p13 = scmp.lt.s32.totalorder %s1178_s23, %s1178_s23 }
  0xdf   : > { %p22710_p10 = scmp.ne.s32.totalorder %s1178_s23, %s22709_s2  ;;  %p22718_p0 = scmp.lt.s32.totalorder %s22709_s2, %s22709_s2 }
  0xe1   : > { %p22712_p11 = pnand %p22710_p10, %p23862_p7  ;;  %p22719_p1 = por %p22718_p0, %p22717_p13 }
  0xe3   : > { %p22713_p12 = pneg %p22712_p11 }
  0xe5   : > { %p22720_p4 = pnand %p22719_p1, %p22713_p12 }
  0xe7   : > { %22723 = shalt.err (!%p22720_p4)
}
  0xe8   : > { %22059 = dma.hbm_to_vmem [thread:$0]  (!%p23852_p5), %s27117_s12, 128, %s1178_s23, [#allocation20]  }
  0xe9   : > { %s23545_s28 = smov [#allocation22]   ;;  %s23546_s18 = smov [#allocation25]  }
  0xea   : > { %s1200_s26 = sshll.u32 %s23545_s28, 4  ;;  %s1226_s16 = sshll.u32 %s23546_s18, 4  ;;  %s1201_s26 = int_to_ptr.vmem [resolvable:$true] %s1200_s26  ;;  %s23941_s16 = int_to_ptr.vmem [resolvable:$true] %s1226_s16 }
  0xeb   : > { %s22724_s10 = scalar_lea.hbm %s23702_s27, 256 }
  0xec   : > { %p22725_p6 = scmp.ne.s32.totalorder %s23702_s27, %s22724_s10  ;;  %p22731_p2 = scmp.lt.u32.totalorder %s22724_s10, %s23702_s27 }
  0xee   : > { %p22727_p8 = pnand %p22725_p6, %p23862_p7 }
  0xf0   : > { %p22728_p9 = pneg %p22727_p8 }
  0xf2   : > { %p22733_p3 = pnand %p22731_p2, %p22728_p9 }
  0xf4   : > { %22736 = shalt.err (!%p22733_p3)
}
  0xf5   : > { %s22737_s2 = scalar_lea.vmem %s1201_s26, 256  ;;  %p22745_p13 = scmp.lt.s32.totalorder %s1201_s26, %s1201_s26 }
  0xf6   : > { %p22738_p10 = scmp.ne.s32.totalorder %s1201_s26, %s22737_s2  ;;  %p22746_p0 = scmp.lt.s32.totalorder %s22737_s2, %s22737_s2 }
  0xf8   : > { %p22740_p11 = pnand %p22738_p10, %p23862_p7  ;;  %p22747_p1 = por %p22746_p0, %p22745_p13 }
  0xfa   : > { %p22741_p12 = pneg %p22740_p11 }
  0xfc   : > { %p22748_p4 = pnand %p22747_p1, %p22741_p12 }
  0xfe   : > { %22751 = shalt.err (!%p22748_p4)
}
  0xff   : > { %s26986_s23 = smov 128   ;;  %s26988_s28 = smov 8  }
 0x100   : > { %22065 = dma.hbm_to_vmem [thread:$0]  (!%p23852_p5), %s23702_s27, 256, %s1201_s26, [#allocation23], %s26986_s23, %s26986_s23, %s26988_s28  }
 0x101   : > { %s22752_s18 = scalar_lea.hbm %s23712_s25, 256 }
 0x102   : > { %p22753_p6 = scmp.ne.s32.totalorder %s23712_s25, %s22752_s18  ;;  %p22759_p2 = scmp.lt.u32.totalorder %s22752_s18, %s23712_s25 }
 0x104   : > { %p22755_p8 = pnand %p22753_p6, %p23862_p7 }
 0x106   : > { %p22756_p9 = pneg %p22755_p8 }
 0x108   : > { %p22761_p3 = pnand %p22759_p2, %p22756_p9 }
 0x10a   : > { %22764 = shalt.err (!%p22761_p3)
}
 0x10b   : > { %s22765_s10 = scalar_lea.vmem %s23941_s16, 256  ;;  %p22773_p13 = scmp.lt.s32.totalorder %s23941_s16, %s23941_s16 }
 0x10c   : > { %p22766_p10 = scmp.ne.s32.totalorder %s23941_s16, %s22765_s10  ;;  %p22774_p0 = scmp.lt.s32.totalorder %s22765_s10, %s22765_s10 }
 0x10e   : > { %p22768_p11 = pnand %p22766_p10, %p23862_p7  ;;  %p22775_p1 = por %p22774_p0, %p22773_p13 }
 0x110   : > { %p22769_p12 = pneg %p22768_p11 }
 0x112   : > { %p22776_p4 = pnand %p22775_p1, %p22769_p12 }
 0x114   : > { %22779 = shalt.err (!%p22776_p4)
}
 0x115   : > { %22071 = dma.hbm_to_vmem [thread:$0]  (!%p23852_p5), %s23712_s25, 256, %s23941_s16, [#allocation26], %s26986_s23, %s26986_s23, %s26988_s28  }
 0x116   : > { %s23549_s26 = smov [#allocation28]   ;;  %s23550_s18 = smov [#allocation31]  }
 0x117   : > { %s1252_s2 = sshll.u32 %s23549_s26, 4  ;;  %s1278_s0 = sshll.u32 %s23550_s18, 4  ;;  %s1253_s2 = int_to_ptr.vmem [resolvable:$true] %s1252_s2  ;;  %s23974_s0 = int_to_ptr.vmem [resolvable:$true] %s1278_s0 }
 0x118   : > { %s22780_s10 = scalar_lea.hbm %s27119_s5, 256 }
 0x119   : > { %p22781_p6 = scmp.ne.s32.totalorder %s27119_s5, %s22780_s10  ;;  %p22787_p2 = scmp.lt.u32.totalorder %s22780_s10, %s27119_s5 }
 0x11b   : > { %p22783_p8 = pnand %p22781_p6, %p23862_p7 }
 0x11d   : > { %p22784_p9 = pneg %p22783_p8 }
 0x11f   : > { %p22789_p3 = pnand %p22787_p2, %p22784_p9 }
 0x121   : > { %22792 = shalt.err (!%p22789_p3)
}
 0x122   : > { %s22793_s8 = scalar_lea.vmem %s1253_s2, 256  ;;  %p22801_p13 = scmp.lt.s32.totalorder %s1253_s2, %s1253_s2 }
 0x123   : > { %p22794_p10 = scmp.ne.s32.totalorder %s1253_s2, %s22793_s8  ;;  %p22802_p0 = scmp.lt.s32.totalorder %s22793_s8, %s22793_s8 }
 0x125   : > { %p22796_p11 = pnand %p22794_p10, %p23862_p7  ;;  %p22803_p1 = por %p22802_p0, %p22801_p13 }
 0x127   : > { %p22797_p12 = pneg %p22796_p11 }
 0x129   : > { %p22804_p4 = pnand %p22803_p1, %p22797_p12 }
 0x12b   : > { %22807 = shalt.err (!%p22804_p4)
}
 0x12c   : > { %22077 = dma.hbm_to_vmem [thread:$0]  (!%p23852_p5), %s27119_s5, 256, %s1253_s2, [#allocation29], %s26986_s23, %s26986_s23, %s26988_s28  }
 0x12d   : > { %s22808_s16 = scalar_lea.hbm %s23732_s20, 256 }
 0x12e   : > { %p22809_p6 = scmp.ne.s32.totalorder %s23732_s20, %s22808_s16  ;;  %p22815_p2 = scmp.lt.u32.totalorder %s22808_s16, %s23732_s20 }
 0x130   : > { %p22811_p8 = pnand %p22809_p6, %p23862_p7 }
 0x132   : > { %p22812_p9 = pneg %p22811_p8 }
 0x134   : > { %p22817_p3 = pnand %p22815_p2, %p22812_p9 }
 0x136   : > { %22820 = shalt.err (!%p22817_p3)
}
 0x137   : > { %s22821_s8 = scalar_lea.vmem %s23974_s0, 256  ;;  %p22829_p13 = scmp.lt.s32.totalorder %s23974_s0, %s23974_s0 }
 0x138   : > { %p22822_p10 = scmp.ne.s32.totalorder %s23974_s0, %s22821_s8  ;;  %p22830_p0 = scmp.lt.s32.totalorder %s22821_s8, %s22821_s8 }
 0x13a   : > { %p22824_p11 = pnand %p22822_p10, %p23862_p7  ;;  %p22831_p1 = por %p22830_p0, %p22829_p13 }
 0x13c   : > { %p22825_p12 = pneg %p22824_p11 }
 0x13e   : > { %p22832_p4 = pnand %p22831_p1, %p22825_p12 }
 0x140   : > { %22835 = shalt.err (!%p22832_p4)
}
 0x141   : > { %22083 = dma.hbm_to_vmem [thread:$0]  (!%p23852_p5), %s23732_s20, 256, %s23974_s0, [#allocation32], %s26986_s23, %s26986_s23, %s26988_s28  }
 0x142   : > { %s23551_s26 = smov [#allocation34]   ;;  %s23552_s18 = smov [#allocation37]  }
 0x143   : > { %s1304_s2 = sshll.u32 %s23551_s26, 4  ;;  %s1330_s10 = sshll.u32 %s23552_s18, 4  ;;  %s1305_s2 = int_to_ptr.vmem [resolvable:$true] %s1304_s2  ;;  %s24007_s10 = int_to_ptr.vmem [resolvable:$true] %s1330_s10 }
 0x144   : > { %s22836_s16 = scalar_lea.hbm %s27118_s6, 256 }
 0x145   : > { %p22837_p6 = scmp.ne.s32.totalorder %s27118_s6, %s22836_s16  ;;  %p22843_p2 = scmp.lt.u32.totalorder %s22836_s16, %s27118_s6 }
 0x147   : > { %p22839_p8 = pnand %p22837_p6, %p23862_p7 }
 0x149   : > { %p22840_p9 = pneg %p22839_p8 }
 0x14b   : > { %p22845_p3 = pnand %p22843_p2, %p22840_p9 }
 0x14d   : > { %22848 = shalt.err (!%p22845_p3)
}
 0x14e   : > { %s22849_s8 = scalar_lea.vmem %s1305_s2, 256  ;;  %p22857_p13 = scmp.lt.s32.totalorder %s1305_s2, %s1305_s2 }
 0x14f   : > { %p22850_p10 = scmp.ne.s32.totalorder %s1305_s2, %s22849_s8  ;;  %p22858_p0 = scmp.lt.s32.totalorder %s22849_s8, %s22849_s8 }
 0x151   : > { %p22852_p11 = pnand %p22850_p10, %p23862_p7  ;;  %p22859_p1 = por %p22858_p0, %p22857_p13 }
 0x153   : > { %p22853_p12 = pneg %p22852_p11 }
 0x155   : > { %p22860_p4 = pnand %p22859_p1, %p22853_p12 }
 0x157   : > { %22863 = shalt.err (!%p22860_p4)
}
 0x158   : > { %22089 = dma.hbm_to_vmem [thread:$0]  (!%p23852_p5), %s27118_s6, 256, %s1305_s2, [#allocation35], %s26986_s23, %s26986_s23, %s26988_s28  }
 0x159   : > { %s22864_s0 = scalar_lea.hbm %s23752_s24, 256 }
 0x15a   : > { %p22865_p6 = scmp.ne.s32.totalorder %s23752_s24, %s22864_s0  ;;  %p22871_p2 = scmp.lt.u32.totalorder %s22864_s0, %s23752_s24 }
 0x15c   : > { %p22867_p8 = pnand %p22865_p6, %p23862_p7 }
 0x15e   : > { %p22868_p9 = pneg %p22867_p8 }
 0x160   : > { %p22873_p3 = pnand %p22871_p2, %p22868_p9 }
 0x162   : > { %22876 = shalt.err (!%p22873_p3)
}
 0x163   : > { %s22877_s26 = scalar_lea.vmem %s24007_s10, 256  ;;  %p22885_p13 = scmp.lt.s32.totalorder %s24007_s10, %s24007_s10 }
 0x164   : > { %p22878_p10 = scmp.ne.s32.totalorder %s24007_s10, %s22877_s26  ;;  %p22886_p0 = scmp.lt.s32.totalorder %s22877_s26, %s22877_s26 }
 0x166   : > { %p22880_p11 = pnand %p22878_p10, %p23862_p7  ;;  %p22887_p1 = por %p22886_p0, %p22885_p13 }
 0x168   : > { %p22881_p12 = pneg %p22880_p11 }
 0x16a   : > { %p22888_p4 = pnand %p22887_p1, %p22881_p12 }
 0x16c   : > { %22891 = shalt.err (!%p22888_p4)
}
 0x16d   : > { %22095 = dma.hbm_to_vmem [thread:$0]  (!%p23852_p5), %s23752_s24, 256, %s24007_s10, [#allocation38], %s26986_s23, %s26986_s23, %s26988_s28  }
 0x16e   : > { %s23553_s2 = smov [#allocation40]   ;;  %s22892_s16 = scalar_lea.hbm %s27116_s14, 512 }
 0x16f   : > { %s1356_s18 = sshll.u32 %s23553_s2, 4  ;;  %p22893_p6 = scmp.ne.s32.totalorder %s27116_s14, %s22892_s16  ;;  %s1357_s18 = int_to_ptr.vmem [resolvable:$true] %s1356_s18 }
 0x170   : > { %p22899_p2 = scmp.lt.u32.totalorder %s22892_s16, %s27116_s14 }
 0x171   : > { %p22895_p8 = pnand %p22893_p6, %p23862_p7 }
 0x173   : > { %p22896_p9 = pneg %p22895_p8 }
 0x175   : > { %p22901_p3 = pnand %p22899_p2, %p22896_p9 }
 0x177   : > { %22904 = shalt.err (!%p22901_p3)
}
 0x178   : > { %s22905_s8 = scalar_lea.vmem %s1357_s18, 512  ;;  %p22913_p13 = scmp.lt.s32.totalorder %s1357_s18, %s1357_s18 }
 0x179   : > { %p22906_p10 = scmp.ne.s32.totalorder %s1357_s18, %s22905_s8  ;;  %p22914_p0 = scmp.lt.s32.totalorder %s22905_s8, %s22905_s8 }
 0x17b   : > { %p22908_p11 = pnand %p22906_p10, %p23862_p7  ;;  %p22915_p1 = por %p22914_p0, %p22913_p13 }
 0x17d   : > { %p22909_p12 = pneg %p22908_p11 }
 0x17f   : > { %p22916_p4 = pnand %p22915_p1, %p22909_p12 }
 0x181   : > { %22919 = shalt.err (!%p22916_p4)
}
 0x182   : > { %s26990_s10 = smov 256   ;;  %s26991_s0 = smov 16  }
 0x183   : > { %22101 = dma.hbm_to_vmem [thread:$0]  (!%p23852_p5), %s27116_s14, 512, %s1357_s18, [#allocation41], %s26990_s10, %s26990_s10, %s26991_s0  }
 0x184   : > { %s23556_s26 = smov [#allocation43]   ;;  %s23557_s16 = smov [#allocation46]  }
 0x185   : > { %s1382_s2 = sshll.u32 %s23556_s26, 4  ;;  %s1414_s8 = sshll.u32 %s23557_s16, 4  ;;  %s1383_s2 = int_to_ptr.vmem [resolvable:$true] %s1382_s2  ;;  %s1415_s8 = int_to_ptr.vmem [resolvable:$true] %s1414_s8 }
 0x186   : > { %s22920_s23 = scalar_lea.hbm %s27120_s3, 256 }
 0x187   : > { %p22921_p6 = scmp.ne.s32.totalorder %s27120_s3, %s22920_s23  ;;  %p22927_p2 = scmp.lt.u32.totalorder %s22920_s23, %s27120_s3 }
 0x189   : > { %p22923_p8 = pnand %p22921_p6, %p23862_p7 }
 0x18b   : > { %p22924_p9 = pneg %p22923_p8 }
 0x18d   : > { %p22929_p3 = pnand %p22927_p2, %p22924_p9 }
 0x18f   : > { %22932 = shalt.err (!%p22929_p3)
}
 0x190   : > { %s22933_s28 = scalar_lea.vmem %s1383_s2, 256  ;;  %p22941_p13 = scmp.lt.s32.totalorder %s1383_s2, %s1383_s2 }
 0x191   : > { %p22934_p10 = scmp.ne.s32.totalorder %s1383_s2, %s22933_s28  ;;  %p22942_p0 = scmp.lt.s32.totalorder %s22933_s28, %s22933_s28 }
 0x193   : > { %p22936_p11 = pnand %p22934_p10, %p23862_p7  ;;  %p22943_p1 = por %p22942_p0, %p22941_p13 }
 0x195   : > { %p22937_p12 = pneg %p22936_p11 }
 0x197   : > { %p22944_p4 = pnand %p22943_p1, %p22937_p12 }
 0x199   : > { %22947 = shalt.err (!%p22944_p4)
}
 0x19a   : > { %s27125_s18 = smov 8   ;;  %s27126_s26 = smov 128  }
 0x19b   : > { %s27127_s23 = sld [smem:[#allocation92_spill]] }
 0x19c   : > { %22107 = dma.hbm_to_vmem [thread:$0]  (!%p23852_p5), %s27120_s3, 256, %s1383_s2, [#allocation44], %s27126_s26, %s27126_s26, %s27125_s18  }
 0x1a1   : > { %s22948_s16 = scalar_lea.hbm %s27127_s23, 1024 }
 0x1a2   : > { %p22949_p6 = scmp.ne.s32.totalorder %s27127_s23, %s22948_s16  ;;  %p22955_p2 = scmp.lt.u32.totalorder %s22948_s16, %s27127_s23 }
 0x1a4   : > { %p22951_p8 = pnand %p22949_p6, %p23862_p7 }
 0x1a6   : > { %p22952_p9 = pneg %p22951_p8 }
 0x1a8   : > { %p22957_p3 = pnand %p22955_p2, %p22952_p9 }
 0x1aa   : > { %22960 = shalt.err (!%p22957_p3)
}
 0x1ab   : > { %s22961_s28 = scalar_lea.vmem %s1415_s8, 1024  ;;  %p22969_p13 = scmp.lt.s32.totalorder %s1415_s8, %s1415_s8 }
 0x1ac   : > { %p22962_p10 = scmp.ne.s32.totalorder %s1415_s8, %s22961_s28  ;;  %p22970_p0 = scmp.lt.s32.totalorder %s22961_s28, %s22961_s28 }
 0x1ae   : > { %p22964_p11 = pnand %p22962_p10, %p23862_p7  ;;  %p22971_p1 = por %p22970_p0, %p22969_p13 }
 0x1b0   : > { %p22965_p12 = pneg %p22964_p11 }
 0x1b2   : > { %p22972_p4 = pnand %p22971_p1, %p22965_p12 }
 0x1b4   : > { %22975 = shalt.err (!%p22972_p4)
}
 0x1b5   : > { %s27128_s2 = sld [smem:[#allocation67_spill]]  ;;  %s23558_s16 = smov [#allocation2]  }
 0x1b6   : > { %22113 = dma.hbm_to_vmem [thread:$0]  (!%p23852_p5), %s27127_s23, 1024, %s1415_s8, [#allocation47], %s27126_s26, %s27126_s26, %s27125_s18  }
 0x1b7   : > { %s1043_s10 = sshll.u32 %s23558_s16, 4  ;;  %s1044_s10 = int_to_ptr.vmem [resolvable:$true] %s1043_s10 }
 0x1bb   : > { %s22976_s0 = scalar_lea.hbm %s27128_s2, 64 }
 0x1bc   : > { %p22977_p6 = scmp.ne.s32.totalorder %s27128_s2, %s22976_s0  ;;  %p22983_p2 = scmp.lt.u32.totalorder %s22976_s0, %s27128_s2 }
 0x1be   : > { %p22979_p8 = pnand %p22977_p6, %p23862_p7 }
 0x1c0   : > { %p22980_p9 = pneg %p22979_p8 }
 0x1c2   : > { %p22985_p3 = pnand %p22983_p2, %p22980_p9 }
 0x1c4   : > { %22988 = shalt.err (!%p22985_p3)
}
 0x1c5   : > { %s22989_s28 = scalar_lea.vmem %s1044_s10, 64  ;;  %p22997_p13 = scmp.lt.s32.totalorder %s1044_s10, %s1044_s10 }
 0x1c6   : > { %p22990_p10 = scmp.ne.s32.totalorder %s1044_s10, %s22989_s28  ;;  %p22998_p0 = scmp.lt.s32.totalorder %s22989_s28, %s22989_s28 }
 0x1c8   : > { %p22992_p11 = pnand %p22990_p10, %p23862_p7  ;;  %p22999_p1 = por %p22998_p0, %p22997_p13 }
 0x1ca   : > { %p22993_p12 = pneg %p22992_p11 }
 0x1cc   : > { %p23000_p4 = pnand %p22999_p1, %p22993_p12 }
 0x1ce   : > { %23003 = shalt.err (!%p23000_p4)
}
 0x1cf   : > { %s27129_s8 = sld [smem:[#allocation69_spill]]  ;;  %s23559_s0 = smov [#allocation6]  }
 0x1d0   : > { %22026 = dma.hbm_to_vmem [thread:$0]  (!%p23852_p5), %s27128_s2, 64, %s1044_s10, [#allocation3]  }
 0x1d1   : > { %s1067_s16 = sshll.u32 %s23559_s0, 4  ;;  %s23560_s3 = smov [#allocation9]   ;;  %s1068_s16 = int_to_ptr.vmem [resolvable:$true] %s1067_s16 }
 0x1d2   : > { %s1091_s5 = sshll.u32 %s23560_s3, 4  ;;  %s1092_s5 = int_to_ptr.vmem [resolvable:$true] %s1091_s5 }
 0x1d5   : > { %s23004_s6 = scalar_lea.hbm %s27129_s8, 64 }
 0x1d6   : > { %p23005_p6 = scmp.ne.s32.totalorder %s27129_s8, %s23004_s6  ;;  %p23011_p2 = scmp.lt.u32.totalorder %s23004_s6, %s27129_s8 }
 0x1d8   : > { %p23007_p8 = pnand %p23005_p6, %p23862_p7 }
 0x1da   : > { %p23008_p9 = pneg %p23007_p8 }
 0x1dc   : > { %p23013_p3 = pnand %p23011_p2, %p23008_p9 }
 0x1de   : > { %23016 = shalt.err (!%p23013_p3)
}
 0x1df   : > { %s23017_s28 = scalar_lea.vmem %s1068_s16, 64  ;;  %p23025_p13 = scmp.lt.s32.totalorder %s1068_s16, %s1068_s16 }
 0x1e0   : > { %p23018_p10 = scmp.ne.s32.totalorder %s1068_s16, %s23017_s28  ;;  %p23026_p0 = scmp.lt.s32.totalorder %s23017_s28, %s23017_s28 }
 0x1e2   : > { %p23020_p11 = pnand %p23018_p10, %p23862_p7  ;;  %p23027_p1 = por %p23026_p0, %p23025_p13 }
 0x1e4   : > { %p23021_p12 = pneg %p23020_p11 }
 0x1e6   : > { %p23028_p4 = pnand %p23027_p1, %p23021_p12 }
 0x1e8   : > { %23031 = shalt.err (!%p23028_p4)
}
 0x1e9   : > { %s27130_s3 = sld [smem:[#allocation71_spill]] }
 0x1ea   : > { %22032 = dma.hbm_to_vmem [thread:$0]  (!%p23852_p5), %s27129_s8, 64, %s1068_s16, [#allocation5]  }
 0x1ef   : > { %s23032_s6 = scalar_lea.hbm %s27130_s3, 1152 }
 0x1f0   : > { %p23033_p6 = scmp.ne.s32.totalorder %s27130_s3, %s23032_s6  ;;  %p23039_p2 = scmp.lt.u32.totalorder %s23032_s6, %s27130_s3 }
 0x1f2   : > { %p23035_p8 = pnand %p23033_p6, %p23862_p7 }
 0x1f4   : > { %p23036_p9 = pneg %p23035_p8 }
 0x1f6   : > { %p23041_p3 = pnand %p23039_p2, %p23036_p9 }
 0x1f8   : > { %23044 = shalt.err (!%p23041_p3)
}
 0x1f9   : > { %s23045_s10 = scalar_lea.vmem %s1092_s5, 1152  ;;  %p23053_p13 = scmp.lt.s32.totalorder %s1092_s5, %s1092_s5 }
 0x1fa   : > { %p23046_p10 = scmp.ne.s32.totalorder %s1092_s5, %s23045_s10  ;;  %p23054_p0 = scmp.lt.s32.totalorder %s23045_s10, %s23045_s10 }
 0x1fc   : > { %p23048_p11 = pnand %p23046_p10, %p23862_p7  ;;  %p23055_p1 = por %p23054_p0, %p23053_p13 }
 0x1fe   : > { %p23049_p12 = pneg %p23048_p11 }
 0x200   : > { %p23056_p4 = pnand %p23055_p1, %p23049_p12 }
 0x202   : > { %23059 = shalt.err (!%p23056_p4)
}
 0x203   : > { %s27131_s0 = sld [smem:[#allocation73_spill]]  ;;  %s23561_s16 = smov [#allocation12]  }
 0x204   : > { %22038 = dma.hbm_to_vmem [thread:$0]  (!%p23852_p5), %s27130_s3, 1152, %s1092_s5, [#allocation8], %s27126_s26, %s27126_s26, %s27125_s18  }
 0x205   : > { %s1115_s28 = sshll.u32 %s23561_s16, 4  ;;  %s23562_s6 = smov [#allocation15]   ;;  %s1116_s28 = int_to_ptr.vmem [resolvable:$true] %s1115_s28 }
 0x206   : > { %s1139_s2 = sshll.u32 %s23562_s6, 4  ;;  %s1140_s2 = int_to_ptr.vmem [resolvable:$true] %s1139_s2 }
 0x209   : > { %s23060_s10 = scalar_lea.hbm %s27131_s0, 1152 }
 0x20a   : > { %p23061_p6 = scmp.ne.s32.totalorder %s27131_s0, %s23060_s10  ;;  %p23067_p2 = scmp.lt.u32.totalorder %s23060_s10, %s27131_s0 }
 0x20c   : > { %p23063_p8 = pnand %p23061_p6, %p23862_p7 }
 0x20e   : > { %p23064_p9 = pneg %p23063_p8 }
 0x210   : > { %p23069_p3 = pnand %p23067_p2, %p23064_p9 }
 0x212   : > { %23072 = shalt.err (!%p23069_p3)
}
 0x213   : > { %s23073_s8 = scalar_lea.vmem %s1116_s28, 1152  ;;  %p23081_p13 = scmp.lt.s32.totalorder %s1116_s28, %s1116_s28 }
 0x214   : > { %p23074_p10 = scmp.ne.s32.totalorder %s1116_s28, %s23073_s8  ;;  %p23082_p0 = scmp.lt.s32.totalorder %s23073_s8, %s23073_s8 }
 0x216   : > { %p23076_p11 = pnand %p23074_p10, %p23862_p7  ;;  %p23083_p1 = por %p23082_p0, %p23081_p13 }
 0x218   : > { %p23077_p12 = pneg %p23076_p11 }
 0x21a   : > { %p23084_p4 = pnand %p23083_p1, %p23077_p12 }
 0x21c   : > { %23087 = shalt.err (!%p23084_p4)
}
 0x21d   : > { %s27132_s5 = sld [smem:[#allocation74_spill]] }
 0x21e   : > { %22044 = dma.hbm_to_vmem [thread:$0]  (!%p23852_p5), %s27131_s0, 1152, %s1116_s28, [#allocation11], %s27126_s26, %s27126_s26, %s27125_s18  }
 0x223   : > { %s23088_s16 = scalar_lea.hbm %s27132_s5, 1152 }
 0x224   : > { %p23089_p6 = scmp.ne.s32.totalorder %s27132_s5, %s23088_s16  ;;  %p23095_p2 = scmp.lt.u32.totalorder %s23088_s16, %s27132_s5 }
 0x226   : > { %p23091_p8 = pnand %p23089_p6, %p23862_p7 }
 0x228   : > { %p23092_p9 = pneg %p23091_p8 }
 0x22a   : > { %p23097_p3 = pnand %p23095_p2, %p23092_p9 }
 0x22c   : > { %23100 = shalt.err (!%p23097_p3)
}
 0x22d   : > { %s23101_s8 = scalar_lea.vmem %s1140_s2, 1152  ;;  %p23109_p13 = scmp.lt.s32.totalorder %s1140_s2, %s1140_s2 }
 0x22e   : > { %p23102_p10 = scmp.ne.s32.totalorder %s1140_s2, %s23101_s8  ;;  %p23110_p0 = scmp.lt.s32.totalorder %s23101_s8, %s23101_s8 }
 0x230   : > { %p23104_p11 = pnand %p23102_p10, %p23862_p7  ;;  %p23111_p1 = por %p23110_p0, %p23109_p13 }
 0x232   : > { %p23105_p12 = pneg %p23104_p11 }
 0x234   : > { %p23112_p4 = pnand %p23111_p1, %p23105_p12 }
 0x236   : > { %23115 = shalt.err (!%p23112_p4)
}
 0x237   : > { %s27133_s28 = sld [smem:[#allocation75_spill]]  ;;  %s23563_s6 = smov [#allocation18]  }
 0x238   : > { %22050 = dma.hbm_to_vmem [thread:$0]  (!%p23852_p5), %s27132_s5, 1152, %s1140_s2, [#allocation14], %s27126_s26, %s27126_s26, %s27125_s18  }
 0x239   : > { %s1163_s10 = sshll.u32 %s23563_s6, 4  ;;  %s23564_s16 = smov [#allocation21]   ;;  %s1164_s10 = int_to_ptr.vmem [resolvable:$true] %s1163_s10 }
 0x23a   : > { %s1187_s0 = sshll.u32 %s23564_s16, 4  ;;  %s1188_s0 = int_to_ptr.vmem [resolvable:$true] %s1187_s0 }
 0x23d   : > { %s23116_s8 = scalar_lea.hbm %s27133_s28, 1152 }
 0x23e   : > { %p23117_p6 = scmp.ne.s32.totalorder %s27133_s28, %s23116_s8  ;;  %p23123_p2 = scmp.lt.u32.totalorder %s23116_s8, %s27133_s28 }
 0x240   : > { %p23119_p8 = pnand %p23117_p6, %p23862_p7 }
 0x242   : > { %p23120_p9 = pneg %p23119_p8 }
 0x244   : > { %p23125_p3 = pnand %p23123_p2, %p23120_p9 }
 0x246   : > { %23128 = shalt.err (!%p23125_p3)
}
 0x247   : > { %s23129_s3 = scalar_lea.vmem %s1164_s10, 1152  ;;  %p23137_p13 = scmp.lt.s32.totalorder %s1164_s10, %s1164_s10 }
 0x248   : > { %p23130_p10 = scmp.ne.s32.totalorder %s1164_s10, %s23129_s3  ;;  %p23138_p0 = scmp.lt.s32.totalorder %s23129_s3, %s23129_s3 }
 0x24a   : > { %p23132_p11 = pnand %p23130_p10, %p23862_p7  ;;  %p23139_p1 = por %p23138_p0, %p23137_p13 }
 0x24c   : > { %p23133_p12 = pneg %p23132_p11 }
 0x24e   : > { %p23140_p4 = pnand %p23139_p1, %p23133_p12 }
 0x250   : > { %23143 = shalt.err (!%p23140_p4)
}
 0x251   : > { %s27134_s2 = sld [smem:[#allocation77_spill]] }
 0x252   : > { %22056 = dma.hbm_to_vmem [thread:$0]  (!%p23852_p5), %s27133_s28, 1152, %s1164_s10, [#allocation17], %s27126_s26, %s27126_s26, %s27125_s18  }
 0x257   : > { %s23144_s6 = scalar_lea.hbm %s27134_s2, 2304 }
 0x258   : > { %p23145_p6 = scmp.ne.s32.totalorder %s27134_s2, %s23144_s6  ;;  %p23151_p2 = scmp.lt.u32.totalorder %s23144_s6, %s27134_s2 }
 0x25a   : > { %p23147_p8 = pnand %p23145_p6, %p23862_p7 }
 0x25c   : > { %p23148_p9 = pneg %p23147_p8 }
 0x25e   : > { %p23153_p3 = pnand %p23151_p2, %p23148_p9 }
 0x260   : > { %23156 = shalt.err (!%p23153_p3)
}
 0x261   : > { %s23157_s3 = scalar_lea.vmem %s1188_s0, 2304  ;;  %p23165_p13 = scmp.lt.s32.totalorder %s1188_s0, %s1188_s0 }
 0x262   : > { %p23158_p10 = scmp.ne.s32.totalorder %s1188_s0, %s23157_s3  ;;  %p23166_p0 = scmp.lt.s32.totalorder %s23157_s3, %s23157_s3 }
 0x264   : > { %p23160_p11 = pnand %p23158_p10, %p23862_p7  ;;  %p23167_p1 = por %p23166_p0, %p23165_p13 }
 0x266   : > { %p23161_p12 = pneg %p23160_p11 }
 0x268   : > { %p23168_p4 = pnand %p23167_p1, %p23161_p12 }
 0x26a   : > { %23171 = shalt.err (!%p23168_p4)
}
 0x26b   : > { %s27135_s10 = sld [smem:[#allocation78_spill]]  ;;  %s23565_s16 = smov [#allocation24]  }
 0x26c   : > { %22062 = dma.hbm_to_vmem [thread:$0]  (!%p23852_p5), %s27134_s2, 2304, %s1188_s0, [#allocation20], %s27126_s26, %s27126_s26, %s27125_s18  }
 0x26d   : > { %s1213_s8 = sshll.u32 %s23565_s16, 4  ;;  %s23566_s6 = smov [#allocation27]   ;;  %s1214_s8 = int_to_ptr.vmem [resolvable:$true] %s1213_s8 }
 0x26e   : > { %s1239_s5 = sshll.u32 %s23566_s6, 4  ;;  %s1240_s5 = int_to_ptr.vmem [resolvable:$true] %s1239_s5 }
 0x271   : > { %s23172_s3 = scalar_lea.hbm %s27135_s10, 2304 }
 0x272   : > { %p23173_p6 = scmp.ne.s32.totalorder %s27135_s10, %s23172_s3  ;;  %p23179_p2 = scmp.lt.u32.totalorder %s23172_s3, %s27135_s10 }
 0x274   : > { %p23175_p8 = pnand %p23173_p6, %p23862_p7 }
 0x276   : > { %p23176_p9 = pneg %p23175_p8 }
 0x278   : > { %p23181_p3 = pnand %p23179_p2, %p23176_p9 }
 0x27a   : > { %23184 = shalt.err (!%p23181_p3)
}
 0x27b   : > { %s23185_s12 = scalar_lea.vmem %s1214_s8, 2304  ;;  %p23193_p13 = scmp.lt.s32.totalorder %s1214_s8, %s1214_s8 }
 0x27c   : > { %p23186_p10 = scmp.ne.s32.totalorder %s1214_s8, %s23185_s12  ;;  %p23194_p0 = scmp.lt.s32.totalorder %s23185_s12, %s23185_s12 }
 0x27e   : > { %p23188_p11 = pnand %p23186_p10, %p23862_p7  ;;  %p23195_p1 = por %p23194_p0, %p23193_p13 }
 0x280   : > { %p23189_p12 = pneg %p23188_p11 }
 0x282   : > { %p23196_p4 = pnand %p23195_p1, %p23189_p12 }
 0x284   : > { %23199 = shalt.err (!%p23196_p4)
}
 0x285   : > { %s27136_s0 = sld [smem:[#allocation79_spill]] }
 0x286   : > { %22068 = dma.hbm_to_vmem [thread:$0]  (!%p23852_p5), %s27135_s10, 2304, %s1214_s8, [#allocation23], %s27126_s26, %s27126_s26, %s27125_s18  }
 0x28b   : > { %s23200_s16 = scalar_lea.hbm %s27136_s0, 2304 }
 0x28c   : > { %p23201_p6 = scmp.ne.s32.totalorder %s27136_s0, %s23200_s16  ;;  %p23207_p2 = scmp.lt.u32.totalorder %s23200_s16, %s27136_s0 }
 0x28e   : > { %p23203_p8 = pnand %p23201_p6, %p23862_p7 }
 0x290   : > { %p23204_p9 = pneg %p23203_p8 }
 0x292   : > { %p23209_p3 = pnand %p23207_p2, %p23204_p9 }
 0x294   : > { %23212 = shalt.err (!%p23209_p3)
}
 0x295   : > { %s23213_s12 = scalar_lea.vmem %s1240_s5, 2304  ;;  %p23221_p13 = scmp.lt.s32.totalorder %s1240_s5, %s1240_s5 }
 0x296   : > { %p23214_p10 = scmp.ne.s32.totalorder %s1240_s5, %s23213_s12  ;;  %p23222_p0 = scmp.lt.s32.totalorder %s23213_s12, %s23213_s12 }
 0x298   : > { %p23216_p11 = pnand %p23214_p10, %p23862_p7  ;;  %p23223_p1 = por %p23222_p0, %p23221_p13 }
 0x29a   : > { %p23217_p12 = pneg %p23216_p11 }
 0x29c   : > { %p23224_p4 = pnand %p23223_p1, %p23217_p12 }
 0x29e   : > { %23227 = shalt.err (!%p23224_p4)
}
 0x29f   : > { %s27137_s8 = sld [smem:[#allocation81_spill]]  ;;  %s23567_s6 = smov [#allocation30]  }
 0x2a0   : > { %22074 = dma.hbm_to_vmem [thread:$0]  (!%p23852_p5), %s27136_s0, 2304, %s1240_s5, [#allocation26], %s27126_s26, %s27126_s26, %s27125_s18  }
 0x2a1   : > { %s1265_s3 = sshll.u32 %s23567_s6, 4  ;;  %s23568_s16 = smov [#allocation33]   ;;  %s1266_s3 = int_to_ptr.vmem [resolvable:$true] %s1265_s3 }
 0x2a2   : > { %s1291_s2 = sshll.u32 %s23568_s16, 4  ;;  %s1292_s2 = int_to_ptr.vmem [resolvable:$true] %s1291_s2 }
 0x2a5   : > { %s23228_s12 = scalar_lea.hbm %s27137_s8, 2304 }
 0x2a6   : > { %p23229_p6 = scmp.ne.s32.totalorder %s27137_s8, %s23228_s12  ;;  %p23235_p2 = scmp.lt.u32.totalorder %s23228_s12, %s27137_s8 }
 0x2a8   : > { %p23231_p8 = pnand %p23229_p6, %p23862_p7 }
 0x2aa   : > { %p23232_p9 = pneg %p23231_p8 }
 0x2ac   : > { %p23237_p3 = pnand %p23235_p2, %p23232_p9 }
 0x2ae   : > { %23240 = shalt.err (!%p23237_p3)
}
 0x2af   : > { %s23241_s10 = scalar_lea.vmem %s1266_s3, 2304  ;;  %p23249_p13 = scmp.lt.s32.totalorder %s1266_s3, %s1266_s3 }
 0x2b0   : > { %p23242_p10 = scmp.ne.s32.totalorder %s1266_s3, %s23241_s10  ;;  %p23250_p0 = scmp.lt.s32.totalorder %s23241_s10, %s23241_s10 }
 0x2b2   : > { %p23244_p11 = pnand %p23242_p10, %p23862_p7  ;;  %p23251_p1 = por %p23250_p0, %p23249_p13 }
 0x2b4   : > { %p23245_p12 = pneg %p23244_p11 }
 0x2b6   : > { %p23252_p4 = pnand %p23251_p1, %p23245_p12 }
 0x2b8   : > { %23255 = shalt.err (!%p23252_p4)
}
 0x2b9   : > { %s27138_s5 = sld [smem:[#allocation82_spill]] }
 0x2ba   : > { %22080 = dma.hbm_to_vmem [thread:$0]  (!%p23852_p5), %s27137_s8, 2304, %s1266_s3, [#allocation29], %s27126_s26, %s27126_s26, %s27125_s18  }
 0x2bf   : > { %s23256_s6 = scalar_lea.hbm %s27138_s5, 2304 }
 0x2c0   : > { %p23257_p6 = scmp.ne.s32.totalorder %s27138_s5, %s23256_s6  ;;  %p23263_p2 = scmp.lt.u32.totalorder %s23256_s6, %s27138_s5 }
 0x2c2   : > { %p23259_p8 = pnand %p23257_p6, %p23862_p7 }
 0x2c4   : > { %p23260_p9 = pneg %p23259_p8 }
 0x2c6   : > { %p23265_p3 = pnand %p23263_p2, %p23260_p9 }
 0x2c8   : > { %23268 = shalt.err (!%p23265_p3)
}
 0x2c9   : > { %s23269_s10 = scalar_lea.vmem %s1292_s2, 2304  ;;  %p23277_p13 = scmp.lt.s32.totalorder %s1292_s2, %s1292_s2 }
 0x2ca   : > { %p23270_p10 = scmp.ne.s32.totalorder %s1292_s2, %s23269_s10  ;;  %p23278_p0 = scmp.lt.s32.totalorder %s23269_s10, %s23269_s10 }
 0x2cc   : > { %p23272_p11 = pnand %p23270_p10, %p23862_p7  ;;  %p23279_p1 = por %p23278_p0, %p23277_p13 }
 0x2ce   : > { %p23273_p12 = pneg %p23272_p11 }
 0x2d0   : > { %p23280_p4 = pnand %p23279_p1, %p23273_p12 }
 0x2d2   : > { %23283 = shalt.err (!%p23280_p4)
}
 0x2d3   : > { %s27139_s3 = sld [smem:[#allocation84_spill]]  ;;  %s23569_s16 = smov [#allocation36]  }
 0x2d4   : > { %22086 = dma.hbm_to_vmem [thread:$0]  (!%p23852_p5), %s27138_s5, 2304, %s1292_s2, [#allocation32], %s27126_s26, %s27126_s26, %s27125_s18  }
 0x2d5   : > { %s1317_s12 = sshll.u32 %s23569_s16, 4  ;;  %s23570_s6 = smov [#allocation39]   ;;  %s1318_s12 = int_to_ptr.vmem [resolvable:$true] %s1317_s12 }
 0x2d6   : > { %s1343_s0 = sshll.u32 %s23570_s6, 4  ;;  %s1344_s0 = int_to_ptr.vmem [resolvable:$true] %s1343_s0 }
 0x2d9   : > { %s23284_s10 = scalar_lea.hbm %s27139_s3, 2304 }
 0x2da   : > { %p23285_p6 = scmp.ne.s32.totalorder %s27139_s3, %s23284_s10  ;;  %p23291_p2 = scmp.lt.u32.totalorder %s23284_s10, %s27139_s3 }
 0x2dc   : > { %p23287_p8 = pnand %p23285_p6, %p23862_p7 }
 0x2de   : > { %p23288_p9 = pneg %p23287_p8 }
 0x2e0   : > { %p23293_p3 = pnand %p23291_p2, %p23288_p9 }
 0x2e2   : > { %23296 = shalt.err (!%p23293_p3)
}
 0x2e3   : > { %s23297_s8 = scalar_lea.vmem %s1318_s12, 2304  ;;  %p23305_p13 = scmp.lt.s32.totalorder %s1318_s12, %s1318_s12 }
 0x2e4   : > { %p23298_p10 = scmp.ne.s32.totalorder %s1318_s12, %s23297_s8  ;;  %p23306_p0 = scmp.lt.s32.totalorder %s23297_s8, %s23297_s8 }
 0x2e6   : > { %p23300_p11 = pnand %p23298_p10, %p23862_p7  ;;  %p23307_p1 = por %p23306_p0, %p23305_p13 }
 0x2e8   : > { %p23301_p12 = pneg %p23300_p11 }
 0x2ea   : > { %p23308_p4 = pnand %p23307_p1, %p23301_p12 }
 0x2ec   : > { %23311 = shalt.err (!%p23308_p4)
}
 0x2ed   : > { %s27140_s2 = sld [smem:[#allocation85_spill]] }
 0x2ee   : > { %22092 = dma.hbm_to_vmem [thread:$0]  (!%p23852_p5), %s27139_s3, 2304, %s1318_s12, [#allocation35], %s27126_s26, %s27126_s26, %s27125_s18  }
 0x2f3   : > { %s23312_s16 = scalar_lea.hbm %s27140_s2, 2048 }
 0x2f4   : > { %p23313_p6 = scmp.ne.s32.totalorder %s27140_s2, %s23312_s16  ;;  %p23319_p2 = scmp.lt.u32.totalorder %s23312_s16, %s27140_s2 }
 0x2f6   : > { %p23315_p8 = pnand %p23313_p6, %p23862_p7 }
 0x2f8   : > { %p23316_p9 = pneg %p23315_p8 }
 0x2fa   : > { %p23321_p3 = pnand %p23319_p2, %p23316_p9 }
 0x2fc   : > { %23324 = shalt.err (!%p23321_p3)
}
 0x2fd   : > { %s23325_s8 = scalar_lea.vmem %s1344_s0, 2048  ;;  %p23333_p13 = scmp.lt.s32.totalorder %s1344_s0, %s1344_s0 }
 0x2fe   : > { %p23326_p10 = scmp.ne.s32.totalorder %s1344_s0, %s23325_s8  ;;  %p23334_p0 = scmp.lt.s32.totalorder %s23325_s8, %s23325_s8 }
 0x300   : > { %p23328_p11 = pnand %p23326_p10, %p23862_p7  ;;  %p23335_p1 = por %p23334_p0, %p23333_p13 }
 0x302   : > { %p23329_p12 = pneg %p23328_p11 }
 0x304   : > { %p23336_p4 = pnand %p23335_p1, %p23329_p12 }
 0x306   : > { %23339 = shalt.err (!%p23336_p4)
}
 0x307   : > { %s23571_s12 = smov 1024   ;;  %s27141_s6 = smov 64  }
 0x308   : > { %s27142_s10 = sld [smem:[#allocation87_spill]]  ;;  %s23572_s16 = smov [#allocation42]  }
 0x309   : > { %22098 = dma.hbm_to_vmem [thread:$0]  (!%p23852_p5), %s27140_s2, 2048, %s1344_s0, [#allocation38], %s23571_s12, %s23571_s12, %s27141_s6  }
 0x30a   : > { %s1369_s3 = sshll.u32 %s23572_s16, 4  ;;  %s23573_s5 = smov [#allocation45]   ;;  %s1370_s3 = int_to_ptr.vmem [resolvable:$true] %s1369_s3 }
 0x30b   : > { %s1398_s14 = sshll.u32 %s23573_s5, 4  ;;  %s24240_s14 = int_to_ptr.vmem [resolvable:$true] %s1398_s14 }
 0x30e   : > { %s23340_s8 = scalar_lea.hbm %s27142_s10, 256 }
 0x30f   : > { %p23341_p6 = scmp.ne.s32.totalorder %s27142_s10, %s23340_s8  ;;  %p23347_p2 = scmp.lt.u32.totalorder %s23340_s8, %s27142_s10 }
 0x311   : > { %p23343_p8 = pnand %p23341_p6, %p23862_p7 }
 0x313   : > { %p23344_p9 = pneg %p23343_p8 }
 0x315   : > { %p23349_p3 = pnand %p23347_p2, %p23344_p9 }
 0x317   : > { %23352 = shalt.err (!%p23349_p3)
}
 0x318   : > { %s23353_s17 = scalar_lea.vmem %s1370_s3, 256  ;;  %p23361_p13 = scmp.lt.s32.totalorder %s1370_s3, %s1370_s3 }
 0x319   : > { %p23354_p10 = scmp.ne.s32.totalorder %s1370_s3, %s23353_s17  ;;  %p23362_p0 = scmp.lt.s32.totalorder %s23353_s17, %s23353_s17 }
 0x31b   : > { %p23356_p11 = pnand %p23354_p10, %p23862_p7  ;;  %p23363_p1 = por %p23362_p0, %p23361_p13 }
 0x31d   : > { %p23357_p12 = pneg %p23356_p11 }
 0x31f   : > { %p23364_p4 = pnand %p23363_p1, %p23357_p12 }
 0x321   : > { %23367 = shalt.err (!%p23364_p4)
}
 0x322   : > { %s27143_s0 = sld [smem:[#allocation90_spill]] }
 0x323   : > { %22104 = dma.hbm_to_vmem [thread:$0]  (!%p23852_p5), %s27142_s10, 256, %s1370_s3, [#allocation41], %s27126_s26, %s27126_s26, %s27125_s18  }
 0x328   : > { %s23368_s5 = scalar_lea.hbm %s27143_s0, 32768 }
 0x329   : > { %p23369_p6 = scmp.ne.s32.totalorder %s27143_s0, %s23368_s5  ;;  %p23375_p2 = scmp.lt.u32.totalorder %s23368_s5, %s27143_s0 }
 0x32b   : > { %p23371_p8 = pnand %p23369_p6, %p23862_p7 }
 0x32d   : > { %p23372_p9 = pneg %p23371_p8 }
 0x32f   : > { %p23377_p3 = pnand %p23375_p2, %p23372_p9 }
 0x331   : > { %23380 = shalt.err (!%p23377_p3)
}
 0x332   : > { %s23381_s17 = scalar_lea.vmem %s24240_s14, 32768  ;;  %p23389_p13 = scmp.lt.s32.totalorder %s24240_s14, %s24240_s14 }
 0x333   : > { %p23382_p10 = scmp.ne.s32.totalorder %s24240_s14, %s23381_s17  ;;  %p23390_p0 = scmp.lt.s32.totalorder %s23381_s17, %s23381_s17 }
 0x335   : > { %p23384_p11 = pnand %p23382_p10, %p23862_p7  ;;  %p23391_p1 = por %p23390_p0, %p23389_p13 }
 0x337   : > { %p23385_p12 = pneg %p23384_p11 }
 0x339   : > { %p23392_p4 = pnand %p23391_p1, %p23385_p12 }
 0x33b   : > { %23395 = shalt.err (!%p23392_p4)
}
 0x33c   : > { %s27144_s3 = smov 16   ;;  %s27145_s12 = smov 256  }
 0x33d   : > { %s27146_s6 = sld [smem:[#allocation93_spill]]  ;;  %s23574_s16 = smov [#allocation48]  }
 0x33e   : > { %22110 = dma.hbm_to_vmem [thread:$0]  (!%p23852_p5), %s27143_s0, 32768, %s24240_s14, [#allocation44], %s27145_s12, %s27145_s12, %s27144_s3  }
 0x33f   : > { %s1427_s8 = sshll.u32 %s23574_s16, 4  ;;  %s1428_s8 = int_to_ptr.vmem [resolvable:$true] %s1427_s8 }
 0x343   : > { %s23396_s5 = scalar_lea.hbm %s27146_s6, 256 }
 0x344   : > { %p23397_p6 = scmp.ne.s32.totalorder %s27146_s6, %s23396_s5  ;;  %p23403_p2 = scmp.lt.u32.totalorder %s23396_s5, %s27146_s6 }
 0x346   : > { %p23399_p8 = pnand %p23397_p6, %p23862_p7 }
 0x348   : > { %p23400_p9 = pneg %p23399_p8 }
 0x34a   : > { %p23405_p3 = pnand %p23403_p2, %p23400_p9 }
 0x34c   : > { %23408 = shalt.err (!%p23405_p3)
}
 0x34d   : > { %s23409_s17 = scalar_lea.vmem %s1428_s8, 256  ;;  %p23417_p13 = scmp.lt.s32.totalorder %s1428_s8, %s1428_s8 }
 0x34e   : > { %p23410_p10 = scmp.ne.s32.totalorder %s1428_s8, %s23409_s17  ;;  %p23418_p0 = scmp.lt.s32.totalorder %s23409_s17, %s23409_s17 }
 0x350   : > { %p23412_p11 = pnand %p23410_p10, %p23862_p7  ;;  %p23419_p1 = por %p23418_p0, %p23417_p13 }
 0x352   : > { %p23413_p12 = pneg %p23412_p11 }
 0x354   : > { %p23420_p4 = pnand %p23419_p1, %p23413_p12 }
 0x356   : > { %23423 = shalt.err (!%p23420_p4)
}
 0x357   : > { %22116 = dma.hbm_to_vmem [thread:$0]  (!%p23852_p5), %s27146_s6, 256, %s1428_s8, [#allocation47], %s27126_s26, %s27126_s26, %s27125_s18  }
 0x358   : > { %p27147_p6 = scmp.ne.s32.totalorder %s27122_s15, 0 }
 0x35a   : > { %1454 = sbr.rel (%p27147_p6) target bundleno = 10337 (0x2861), region = 168 }
 0x361   : > { %p27148_p8 = scmp.eq.s32.totalorder %s23835_s11, 0 }
 0x363   : > { %23429 = dma.done.wait (%p27148_p8), [#allocation3], 64   ;;  %p27149_p7 = pmov %p27148_p8 }
 0x365   : > { %23431 = vsyncadd (%p27149_p7), [#allocation3], 4294967232  ;;  %p27150_p9 = pmov %p27149_p7 }
 0x366   : > { %p27151_p2 = pmov %p27149_p7 }
 0x367   : > { %23433 = dma.done.wait (%p27150_p9), [#allocation5], 640  }
 0x368   : > { %23435 = vsyncadd (%p27151_p2), [#allocation5], 4294966656  ;;  %p27152_p3 = pmov %p27151_p2 }
 0x369   : > { %p27153_p5 = pmov %p27151_p2 }
 0x36a   : > { %23437 = dma.done.wait (%p27152_p3), [#allocation8], 1280  }
 0x36b   : > { %23439 = vsyncadd (%p27153_p5), [#allocation8], 4294966016  ;;  %p27154_p10 = pmov %p27151_p2 }
 0x36c   : > { %p27155_p11 = pmov %p27151_p2 }
 0x36d   : > { %23441 = dma.done.wait (%p27154_p10), [#allocation11], 1280  }
 0x36e   : > { %23443 = vsyncadd (%p27155_p11), [#allocation11], 4294966016  ;;  %p27156_p12 = pmov %p27151_p2 }
 0x36f   : > { %p27157_p13 = pmov %p27151_p2 }
 0x370   : > { %23445 = dma.done.wait (%p27156_p12), [#allocation14], 1280  }
 0x371   : > { %23447 = vsyncadd (%p27157_p13), [#allocation14], 4294966016  ;;  %p27158_p0 = pmov %p27151_p2 }
 0x373   : > { %23449 = dma.done.wait (%p27158_p0), [#allocation17], 1280   ;;  %p27159_p1 = pmov %p27158_p0 }
 0x374   : > { %p27160_p4 = pmov %p27158_p0 }
 0x375   : > { %23451 = vsyncadd (%p27159_p1), [#allocation17], 4294966016 }
 0x376   : > { %23453 = dma.done.wait (%p27160_p4), [#allocation20], 2432   ;;  %p27161_p6 = pmov %p27158_p0 }
 0x377   : > { %p27162_p8 = pmov %p27158_p0 }
 0x378   : > { %23455 = vsyncadd (%p27161_p6), [#allocation20], 4294964864 }
 0x379   : > { %23457 = dma.done.wait (%p27162_p8), [#allocation23], 2560   ;;  %p27163_p7 = pmov %p27158_p0 }
 0x37a   : > { %p27164_p9 = pmov %p27158_p0 }
 0x37b   : > { %23459 = vsyncadd (%p27163_p7), [#allocation23], 4294964736 }
 0x37c   : > { %23461 = dma.done.wait (%p27164_p9), [#allocation26], 2560   ;;  %p27165_p2 = pmov %p27158_p0 }
 0x37d   : > { %p27166_p3 = pmov %p27158_p0 }
 0x37e   : > { %23463 = vsyncadd (%p27165_p2), [#allocation26], 4294964736 }
 0x37f   : > { %23465 = dma.done.wait (%p27166_p3), [#allocation29], 2560   ;;  %p27167_p5 = pmov %p27158_p0 }
 0x380   : > { %p27168_p10 = pmov %p27158_p0 }
 0x381   : > { %23467 = vsyncadd (%p27167_p5), [#allocation29], 4294964736 }
 0x382   : > { %23469 = dma.done.wait (%p27168_p10), [#allocation32], 2560   ;;  %p27169_p11 = pmov %p27158_p0 }
 0x383   : > { %p27170_p12 = pmov %p27158_p0 }
 0x384   : > { %23471 = vsyncadd (%p27169_p11), [#allocation32], 4294964736 }
 0x385   : > { %23473 = dma.done.wait (%p27170_p12), [#allocation35], 2560   ;;  %p27171_p13 = pmov %p27158_p0 }
 0x387   : > { %23475 = vsyncadd (%p27171_p13), [#allocation35], 4294964736 }
 0x388   : > { %23477 = dma.done.wait (%p27158_p0), [#allocation38], 2304   ;;  %p27172_p1 = pmov %p27158_p0 }
 0x389   : > { %p27173_p4 = pmov %p27158_p0 }
 0x38a   : > { %23479 = vsyncadd (%p27172_p1), [#allocation38], 4294964992 }
 0x38b   : > { %23481 = dma.done.wait (%p27173_p4), [#allocation41], 768   ;;  %p27174_p6 = pmov %p27158_p0 }
 0x38c   : > { %p27175_p8 = pmov %p27158_p0 }
 0x38d   : > { %23483 = vsyncadd (%p27174_p6), [#allocation41], 4294966528 }
 0x38e   : > { %23485 = dma.done.wait (%p27175_p8), [#allocation44], 33024   ;;  %p27176_p7 = pmov %p27158_p0 }
 0x38f   : > { %p27177_p9 = pmov %p27158_p0 }
 0x390   : > { %23487 = vsyncadd (%p27176_p7), [#allocation44], 4294934272 }
 0x391   : > { %23489 = dma.done.wait (%p27177_p9), [#allocation47], 1280   ;;  %p27178_p2 = pmov %p27158_p0 }
 0x392   : > { %s27179_s14 = sld [smem:[#allocation65_spill]]  ;;  %p1692_p3 = scmp.lt.s32.totalorder %s23835_s11, 1  ;;  %v1771_v0 = vlaneseq  ;;  %v1821_v6 = vld [vmem:[#allocation39 + $0x1] ss:$8 sm:$0xf]  ;;  %vm1748_vm0 = vcmask 269312  }
 0x393   : > { %23491 = vsyncadd (%p27178_p2), [#allocation47], 4294966016  ;;  %s23575_s1 = smov 33   ;;  %v1822_v7 = vld [vmem:[#allocation39 + $0x1] ss:$8 sm:$0xf0] }
 0x394   : > { %s27275_s11 = smov (!%p1692_p3, %s23835_s11), 1  ;;  %v1772_v1 = vshrl.u32 %v1771_v0, 7  ;;  %v1823_v9 = vor.u32 %v1822_v7, %v1821_v6  ;;  %s27055_s18 = smov 1   ;;  %v1767_v23 = vld [vmem:[#allocation39] ss:$8 sm:$0xf] }
 0x395   : > { %s20311_s15 = sshll.u32 %s27275_s11, 5  ;;  %v1768_v24 = vld [vmem:[#allocation39] ss:$8 sm:$0xf0]  ;;  %s27049_s26 = smov 2   ;;  %vm27051_vm1 = vcmask 7168  }
 0x396   : > { %v24362_v4 = vsub.s32 0, %v1772_v1  ;;  %v24370_v12 = vsub.s32 2, %v1772_v1  ;;  %v24372_v13 = vsub.s32 1, %v1772_v1  ;;  %v24378_v16 = vsub.s32 4, %v1772_v1  ;;  %s27040_s3 = smov 32   ;;  %s27032_s12 = smov 34  }
 0x397   : > { %v24380_v17 = vsub.s32 3, %v1772_v1  ;;  %v24386_v20 = vsub.s32 6, %v1772_v1  ;;  %v24388_v21 = vsub.s32 5, %v1772_v1  ;;  %v24393_v26 = vor.u32 %v1768_v24, %v1767_v23  ;;  %v2554_v30 = vld [vmem:[#allocation39 + $0x2] ss:$8 sm:$0xf] }
 0x398   : > { %s24358_s22 = scalar_lea.vmem %s27179_s14, %s20311_s15  ;;  %27180 = vst [vmem:[#allocation96_spill] sm:$0xff] %v24362_v4  ;;  %v1828_v11 = vrot.slane %v1823_v9, %v24362_v4  ;;  %27181 = vst [vmem:[#allocation97_spill] sm:$0xff] %v24372_v13  ;;  %v1836_v14 = vrot.slane %v1823_v9, %v24370_v12  ;;  %v1832_v15 = vrot.slane %v1823_v9, %v24372_v13  ;;  %v24399_v29 = vsub.s32 7, %v1772_v1  ;;  %v2555_v31 = vld [vmem:[#allocation39 + $0x2] ss:$8 sm:$0xf0] }
 0x399   : > { %v1721_v2 = vld [vmem:[%s24358_s22 + $0x8] sm:$0x77]  ;;  %v1720_v3 = vld [vmem:[%s24358_s22] sm:$0x77]  ;;  %v1722_v8 = vld [vmem:[%s24358_s22 + $0x10] sm:$0x77]  ;;  %v1844_v18 = vrot.slane %v1823_v9, %v24378_v16  ;;  %v1840_v19 = vrot.slane %v1823_v9, %v24380_v17  ;;  %v1852_v27 = vrot.slane %v1823_v9, %v24386_v20  ;;  %v1848_v28 = vrot.slane %v1823_v9, %v24388_v21 }
 0x39a   : > { %1736 = vrot.lane.b32.xlu1 %v1721_v2, %s23575_s1  ;;  %1732 = vrot.lane.b32.xlu0 %v1720_v3, %s23575_s1  ;;  %v1728_v5 = vcombine.high %v1720_v3, %v1720_v3  ;;  %v1729_v10 = vcombine.high %v1721_v2, %v1721_v2  ;;  %v1730_v22 = vcombine.high %v1722_v8, %v1722_v8  ;;  %v1723_v25 = vld [vmem:[%s24358_s22 + $0x18] sm:$0x77]  ;;  %v2982_v43 = vld [vmem:[#allocation39 + $0x3] ss:$8 sm:$0xf]  ;;  %s23580_s16 = smov 64  }
 0x39b   : > { %v24403_v32 = vrot.slane %v24393_v26, %v24380_v17  ;;  %v24407_v33 = vrot.slane %v24393_v26, %v24370_v12  ;;  %v24411_v34 = vrot.slane %v24393_v26, %v24399_v29  ;;  %v24415_v35 = vrot.slane %v24393_v26, %v24386_v20  ;;  %v2983_v44 = vld [vmem:[#allocation39 + $0x3] ss:$8 sm:$0xf0]  ;;  %v3752_v56 = vld [vmem:[#allocation39 + $0x5] ss:$8 sm:$0xf] }
 0x39c   : > { %v1731_v36 = vcombine.high %v1723_v25, %v1723_v25  ;;  %v1856_v37 = vrot.slane %v1823_v9, %v24399_v29  ;;  %v2556_v38 = vor.u32 %v2555_v31, %v2554_v30  ;;  %v2984_v47 = vor.u32 %v2983_v44, %v2982_v43  ;;  %v3753_v57 = vld [vmem:[#allocation39 + $0x5] ss:$8 sm:$0xf0]  ;;  %v4180_v1 = vld [vmem:[#allocation39 + $0x6] ss:$8 sm:$0xf] }
 0x39d   : > { %27182 = vst [vmem:[#allocation98_spill] sm:$0xff] %v24403_v32  ;;  %27183 = vst [vmem:[#allocation99_spill] sm:$0xff] %v24407_v33  ;;  %v3754_v60 = vor.u32 %v3753_v57, %v3752_v56  ;;  %v4181_v2 = vld [vmem:[#allocation39 + $0x6] ss:$8 sm:$0xf0]  ;;  %s23581_s8 = smov 65  }
 0x39e   : > { %1740 = vrot.lane.b32.xlu1 %v1722_v8, %s23575_s1  ;;  %1734 = vrot.lane.b32.xlu0 %v1728_v5, %s23575_s1  ;;  %27184 = vst [vmem:[#allocation100_spill] sm:$0xff] %v24411_v34  ;;  %27185 = vst [vmem:[#allocation101_spill] sm:$0xff] %v24415_v35  ;;  %v2565_v39 = vrot.slane %v2556_v38, %v24372_v13  ;;  %v2561_v40 = vrot.slane %v2556_v38, %v24362_v4  ;;  %s23582_s5 = smov 66   ;;  %s27066_s17 = smov 127   ;;  %vm1941_vm2 = vcmask 1042432   ;;  %vm1937_vm3 = vcmask 23552  }
 0x39f   : > { %v2577_v41 = vrot.slane %v2556_v38, %v24378_v16  ;;  %v2569_v42 = vrot.slane %v2556_v38, %v24370_v12  ;;  %v2585_v45 = vrot.slane %v2556_v38, %v24386_v20  ;;  %v2581_v46 = vrot.slane %v2556_v38, %v24388_v21  ;;  %s27188_s14 = sld [smem:[#allocation66_spill]]  ;;  %s27064_s15 = smov 126  }
 0x3a0   : > { %v2989_v48 = vrot.slane %v2984_v47, %v24362_v4  ;;  %v2573_v49 = vrot.slane %v2556_v38, %v24380_v17  ;;  %v2997_v50 = vrot.slane %v2984_v47, %v24370_v12  ;;  %v2993_v51 = vrot.slane %v2984_v47, %v24372_v13  ;;  %s23586_s22 = smov 96   ;;  %s27262_s0 = smov 119  }
 0x3a1   : > { %v3005_v52 = vrot.slane %v2984_v47, %v24378_v16  ;;  %v2589_v53 = vrot.slane %v2556_v38, %v24399_v29  ;;  %v3013_v54 = vrot.slane %v2984_v47, %v24386_v20  ;;  %v3009_v55 = vrot.slane %v2984_v47, %v24388_v21  ;;  %s27265_s2 = sshll.u32 %s27275_s11, 3  ;;  %s23607_s10 = smov 5  }
 0x3a2   : > { %1857 = vrot.lane.b32.xlu1 %v1828_v11, %s27055_s18  ;;  %1738 = vrot.lane.b32.xlu0 %v1729_v10, %s23575_s1  ;;  %v3017_v58 = vrot.slane %v2984_v47, %v24399_v29  ;;  %v3001_v59 = vrot.slane %v2984_v47, %v24380_v17  ;;  %v3763_v61 = vrot.slane %v3754_v60, %v24372_v13  ;;  %vm27052_vm4 = vcmask 15360   ;;  %s1704_s6 = scalar_lea.vmem %s23812_s13, %s27265_s2  ;;  %s23609_s2 = smov 124  }
 0x3a3   : > { %v3759_v62 = vrot.slane %v3754_v60, %v24362_v4  ;;  %v3775_v63 = vrot.slane %v3754_v60, %v24378_v16  ;;  %v3767_v0 = vrot.slane %v3754_v60, %v24370_v12  ;;  %v3783_v3 = vrot.slane %v3754_v60, %v24386_v20 }
 0x3a4   : > { %v3779_v5 = vrot.slane %v3754_v60, %v24388_v21  ;;  %v4182_v6 = vor.u32 %v4181_v2, %v4180_v1  ;;  %v3771_v8 = vrot.slane %v3754_v60, %v24380_v17  ;;  %vm3034_vm5 = vcmask 261120  }
 0x3a5   : > { %vm3804_vm6 = vcmask 277504   ;;  %vm4232_vm7 = vcmask 523264   ;;  %vm4659_vm8 = vcmask 531456   ;;  %vm1928_vm9 = vcmask 1039360  }
 0x3a6   : > { %1861 = vrot.lane.b32.xlu1 %v1836_v14, %s27055_s18  ;;  %1859 = vrot.lane.b32.xlu0 %v1832_v15, %s27055_s18  ;;  %v4187_v7 = vrot.slane %v4182_v6, %v24362_v4  ;;  %v4195_v9 = vrot.slane %v4182_v6, %v24370_v12  ;;  %v4191_v10 = vrot.slane %v4182_v6, %v24372_v13  ;;  %v4607_v15 = vld [vmem:[#allocation39 + $0x7] ss:$8 sm:$0xf]  ;;  %vm5087_vm10 = vcmask 539648  }
 0x3a7   : > { %v4203_v11 = vrot.slane %v4182_v6, %v24378_v16  ;;  %v3787_v14 = vrot.slane %v3754_v60, %v24399_v29  ;;  %vm2661_vm11 = vcmask 1031168   ;;  %vm3089_vm12 = vcmask 785408  }
 0x3a8   : > { %vm3431_vm13 = vcmask 777216   ;;  %vm3859_vm14 = vcmask 769024   ;;  %vm4714_vm15 = vcmask 515072  }
 0x3aa   : > { %1865 = vrot.lane.b32.xlu1 %v1844_v18, %s27055_s18  ;;  %1863 = vrot.lane.b32.xlu0 %v1840_v19, %s27055_s18  ;;  %v4608_v18 = vld [vmem:[#allocation39 + $0x7] ss:$8 sm:$0xf0]  ;;  %v4211_v19 = vrot.slane %v4182_v6, %v24386_v20 }
 0x3ab   : > { %v4609_v23 = vor.u32 %v4608_v18, %v4607_v15 }
 0x3ad   : > { %v4618_v24 = vrot.slane %v4609_v23, %v24372_v13  ;;  %v4634_v30 = vrot.slane %v4609_v23, %v24388_v21  ;;  %v4622_v31 = vrot.slane %v4609_v23, %v24370_v12  ;;  %v4626_v38 = vrot.slane %v4609_v23, %v24380_v17 }
 0x3ae   : > { %1744 = vrot.lane.b32.xlu1 %v1723_v25, %s23575_s1  ;;  %1742 = vrot.lane.b32.xlu0 %v1730_v22, %s23575_s1  ;;  %v4207_v22 = vrot.slane %v4182_v6, %v24388_v21  ;;  %v4199_v25 = vrot.slane %v4182_v6, %v24380_v17  ;;  %v4642_v43 = vrot.slane %v4609_v23, %v24399_v29 }
 0x3b2   : > { %1869 = vrot.lane.b32.xlu1 %v1852_v27, %s27055_s18  ;;  %1867 = vrot.lane.b32.xlu0 %v1848_v28, %s27055_s18  ;;  %v4215_v27 = vrot.slane %v4182_v6, %v24399_v29  ;;  %v4614_v28 = vrot.slane %v4609_v23, %v24362_v4 }
 0x3b6   : > { %1871 = vrot.lane.b32.xlu1 %v1856_v37, %s27055_s18  ;;  %1746 = vrot.lane.b32.xlu0 %v1731_v36, %s23575_s1  ;;  %v5035_v36 = vld [vmem:[#allocation39 + $0x40] ss:$8 sm:$0xf] }
 0x3b7   : > { %v5036_v37 = vld [vmem:[#allocation39 + $0x40] ss:$8 sm:$0xf0] }
 0x3ba   : > { %2592 = vrot.lane.b32.xlu1 %v2565_v39, %s27049_s26  ;;  %2590 = vrot.lane.b32.xlu0 %v2561_v40, %s27049_s26  ;;  %v4630_v39 = vrot.slane %v4609_v23, %v24378_v16  ;;  %v24492_v40 = vor.u32 %v5036_v37, %v5035_v36 }
 0x3bc   : > { %v5042_v44 = vrot.slane %v24492_v40, %v24362_v4 }
 0x3be   : > { %2598 = vrot.lane.b32.xlu1 %v2577_v41, %s27049_s26  ;;  %2594 = vrot.lane.b32.xlu0 %v2569_v42, %s27049_s26  ;;  %v5046_v41 = vrot.slane %v24492_v40, %v24372_v13  ;;  %v4638_v42 = vrot.slane %v4609_v23, %v24386_v20 }
 0x3c2   : > { %2602 = vrot.lane.b32.xlu1 %v2585_v45, %s27049_s26  ;;  %2600 = vrot.lane.b32.xlu0 %v2581_v46, %s27049_s26  ;;  %v5050_v45 = vrot.slane %v24492_v40, %v24370_v12 }
 0x3c6   : > { %3018 = vrot.lane.b32.xlu1 %v2989_v48, %s27040_s3  ;;  %2596 = vrot.lane.b32.xlu0 %v2573_v49, %s27049_s26 }
 0x3ca   : > { %3022 = vrot.lane.b32.xlu1 %v2997_v50, %s27040_s3  ;;  %3020 = vrot.lane.b32.xlu0 %v2993_v51, %s27040_s3 }
 0x3ce   : > { %3026 = vrot.lane.b32.xlu1 %v3005_v52, %s27040_s3  ;;  %2604 = vrot.lane.b32.xlu0 %v2589_v53, %s27049_s26  ;;  %v27009_v53 = vmov 0.0  }
 0x3cf   : > { %2022 = vmatprep.mubr.f32.mxu1 %v27009_v53  ;;  %2475 = vmatprep.mubr.f32.mxu0 %v27009_v53 }
 0x3d2   : > { %3030 = vrot.lane.b32.xlu1 %v3013_v54, %s27040_s3  ;;  %3028 = vrot.lane.b32.xlu0 %v3009_v55, %s27040_s3 }
 0x3d6   : > { %3032 = vrot.lane.b32.xlu1 %v3017_v58, %s27040_s3  ;;  %3024 = vrot.lane.b32.xlu0 %v3001_v59, %s27040_s3  ;;  %s23590_s3 = smov 62  }
 0x3da   : > { %3790 = vrot.lane.b32.xlu1 %v3763_v61, %s27032_s12  ;;  %3788 = vrot.lane.b32.xlu0 %v3759_v62, %s27032_s12 }
 0x3de   : > { %3796 = vrot.lane.b32.xlu1 %v3775_v63, %s27032_s12  ;;  %3792 = vrot.lane.b32.xlu0 %v3767_v0, %s27032_s12 }
 0x3e2   : > { %3800 = vrot.lane.b32.xlu1 %v3783_v3, %s27032_s12  ;;  %3798 = vrot.lane.b32.xlu0 %v3779_v5, %s27032_s12 }
 0x3e6   : > { %4216 = vrot.lane.b32.xlu1 %v4187_v7, %s23580_s16  ;;  %3794 = vrot.lane.b32.xlu0 %v3771_v8, %s27032_s12  ;;  %v24552_v7 = vrot.slane %v24393_v26, %v24388_v21  ;;  %v24556_v8 = vrot.slane %v24393_v26, %v24378_v16 }
 0x3e8   : > { %27186 = vst [vmem:[#allocation102_spill] sm:$0xff] %v24552_v7  ;;  %27187 = vst [vmem:[#allocation103_spill] sm:$0xff] %v24556_v8 }
 0x3ea   : > { %4220 = vrot.lane.b32.xlu1 %v4195_v9, %s23580_s16  ;;  %4218 = vrot.lane.b32.xlu0 %v4191_v10, %s23580_s16 }
 0x3ee   : > { %4224 = vrot.lane.b32.xlu1 %v4203_v11, %s23580_s16  ;;  %3802 = vrot.lane.b32.xlu0 %v3787_v14, %s27032_s12  ;;  %s23589_s12 = smov 63  }
 0x3f2   : > { %4228 = vrot.lane.b32.xlu1 %v4211_v19, %s23580_s16  ;;  %4226 = vrot.lane.b32.xlu0 %v4207_v22, %s23580_s16 }
 0x3f6   : > { %4645 = vrot.lane.b32.xlu1 %v4618_v24, %s23581_s8  ;;  %4222 = vrot.lane.b32.xlu0 %v4199_v25, %s23580_s16 }
 0x3fa   : > { %4230 = vrot.lane.b32.xlu1 %v4215_v27, %s23580_s16  ;;  %4643 = vrot.lane.b32.xlu0 %v4614_v28, %s23581_s8  ;;  %v24583_v28 = vld [vmem:[%s27188_s14] sm:$0xf] }
 0x3fe   : > { %4653 = vrot.lane.b32.xlu1 %v4634_v30, %s23581_s8  ;;  %4647 = vrot.lane.b32.xlu0 %v4622_v31, %s23581_s8 }
 0x402   : > { %4649 = vrot.lane.b32.xlu1 %v4626_v38, %s23581_s8  ;;  %4651 = vrot.lane.b32.xlu0 %v4630_v39, %s23581_s8 }
 0x406   : > { %5073 = vrot.lane.b32.xlu1 %v5046_v41, %s23582_s5  ;;  %4655 = vrot.lane.b32.xlu0 %v4638_v42, %s23581_s8 }
 0x40a   : > { %4657 = vrot.lane.b32.xlu1 %v4642_v43, %s23581_s8  ;;  %5071 = vrot.lane.b32.xlu0 %v5042_v44, %s23582_s5  ;;  %v5062_v44 = vrot.slane %v24492_v40, %v24388_v21  ;;  %s23587_s8 = smov 95  }
 0x40c   : > { %v1737_v46 = vpop.permute.xlu1 %1736  ;;  %v1733_v47 = vpop.permute.xlu0 %1732 }
 0x40d   : > { %v24506_v50 = vsel %vm1748_vm0, 0.0, %v1733_v47 }
 0x40e   : > { %5075 = vrot.lane.b32.xlu0 %v5050_v45, %s23582_s5  ;;  %v5058_v45 = vrot.slane %v24492_v40, %v24378_v16 }
 0x410   : > { %v1741_v48 = vpop.permute.xlu1 %1740  ;;  %v1735_v49 = vpop.permute.xlu0 %1734 }
 0x411   : > { %v24516_v56 = vsel %vm1748_vm0, %v1733_v47, %v1735_v49  ;;  %v24519_v57 = vsel %vm1748_vm0, %v1735_v49, %v1737_v46  ;;  %v5066_v49 = vrot.slane %v24492_v40, %v24386_v20 }
 0x414   : > { %v24508_v51 = vpop.permute.xlu1 %1857  ;;  %v1739_v52 = vpop.permute.xlu0 %1738 }
 0x415   : > { %v1890_v12 = vmul.f32 %v24508_v51, %v24506_v50  ;;  %v24535_v0 = vsel %vm1748_vm0, %v1737_v46, %v1739_v52  ;;  %v24538_v1 = vsel %vm1748_vm0, %v1739_v52, %v1741_v48 }
 0x416   : > { %v1815_v15 = vmul.f32 %v24556_v8, %v24538_v1 }
 0x417   : > { %1910 = vrot.lane.b32.xlu1 %v1890_v12, %s27066_s17  ;;  %v5070_v12 = vrot.slane %v24492_v40, %v24399_v29 }
 0x418   : > { %v1862_v54 = vpop.permute.xlu1 %1861  ;;  %v1860_v55 = vpop.permute.xlu0 %1859 }
 0x419   : > { %v24523_v58 = vsel %vm27051_vm1, %v24508_v51, %v1860_v55  ;;  %v24526_v59 = vsel %vm27051_vm1, %v1860_v55, %v1862_v54 }
 0x41a   : > { %v1892_v60 = vmul.f32 %v24526_v59, %v24519_v57  ;;  %v1891_v61 = vmul.f32 %v24523_v58, %v24516_v56 }
 0x41c   : > { %v1866_v62 = vpop.permute.xlu1 %1865  ;;  %1914 = vrot.lane.b32.xlu0 %v1892_v60, %s27066_s17  ;;  %1912 = vrot.lane.b32.xlu1 %v1891_v61, %s27066_s17  ;;  %v1864_v63 = vpop.permute.xlu0 %1863 }
 0x41d   : > { %v24541_v2 = vsel %vm27051_vm1, %v1862_v54, %v1864_v63  ;;  %v24544_v3 = vsel %vm27051_vm1, %v1864_v63, %v1866_v62 }
 0x41e   : > { %v1894_v5 = vmul.f32 %v24544_v3, %v24538_v1  ;;  %v1893_v6 = vmul.f32 %v24541_v2, %v24535_v0 }
 0x420   : > { %v1745_v9 = vpop.permute.xlu1 %1744  ;;  %1918 = vrot.lane.b32.xlu1 %v1894_v5, %s27066_s17  ;;  %1916 = vrot.lane.b32.xlu0 %v1893_v6, %s27066_s17  ;;  %v1743_v10 = vpop.permute.xlu0 %1742 }
 0x421   : > { %v24561_v11 = vsel %vm1748_vm0, %v1741_v48, %v1743_v10  ;;  %v24569_v22 = vsel %vm1748_vm0, %v1743_v10, %v1745_v9  ;;  %v5054_v48 = vrot.slane %v24492_v40, %v24380_v17 }
 0x422   : > { %v1816_v14 = vmul.f32 %v24552_v7, %v24561_v11 }
 0x424   : > { %v1870_v18 = vpop.permute.xlu1 %1869  ;;  %19895 = vmatprep.subr.msk.mxu0 %vm1941_vm2, %v1816_v14  ;;  %v1868_v19 = vpop.permute.xlu0 %1867 }
 0x425   : > { %v24572_v23 = vsel %vm27051_vm1, %v1866_v62, %v1868_v19  ;;  %v24575_v24 = vsel %vm27051_vm1, %v1868_v19, %v1870_v18  ;;  %19896 = vmatpush1.msk.msra.mxu0 %vm1941_vm2, %v1815_v15 }
 0x426   : > { %27189 = vst [vmem:[#allocation104_spill] sm:$0xff] %v24575_v24  ;;  %v1896_v25 = vmul.f32 %v24575_v24, %v24569_v22  ;;  %v1895_v27 = vmul.f32 %v24572_v23, %v24561_v11  ;;  %19897 = vmatmul.mubr.msk.f32.vlgmr.msra.gmra.mrb[0].mxu0 %vm1937_vm3, %v24583_v28 }
 0x427   : > { %2753 = vmatprep.mubr.f32.mxu0 %v27009_v53 }
 0x428   : > { %v24587_v30 = vpop.permute.xlu1 %1871  ;;  %1922 = vrot.lane.b32.xlu1 %v1896_v25, %s27066_s17  ;;  %1920 = vrot.lane.b32.xlu0 %v1895_v27, %s27066_s17  ;;  %v1747_v31 = vpop.permute.xlu0 %1746 }
 0x429   : > { %27190 = vst [vmem:[#allocation105_spill] sm:$0xff] %v24587_v30  ;;  %v24592_v36 = vsel %vm1748_vm0, %v1745_v9, %v1747_v31  ;;  %v24595_v37 = vsel %vm1748_vm0, %v1747_v31, 0.0  ;;  %v24599_v38 = vsel %vm27051_vm1, %v1870_v18, %v24587_v30 }
 0x42a   : > { %27191 = vst [vmem:[#allocation106_spill] sm:$0xff] %v24599_v38  ;;  %v1898_v39 = vmul.f32 %v24587_v30, %v24595_v37  ;;  %v1897_v41 = vmul.f32 %v24599_v38, %v24592_v36 }
 0x42c   : > { %v2593_v42 = vpop.permute.xlu1 %2592  ;;  %1926 = vrot.lane.b32.xlu1 %v1898_v39, %s27066_s17  ;;  %1924 = vrot.lane.b32.xlu0 %v1897_v41, %s27066_s17  ;;  %v24608_v43 = vpop.permute.xlu0 %2590 }
 0x42d   : > { %v24622_v52 = vsel %vm27052_vm4, %v24608_v43, %v2593_v42  ;;  %v2623_v60 = vmul.f32 %v24608_v43, %v24506_v50 }
 0x42e   : > { %v2624_v54 = vmul.f32 %v24622_v52, %v24516_v56 }
 0x430   : > { %v2599_v46 = vpop.permute.xlu1 %2598  ;;  %5081 = vrot.lane.b32.xlu1 %v5062_v44, %s23582_s5  ;;  %5079 = vrot.lane.b32.xlu0 %v5058_v45, %s23582_s5  ;;  %v2595_v47 = vpop.permute.xlu0 %2594 }
 0x431   : > { %v24631_v17 = vsel %vm27052_vm4, %v2593_v42, %v2595_v47 }
 0x432   : > { %v2625_v29 = vmul.f32 %v24631_v17, %v24519_v57 }
 0x434   : > { %v2603_v21 = vpop.permute.xlu1 %2602  ;;  %5077 = vrot.lane.b32.xlu1 %v5054_v48, %s23582_s5  ;;  %5083 = vrot.lane.b32.xlu0 %v5066_v49, %s23582_s5  ;;  %v2601_v16 = vpop.permute.xlu0 %2600 }
 0x435   : > { %v24642_v40 = vsel %vm27052_vm4, %v2599_v46, %v2601_v16  ;;  %v24645_v61 = vsel %vm27052_vm4, %v2601_v16, %v2603_v21 }
 0x436   : > { %27192 = vst [vmem:[#allocation107_spill] sm:$0xff] %v24645_v61  ;;  %v2629_v5 = vmul.f32 %v24645_v61, %v24569_v22  ;;  %v2628_v6 = vmul.f32 %v24642_v40, %v24561_v11 }
 0x438   : > { %v24633_v20 = vpop.permute.xlu1 %3018  ;;  %5085 = vrot.lane.b32.xlu0 %v5070_v12, %s23582_s5  ;;  %2645 = vrot.lane.b32.xlu1 %v2624_v54, %s27064_s15  ;;  %v2597_v55 = vpop.permute.xlu0 %2596  ;;  %s23588_s5 = smov 94  }
 0x439   : > { %v24654_v9 = vsel %vm27052_vm4, %v2595_v47, %v2597_v55  ;;  %v24657_v10 = vsel %vm27052_vm4, %v2597_v55, %v2599_v46  ;;  %v3051_v12 = vmul.f32 %v24633_v20, %v24506_v50 }
 0x43a   : > { %v2627_v18 = vmul.f32 %v24657_v10, %v24538_v1  ;;  %v2626_v19 = vmul.f32 %v24654_v9, %v24535_v0 }
 0x43c   : > { %v3023_v62 = vpop.permute.xlu1 %3022  ;;  %2643 = vrot.lane.b32.xlu1 %v2623_v60, %s27064_s15  ;;  %2647 = vrot.lane.b32.xlu0 %v2625_v29, %s27064_s15  ;;  %v3021_v63 = vpop.permute.xlu0 %3020 }
 0x43d   : > { %v24669_v25 = vsel %vm3034_vm5, %v24633_v20, %v3021_v63  ;;  %v24672_v27 = vsel %vm3034_vm5, %v3021_v63, %v3023_v62 }
 0x43e   : > { %v3053_v41 = vmul.f32 %v24672_v27, %v24519_v57  ;;  %v3052_v42 = vmul.f32 %v24669_v25, %v24516_v56 }
 0x440   : > { %v3027_v14 = vpop.permute.xlu1 %3026  ;;  %2655 = vrot.lane.b32.xlu1 %v2629_v5, %s27064_s15  ;;  %2653 = vrot.lane.b32.xlu0 %v2628_v6, %s27064_s15  ;;  %v24661_v15 = vpop.permute.xlu0 %2604 }
 0x441   : > { %27193 = vst [vmem:[#allocation108_spill] sm:$0xff] %v24661_v15  ;;  %v24682_v44 = vsel %vm27052_vm4, %v2603_v21, %v24661_v15  ;;  %v2631_v47 = vmul.f32 %v24661_v15, %v24595_v37 }
 0x442   : > { %27194 = vst [vmem:[#allocation109_spill] sm:$0xff] %v24682_v44  ;;  %v2630_v48 = vmul.f32 %v24682_v44, %v24592_v36 }
 0x444   : > { %v3031_v31 = vpop.permute.xlu1 %3030  ;;  %2651 = vrot.lane.b32.xlu1 %v2627_v18, %s27064_s15  ;;  %2649 = vrot.lane.b32.xlu0 %v2626_v19, %s27064_s15  ;;  %v3029_v39 = vpop.permute.xlu0 %3028 }
 0x445   : > { %v24693_v49 = vsel %vm3034_vm5, %v3027_v14, %v3029_v39  ;;  %v24704_v55 = vsel %vm3034_vm5, %v3029_v39, %v3031_v31 }
 0x446   : > { %v3056_v54 = vmul.f32 %v24693_v49, %v24561_v11  ;;  %27196 = vst [vmem:[#allocation111_spill] sm:$0xff] %v24704_v55  ;;  %v3057_v5 = vmul.f32 %v24704_v55, %v24569_v22 }
 0x448   : > { %v24684_v45 = vpop.permute.xlu1 %3032  ;;  %3075 = vrot.lane.b32.xlu1 %v3053_v41, %s23586_s22  ;;  %3073 = vrot.lane.b32.xlu0 %v3052_v42, %s23586_s22  ;;  %v3025_v46 = vpop.permute.xlu0 %3024 }
 0x449   : > { %27195 = vst [vmem:[#allocation110_spill] sm:$0xff] %v24684_v45  ;;  %v24707_v60 = vsel %vm3034_vm5, %v3023_v62, %v3025_v46  ;;  %v24716_v18 = vsel %vm3034_vm5, %v3025_v46, %v3027_v14  ;;  %v24726_v41 = vsel %vm3034_vm5, %v3031_v31, %v24684_v45 }
 0x44a   : > { %v3054_v6 = vmul.f32 %v24707_v60, %v24535_v0  ;;  %v3055_v39 = vmul.f32 %v24716_v18, %v24538_v1  ;;  %27197 = vst [vmem:[#allocation112_spill] sm:$0xff] %v24726_v41  ;;  %v3058_v46 = vmul.f32 %v24726_v41, %v24592_v36 }
 0x44c   : > { %v3791_v16 = vpop.permute.xlu1 %3790  ;;  %2659 = vrot.lane.b32.xlu1 %v2631_v47, %s27064_s15  ;;  %2657 = vrot.lane.b32.xlu0 %v2630_v48, %s27064_s15  ;;  %v24697_v21 = vpop.permute.xlu0 %3788  ;;  %v3059_v48 = vmul.f32 %v24684_v45, %v24595_v37 }
 0x44d   : > { %v3821_v44 = vmul.f32 %v24697_v21, %v24506_v50 }
 0x450   : > { %v3797_v29 = vpop.permute.xlu1 %3796  ;;  %3071 = vrot.lane.b32.xlu0 %v3051_v12, %s23586_s22  ;;  %3081 = vrot.lane.b32.xlu1 %v3056_v54, %s23586_s22  ;;  %v3793_v63 = vpop.permute.xlu0 %3792 }
 0x454   : > { %v24718_v19 = vpop.permute.xlu1 %3800  ;;  %3083 = vrot.lane.b32.xlu0 %v3057_v5, %s23586_s22  ;;  %3077 = vrot.lane.b32.xlu1 %v3054_v6, %s23586_s22  ;;  %v3799_v62 = vpop.permute.xlu0 %3798 }
 0x455   : > { %v24779_v41 = vsel %vm3804_vm6, %v3797_v29, %v3799_v62  ;;  %v24793_v15 = vsel %vm3804_vm6, %v3799_v62, %v24718_v19 }
 0x456   : > { %27200 = vst [vmem:[#allocation115_spill] sm:$0xff] %v24779_v41  ;;  %27201 = vst [vmem:[#allocation116_spill] sm:$0xff] %v24793_v15  ;;  %v3827_v38 = vmul.f32 %v24793_v15, %v24569_v22 }
 0x458   : > { %v24728_v42 = vpop.permute.xlu1 %4216  ;;  %3079 = vrot.lane.b32.xlu0 %v3055_v39, %s23586_s22  ;;  %3415 = vrot.lane.b32.xlu1 %v24516_v56, %s23587_s8  ;;  %v3795_v14 = vpop.permute.xlu0 %3794  ;;  %v24757_v39 = vsel %vm3804_vm6, %v24697_v21, %v3791_v16 }
 0x459   : > { %27198 = vst [vmem:[#allocation113_spill] sm:$0xff] %v24728_v42  ;;  %v3822_v8 = vmul.f32 %v24757_v39, %v24516_v56  ;;  %v24796_v30 = vsel %vm3804_vm6, %v3793_v63, %v3795_v14  ;;  %v24807_v24 = vsel %vm3804_vm6, %v3795_v14, %v3797_v29 }
 0x45c   : > { %v24735_v47 = vpop.permute.xlu1 %4220  ;;  %3417 = vrot.lane.b32.xlu0 %v24519_v57, %s23587_s8  ;;  %3085 = vrot.lane.b32.xlu1 %v3058_v46, %s23586_s22  ;;  %v4219_v31 = vpop.permute.xlu0 %4218  ;;  %v24760_v46 = vsel %vm3804_vm6, %v3791_v16, %v3793_v63 }
 0x45d   : > { %v3823_v7 = vmul.f32 %v24760_v46, %v24519_v57  ;;  %v24811_v63 = vsel %vm4232_vm7, %v24728_v42, %v4219_v31  ;;  %v24825_v29 = vsel %vm4232_vm7, %v4219_v31, %v24735_v47 }
 0x45e   : > { %27202 = vst [vmem:[#allocation117_spill] sm:$0xff] %v24811_v63  ;;  %v4250_v15 = vmul.f32 %v24811_v63, %v24516_v56  ;;  %27203 = vst [vmem:[#allocation118_spill] sm:$0xff] %v24825_v29 }
 0x460   : > { %v24742_v12 = vpop.permute.xlu1 %4224  ;;  %3087 = vrot.lane.b32.xlu0 %v3059_v48, %s23586_s22  ;;  %3413 = vrot.lane.b32.xlu1 %v24506_v50, %s23587_s8  ;;  %v24747_v54 = vpop.permute.xlu0 %3802 }
 0x461   : > { %27199 = vst [vmem:[#allocation114_spill] sm:$0xff] %v24747_v54  ;;  %v24830_v14 = vsel %vm3804_vm6, %v24718_v19, %v24747_v54  ;;  %v4249_v19 = vmul.f32 %v24728_v42, %v24506_v50 }
 0x462   : > { %27204 = vst [vmem:[#allocation119_spill] sm:$0xff] %v24830_v14 }
 0x464   : > { %v24749_v5 = vpop.permute.xlu1 %4228  ;;  %3423 = vrot.lane.b32.xlu0 %v24561_v11, %s23587_s8  ;;  %3425 = vrot.lane.b32.xlu1 %v24569_v22, %s23587_s8  ;;  %v4227_v6 = vpop.permute.xlu0 %4226 }
 0x465   : > { %v24850_v31 = vsel %vm4232_vm7, %v24742_v12, %v4227_v6 }
 0x466   : > { %27205 = vst [vmem:[#allocation120_spill] sm:$0xff] %v24850_v31 }
 0x468   : > { %v24762_v48 = vpop.permute.xlu1 %4645  ;;  %3419 = vrot.lane.b32.xlu0 %v24535_v0, %s23587_s8  ;;  %3421 = vrot.lane.b32.xlu1 %v24538_v1, %s23587_s8  ;;  %v4223_v53 = vpop.permute.xlu0 %4222 }
 0x469   : > { %v24868_v42 = vsel %vm4232_vm7, %v24735_v47, %v4223_v53 }
 0x46a   : > { %27207 = vst [vmem:[#allocation122_spill] sm:$0xff] %v24868_v42 }
 0x46c   : > { %3843 = vrot.lane.b32.xlu0 %v3822_v8, %s23588_s5  ;;  %3845 = vrot.lane.b32.xlu1 %v3823_v7, %s23588_s5  ;;  %v24774_v16 = vpop.permute.xlu0 %4643  ;;  %v24776_v45 = vpop.permute.xlu1 %4230  ;;  %v3826_v8 = vmul.f32 %v24779_v41, %v24561_v11  ;;  %v3824_v41 = vmul.f32 %v24796_v30, %v24535_v0 }
 0x470   : > { %3427 = vrot.lane.b32.xlu0 %v24592_v36, %s23587_s8  ;;  %3429 = vrot.lane.b32.xlu1 %v24595_v37, %s23587_s8  ;;  %v24789_v7 = vpop.permute.xlu0 %4647  ;;  %v24798_v55 = vpop.permute.xlu1 %4653 }
 0x471   : > { %v24890_v47 = vsel %vm4659_vm8, %v24762_v48, %v24789_v7 }
 0x472   : > { %27210 = vst [vmem:[#allocation125_spill] sm:$0xff] %v24890_v47 }
 0x474   : > { %3841 = vrot.lane.b32.xlu0 %v3821_v44, %s23588_s5  ;;  %3851 = vrot.lane.b32.xlu1 %v3826_v8, %s23588_s5  ;;  %v24813_v62 = vpop.permute.xlu0 %4651  ;;  %v24817_v44 = vpop.permute.xlu1 %4649  ;;  %v3825_v8 = vmul.f32 %v24807_v24, %v24538_v1 }
 0x478   : > { %3853 = vrot.lane.b32.xlu0 %v3827_v38, %s23588_s5  ;;  %3847 = vrot.lane.b32.xlu1 %v3824_v41, %s23588_s5  ;;  %v4251_v38 = vmul.f32 %v24825_v29, %v24519_v57  ;;  %v3828_v41 = vmul.f32 %v24830_v14, %v24592_v36  ;;  %v24838_v63 = vpop.permute.xlu0 %4655  ;;  %v24840_v61 = vpop.permute.xlu1 %5073  ;;  %v24901_v29 = vsel %vm4232_vm7, %v24749_v5, %v24776_v45 }
 0x479   : > { %27211 = vst [vmem:[#allocation126_spill] sm:$0xff] %v24901_v29 }
 0x47c   : > { %3849 = vrot.lane.b32.xlu0 %v3825_v8, %s23588_s5  ;;  %4271 = vrot.lane.b32.xlu1 %v4250_v15, %s23580_s16  ;;  %v3829_v15 = vmul.f32 %v24747_v54, %v24595_v37  ;;  %v24854_v8 = vsel %vm4232_vm7, %v4227_v6, %v24749_v5  ;;  %v24856_v14 = vpop.permute.xlu0 %5071  ;;  %v24872_v6 = vsel %vm4232_vm7, %v4223_v53, %v24742_v12 }
 0x47d   : > { %27206 = vst [vmem:[#allocation121_spill] sm:$0xff] %v24854_v8  ;;  %v4255_v54 = vmul.f32 %v24854_v8, %v24569_v22  ;;  %27208 = vst [vmem:[#allocation123_spill] sm:$0xff] %v24872_v6  ;;  %v4253_v8 = vmul.f32 %v24872_v6, %v24538_v1  ;;  %v24885_v53 = vsel %vm4659_vm8, %v24774_v16, %v24762_v48 }
 0x47e   : > { %27209 = vst [vmem:[#allocation124_spill] sm:$0xff] %v24885_v53  ;;  %v4677_v12 = vmul.f32 %v24885_v53, %v24516_v56  ;;  %v4256_v53 = vmul.f32 %v24901_v29, %v24592_v36  ;;  %v24966_v29 = vrot.slane %v24393_v26, %v24372_v13 }
 0x480   : > { %4273 = vrot.lane.b32.xlu0 %v4251_v38, %s23580_s16  ;;  %3855 = vrot.lane.b32.xlu1 %v3828_v41, %s23588_s5  ;;  %v24860_v38 = vpop.permute.xlu1 %4657  ;;  %v4254_v41 = vmul.f32 %v24850_v31, %v24561_v11  ;;  %v24880_v31 = vpop.permute.xlu0 %5075 }
 0x484   : > { %3857 = vrot.lane.b32.xlu0 %v3829_v15, %s23588_s5  ;;  %4269 = vrot.lane.b32.xlu1 %v4249_v19, %s23580_s16  ;;  %v4252_v15 = vmul.f32 %v24868_v42, %v24535_v0 }
 0x488   : > { %4281 = vrot.lane.b32.xlu1 %v4255_v54, %s23580_s16  ;;  %4279 = vrot.lane.b32.xlu0 %v4254_v41, %s23580_s16  ;;  %v4678_v54 = vmul.f32 %v24890_v47, %v24519_v57  ;;  %v4257_v47 = vmul.f32 %v24776_v45, %v24595_v37 }
 0x489   : > { %v1911_v19 = vpop.permute.xlu1 %1910 }
 0x48c   : > { %4277 = vrot.lane.b32.xlu1 %v4253_v8, %s23580_s16  ;;  %4275 = vrot.lane.b32.xlu0 %v4252_v15, %s23580_s16  ;;  %v19876_v15 = vld [vmem:[%s27188_s14 + $0x4] sm:$0xf] }
 0x48e   : > { %v1913_v41 = vpop.permute.xlu1 %1912  ;;  %v1915_v6 = vpop.permute.xlu0 %1914 }
 0x48f   : > { %v1930_v48 = vsel %vm1928_vm9, %v1913_v41, %v1915_v6  ;;  %v1929_v8 = vsel %vm1928_vm9, %v1911_v19, %v1913_v41  ;;  %v24917_v19 = vsel %vm4659_vm8, %v24813_v62, %v24798_v55  ;;  %v27212_v41 = vmov 0.0  }
 0x490   : > { %4698 = vrot.lane.b32.xlu0 %v4677_v12, %s23589_s12  ;;  %4700 = vrot.lane.b32.xlu1 %v4678_v54, %s23589_s12 }
 0x491   : > { %19877 = vmatprep.subr.msk.mxu1 %vm1941_vm2, %v1930_v48  ;;  %v4676_v48 = vmul.f32 %v24774_v16, %v24506_v50 }
 0x492   : > { %19878 = vmatpush1.msk.msra.mxu1 %vm1941_vm2, %v1929_v8  ;;  %v1919_v5 = vpop.permute.xlu1 %1918  ;;  %v1917_v42 = vpop.permute.xlu0 %1916  ;;  %v4681_v8 = vmul.f32 %v24917_v19, %v24561_v11 }
 0x493   : > { %v1931_v12 = vsel %vm1928_vm9, %v1915_v6, %v1917_v42  ;;  %v1932_v54 = vsel %vm1928_vm9, %v1917_v42, %v1919_v5  ;;  %19879 = vmatmul.mubr.msk.f32.vlgmr.msra.gmra.mrb[0].mxu1 %vm1937_vm3, %v19876_v15  ;;  %v24934_v42 = vsel %vm4659_vm8, %v24789_v7, %v24817_v44  ;;  %v24939_v6 = vsel %vm4659_vm8, %v24798_v55, %v24838_v63 }
 0x494   : > { %4283 = vrot.lane.b32.xlu0 %v4256_v53, %s23580_s16  ;;  %4285 = vrot.lane.b32.xlu1 %v4257_v47, %s23580_s16  ;;  %v4679_v53 = vmul.f32 %v24934_v42, %v24535_v0  ;;  %v4682_v7 = vmul.f32 %v24939_v6, %v24569_v22  ;;  %v24952_v55 = vsel %vm4659_vm8, %v24817_v44, %v24813_v62 }
 0x495   : > { %19880 = vmatprep.subr.msk.mxu1 %vm1941_vm2, %v1932_v54  ;;  %2093 = vmatprep.mubr.f32.mxu1 %v27212_v41  ;;  %v24957_v54 = vsel %vm5087_vm10, %v24856_v14, %v24840_v61  ;;  %v4680_v62 = vmul.f32 %v24952_v55, %v24538_v1 }
 0x496   : > { %19881 = vmatpush1.msk.msra.mxu1 %vm1941_vm2, %v1931_v12  ;;  %v5105_v44 = vmul.f32 %v24957_v54, %v24516_v56 }
 0x497   : > { %19882 = vmatmul.mubr.msk.f32.vlgmr.msra.gmra.mrb[2].mxu1 %vm1937_vm3, %v19876_v15 }
 0x498   : > { %4696 = vrot.lane.b32.xlu0 %v4676_v48, %s23589_s12  ;;  %4706 = vrot.lane.b32.xlu1 %v4681_v8, %s23589_s12 }
 0x499   : > { %2164 = vmatprep.mubr.f32.mxu1 %v27212_v41 }
 0x49a   : > { %v1923_v47 = vpop.permute.xlu1 %1922  ;;  %v1921_v12 = vpop.permute.xlu0 %1920 }
 0x49b   : > { %v1933_v48 = vsel %vm1928_vm9, %v1919_v5, %v1921_v12  ;;  %v1934_v8 = vsel %vm1928_vm9, %v1921_v12, %v1923_v47 }
 0x49c   : > { %4702 = vrot.lane.b32.xlu1 %v4679_v53, %s23589_s12  ;;  %4708 = vrot.lane.b32.xlu0 %v4682_v7, %s23589_s12  ;;  %v24975_v53 = vrot.slane %v24393_v26, %v24362_v4  ;;  %v24980_v7 = vsel %vm4659_vm8, %v24838_v63, %v24860_v38  ;;  %v1812_v26 = vmul.f32 %v24966_v29, %v24516_v56  ;;  %vm5142_vm8 = vcmask 506880  }
 0x49d   : > { %19883 = vmatprep.subr.msk.mxu1 %vm1941_vm2, %v1934_v8  ;;  %v4683_v63 = vmul.f32 %v24980_v7, %v24592_v36  ;;  %v5104_v56 = vmul.f32 %v24856_v14, %v24506_v50 }
 0x49e   : > { %19884 = vmatpush1.msk.msra.mxu1 %vm1941_vm2, %v1933_v48  ;;  %v1927_v5 = vpop.permute.xlu1 %1926  ;;  %v1925_v12 = vpop.permute.xlu0 %1924  ;;  %27213 = vst [vmem:[#allocation127_spill] sm:$0xff] %v24975_v53  ;;  %v24988_v48 = vsel %vm5087_vm10, %v24840_v61, %v24880_v31 }
 0x49f   : > { %19885 = vmatmul.mubr.msk.f32.vlgmr.msra.gmra.mrb[4].mxu1 %vm1937_vm3, %v19876_v15  ;;  %v1935_v8 = vsel %vm1928_vm9, %v1923_v47, %v1925_v12  ;;  %v1936_v13 = vsel %vm1928_vm9, %v1925_v12, %v1927_v5 }
 0x4a0   : > { %4704 = vrot.lane.b32.xlu0 %v4680_v62, %s23589_s12  ;;  %5126 = vrot.lane.b32.xlu1 %v5105_v44, %s23590_s3  ;;  %v1811_v62 = vmul.f32 %v24975_v53, %v24506_v50  ;;  %v5106_v44 = vmul.f32 %v24988_v48, %v24519_v57 }
 0x4a1   : > { %19886 = vmatprep.subr.msk.mxu1 %vm1941_vm2, %v1936_v13  ;;  %2235 = vmatprep.mubr.f32.mxu1 %v27212_v41  ;;  %v1814_v13 = vmul.f32 %v24403_v32, %v24535_v0 }
 0x4a2   : > { %19887 = vmatpush1.msk.msra.mxu1 %vm1941_vm2, %v1935_v8  ;;  %v5082_v47 = vpop.permute.xlu1 %5081  ;;  %v5080_v61 = vpop.permute.xlu0 %5079  ;;  %v4684_v8 = vmul.f32 %v24860_v38, %v24595_v37 }
 0x4a3   : > { %19888 = vmatmul.mubr.msk.f32.vlgmr.msra.gmra.mrb[6].mxu1 %vm1937_vm3, %v19876_v15  ;;  %19889 = vmatprep.subr.msk.mxu1 %vm1941_vm2, %v1812_v26  ;;  %v1813_v15 = vmul.f32 %v24407_v33, %v24519_v57  ;;  %v25026_v50 = vsel %vm5087_vm10, %v5080_v61, %v5082_v47 }
 0x4a4   : > { %19890 = vmatpush1.msk.msra.mxu1 %vm1941_vm2, %v1811_v62  ;;  %4710 = vrot.lane.b32.xlu1 %v4683_v63, %s23589_s12  ;;  %v1818_v63 = vmul.f32 %v24411_v34, %v24592_v36 }
 0x4a5   : > { %5128 = vrot.lane.b32.xlu0 %v5106_v44, %s23590_s3  ;;  %19892 = vmatprep.subr.msk.mxu1 %vm1941_vm2, %v1814_v13  ;;  %v1817_v44 = vmul.f32 %v24415_v35, %v24569_v22 }
 0x4a6   : > { %2333 = vmatprep.mubr.f32.mxu1 %v27212_v41  ;;  %v5078_v5 = vpop.permute.xlu1 %5077  ;;  %v5084_v12 = vpop.permute.xlu0 %5083 }
 0x4a7   : > { %19891 = vmatmul.mubr.msk.f32.vlgmr.msra.gmra.mrb[0].mxu1 %vm1937_vm3, %v24583_v28  ;;  %v25021_v26 = vsel %vm5087_vm10, %v5082_v47, %v5084_v12  ;;  %v5109_v47 = vmul.f32 %v25026_v50, %v24561_v11 }
 0x4a8   : > { %19893 = vmatpush1.msk.msra.mxu1 %vm1941_vm2, %v1813_v15  ;;  %5124 = vrot.lane.b32.xlu1 %v5104_v56, %s23590_s3  ;;  %v5110_v57 = vmul.f32 %v25021_v26, %v24569_v22  ;;  %v25042_v56 = vsel %vm5087_vm10, %v5078_v5, %v5080_v61  ;;  %v25048_v15 = vsel %vm5087_vm10, %v24880_v31, %v5078_v5 }
 0x4a9   : > { %19898 = vmatprep.subr.msk.mxu1 %vm1941_vm2, %v1818_v63  ;;  %4712 = vrot.lane.b32.xlu0 %v4684_v8, %s23589_s12  ;;  %v5108_v11 = vmul.f32 %v25042_v56, %v24538_v1  ;;  %v23591_v8 = vmov 0   ;;  %v5107_v31 = vmul.f32 %v25048_v15, %v24535_v0 }
 0x4aa   : > { %2404 = vmatprep.mubr.f32.mxu1 %v27212_v41  ;;  %v2646_v62 = vpop.permute.xlu1 %2645  ;;  %v25037_v13 = vpop.permute.xlu0 %5085  ;;  %22305 = vset.pattern.permute.xlu0 %v23591_v8 }
 0x4ab   : > { %19894 = vmatmul.mubr.msk.f32.vlgmr.msra.gmra.mrb[2].mxu1 %vm1937_vm3, %v24583_v28  ;;  %22341 = vset.pattern.permute.xlu1 %v23591_v8  ;;  %v5112_v0 = vmul.f32 %v25037_v13, %v24595_v37 }
 0x4ac   : > { %19899 = vmatpush1.msk.msra.mxu1 %vm1941_vm2, %v1817_v44  ;;  %5136 = vrot.lane.b32.xlu1 %v5110_v57, %s23590_s3  ;;  %v19901_v57 = vld [vmem:[%s27188_s14 + $0x8] sm:$0xf]  ;;  %v25065_v44 = vsel %vm5087_vm10, %v5084_v12, %v25037_v13  ;;  %vm5581_vm10 = vcmask 31744  }
 0x4ad   : > { %5134 = vrot.lane.b32.xlu0 %v5109_v47, %s23590_s3  ;;  %2546 = vmatprep.mubr.f32.mxu1 %v27212_v41 }
 0x4ae   : > { %v2644_v22 = vpop.permute.xlu1 %2643  ;;  %v2648_v61 = vpop.permute.xlu0 %2647 }
 0x4af   : > { %v2662_v5 = vsel %vm2661_vm11, %v2644_v22, %v2646_v62  ;;  %v2663_v63 = vsel %vm2661_vm11, %v2646_v62, %v2648_v61  ;;  %19900 = vmatmul.mubr.msk.f32.vlgmr.msra.gmra.mrb[6].mxu1 %vm1937_vm3, %v24583_v28  ;;  %v5111_v28 = vmul.f32 %v25065_v44, %v24592_v36  ;;  %v5462_v36 = vld [vmem:[#allocation2] sm:$0xf] }
 0x4b0   : > { %5132 = vrot.lane.b32.xlu1 %v5108_v11, %s23590_s3  ;;  %19902 = vmatprep.subr.msk.mxu0 %vm1941_vm2, %v2663_v63 }
 0x4b1   : > { %5130 = vrot.lane.b32.xlu0 %v5107_v31, %s23590_s3  ;;  %19903 = vmatpush1.msk.msra.mxu0 %vm1941_vm2, %v2662_v5 }
 0x4b2   : > { %v2656_v1 = vpop.permute.xlu1 %2655  ;;  %v2654_v62 = vpop.permute.xlu0 %2653  ;;  %19904 = vmatmul.mubr.msk.f32.vlgmr.msra.gmra.mrb[2].mxu0 %vm1937_vm3, %v19901_v57  ;;  %2824 = vmatprep.mubr.f32.mxu1 %v27212_v41 }
 0x4b3   : > { %v2667_v12 = vsel %vm2661_vm11, %v2654_v62, %v2656_v1  ;;  %2895 = vmatprep.mubr.f32.mxu0 %v27212_v41 }
 0x4b4   : > { %5140 = vrot.lane.b32.xlu1 %v5112_v0, %s23590_s3  ;;  %19908 = vmatprep.subr.msk.mxu0 %vm1941_vm2, %v2667_v12 }
 0x4b5   : > { %5138 = vrot.lane.b32.xlu0 %v5111_v28, %s23590_s3 }
 0x4b6   : > { %v2652_v37 = vpop.permute.xlu1 %2651  ;;  %v2650_v47 = vpop.permute.xlu0 %2649 }
 0x4b7   : > { %v2666_v11 = vsel %vm2661_vm11, %v2652_v37, %v2654_v62  ;;  %v2664_v22 = vsel %vm2661_vm11, %v2648_v61, %v2650_v47  ;;  %v2665_v8 = vsel %vm2661_vm11, %v2650_v47, %v2652_v37  ;;  %v19914_v47 = vld [vmem:[%s27188_s14 + $0xc] sm:$0xf] }
 0x4b8   : > { %19905 = vmatprep.subr.msk.mxu1 %vm1941_vm2, %v2665_v8  ;;  %19909 = vmatpush1.msk.msra.mxu0 %vm1941_vm2, %v2666_v11 }
 0x4b9   : > { %19906 = vmatpush1.msk.msra.mxu1 %vm1941_vm2, %v2664_v22  ;;  %19910 = vmatmul.mubr.msk.f32.vlgmr.msra.gmra.mrb[0].mxu0 %vm1937_vm3, %v19901_v57 }
 0x4ba   : > { %v3076_v31 = vpop.permute.xlu1 %3075  ;;  %v3074_v5 = vpop.permute.xlu0 %3073  ;;  %19907 = vmatmul.mubr.msk.f32.vlgmr.msra.gmra.mrb[2].mxu1 %vm1937_vm3, %v19901_v57  ;;  %3181 = vmatprep.mubr.f32.mxu0 %v27212_v41 }
 0x4bb   : > { %v3091_v61 = vsel %vm3089_vm12, %v3074_v5, %v3076_v31  ;;  %2966 = vmatprep.mubr.f32.mxu1 %v27212_v41  ;;  %5465 = vperm.xlu0 %22305, %v5462_v36  }
 0x4bc   : > { %19915 = vmatprep.subr.msk.mxu0 %vm1941_vm2, %v3091_v61 }
 0x4be   : > { %v2660_v63 = vpop.permute.xlu1 %2659  ;;  %v2658_v0 = vpop.permute.xlu0 %2657 }
 0x4bf   : > { %v2668_v62 = vsel %vm2661_vm11, %v2656_v1, %v2658_v0  ;;  %v2669_v28 = vsel %vm2661_vm11, %v2658_v0, %v2660_v63 }
 0x4c0   : > { %19911 = vmatprep.subr.msk.mxu1 %vm1941_vm2, %v2669_v28 }
 0x4c1   : > { %19912 = vmatpush1.msk.msra.mxu1 %vm1941_vm2, %v2668_v62 }
 0x4c2   : > { %v3082_v12 = vpop.permute.xlu1 %3081  ;;  %v3072_v37 = vpop.permute.xlu0 %3071  ;;  %19913 = vmatmul.mubr.msk.f32.vlgmr.msra.gmra.mrb[6].mxu1 %vm1937_vm3, %v19901_v57 }
 0x4c3   : > { %v3090_v11 = vsel %vm3089_vm12, %v3072_v37, %v3074_v5  ;;  %3252 = vmatprep.mubr.f32.mxu1 %v27212_v41  ;;  %v19927_v37 = vld [vmem:[%s27188_s14 + $0x10] sm:$0xf] }
 0x4c4   : > { %19916 = vmatpush1.msk.msra.mxu0 %vm1941_vm2, %v3090_v11 }
 0x4c5   : > { %19917 = vmatmul.mubr.msk.f32.vlgmr.msra.gmra.mrb[2].mxu0 %vm1937_vm3, %v19914_v47 }
 0x4c6   : > { %v3078_v1 = vpop.permute.xlu1 %3077  ;;  %v3084_v22 = vpop.permute.xlu0 %3083  ;;  %3323 = vmatprep.mubr.f32.mxu0 %v27212_v41 }
 0x4c7   : > { %v3095_v8 = vsel %vm3089_vm12, %v3082_v12, %v3084_v22  ;;  %v3092_v63 = vsel %vm3089_vm12, %v3076_v31, %v3078_v1 }
 0x4c8   : > { %19921 = vmatprep.subr.msk.mxu0 %vm1941_vm2, %v3095_v8 }
 0x4ca   : > { %v3416_v36 = vpop.permute.xlu1 %3415  ;;  %v3080_v61 = vpop.permute.xlu0 %3079 }
 0x4cb   : > { %v3094_v57 = vsel %vm3089_vm12, %v3080_v61, %v3082_v12  ;;  %v3093_v5 = vsel %vm3089_vm12, %v3078_v1, %v3080_v61 }
 0x4cc   : > { %19918 = vmatprep.subr.msk.mxu1 %vm1941_vm2, %v3093_v5  ;;  %19922 = vmatpush1.msk.msra.mxu0 %vm1941_vm2, %v3094_v57 }
 0x4cd   : > { %19919 = vmatpush1.msk.msra.mxu1 %vm1941_vm2, %v3092_v63  ;;  %19923 = vmatmul.mubr.msk.f32.vlgmr.msra.gmra.mrb[0].mxu0 %vm1937_vm3, %v19914_v47 }
 0x4ce   : > { %v3086_v0 = vpop.permute.xlu1 %3085  ;;  %v3418_v62 = vpop.permute.xlu0 %3417  ;;  %19920 = vmatmul.mubr.msk.f32.vlgmr.msra.gmra.mrb[2].mxu1 %vm1937_vm3, %v19914_v47  ;;  %3523 = vmatprep.mubr.f32.mxu0 %v27212_v41 }
 0x4cf   : > { %v3433_v28 = vsel %vm3431_vm13, %v3416_v36, %v3418_v62  ;;  %3394 = vmatprep.mubr.f32.mxu1 %v27212_v41  ;;  %v3096_v8 = vsel %vm3089_vm12, %v3084_v22, %v3086_v0 }
 0x4d0   : > { %19928 = vmatprep.subr.msk.mxu0 %vm1941_vm2, %v3433_v28 }
 0x4d2   : > { %v3414_v31 = vpop.permute.xlu1 %3413  ;;  %v3088_v12 = vpop.permute.xlu0 %3087 }
 0x4d3   : > { %v3432_v11 = vsel %vm3431_vm13, %v3414_v31, %v3416_v36  ;;  %v3097_v1 = vsel %vm3089_vm12, %v3086_v0, %v3088_v12 }
 0x4d4   : > { %19924 = vmatprep.subr.msk.mxu1 %vm1941_vm2, %v3097_v1  ;;  %19929 = vmatpush1.msk.msra.mxu0 %vm1941_vm2, %v3432_v11 }
 0x4d5   : > { %19925 = vmatpush1.msk.msra.mxu1 %vm1941_vm2, %v3096_v8  ;;  %19930 = vmatmul.mubr.msk.f32.vlgmr.msra.gmra.mrb[2].mxu0 %vm1937_vm3, %v19927_v37 }
 0x4d6   : > { %v3426_v61 = vpop.permute.xlu1 %3425  ;;  %v3424_v57 = vpop.permute.xlu0 %3423  ;;  %19926 = vmatmul.mubr.msk.f32.vlgmr.msra.gmra.mrb[6].mxu1 %vm1937_vm3, %v19914_v47  ;;  %3665 = vmatprep.mubr.f32.mxu0 %v27212_v41 }
 0x4d7   : > { %v3437_v36 = vsel %vm3431_vm13, %v3424_v57, %v3426_v61  ;;  %3594 = vmatprep.mubr.f32.mxu1 %v27212_v41 }
 0x4d8   : > { %19934 = vmatprep.subr.msk.mxu0 %vm1941_vm2, %v3437_v36 }
 0x4da   : > { %v3422_v22 = vpop.permute.xlu1 %3421  ;;  %v3420_v5 = vpop.permute.xlu0 %3419 }
 0x4db   : > { %v3436_v63 = vsel %vm3431_vm13, %v3422_v22, %v3424_v57  ;;  %v3434_v0 = vsel %vm3431_vm13, %v3418_v62, %v3420_v5  ;;  %v3435_v28 = vsel %vm3431_vm13, %v3420_v5, %v3422_v22  ;;  %v19940_v22 = vld [vmem:[%s27188_s14 + $0x14] sm:$0xf] }
 0x4dc   : > { %19931 = vmatprep.subr.msk.mxu1 %vm1941_vm2, %v3435_v28  ;;  %19935 = vmatpush1.msk.msra.mxu0 %vm1941_vm2, %v3436_v63 }
 0x4dd   : > { %19932 = vmatpush1.msk.msra.mxu1 %vm1941_vm2, %v3434_v0  ;;  %19936 = vmatmul.mubr.msk.f32.vlgmr.msra.gmra.mrb[0].mxu0 %vm1937_vm3, %v19927_v37 }
 0x4de   : > { %v3846_v47 = vpop.permute.xlu1 %3845  ;;  %v3844_v31 = vpop.permute.xlu0 %3843  ;;  %19933 = vmatmul.mubr.msk.f32.vlgmr.msra.gmra.mrb[2].mxu1 %vm1937_vm3, %v19927_v37  ;;  %3951 = vmatprep.mubr.f32.mxu0 %v27212_v41 }
 0x4df   : > { %v3861_v62 = vsel %vm3859_vm14, %v3844_v31, %v3846_v47  ;;  %3736 = vmatprep.mubr.f32.mxu1 %v27212_v41 }
 0x4e0   : > { %19941 = vmatprep.subr.msk.mxu0 %vm1941_vm2, %v3861_v62 }
 0x4e2   : > { %v3430_v12 = vpop.permute.xlu1 %3429  ;;  %v3428_v11 = vpop.permute.xlu0 %3427 }
 0x4e3   : > { %v3438_v1 = vsel %vm3431_vm13, %v3426_v61, %v3428_v11  ;;  %v3439_v8 = vsel %vm3431_vm13, %v3428_v11, %v3430_v12 }
 0x4e4   : > { %19937 = vmatprep.subr.msk.mxu1 %vm1941_vm2, %v3439_v8 }
 0x4e5   : > { %19938 = vmatpush1.msk.msra.mxu1 %vm1941_vm2, %v3438_v1 }
 0x4e6   : > { %v3852_v57 = vpop.permute.xlu1 %3851  ;;  %v3842_v36 = vpop.permute.xlu0 %3841  ;;  %19939 = vmatmul.mubr.msk.f32.vlgmr.msra.gmra.mrb[6].mxu1 %vm1937_vm3, %v19927_v37 }
 0x4e7   : > { %v3860_v5 = vsel %vm3859_vm14, %v3842_v36, %v3844_v31  ;;  %4022 = vmatprep.mubr.f32.mxu1 %v27212_v41  ;;  %v19953_v36 = vld [vmem:[%s27188_s14 + $0x18] sm:$0xf] }
 0x4e8   : > { %19942 = vmatpush1.msk.msra.mxu0 %vm1941_vm2, %v3860_v5 }
 0x4e9   : > { %19943 = vmatmul.mubr.msk.f32.vlgmr.msra.gmra.mrb[2].mxu0 %vm1937_vm3, %v19940_v22 }
 0x4ea   : > { %v3848_v61 = vpop.permute.xlu1 %3847  ;;  %v3854_v63 = vpop.permute.xlu0 %3853  ;;  %4093 = vmatprep.mubr.f32.mxu0 %v27212_v41 }
 0x4eb   : > { %v3865_v0 = vsel %vm3859_vm14, %v3852_v57, %v3854_v63  ;;  %v3862_v12 = vsel %vm3859_vm14, %v3846_v47, %v3848_v61 }
 0x4ec   : > { %19947 = vmatprep.subr.msk.mxu0 %vm1941_vm2, %v3865_v0 }
 0x4ee   : > { %v4272_v28 = vpop.permute.xlu1 %4271  ;;  %v3850_v62 = vpop.permute.xlu0 %3849 }
 0x4ef   : > { %v3864_v37 = vsel %vm3859_vm14, %v3850_v62, %v3852_v57  ;;  %v3863_v31 = vsel %vm3859_vm14, %v3848_v61, %v3850_v62 }
 0x4f0   : > { %19944 = vmatprep.subr.msk.mxu1 %vm1941_vm2, %v3863_v31  ;;  %19948 = vmatpush1.msk.msra.mxu0 %vm1941_vm2, %v3864_v37 }
 0x4f1   : > { %19945 = vmatpush1.msk.msra.mxu1 %vm1941_vm2, %v3862_v12  ;;  %19949 = vmatmul.mubr.msk.f32.vlgmr.msra.gmra.mrb[0].mxu0 %vm1937_vm3, %v19940_v22 }
 0x4f2   : > { %v3856_v11 = vpop.permute.xlu1 %3855  ;;  %v4274_v1 = vpop.permute.xlu0 %4273  ;;  %19946 = vmatmul.mubr.msk.f32.vlgmr.msra.gmra.mrb[2].mxu1 %vm1937_vm3, %v19940_v22  ;;  %4378 = vmatprep.mubr.f32.mxu0 %v27212_v41 }
 0x4f3   : > { %v4288_v8 = vsel %vm4232_vm7, %v4272_v28, %v4274_v1  ;;  %4164 = vmatprep.mubr.f32.mxu1 %v27212_v41  ;;  %v3866_v0 = vsel %vm3859_vm14, %v3854_v63, %v3856_v11 }
 0x4f4   : > { %19954 = vmatprep.subr.msk.mxu0 %vm1941_vm2, %v4288_v8 }
 0x4f6   : > { %v4270_v47 = vpop.permute.xlu1 %4269  ;;  %v3858_v57 = vpop.permute.xlu0 %3857 }
 0x4f7   : > { %v4287_v5 = vsel %vm4232_vm7, %v4270_v47, %v4272_v28  ;;  %v3867_v61 = vsel %vm3859_vm14, %v3856_v11, %v3858_v57 }
 0x4f8   : > { %19950 = vmatprep.subr.msk.mxu1 %vm1941_vm2, %v3867_v61  ;;  %19955 = vmatpush1.msk.msra.mxu0 %vm1941_vm2, %v4287_v5 }
 0x4f9   : > { %19951 = vmatpush1.msk.msra.mxu1 %vm1941_vm2, %v3866_v0  ;;  %19956 = vmatmul.mubr.msk.f32.vlgmr.msra.gmra.mrb[2].mxu0 %vm1937_vm3, %v19953_v36 }
 0x4fa   : > { %v4282_v62 = vpop.permute.xlu1 %4281  ;;  %v4280_v37 = vpop.permute.xlu0 %4279  ;;  %19952 = vmatmul.mubr.msk.f32.vlgmr.msra.gmra.mrb[6].mxu1 %vm1937_vm3, %v19940_v22  ;;  %4520 = vmatprep.mubr.f32.mxu0 %v27212_v41 }
 0x4fb   : > { %v4292_v28 = vsel %vm4232_vm7, %v4280_v37, %v4282_v62  ;;  %4449 = vmatprep.mubr.f32.mxu1 %v27212_v41 }
 0x4fc   : > { %19960 = vmatprep.subr.msk.mxu0 %vm1941_vm2, %v4292_v28 }
 0x4fe   : > { %v4278_v63 = vpop.permute.xlu1 %4277  ;;  %v4276_v31 = vpop.permute.xlu0 %4275 }
 0x4ff   : > { %v4291_v12 = vsel %vm4232_vm7, %v4278_v63, %v4280_v37  ;;  %v4289_v11 = vsel %vm4232_vm7, %v4274_v1, %v4276_v31  ;;  %v4290_v8 = vsel %vm4232_vm7, %v4276_v31, %v4278_v63  ;;  %v19966_v63 = vld [vmem:[%s27188_s14 + $0x1c] sm:$0xf] }
 0x500   : > { %19957 = vmatprep.subr.msk.mxu1 %vm1941_vm2, %v4290_v8  ;;  %19961 = vmatpush1.msk.msra.mxu0 %vm1941_vm2, %v4291_v12 }
 0x501   : > { %19958 = vmatpush1.msk.msra.mxu1 %vm1941_vm2, %v4289_v11  ;;  %19962 = vmatmul.mubr.msk.f32.vlgmr.msra.gmra.mrb[0].mxu0 %vm1937_vm3, %v19953_v36 }
 0x502   : > { %v4701_v22 = vpop.permute.xlu1 %4700  ;;  %v4699_v47 = vpop.permute.xlu0 %4698  ;;  %19959 = vmatmul.mubr.msk.f32.vlgmr.msra.gmra.mrb[2].mxu1 %vm1937_vm3, %v19953_v36  ;;  %4806 = vmatprep.mubr.f32.mxu0 %v27212_v41 }
 0x503   : > { %v4716_v1 = vsel %vm4714_vm15, %v4699_v47, %v4701_v22  ;;  %4591 = vmatprep.mubr.f32.mxu1 %v27212_v41 }
 0x504   : > { %19967 = vmatprep.subr.msk.mxu0 %vm1941_vm2, %v4716_v1 }
 0x506   : > { %v4286_v57 = vpop.permute.xlu1 %4285  ;;  %v4284_v5 = vpop.permute.xlu0 %4283 }
 0x507   : > { %v4293_v61 = vsel %vm4232_vm7, %v4282_v62, %v4284_v5  ;;  %v4294_v0 = vsel %vm4232_vm7, %v4284_v5, %v4286_v57 }
 0x508   : > { %19963 = vmatprep.subr.msk.mxu1 %vm1941_vm2, %v4294_v0 }
 0x509   : > { %19964 = vmatpush1.msk.msra.mxu1 %vm1941_vm2, %v4293_v61 }
 0x50a   : > { %v4707_v37 = vpop.permute.xlu1 %4706  ;;  %v4697_v28 = vpop.permute.xlu0 %4696  ;;  %19965 = vmatmul.mubr.msk.f32.vlgmr.msra.gmra.mrb[6].mxu1 %vm1937_vm3, %v19953_v36 }
 0x50b   : > { %v4715_v31 = vsel %vm4714_vm15, %v4697_v28, %v4699_v47  ;;  %4877 = vmatprep.mubr.f32.mxu1 %v27212_v41 }
 0x50c   : > { %19968 = vmatpush1.msk.msra.mxu0 %vm1941_vm2, %v4715_v31 }
 0x50d   : > { %19969 = vmatmul.mubr.msk.f32.vlgmr.msra.gmra.mrb[2].mxu0 %vm1937_vm3, %v19966_v63 }
 0x50e   : > { %v4703_v62 = vpop.permute.xlu1 %4702  ;;  %v4709_v12 = vpop.permute.xlu0 %4708  ;;  %4948 = vmatprep.mubr.f32.mxu0 %v27212_v41 }
 0x50f   : > { %v4720_v11 = vsel %vm4714_vm15, %v4707_v37, %v4709_v12  ;;  %v4717_v57 = vsel %vm4714_vm15, %v4701_v22, %v4703_v62 }
 0x510   : > { %19973 = vmatprep.subr.msk.mxu0 %vm1941_vm2, %v4720_v11 }
 0x512   : > { %v5127_v8 = vpop.permute.xlu1 %5126  ;;  %v4705_v1 = vpop.permute.xlu0 %4704 }
 0x513   : > { %v4719_v36 = vsel %vm4714_vm15, %v4705_v1, %v4707_v37  ;;  %v4718_v47 = vsel %vm4714_vm15, %v4703_v62, %v4705_v1  ;;  %v19979_v37 = vld [vmem:[%s27188_s14 + $0x20] sm:$0xf] }
 0x514   : > { %19970 = vmatprep.subr.msk.mxu1 %vm1941_vm2, %v4718_v47  ;;  %19974 = vmatpush1.msk.msra.mxu0 %vm1941_vm2, %v4719_v36 }
 0x515   : > { %19971 = vmatpush1.msk.msra.mxu1 %vm1941_vm2, %v4717_v57  ;;  %19975 = vmatmul.mubr.msk.f32.vlgmr.msra.gmra.mrb[0].mxu0 %vm1937_vm3, %v19966_v63 }
 0x516   : > { %v4711_v5 = vpop.permute.xlu1 %4710  ;;  %5234 = vmatprep.mubr.f32.mxu0 %v27212_v41  ;;  %19972 = vmatmul.mubr.msk.f32.vlgmr.msra.gmra.mrb[2].mxu1 %vm1937_vm3, %v19966_v63 }
 0x517   : > { %v5129_v61 = vpop.permute.xlu0 %5128  ;;  %5019 = vmatprep.mubr.f32.mxu1 %v27212_v41  ;;  %v4721_v11 = vsel %vm4714_vm15, %v4709_v12, %v4711_v5 }
 0x518   : > { %v5144_v0 = vsel %vm5142_vm8, %v5127_v8, %v5129_v61 }
 0x519   : > { %19980 = vmatprep.subr.msk.mxu0 %vm1941_vm2, %v5144_v0 }
 0x51a   : > { %v5125_v22 = vpop.permute.xlu1 %5124 }
 0x51b   : > { %v5143_v28 = vsel %vm5142_vm8, %v5125_v22, %v5127_v8  ;;  %v4713_v31 = vpop.permute.xlu0 %4712 }
 0x51c   : > { %v4722_v62 = vsel %vm4714_vm15, %v4711_v5, %v4713_v31  ;;  %19981 = vmatpush1.msk.msra.mxu0 %vm1941_vm2, %v5143_v28 }
 0x51d   : > { %19976 = vmatprep.subr.msk.mxu1 %vm1941_vm2, %v4722_v62  ;;  %19982 = vmatmul.mubr.msk.f32.vlgmr.msra.gmra.mrb[2].mxu0 %vm1937_vm3, %v19979_v37 }
 0x51e   : > { %19977 = vmatpush1.msk.msra.mxu1 %vm1941_vm2, %v4721_v11  ;;  %v5137_v1 = vpop.permute.xlu1 %5136  ;;  %5376 = vmatprep.mubr.f32.mxu0 %v27212_v41 }
 0x51f   : > { %v5135_v36 = vpop.permute.xlu0 %5134  ;;  %19978 = vmatmul.mubr.msk.f32.vlgmr.msra.gmra.mrb[6].mxu1 %vm1937_vm3, %v19966_v63 }
 0x520   : > { %v5148_v8 = vsel %vm5142_vm8, %v5135_v36, %v5137_v1  ;;  %5305 = vmatprep.mubr.f32.mxu1 %v27212_v41 }
 0x521   : > { %19986 = vmatprep.subr.msk.mxu0 %vm1941_vm2, %v5148_v8 }
 0x522   : > { %v5133_v47 = vpop.permute.xlu1 %5132 }
 0x523   : > { %v5147_v12 = vsel %vm5142_vm8, %v5133_v47, %v5135_v36  ;;  %v5131_v57 = vpop.permute.xlu0 %5130 }
 0x524   : > { %v5145_v5 = vsel %vm5142_vm8, %v5129_v61, %v5131_v57  ;;  %v5146_v0 = vsel %vm5142_vm8, %v5131_v57, %v5133_v47  ;;  %19987 = vmatpush1.msk.msra.mxu0 %vm1941_vm2, %v5147_v12 }
 0x525   : > { %19983 = vmatprep.subr.msk.mxu1 %vm1941_vm2, %v5146_v0  ;;  %19988 = vmatmul.mubr.msk.f32.vlgmr.msra.gmra.mrb[0].mxu0 %vm1937_vm3, %v19979_v37 }
 0x526   : > { %19984 = vmatpush1.msk.msra.mxu1 %vm1941_vm2, %v5145_v5  ;;  %v5141_v63 = vpop.permute.xlu1 %5140  ;;  %5666 = vmatprep.mubr.f32.mxu0 %v27212_v41 }
 0x527   : > { %19985 = vmatmul.mubr.msk.f32.vlgmr.msra.gmra.mrb[2].mxu1 %vm1937_vm3, %v19979_v37  ;;  %v5139_v22 = vpop.permute.xlu0 %5138 }
 0x528   : > { %v5149_v28 = vsel %vm5142_vm8, %v5137_v1, %v5139_v22  ;;  %v5150_v61 = vsel %vm5142_vm8, %v5139_v22, %v5141_v63  ;;  %5447 = vmatprep.mubr.f32.mxu1 %v27212_v41 }
 0x529   : > { %19989 = vmatprep.subr.msk.mxu1 %vm1941_vm2, %v5150_v61 }
 0x52a   : > { %19990 = vmatpush1.msk.msra.mxu1 %vm1941_vm2, %v5149_v28  ;;  %vm5585_vm2 = vcmask 1043456  }
 0x52b   : > { %19991 = vmatmul.mubr.msk.f32.vlgmr.msra.gmra.mrb[6].mxu1 %vm1937_vm3, %v19979_v37 }
 0x52c   : > { %5737 = vmatprep.mubr.f32.mxu1 %v27212_v41 }
 0x53a   : > { %v5466_v47 = vpop.permute.xlu0 %5465 }
 0x572   : > { %v2166_v31 = vpop.f32.mrb[4].mxu1 }
 0x573   : > { %v2168_v62 = vpop.f32.mrb[5].mxu1 }
 0x57a   : > { %v2335_v11 = vpop.f32.mrb[0].mxu1 }
 0x57b   : > { %v2337_v36 = vpop.f32.mrb[1].mxu1 }
 0x5f0   : > { %v5236_v8 = vpop.f32.mrb[2].mxu0 }
 0x5f1   : > { %v21637_v12 = vadd.f32 %v5236_v8, %v2335_v11  ;;  %v5238_v1 = vpop.f32.mrb[3].mxu0 }
 0x5f2   : > { %v21638_v57 = vadd.f32 %v5238_v1, %v2337_v36 }
 0x5f3   : > { %v5468_v5 = vadd.f32 %v21637_v12, %v5466_v47 }
 0x5f4   : > { %v5469_v63 = vadd.f32 %v21638_v57, %v5466_v47 }
 0x5f5   : > { %v5476_v0 = vmax.f32 %v5468_v5, 0.0 }
 0x5f6   : > { %v5477_v37 = vmax.f32 %v5469_v63, 0.0 }
 0x5f7   : > { %5492 = vrot.lane.b32.xlu1 %v5476_v0, %s23575_s1 }
 0x5f8   : > { %v5378_v22 = vpop.f32.mrb[0].mxu0 }
 0x5f9   : > { %v21639_v28 = vadd.f32 %v5378_v22, %v2166_v31  ;;  %v5380_v61 = vpop.f32.mrb[1].mxu0 }
 0x5fa   : > { %v5307_v4 = vpop.f32.mrb[2].mxu1  ;;  %v21640_v35 = vadd.f32 %v5380_v61, %v2168_v62 }
 0x5fb   : > { %v5472_v34 = vadd.f32 %v21639_v28, %v5466_v47  ;;  %v5309_v33 = vpop.f32.mrb[3].mxu1  ;;  %5494 = vrot.lane.b32.xlu1 %v5477_v37, %s23575_s1  ;;  %v5470_v11 = vadd.f32 %v5466_v47, %v5307_v4 }
 0x5fc   : > { %v5473_v32 = vadd.f32 %v21640_v35, %v5466_v47  ;;  %v5471_v36 = vadd.f32 %v5466_v47, %v5309_v33 }
 0x5fd   : > { %v5480_v53 = vmax.f32 %v5472_v34, 0.0  ;;  %v5478_v31 = vmax.f32 %v5470_v11, 0.0 }
 0x5fe   : > { %v5481_v8 = vmax.f32 %v5473_v32, 0.0  ;;  %v5449_v12 = vpop.f32.mrb[6].mxu1  ;;  %v5479_v5 = vmax.f32 %v5471_v36, 0.0 }
 0x5ff   : > { %v5451_v1 = vpop.f32.mrb[7].mxu1  ;;  %5500 = vrot.lane.b32.xlu0 %v5480_v53, %s23575_s1  ;;  %v5474_v57 = vadd.f32 %v5466_v47, %v5449_v12 }
 0x600   : > { %5502 = vrot.lane.b32.xlu1 %v5481_v8, %s23575_s1  ;;  %v5475_v0 = vadd.f32 %v5466_v47, %v5451_v1 }
 0x601   : > { %v5482_v62 = vmax.f32 %v5474_v57, 0.0 }
 0x602   : > { %v5483_v35 = vmax.f32 %v5475_v0, 0.0 }
 0x603   : > { %5496 = vrot.lane.b32.xlu0 %v5478_v31, %s23575_s1 }
 0x604   : > { %5498 = vrot.lane.b32.xlu1 %v5479_v5, %s23575_s1  ;;  %v27214_v5 = vld [vmem:[#allocation107_spill] sm:$0xff] }
 0x607   : > { %5504 = vrot.lane.b32.xlu0 %v5482_v62, %s23575_s1 }
 0x608   : > { %5506 = vrot.lane.b32.xlu1 %v5483_v35, %s23575_s1  ;;  %v27216_v35 = vld [vmem:[#allocation106_spill] sm:$0xff] }
 0x669   : > { %v5493_v4 = vpop.permute.xlu1 %5492 }
 0x66a   : > { %v25257_v32 = vsel %vm1748_vm0, 0.0, %v5493_v4 }
 0x66b   : > { %6915 = vrot.lane.b32.xlu1 %v25257_v32, %s23587_s8  ;;  %v5535_v33 = vmul.f32 %v25257_v32, %v24508_v51  ;;  %v6554_v47 = vmul.f32 %v25257_v32, %v24633_v20  ;;  %v6197_v63 = vmul.f32 %v25257_v32, %v24608_v43  ;;  %v7252_v51 = vmul.f32 %v25257_v32, %v24697_v21 }
 0x66d   : > { %v5495_v34 = vpop.permute.xlu1 %5494  ;;  %5555 = vrot.lane.b32.xlu0 %v5535_v33, %s27066_s17  ;;  %v27217_v33 = vld [vmem:[#allocation111_spill] sm:$0xff] }
 0x66e   : > { %v25265_v53 = vsel %vm1748_vm0, %v5493_v4, %v5495_v34 }
 0x66f   : > { %6917 = vrot.lane.b32.xlu1 %v25265_v53, %s23587_s8  ;;  %v6198_v61 = vmul.f32 %v25265_v53, %v24622_v52  ;;  %v5536_v43 = vmul.f32 %v25265_v53, %v24523_v58  ;;  %v6555_v21 = vmul.f32 %v25265_v53, %v24669_v25  ;;  %v7253_v58 = vmul.f32 %v25265_v53, %v24757_v39 }
 0x671   : > { %6574 = vrot.lane.b32.xlu0 %v6554_v47, %s23586_s22  ;;  %v5501_v22 = vpop.permute.xlu0 %5500  ;;  %v27218_v47 = vld [vmem:[#allocation115_spill] sm:$0xff] }
 0x672   : > { %v5503_v28 = vpop.permute.xlu1 %5502 }
 0x673   : > { %6217 = vrot.lane.b32.xlu1 %v6197_v63, %s27064_s15  ;;  %v25281_v37 = vsel %vm1748_vm0, %v5501_v22, %v5503_v28 }
 0x674   : > { %v5540_v20 = vmul.f32 %v25281_v37, %v24572_v23  ;;  %v6559_v52 = vmul.f32 %v25281_v37, %v24693_v49  ;;  %v6202_v49 = vmul.f32 %v25281_v37, %v24642_v40  ;;  %v7257_v63 = vmul.f32 %v25281_v37, %v27218_v47 }
 0x675   : > { %7272 = vrot.lane.b32.xlu0 %v7252_v51, %s23588_s5  ;;  %v5497_v11 = vpop.permute.xlu0 %5496  ;;  %v27220_v51 = vld [vmem:[#allocation117_spill] sm:$0xff]  ;;  %v7966_v47 = vmul.f32 %v25257_v32, %v24774_v16 }
 0x676   : > { %v5499_v8 = vpop.permute.xlu1 %5498  ;;  %v25300_v23 = vsel %vm1748_vm0, %v5495_v34, %v5497_v11 }
 0x677   : > { %6219 = vrot.lane.b32.xlu1 %v6198_v61, %s27064_s15  ;;  %v25303_v36 = vsel %vm1748_vm0, %v5497_v11, %v5499_v8  ;;  %v5537_v25 = vmul.f32 %v25300_v23, %v24526_v59  ;;  %v6556_v39 = vmul.f32 %v25300_v23, %v24672_v27  ;;  %v7254_v12 = vmul.f32 %v25300_v23, %v24760_v46  ;;  %v27223_v11 = vld [vmem:[#allocation118_spill] sm:$0xff] }
 0x678   : > { %v25323_v59 = vsel %vm1748_vm0, %v5499_v8, %v5501_v22  ;;  %v6199_v27 = vmul.f32 %v25300_v23, %v24631_v17  ;;  %v6200_v46 = vmul.f32 %v25303_v36, %v24654_v9  ;;  %v5538_v1 = vmul.f32 %v25303_v36, %v24541_v2  ;;  %v27219_v22 = vld [vmem:[#allocation105_spill] sm:$0xff] }
 0x679   : > { %5557 = vrot.lane.b32.xlu0 %v5536_v43, %s27066_s17  ;;  %v5539_v40 = vmul.f32 %v25323_v59, %v24544_v3  ;;  %v6558_v3 = vmul.f32 %v25323_v59, %v24716_v18  ;;  %v6201_v17 = vmul.f32 %v25323_v59, %v24657_v10  ;;  %v7256_v9 = vmul.f32 %v25323_v59, %v24807_v24  ;;  %v5505_v31 = vpop.permute.xlu0 %5504  ;;  %v27221_v43 = vld [vmem:[#allocation116_spill] sm:$0xff] }
 0x67a   : > { %v6557_v2 = vmul.f32 %v25303_v36, %v24707_v60  ;;  %v25353_v18 = vsel %vm1748_vm0, %v5503_v28, %v5505_v31  ;;  %v5507_v57 = vpop.permute.xlu1 %5506  ;;  %v7255_v10 = vmul.f32 %v25303_v36, %v24796_v30  ;;  %v27215_v30 = vld [vmem:[#allocation104_spill] sm:$0xff]  ;;  %v7610_v61 = vmul.f32 %v25265_v53, %v27220_v51 }
 0x67b   : > { %5565 = vrot.lane.b32.xlu1 %v5540_v20, %s27066_s17  ;;  %v25361_v24 = vsel %vm1748_vm0, %v5507_v57, 0.0  ;;  %v25366_v60 = vsel %vm1748_vm0, %v5505_v31, %v5507_v57  ;;  %v6203_v0 = vmul.f32 %v25353_v18, %v27214_v5  ;;  %v5541_v62 = vmul.f32 %v25353_v18, %v27215_v30  ;;  %v27230_v31 = vld [vmem:[#allocation121_spill] sm:$0xff]  ;;  %v27231_v57 = vld [vmem:[#allocation110_spill] sm:$0xff]  ;;  %v27233_v30 = vld [vmem:[#allocation124_spill] sm:$0xff] }
 0x67c   : > { %v5542_v4 = vmul.f32 %v25366_v60, %v27216_v35  ;;  %v6560_v34 = vmul.f32 %v25353_v18, %v27217_v33  ;;  %v5543_v28 = vmul.f32 %v25361_v24, %v27219_v22  ;;  %v7258_v20 = vmul.f32 %v25353_v18, %v27221_v43  ;;  %v27232_v5 = vld [vmem:[#allocation125_spill] sm:$0xff]  ;;  %v27234_v33 = vld [vmem:[#allocation119_spill] sm:$0xff] }
 0x67d   : > { %6576 = vrot.lane.b32.xlu0 %v6555_v21, %s23586_s22  ;;  %v27222_v21 = vld [vmem:[#allocation122_spill] sm:$0xff]  ;;  %v7611_v8 = vmul.f32 %v25300_v23, %v27223_v11  ;;  %v7970_v35 = vmul.f32 %v25323_v59, %v24952_v55  ;;  %v7971_v55 = vmul.f32 %v25281_v37, %v24917_v19  ;;  %v7972_v51 = vmul.f32 %v25353_v18, %v24939_v6 }
 0x67e   : > { %v8324_v19 = vmul.f32 %v25265_v53, %v24957_v54  ;;  %v7973_v6 = vmul.f32 %v25366_v60, %v24980_v7  ;;  %v8325_v54 = vmul.f32 %v25300_v23, %v24988_v48  ;;  %v7974_v7 = vmul.f32 %v25361_v24, %v24860_v38 }
 0x67f   : > { %6584 = vrot.lane.b32.xlu1 %v6559_v52, %s23586_s22  ;;  %v7612_v52 = vmul.f32 %v25303_v36, %v27222_v21  ;;  %v8329_v38 = vmul.f32 %v25353_v18, %v25021_v26  ;;  %v8330_v26 = vmul.f32 %v25366_v60, %v25065_v44 }
 0x681   : > { %7274 = vrot.lane.b32.xlu0 %v7253_v58, %s23588_s5  ;;  %v27224_v58 = vld [vmem:[#allocation108_spill] sm:$0xff] }
 0x683   : > { %6921 = vrot.lane.b32.xlu1 %v25303_v36, %s23587_s8 }
 0x685   : > { %6925 = vrot.lane.b32.xlu0 %v25281_v37, %s23587_s8 }
 0x687   : > { %5559 = vrot.lane.b32.xlu1 %v5537_v25, %s27066_s17  ;;  %v6205_v25 = vmul.f32 %v25361_v24, %v27224_v58 }
 0x689   : > { %6227 = vrot.lane.b32.xlu0 %v6202_v49, %s27064_s15  ;;  %v27225_v49 = vld [vmem:[#allocation123_spill] sm:$0xff] }
 0x68b   : > { %6578 = vrot.lane.b32.xlu1 %v6556_v39, %s23586_s22  ;;  %v7613_v39 = vmul.f32 %v25323_v59, %v27225_v49  ;;  %v8323_v49 = vmul.f32 %v25257_v32, %v24856_v14  ;;  %v8328_v14 = vmul.f32 %v25281_v37, %v25026_v50 }
 0x68d   : > { %6919 = vrot.lane.b32.xlu0 %v25300_v23, %s23587_s8 }
 0x68f   : > { %7276 = vrot.lane.b32.xlu1 %v7254_v12, %s23588_s5  ;;  %v27226_v12 = vld [vmem:[#allocation113_spill] sm:$0xff] }
 0x691   : > { %6923 = vrot.lane.b32.xlu0 %v25323_v59, %s23587_s8 }
 0x693   : > { %5563 = vrot.lane.b32.xlu1 %v5539_v40, %s27066_s17  ;;  %v7609_v40 = vmul.f32 %v25257_v32, %v27226_v12 }
 0x695   : > { %6221 = vrot.lane.b32.xlu0 %v6199_v27, %s27064_s15  ;;  %v27227_v27 = vld [vmem:[#allocation109_spill] sm:$0xff] }
 0x697   : > { %6223 = vrot.lane.b32.xlu1 %v6200_v46, %s27064_s15  ;;  %v6204_v46 = vmul.f32 %v25366_v60, %v27227_v27 }
 0x699   : > { %5561 = vrot.lane.b32.xlu0 %v5538_v1, %s27066_s17  ;;  %v27228_v1 = vld [vmem:[#allocation112_spill] sm:$0xff] }
 0x69b   : > { %6582 = vrot.lane.b32.xlu1 %v6558_v3, %s23586_s22  ;;  %v6561_v3 = vmul.f32 %v25366_v60, %v27228_v1  ;;  %v8680_v1 = vld [vmem:[#allocation6] sm:$0xf] }
 0x69d   : > { %6225 = vrot.lane.b32.xlu0 %v6201_v17, %s27064_s15  ;;  %v27229_v17 = vld [vmem:[#allocation120_spill] sm:$0xff] }
 0x69f   : > { %7280 = vrot.lane.b32.xlu1 %v7256_v9, %s23588_s5  ;;  %v7614_v9 = vmul.f32 %v25281_v37, %v27229_v17 }
 0x6a1   : > { %6580 = vrot.lane.b32.xlu0 %v6557_v2, %s23586_s22  ;;  %v7615_v2 = vmul.f32 %v25353_v18, %v27230_v31 }
 0x6a3   : > { %6927 = vrot.lane.b32.xlu1 %v25353_v18, %s23587_s8 }
 0x6a5   : > { %7278 = vrot.lane.b32.xlu0 %v7255_v10, %s23588_s5  ;;  %v6562_v10 = vmul.f32 %v25361_v24, %v27231_v57 }
 0x6a7   : > { %6931 = vrot.lane.b32.xlu1 %v25361_v24, %s23587_s8 }
 0x6a9   : > { %6929 = vrot.lane.b32.xlu0 %v25366_v60, %s23587_s8 }
 0x6ab   : > { %6229 = vrot.lane.b32.xlu1 %v6203_v0, %s27064_s15  ;;  %v7968_v0 = vmul.f32 %v25300_v23, %v27232_v5 }
 0x6ad   : > { %5567 = vrot.lane.b32.xlu0 %v5541_v62, %s27066_s17  ;;  %v7967_v62 = vmul.f32 %v25265_v53, %v27233_v30 }
 0x6af   : > { %5569 = vrot.lane.b32.xlu1 %v5542_v4, %s27066_s17  ;;  %v7969_v4 = vmul.f32 %v25303_v36, %v24934_v42 }
 0x6b1   : > { %6586 = vrot.lane.b32.xlu0 %v6560_v34, %s23586_s22  ;;  %v7259_v34 = vmul.f32 %v25366_v60, %v27234_v33 }
 0x6b3   : > { %7282 = vrot.lane.b32.xlu1 %v7257_v63, %s23588_s5  ;;  %v27235_v63 = vld [vmem:[#allocation114_spill] sm:$0xff] }
 0x6b4   : > { %v7260_v42 = vmul.f32 %v25361_v24, %v27235_v63 }
 0x6b5   : > { %5571 = vrot.lane.b32.xlu0 %v5543_v28, %s27066_s17  ;;  %v7617_v28 = vmul.f32 %v25361_v24, %v24776_v45 }
 0x6b7   : > { %7631 = vrot.lane.b32.xlu1 %v7610_v61, %s23580_s16 }
 0x6b9   : > { %7284 = vrot.lane.b32.xlu0 %v7258_v20, %s23588_s5  ;;  %v27236_v20 = vld [vmem:[#allocation126_spill] sm:$0xff] }
 0x6ba   : > { %v7616_v45 = vmul.f32 %v25366_v60, %v27236_v20  ;;  %v5527_v20 = vmul.f32 %v25265_v53, %v24966_v29  ;;  %v5534_v29 = vld [vmem:[#allocation4] sm:$0xf] }
 0x6bb   : > { %7635 = vrot.lane.b32.xlu1 %v7612_v52, %s23580_s16 }
 0x6bd   : > { %7633 = vrot.lane.b32.xlu0 %v7611_v8, %s23580_s16  ;;  %v8326_v8 = vmul.f32 %v25303_v36, %v25048_v15 }
 0x6bf   : > { %6233 = vrot.lane.b32.xlu1 %v6205_v25, %s27064_s15 }
 0x6c1   : > { %7637 = vrot.lane.b32.xlu0 %v7613_v39, %s23580_s16  ;;  %v8327_v39 = vmul.f32 %v25323_v59, %v25042_v56  ;;  %v8331_v56 = vmul.f32 %v25361_v24, %v25037_v13 }
 0x6c3   : > { %7629 = vrot.lane.b32.xlu1 %v7609_v40, %s23580_s16 }
 0x6c5   : > { %6231 = vrot.lane.b32.xlu0 %v6204_v46, %s27064_s15 }
 0x6c7   : > { %6588 = vrot.lane.b32.xlu1 %v6561_v3, %s23586_s22  ;;  %v25513_v3 = vld [vmem:[#allocation4 + $0x4] sm:$0xf] }
 0x6c9   : > { %7639 = vrot.lane.b32.xlu0 %v7614_v9, %s23580_s16 }
 0x6cb   : > { %7641 = vrot.lane.b32.xlu1 %v7615_v2, %s23580_s16 }
 0x6cd   : > { %6590 = vrot.lane.b32.xlu0 %v6562_v10, %s23586_s22 }
 0x6cf   : > { %7990 = vrot.lane.b32.xlu1 %v7968_v0, %s23589_s12 }
 0x6d1   : > { %7988 = vrot.lane.b32.xlu0 %v7967_v62, %s23589_s12 }
 0x6d3   : > { %7994 = vrot.lane.b32.xlu1 %v7970_v35, %s23589_s12 }
 0x6d5   : > { %7992 = vrot.lane.b32.xlu0 %v7969_v4, %s23589_s12 }
 0x6d7   : > { %7286 = vrot.lane.b32.xlu1 %v7259_v34, %s23588_s5 }
 0x6d9   : > { %7986 = vrot.lane.b32.xlu0 %v7966_v47, %s23589_s12 }
 0x6db   : > { %7996 = vrot.lane.b32.xlu1 %v7971_v55, %s23589_s12 }
 0x6dd   : > { %v25447_v22 = vpop.permute.xlu1 %6915  ;;  %7288 = vrot.lane.b32.xlu0 %v7260_v42, %s23588_s5 }
 0x6df   : > { %7645 = vrot.lane.b32.xlu1 %v7617_v28, %s23580_s16  ;;  %v5556_v16 = vpop.permute.xlu0 %5555 }
 0x6e1   : > { %v25455_v61 = vpop.permute.xlu1 %6917  ;;  %7998 = vrot.lane.b32.xlu0 %v7972_v51, %s23589_s12 }
 0x6e3   : > { %8345 = vrot.lane.b32.xlu1 %v8324_v19, %s23590_s3  ;;  %v25461_v43 = vpop.permute.xlu0 %6574 }
 0x6e5   : > { %v25465_v21 = vpop.permute.xlu1 %6217  ;;  %7643 = vrot.lane.b32.xlu0 %v7616_v45, %s23580_s16  ;;  %v27237_v45 = vld [vmem:[#allocation127_spill] sm:$0xff]  ;;  %s27053_s16 = smov 18  }
 0x6e7   : > { %8000 = vrot.lane.b32.xlu1 %v7973_v6, %s23589_s12  ;;  %v25471_v52 = vpop.permute.xlu0 %7272  ;;  %v5526_v6 = vmul.f32 %v25257_v32, %v27237_v45  ;;  %v27239_v32 = vld [vmem:[#allocation103_spill] sm:$0xff]  ;;  %v6933_v45 = vsel %vm3431_vm13, %v25447_v22, %v25455_v61 }
 0x6e9   : > { %v25475_v11 = vpop.permute.xlu1 %6219  ;;  %8347 = vrot.lane.b32.xlu0 %v8325_v54, %s23590_s3 }
 0x6eb   : > { %8349 = vrot.lane.b32.xlu1 %v8326_v8, %s23590_s3  ;;  %v5558_v58 = vpop.permute.xlu0 %5557  ;;  %v27238_v8 = vld [vmem:[#allocation102_spill] sm:$0xff] }
 0x6ec   : > { %v5573_v17 = vsel %vm1928_vm9, %v5556_v16, %v5558_v58 }
 0x6ed   : > { %v5566_v25 = vpop.permute.xlu1 %5565  ;;  %8002 = vrot.lane.b32.xlu0 %v7974_v7, %s23589_s12  ;;  %v5530_v7 = vmul.f32 %v25323_v59, %v27239_v32  ;;  %v27240_v59 = vld [vmem:[#allocation98_spill] sm:$0xff]  ;;  %s27054_s12 = smov 16  }
 0x6ef   : > { %8343 = vrot.lane.b32.xlu1 %v8323_v49, %s23590_s3  ;;  %v25487_v48 = vpop.permute.xlu0 %6576 }
 0x6f1   : > { %v25491_v15 = vpop.permute.xlu1 %6584  ;;  %8351 = vrot.lane.b32.xlu0 %v8327_v39, %s23590_s3 }
 0x6f3   : > { %8355 = vrot.lane.b32.xlu1 %v8329_v38, %s23590_s3  ;;  %v25497_v12 = vpop.permute.xlu0 %7274 }
 0x6f5   : > { %v25501_v40 = vpop.permute.xlu1 %6921  ;;  %8353 = vrot.lane.b32.xlu0 %v8328_v14, %s23590_s3  ;;  %v5529_v14 = vmul.f32 %v25303_v36, %v27240_v59 }
 0x6f7   : > { %8359 = vrot.lane.b32.xlu1 %v8331_v56, %s23590_s3  ;;  %v25507_v27 = vpop.permute.xlu0 %6925  ;;  %v27241_v56 = vld [vmem:[#allocation99_spill] sm:$0xff] }
 0x6f9   : > { %v5560_v46 = vpop.permute.xlu1 %5559  ;;  %8357 = vrot.lane.b32.xlu0 %v8330_v26, %s23590_s3  ;;  %v5528_v26 = vmul.f32 %v25300_v23, %v27241_v56  ;;  %v7619_v56 = vld [vmem:[#allocation4 + $0x18] sm:$0xf]  ;;  %s23592_s3 = smov 17  }
 0x6fa   : > { %v5574_v50 = vsel %vm1928_vm9, %v5558_v58, %v5560_v46  ;;  %v5531_v58 = vmul.f32 %v25281_v37, %v27238_v8 }
 0x6fb   : > { %19992 = vmatprep.subr.msk.mxu0 %vm5585_vm2, %v5574_v50  ;;  %v25517_v13 = vpop.permute.xlu0 %6227  ;;  %v27242_v50 = vld [vmem:[#allocation100_spill] sm:$0xff] }
 0x6fc   : > { %19993 = vmatpush1.msk.msra.mxu0 %vm5585_vm2, %v5573_v17  ;;  %v6235_v17 = vsel %vm2661_vm11, %v25465_v21, %v25475_v11 }
 0x6fd   : > { %v25520_v24 = vpop.permute.xlu1 %6578  ;;  %8683 = vperm.xlu0 %22305, %v8680_v1   ;;  %19994 = vmatmul.mubr.msk.f32.vlgmr.msra.gmra.mrb[4].mxu0 %vm5581_vm10, %v25513_v3  ;;  %v5533_v1 = vmul.f32 %v25366_v60, %v27242_v50  ;;  %v27243_v60 = vld [vmem:[#allocation101_spill] sm:$0xff] }
 0x6fe   : > { %5808 = vmatprep.mubr.f32.mxu0 %v27212_v41  ;;  %v5532_v21 = vmul.f32 %v25353_v18, %v27243_v60  ;;  %v6593_v18 = vsel %vm3089_vm12, %v25487_v48, %v25520_v24 }
 0x6ff   : > { %v25525_v44 = vpop.permute.xlu0 %6919 }
 0x701   : > { %v25527_v9 = vpop.permute.xlu1 %7276 }
 0x703   : > { %v25529_v31 = vpop.permute.xlu0 %6923 }
 0x705   : > { %v5564_v2 = vpop.permute.xlu1 %5563 }
 0x706   : > { %v5577_v51 = vsel %vm1928_vm9, %v5564_v2, %v5566_v25 }
 0x707   : > { %v25531_v57 = vpop.permute.xlu0 %6221 }
 0x708   : > { %v6236_v37 = vsel %vm2661_vm11, %v25475_v11, %v25531_v57 }
 0x709   : > { %v25533_v10 = vpop.permute.xlu1 %6223 }
 0x70b   : > { %v5562_v5 = vpop.permute.xlu0 %5561 }
 0x70c   : > { %v5575_v0 = vsel %vm1928_vm9, %v5560_v46, %v5562_v5  ;;  %v5576_v30 = vsel %vm1928_vm9, %v5562_v5, %v5564_v2 }
 0x70d   : > { %v25537_v62 = vpop.permute.xlu1 %6582  ;;  %19995 = vmatprep.subr.msk.mxu1 %vm5585_vm2, %v5576_v30 }
 0x70e   : > { %19996 = vmatpush1.msk.msra.mxu1 %vm5585_vm2, %v5575_v0 }
 0x70f   : > { %v25541_v35 = vpop.permute.xlu0 %6225  ;;  %19997 = vmatmul.mubr.msk.f32.vlgmr.msra.gmra.mrb[8].mxu1 %vm5581_vm10, %v25513_v3 }
 0x710   : > { %5879 = vmatprep.mubr.f32.mxu1 %v27212_v41  ;;  %v6239_v2 = vsel %vm2661_vm11, %v25541_v35, %v25517_v13  ;;  %v6238_v5 = vsel %vm2661_vm11, %v25533_v10, %v25541_v35  ;;  %v6592_v35 = vsel %vm3089_vm12, %v25461_v43, %v25487_v48  ;;  %v6596_v48 = vsel %vm3089_vm12, %v25537_v62, %v25491_v15 }
 0x711   : > { %v25546_v4 = vpop.permute.xlu1 %7280 }
 0x713   : > { %v25548_v33 = vpop.permute.xlu0 %6580 }
 0x715   : > { %v25550_v34 = vpop.permute.xlu1 %6927 }
 0x717   : > { %v25552_v47 = vpop.permute.xlu0 %7278 }
 0x719   : > { %v25554_v55 = vpop.permute.xlu1 %6931 }
 0x71b   : > { %v25556_v63 = vpop.permute.xlu0 %6929 }
 0x71d   : > { %v25558_v42 = vpop.permute.xlu1 %6229 }
 0x71e   : > { %v6240_v23 = vsel %vm2661_vm11, %v25517_v13, %v25558_v42  ;;  %v6237_v13 = vsel %vm2661_vm11, %v25531_v57, %v25533_v10 }
 0x71f   : > { %v5568_v28 = vpop.permute.xlu0 %5567 }
 0x720   : > { %v5578_v16 = vsel %vm1928_vm9, %v5566_v25, %v5568_v28 }
 0x721   : > { %v5570_v19 = vpop.permute.xlu1 %5569  ;;  %19998 = vmatprep.subr.msk.mxu0 %vm5585_vm2, %v5578_v16 }
 0x722   : > { %19999 = vmatpush1.msk.msra.mxu0 %vm5585_vm2, %v5577_v51  ;;  %v5579_v39 = vsel %vm1928_vm9, %v5568_v28, %v5570_v19  ;;  %v6564_v28 = vld [vmem:[#allocation4 + $0xc] sm:$0xf] }
 0x723   : > { %20000 = vmatmul.mubr.msk.f32.vlgmr.msra.gmra.mrb[6].mxu0 %vm5581_vm10, %v25513_v3  ;;  %20004 = vmatprep.subr.msk.mxu0 %vm5585_vm2, %v5527_v20  ;;  %v25571_v54 = vpop.permute.xlu0 %6586 }
 0x724   : > { %20005 = vmatpush1.msk.msra.mxu0 %vm5585_vm2, %v5526_v6  ;;  %5977 = vmatprep.mubr.f32.mxu0 %v27212_v41  ;;  %v6597_v57 = vsel %vm3089_vm12, %v25491_v15, %v25571_v54  ;;  %v6595_v15 = vsel %vm3089_vm12, %v25548_v33, %v25537_v62  ;;  %v6594_v6 = vsel %vm3089_vm12, %v25520_v24, %v25548_v33 }
 0x725   : > { %v25577_v53 = vpop.permute.xlu1 %7282  ;;  %20010 = vmatprep.subr.msk.mxu0 %vm5585_vm2, %v5531_v58  ;;  %v6938_v62 = vsel %vm3431_vm13, %v25507_v27, %v25550_v34  ;;  %v6912_v58 = vld [vmem:[#allocation4 + $0x10] sm:$0xf] }
 0x727   : > { %20006 = vmatmul.mubr.msk.f32.vlgmr.msra.gmra.mrb[4].mxu0 %vm5581_vm10, %v5534_v29  ;;  %v5572_v25 = vpop.permute.xlu0 %5571 }
 0x728   : > { %20011 = vmatpush1.msk.msra.mxu0 %vm5585_vm2, %v5530_v7  ;;  %v5580_v49 = vsel %vm1928_vm9, %v5570_v19, %v5572_v25  ;;  %6119 = vmatprep.mubr.f32.mxu0 %v27212_v41  ;;  %v6934_v19 = vsel %vm3431_vm13, %v25455_v61, %v25525_v44  ;;  %v6937_v61 = vsel %vm3431_vm13, %v25529_v31, %v25507_v27 }
 0x729   : > { %20016 = vmatprep.subr.msk.mxu0 %vm5585_vm2, %v6236_v37  ;;  %v25591_v38 = vpop.permute.xlu1 %7631  ;;  %20001 = vmatprep.subr.msk.mxu1 %vm5585_vm2, %v5580_v49  ;;  %v6936_v27 = vsel %vm3431_vm13, %v25501_v40, %v25529_v31  ;;  %v7290_v7 = vsel %vm3859_vm14, %v25471_v52, %v25497_v12  ;;  %v6935_v25 = vsel %vm3431_vm13, %v25525_v44, %v25501_v40 }
 0x72a   : > { %20002 = vmatpush1.msk.msra.mxu1 %vm5585_vm2, %v5579_v39  ;;  %v6940_v52 = vsel %vm3431_vm13, %v25556_v63, %v25554_v55  ;;  %v6939_v44 = vsel %vm3431_vm13, %v25550_v34, %v25556_v63  ;;  %v7294_v37 = vsel %vm3859_vm14, %v25546_v4, %v25577_v53  ;;  %v7293_v55 = vsel %vm3859_vm14, %v25552_v47, %v25546_v4 }
 0x72b   : > { %20003 = vmatmul.mubr.msk.f32.vlgmr.msra.gmra.mrb[10].mxu1 %vm5581_vm10, %v25513_v3  ;;  %20007 = vmatprep.subr.msk.mxu1 %vm5585_vm2, %v5529_v14  ;;  %v25602_v46 = vpop.permute.xlu0 %7284  ;;  %v6207_v3 = vld [vmem:[#allocation4 + $0x8] sm:$0xf]  ;;  %v7292_v39 = vsel %vm3859_vm14, %v25527_v9, %v25552_v47 }
 0x72c   : > { %20012 = vmatmul.mubr.msk.f32.vlgmr.msra.gmra.mrb[6].mxu0 %vm5581_vm10, %v5534_v29  ;;  %20008 = vmatpush1.msk.msra.mxu1 %vm5585_vm2, %v5528_v26  ;;  %v7295_v31 = vsel %vm3859_vm14, %v25577_v53, %v25602_v46 }
 0x72d   : > { %20017 = vmatpush1.msk.msra.mxu0 %vm5585_vm2, %v6235_v17  ;;  %v25615_v36 = vpop.permute.xlu1 %7635  ;;  %20013 = vmatprep.subr.msk.mxu1 %vm5585_vm2, %v5533_v1 }
 0x72e   : > { %20022 = vmatprep.subr.msk.mxu0 %vm5585_vm2, %v6240_v23  ;;  %6048 = vmatprep.mubr.f32.mxu1 %v27212_v41 }
 0x72f   : > { %6326 = vmatprep.mubr.f32.mxu0 %v27212_v41  ;;  %20009 = vmatmul.mubr.msk.f32.vlgmr.msra.gmra.mrb[8].mxu1 %vm5581_vm10, %v5534_v29  ;;  %v25624_v11 = vpop.permute.xlu0 %7633 }
 0x730   : > { %20014 = vmatpush1.msk.msra.mxu1 %vm5585_vm2, %v5532_v21  ;;  %20018 = vmatmul.mubr.msk.f32.vlgmr.msra.gmra.mrb[4].mxu0 %vm5581_vm10, %v6207_v3  ;;  %v7648_v34 = vsel %vm4232_vm7, %v25591_v38, %v25624_v11  ;;  %v7649_v23 = vsel %vm4232_vm7, %v25624_v11, %v25615_v36 }
 0x731   : > { %20023 = vmatpush1.msk.msra.mxu0 %vm5585_vm2, %v6239_v2  ;;  %20019 = vmatprep.subr.msk.mxu1 %vm5585_vm2, %v6238_v5  ;;  %v6234_v0 = vpop.permute.xlu1 %6233  ;;  %v7976_v2 = vld [vmem:[#allocation4 + $0x1c] sm:$0xf] }
 0x732   : > { %20028 = vmatprep.subr.msk.mxu0 %vm5585_vm2, %v6593_v18  ;;  %6190 = vmatprep.mubr.f32.mxu1 %v27212_v41 }
 0x733   : > { %6468 = vmatprep.mubr.f32.mxu0 %v27212_v41  ;;  %20015 = vmatmul.mubr.msk.f32.vlgmr.msra.gmra.mrb[10].mxu1 %vm5581_vm10, %v5534_v29  ;;  %v25646_v30 = vpop.permute.xlu0 %7637  ;;  %v7291_v29 = vsel %vm3859_vm14, %v25497_v12, %v25527_v9  ;;  %v7262_v12 = vld [vmem:[#allocation4 + $0x14] sm:$0xf] }
 0x734   : > { %20020 = vmatpush1.msk.msra.mxu1 %vm5585_vm2, %v6237_v13  ;;  %20024 = vmatmul.mubr.msk.f32.vlgmr.msra.gmra.mrb[6].mxu0 %vm5581_vm10, %v6207_v3 }
 0x735   : > { %20029 = vmatpush1.msk.msra.mxu0 %vm5585_vm2, %v6592_v35  ;;  %v25657_v10 = vpop.permute.xlu1 %7629  ;;  %6397 = vmatprep.mubr.f32.mxu1 %v27212_v41 }
 0x736   : > { %20034 = vmatprep.subr.msk.mxu0 %vm5585_vm2, %v6597_v57  ;;  %6683 = vmatprep.mubr.f32.mxu0 %v27212_v41  ;;  %v7647_v4 = vsel %vm4232_vm7, %v25657_v10, %v25591_v38 }
 0x737   : > { %20021 = vmatmul.mubr.msk.f32.vlgmr.msra.gmra.mrb[8].mxu1 %vm5581_vm10, %v6207_v3  ;;  %v6232_v43 = vpop.permute.xlu0 %6231 }
 0x738   : > { %20030 = vmatmul.mubr.msk.f32.vlgmr.msra.gmra.mrb[4].mxu0 %vm5581_vm10, %v6564_v28  ;;  %v6241_v16 = vsel %vm2661_vm11, %v25558_v42, %v6232_v43  ;;  %v6242_v51 = vsel %vm2661_vm11, %v6232_v43, %v6234_v0  ;;  %6539 = vmatprep.mubr.f32.mxu1 %v27212_v41 }
 0x739   : > { %20035 = vmatpush1.msk.msra.mxu0 %vm5585_vm2, %v6596_v48  ;;  %v6589_v20 = vpop.permute.xlu1 %6588  ;;  %20025 = vmatprep.subr.msk.mxu1 %vm5585_vm2, %v6242_v51  ;;  %v8333_v51 = vld [vmem:[#allocation4 + $0x20] sm:$0xf] }
 0x73a   : > { %20040 = vmatprep.subr.msk.mxu0 %vm5585_vm2, %v6934_v19  ;;  %20026 = vmatpush1.msk.msra.mxu1 %vm5585_vm2, %v6241_v16  ;;  %v6598_v33 = vsel %vm3089_vm12, %v25571_v54, %v6589_v20 }
 0x73b   : > { %6825 = vmatprep.mubr.f32.mxu0 %v27212_v41  ;;  %20027 = vmatmul.mubr.msk.f32.vlgmr.msra.gmra.mrb[10].mxu1 %vm5581_vm10, %v6207_v3  ;;  %v25683_v42 = vpop.permute.xlu0 %7639 }
 0x73c   : > { %20031 = vmatprep.subr.msk.mxu1 %vm5585_vm2, %v6595_v15  ;;  %20036 = vmatmul.mubr.msk.f32.vlgmr.msra.gmra.mrb[6].mxu0 %vm5581_vm10, %v6564_v28  ;;  %v7651_v47 = vsel %vm4232_vm7, %v25646_v30, %v25683_v42 }
 0x73d   : > { %20041 = vmatpush1.msk.msra.mxu0 %vm5585_vm2, %v6933_v45  ;;  %20032 = vmatpush1.msk.msra.mxu1 %vm5585_vm2, %v6594_v6  ;;  %v25698_v8 = vpop.permute.xlu1 %7641 }
 0x73e   : > { %20046 = vmatprep.subr.msk.mxu0 %vm5585_vm2, %v6938_v62  ;;  %6754 = vmatprep.mubr.f32.mxu1 %v27212_v41  ;;  %v7652_v59 = vsel %vm4232_vm7, %v25683_v42, %v25698_v8 }
 0x73f   : > { %7024 = vmatprep.mubr.f32.mxu0 %v27212_v41  ;;  %20033 = vmatmul.mubr.msk.f32.vlgmr.msra.gmra.mrb[8].mxu1 %vm5581_vm10, %v6564_v28  ;;  %v6591_v22 = vpop.permute.xlu0 %6590 }
 0x740   : > { %20042 = vmatmul.mubr.msk.f32.vlgmr.msra.gmra.mrb[4].mxu0 %vm5581_vm10, %v6912_v58  ;;  %v6599_v24 = vsel %vm3089_vm12, %v6589_v20, %v6591_v22  ;;  %6896 = vmatprep.mubr.f32.mxu1 %v27212_v41 }
 0x741   : > { %20047 = vmatpush1.msk.msra.mxu0 %vm5585_vm2, %v6937_v61  ;;  %v25716_v32 = vpop.permute.xlu1 %7990  ;;  %20037 = vmatprep.subr.msk.mxu1 %vm5585_vm2, %v6599_v24 }
 0x742   : > { %20052 = vmatprep.subr.msk.mxu0 %vm5585_vm2, %v7291_v29  ;;  %20038 = vmatpush1.msk.msra.mxu1 %vm5585_vm2, %v6598_v33 }
 0x743   : > { %7166 = vmatprep.mubr.f32.mxu0 %v27212_v41  ;;  %20039 = vmatmul.mubr.msk.f32.vlgmr.msra.gmra.mrb[10].mxu1 %vm5581_vm10, %v6564_v28  ;;  %v25726_v54 = vpop.permute.xlu0 %7988 }
 0x744   : > { %20043 = vmatprep.subr.msk.mxu1 %vm5585_vm2, %v6936_v27  ;;  %20048 = vmatmul.mubr.msk.f32.vlgmr.msra.gmra.mrb[6].mxu0 %vm5581_vm10, %v6912_v58  ;;  %v8005_v50 = vsel %vm4714_vm15, %v25726_v54, %v25716_v32 }
 0x745   : > { %20053 = vmatpush1.msk.msra.mxu0 %vm5585_vm2, %v7290_v7  ;;  %20044 = vmatpush1.msk.msra.mxu1 %vm5585_vm2, %v6935_v25  ;;  %v25741_v49 = vpop.permute.xlu1 %7994 }
 0x746   : > { %20058 = vmatprep.subr.msk.mxu0 %vm5585_vm2, %v7295_v31  ;;  %20049 = vmatprep.subr.msk.mxu1 %vm5585_vm2, %v6940_v52 }
 0x747   : > { %7095 = vmatprep.mubr.f32.mxu1 %v27212_v41  ;;  %7381 = vmatprep.mubr.f32.mxu0 %v27212_v41  ;;  %v25750_v40 = vpop.permute.xlu0 %7992 }
 0x748   : > { %20045 = vmatmul.mubr.msk.f32.vlgmr.msra.gmra.mrb[8].mxu1 %vm5581_vm10, %v6912_v58  ;;  %20054 = vmatmul.mubr.msk.f32.vlgmr.msra.gmra.mrb[4].mxu0 %vm5581_vm10, %v7262_v12  ;;  %v8007_v13 = vsel %vm4714_vm15, %v25750_v40, %v25741_v49  ;;  %v8006_v35 = vsel %vm4714_vm15, %v25716_v32, %v25750_v40 }
 0x749   : > { %20050 = vmatpush1.msk.msra.mxu1 %vm5585_vm2, %v6939_v44  ;;  %20059 = vmatpush1.msk.msra.mxu0 %vm5585_vm2, %v7294_v37  ;;  %v7287_v63 = vpop.permute.xlu1 %7286 }
 0x74a   : > { %20055 = vmatprep.subr.msk.mxu1 %vm5585_vm2, %v7293_v55  ;;  %20064 = vmatprep.subr.msk.mxu0 %vm5585_vm2, %v7648_v34  ;;  %v7296_v26 = vsel %vm3859_vm14, %v25602_v46, %v7287_v63  ;;  %v7650_v46 = vsel %vm4232_vm7, %v25615_v36, %v25646_v30 }
 0x74b   : > { %7237 = vmatprep.mubr.f32.mxu1 %v27212_v41  ;;  %7523 = vmatprep.mubr.f32.mxu0 %v27212_v41  ;;  %v7987_v53 = vpop.permute.xlu0 %7986 }
 0x74c   : > { %20051 = vmatmul.mubr.msk.f32.vlgmr.msra.gmra.mrb[10].mxu1 %vm5581_vm10, %v6912_v58  ;;  %20060 = vmatmul.mubr.msk.f32.vlgmr.msra.gmra.mrb[6].mxu0 %vm5581_vm10, %v7262_v12  ;;  %v8004_v60 = vsel %vm4714_vm15, %v7987_v53, %v25726_v54 }
 0x74d   : > { %20056 = vmatpush1.msk.msra.mxu1 %vm5585_vm2, %v7292_v39  ;;  %20065 = vmatpush1.msk.msra.mxu0 %vm5585_vm2, %v7647_v4  ;;  %v7997_v14 = vpop.permute.xlu1 %7996  ;;  %v8799_v4 = vld [vmem:[#allocation45 + $0x8] sm:$0xff] }
 0x74e   : > { %20070 = vmatprep.subr.msk.mxu0 %vm5585_vm2, %v7652_v59  ;;  %7452 = vmatprep.mubr.f32.mxu1 %v27212_v41  ;;  %v8008_v18 = vsel %vm4714_vm15, %v25741_v49, %v7997_v14  ;;  %v8801_v59 = vld [vmem:[#allocation45 + $0x18] sm:$0xff] }
 0x74f   : > { %7738 = vmatprep.mubr.f32.mxu0 %v27212_v41  ;;  %v7289_v9 = vpop.permute.xlu0 %7288 }
 0x750   : > { %20057 = vmatmul.mubr.msk.f32.vlgmr.msra.gmra.mrb[8].mxu1 %vm5581_vm10, %v7262_v12  ;;  %20066 = vmatmul.mubr.msk.f32.vlgmr.msra.gmra.mrb[4].mxu0 %vm5581_vm10, %v7619_v56  ;;  %v7297_v38 = vsel %vm3859_vm14, %v7287_v63, %v7289_v9  ;;  %v8800_v9 = vld [vmem:[#allocation45 + $0x10] sm:$0xff] }
 0x751   : > { %20071 = vmatpush1.msk.msra.mxu0 %vm5585_vm2, %v7651_v47  ;;  %v7646_v1 = vpop.permute.xlu1 %7645  ;;  %20061 = vmatprep.subr.msk.mxu1 %vm5585_vm2, %v7297_v38  ;;  %v8803_v47 = vld [vmem:[#allocation45 + $0x28] sm:$0xff]  ;;  %v8805_v38 = vld [vmem:[#allocation45 + $0x38] sm:$0xff] }
 0x752   : > { %20076 = vmatprep.subr.msk.mxu0 %vm5585_vm2, %v8005_v50  ;;  %20062 = vmatpush1.msk.msra.mxu1 %vm5585_vm2, %v7296_v26  ;;  %v21157_v50 = vpack.c.bf16 %v8805_v38, %v8803_v47 }
 0x753   : > { %7594 = vmatprep.mubr.f32.mxu1 %v27212_v41  ;;  %7880 = vmatprep.mubr.f32.mxu0 %v27212_v41  ;;  %v7999_v17 = vpop.permute.xlu0 %7998 }
 0x754   : > { %20063 = vmatmul.mubr.msk.f32.vlgmr.msra.gmra.mrb[10].mxu1 %vm5581_vm10, %v7262_v12  ;;  %20067 = vmatprep.subr.msk.mxu1 %vm5585_vm2, %v7650_v46  ;;  %v8009_v3 = vsel %vm4714_vm15, %v7997_v14, %v7999_v17  ;;  %v8798_v14 = vld [vmem:[#allocation45] sm:$0xff]  ;;  %v8804_v46 = vld [vmem:[#allocation45 + $0x30] sm:$0xff] }
 0x755   : > { %20072 = vmatmul.mubr.msk.f32.vlgmr.msra.gmra.mrb[6].mxu0 %vm5581_vm10, %v7619_v56  ;;  %20068 = vmatpush1.msk.msra.mxu1 %vm5585_vm2, %v7649_v23  ;;  %v8346_v21 = vpop.permute.xlu1 %8345  ;;  %v21155_v26 = vpack.c.bf16 %v8800_v9, %v8798_v14  ;;  %v8809_v23 = vld [vmem:[#allocation45 + $0x58] sm:$0xff]  ;;  %v8832_v14 = vld [vmem:[#allocation45 + $0x110] sm:$0xff] }
 0x756   : > { %20077 = vmatpush1.msk.msra.mxu0 %vm5585_vm2, %v8004_v60  ;;  %7809 = vmatprep.mubr.f32.mxu1 %v27212_v41  ;;  %v8837_v9 = vld [vmem:[#allocation45 + $0x138] sm:$0xff] }
 0x757   : > { %20082 = vmatprep.subr.msk.mxu0 %vm5585_vm2, %v8009_v3  ;;  %8095 = vmatprep.mubr.f32.mxu0 %v27212_v41  ;;  %v7644_v36 = vpop.permute.xlu0 %7643 }
 0x758   : > { %20069 = vmatmul.mubr.msk.f32.vlgmr.msra.gmra.mrb[8].mxu1 %vm5581_vm10, %v7619_v56  ;;  %v7653_v11 = vsel %vm4232_vm7, %v25698_v8, %v7644_v36  ;;  %v7654_v5 = vsel %vm4232_vm7, %v7644_v36, %v7646_v1  ;;  %v8802_v1 = vld [vmem:[#allocation45 + $0x20] sm:$0xff]  ;;  %v8811_v36 = vld [vmem:[#allocation45 + $0x68] sm:$0xff] }
 0x759   : > { %20078 = vmatmul.mubr.msk.f32.vlgmr.msra.gmra.mrb[4].mxu0 %vm5581_vm10, %v7976_v2  ;;  %v8001_v0 = vpop.permute.xlu1 %8000  ;;  %20073 = vmatprep.subr.msk.mxu1 %vm5585_vm2, %v7654_v5  ;;  %v21159_v3 = vpack.c.bf16 %v8804_v46, %v8802_v1  ;;  %v8839_v1 = vld [vmem:[#allocation45 + $0x148] sm:$0xff]  ;;  %v8841_v46 = vld [vmem:[#allocation45 + $0x158] sm:$0xff] }
 0x75a   : > { %20083 = vmatpush1.msk.msra.mxu0 %vm5585_vm2, %v8008_v18  ;;  %20074 = vmatpush1.msk.msra.mxu1 %vm5585_vm2, %v7653_v11  ;;  %v8010_v48 = vsel %vm4714_vm15, %v7999_v17, %v8001_v0  ;;  %v8807_v17 = vld [vmem:[#allocation45 + $0x48] sm:$0xff]  ;;  %v8813_v11 = vld [vmem:[#allocation45 + $0x78] sm:$0xff] }
 0x75b   : > { %7951 = vmatprep.mubr.f32.mxu1 %v27212_v41  ;;  %20079 = vmatprep.subr.msk.mxu1 %vm5585_vm2, %v8007_v13  ;;  %v8348_v30 = vpop.permute.xlu0 %8347  ;;  %v21161_v60 = vpack.c.bf16 %v8809_v23, %v8807_v17  ;;  %v21165_v18 = vpack.c.bf16 %v8813_v11, %v8811_v36  ;;  %v8812_v13 = vld [vmem:[#allocation45 + $0x70] sm:$0xff]  ;;  %v21193_v23 = vpack.c.bf16 %v8841_v46, %v8839_v1 }
 0x75c   : > { %20075 = vmatmul.mubr.msk.f32.vlgmr.msra.gmra.mrb[10].mxu1 %vm5581_vm10, %v7619_v56  ;;  %v8362_v57 = vsel %vm5142_vm8, %v8346_v21, %v8348_v30  ;;  %8237 = vmatprep.mubr.f32.mxu0 %v27212_v41  ;;  %v21153_v56 = vpack.c.bf16 %v8801_v59, %v8799_v4  ;;  %v8830_v59 = vld [vmem:[#allocation45 + $0x100] sm:$0xff] }
 0x75d   : > { %20080 = vmatpush1.msk.msra.mxu1 %vm5585_vm2, %v8006_v35  ;;  %v8350_v10 = vpop.permute.xlu1 %8349  ;;  %20088 = vmatprep.subr.msk.mxu0 %vm5585_vm2, %v8362_v57  ;;  %v8817_v35 = vld [vmem:[#allocation45 + $0x98] sm:$0xff]  ;;  %v21187_v47 = vpack.c.bf16 %v8832_v14, %v8830_v59 }
 0x75e   : > { %8166 = vmatprep.mubr.f32.mxu1 %v27212_v41  ;;  %20084 = vmatmul.mubr.msk.f32.vlgmr.msra.gmra.mrb[6].mxu0 %vm5581_vm10, %v7976_v2  ;;  %v8363_v42 = vsel %vm5142_vm8, %v8348_v30, %v8350_v10  ;;  %v8815_v30 = vld [vmem:[#allocation45 + $0x88] sm:$0xff] }
 0x75f   : > { %v8003_v28 = vpop.permute.xlu0 %8002  ;;  %8452 = vmatprep.mubr.f32.mxu0 %v27212_v41 }
 0x760   : > { %20081 = vmatmul.mubr.msk.f32.vlgmr.msra.gmra.mrb[8].mxu1 %vm5581_vm10, %v7976_v2  ;;  %v8011_v43 = vsel %vm4714_vm15, %v8001_v0, %v8003_v28  ;;  %v8810_v0 = vld [vmem:[#allocation45 + $0x60] sm:$0xff] }
 0x761   : > { %v8344_v16 = vpop.permute.xlu1 %8343  ;;  %20085 = vmatprep.subr.msk.mxu1 %vm5585_vm2, %v8011_v43  ;;  %8308 = vmatprep.mubr.f32.mxu1 %v27212_v41  ;;  %v21167_v57 = vpack.c.bf16 %v8812_v13, %v8810_v0  ;;  %v8814_v28 = vld [vmem:[#allocation45 + $0x80] sm:$0xff]  ;;  %v8816_v43 = vld [vmem:[#allocation45 + $0x90] sm:$0xff]  ;;  %v8847_v0 = vld [vmem:[#allocation45 + $0x188] sm:$0xff] }
 0x762   : > { %v8361_v19 = vsel %vm5142_vm8, %v8344_v16, %v8346_v21  ;;  %20086 = vmatpush1.msk.msra.mxu1 %vm5585_vm2, %v8010_v48  ;;  %v8806_v21 = vld [vmem:[#allocation45 + $0x40] sm:$0xff]  ;;  %v8819_v48 = vld [vmem:[#allocation45 + $0xa8] sm:$0xff]  ;;  %v8821_v16 = vld [vmem:[#allocation45 + $0xb8] sm:$0xff] }
 0x763   : > { %20089 = vmatpush1.msk.msra.mxu0 %vm5585_vm2, %v8361_v19  ;;  %v8352_v20 = vpop.permute.xlu0 %8351  ;;  %v21173_v19 = vpack.c.bf16 %v8821_v16, %v8819_v48  ;;  %v8849_v13 = vld [vmem:[#allocation45 + $0x198] sm:$0xff] }
 0x764   : > { %20087 = vmatmul.mubr.msk.f32.vlgmr.msra.gmra.mrb[10].mxu1 %vm5581_vm10, %v7976_v2  ;;  %20090 = vmatmul.mubr.msk.f32.vlgmr.msra.gmra.mrb[4].mxu0 %vm5581_vm10, %v8333_v51  ;;  %v8364_v15 = vsel %vm5142_vm8, %v8350_v10, %v8352_v20  ;;  %v8808_v2 = vld [vmem:[#allocation45 + $0x50] sm:$0xff]  ;;  %v21169_v10 = vpack.c.bf16 %v8817_v35, %v8815_v30  ;;  %v21201_v35 = vpack.c.bf16 %v8849_v13, %v8847_v0 }
 0x765   : > { %v8356_v45 = vpop.permute.xlu1 %8355  ;;  %20091 = vmatprep.subr.msk.mxu1 %vm5585_vm2, %v8364_v15  ;;  %8523 = vmatprep.mubr.f32.mxu1 %v27212_v41  ;;  %v21163_v5 = vpack.c.bf16 %v8808_v2, %v8806_v21  ;;  %v8820_v15 = vld [vmem:[#allocation45 + $0xb0] sm:$0xff]  ;;  %v8843_v21 = vld [vmem:[#allocation45 + $0x168] sm:$0xff]  ;;  %v8845_v2 = vld [vmem:[#allocation45 + $0x178] sm:$0xff] }
 0x766   : > { %20092 = vmatpush1.msk.msra.mxu1 %vm5585_vm2, %v8363_v42  ;;  %8594 = vmatprep.mubr.f32.mxu0 %v27212_v41  ;;  %v8823_v42 = vld [vmem:[#allocation45 + $0xc8] sm:$0xff]  ;;  %v21197_v11 = vpack.c.bf16 %v8845_v2, %v8843_v21  ;;  %v8864_v21 = vld [vmem:[#allocation45 + $0x210] sm:$0xff] }
 0x767   : > { %v8354_v6 = vpop.permute.xlu0 %8353 }
 0x768   : > { %20093 = vmatmul.mubr.msk.f32.vlgmr.msra.gmra.mrb[8].mxu1 %vm5581_vm10, %v8333_v51  ;;  %v8365_v62 = vsel %vm5142_vm8, %v8352_v20, %v8354_v6  ;;  %v8366_v8 = vsel %vm5142_vm8, %v8354_v6, %v8356_v45  ;;  %v8818_v20 = vld [vmem:[#allocation45 + $0xa0] sm:$0xff] }
 0x769   : > { %20094 = vmatprep.subr.msk.mxu0 %vm5585_vm2, %v8366_v8  ;;  %8665 = vmatprep.mubr.f32.mxu1 %v27212_v41  ;;  %v8360_v58 = vpop.permute.xlu1 %8359  ;;  %v21175_v6 = vpack.c.bf16 %v8820_v15, %v8818_v20  ;;  %v8822_v8 = vld [vmem:[#allocation45 + $0xc0] sm:$0xff]  ;;  %v8855_v15 = vld [vmem:[#allocation45 + $0x1c8] sm:$0xff] }
 0x76a   : > { %20095 = vmatpush1.msk.msra.mxu0 %vm5585_vm2, %v8365_v62 }
 0x76b   : > { %20096 = vmatmul.mubr.msk.f32.vlgmr.msra.gmra.mrb[6].mxu0 %vm5581_vm10, %v8333_v51  ;;  %v8358_v22 = vpop.permute.xlu0 %8357  ;;  %21154 = vmatprep.subr.bf16.mxu0 %v21153_v56  ;;  %v8835_v56 = vld [vmem:[#allocation45 + $0x128] sm:$0xff] }
 0x76c   : > { %v8367_v61 = vsel %vm5142_vm8, %v8356_v45, %v8358_v22  ;;  %v8368_v24 = vsel %vm5142_vm8, %v8358_v22, %v8360_v58  ;;  %21156 = vmatpush1.bf16.msra.mxu0 %v21155_v26  ;;  %v8825_v45 = vld [vmem:[#allocation45 + $0xd8] sm:$0xff]  ;;  %v8824_v58 = vld [vmem:[#allocation45 + $0xd0] sm:$0xff]  ;;  %v8827_v22 = vld [vmem:[#allocation45 + $0xe8] sm:$0xff]  ;;  %v21189_v38 = vpack.c.bf16 %v8837_v9, %v8835_v56  ;;  %vm9344_vm8 = vcmask 138240  }
 0x76d   : > { %20097 = vmatprep.subr.msk.mxu1 %vm5585_vm2, %v8368_v24  ;;  %21158 = vmatprep.subr.bf16.mxu0 %v21157_v50  ;;  %v21177_v62 = vpack.c.bf16 %v8825_v45, %v8823_v42  ;;  %v21179_v24 = vpack.c.bf16 %v8824_v58, %v8822_v8  ;;  %v8834_v26 = vld [vmem:[#allocation45 + $0x120] sm:$0xff]  ;;  %v8836_v50 = vld [vmem:[#allocation45 + $0x130] sm:$0xff]  ;;  %v8857_v42 = vld [vmem:[#allocation45 + $0x1d8] sm:$0xff] }
 0x76e   : > { %20098 = vmatpush1.msk.msra.mxu1 %vm5585_vm2, %v8367_v61  ;;  %v8829_v61 = vld [vmem:[#allocation45 + $0xf8] sm:$0xff]  ;;  %v21191_v17 = vpack.c.bf16 %v8836_v50, %v8834_v26  ;;  %v8854_v45 = vld [vmem:[#allocation45 + $0x1c0] sm:$0xff]  ;;  %v8859_v58 = vld [vmem:[#allocation45 + $0x1e8] sm:$0xff] }
 0x76f   : > { %20099 = vmatmul.mubr.msk.f32.vlgmr.msra.gmra.mrb[10].mxu1 %vm5581_vm10, %v8333_v51  ;;  %v21171_v51 = vpack.c.bf16 %v8816_v43, %v8814_v28  ;;  %v8851_v28 = vld [vmem:[#allocation45 + $0x1a8] sm:$0xff]  ;;  %v8853_v43 = vld [vmem:[#allocation45 + $0x1b8] sm:$0xff] }
 0x770   : > { %9472 = vmatprep.mubr.f32.mxu1 %v27212_v41  ;;  %21160 = vmatpush1.bf16.msra.mxu0 %v21159_v3  ;;  %v8838_v3 = vld [vmem:[#allocation45 + $0x140] sm:$0xff]  ;;  %v21205_v16 = vpack.c.bf16 %v8853_v43, %v8851_v28 }
 0x771   : > { %21162 = vmatprep.subr.bf16.mxu0 %v21161_v60  ;;  %v8840_v60 = vld [vmem:[#allocation45 + $0x150] sm:$0xff]  ;;  %v8866_v43 = vld [vmem:[#allocation45 + $0x220] sm:$0xff] }
 0x772   : > { %v21195_v36 = vpack.c.bf16 %v8840_v60, %v8838_v3  ;;  %v8862_v60 = vld [vmem:[#allocation45 + $0x200] sm:$0xff] }
 0x774   : > { %21164 = vmatpush1.bf16.msra.mxu0 %v21163_v5  ;;  %v8842_v5 = vld [vmem:[#allocation45 + $0x160] sm:$0xff] }
 0x775   : > { %21166 = vmatprep.subr.bf16.mxu0 %v21165_v18  ;;  %v8844_v18 = vld [vmem:[#allocation45 + $0x170] sm:$0xff] }
 0x776   : > { %v21199_v30 = vpack.c.bf16 %v8844_v18, %v8842_v5 }
 0x778   : > { %21168 = vmatpush1.bf16.msra.mxu0 %v21167_v57  ;;  %v8846_v57 = vld [vmem:[#allocation45 + $0x180] sm:$0xff] }
 0x779   : > { %21170 = vmatprep.subr.bf16.mxu0 %v21169_v10  ;;  %v8848_v10 = vld [vmem:[#allocation45 + $0x190] sm:$0xff] }
 0x77a   : > { %v21203_v48 = vpack.c.bf16 %v8848_v10, %v8846_v57 }
 0x77c   : > { %v25877_v32 = vpop.permute.xlu0 %8683  ;;  %21172 = vmatpush1.bf16.msra.mxu0 %v21171_v51  ;;  %v8850_v51 = vld [vmem:[#allocation45 + $0x1a0] sm:$0xff] }
 0x77d   : > { %21174 = vmatprep.subr.bf16.mxu0 %v21173_v19  ;;  %v8852_v19 = vld [vmem:[#allocation45 + $0x1b0] sm:$0xff] }
 0x77e   : > { %v21207_v20 = vpack.c.bf16 %v8852_v19, %v8850_v51  ;;  %v8873_v51 = vld [vmem:[#allocation45 + $0x258] sm:$0xff] }
 0x780   : > { %21176 = vmatpush1.bf16.msra.mxu0 %v21175_v6  ;;  %v21209_v6 = vpack.c.bf16 %v8857_v42, %v8855_v15 }
 0x781   : > { %21178 = vmatprep.subr.bf16.mxu0 %v21177_v62  ;;  %v8856_v62 = vld [vmem:[#allocation45 + $0x1d0] sm:$0xff] }
 0x782   : > { %v21211_v8 = vpack.c.bf16 %v8856_v62, %v8854_v45  ;;  %v8870_v62 = vld [vmem:[#allocation45 + $0x240] sm:$0xff] }
 0x784   : > { %21180 = vmatpush1.bf16.msra.mxu0 %v21179_v24 }
 0x837   : > { %v8454_v33 = vpop.f32.mrb[4].mxu0 }
 0x838   : > { %v8456_v29 = vpop.f32.mrb[5].mxu0  ;;  %v25883_v54 = vadd.f32 %v25877_v32, %v8454_v33  ;;  %v21181_v33 = vpack.c.bf16 %v8829_v61, %v8827_v22  ;;  %v8861_v22 = vld [vmem:[#allocation45 + $0x1f8] sm:$0xff]  ;;  %v8858_v61 = vld [vmem:[#allocation45 + $0x1e0] sm:$0xff] }
 0x839   : > { %v25880_v27 = vadd.f32 %v25877_v32, %v8456_v29  ;;  %v8826_v29 = vld [vmem:[#allocation45 + $0xe0] sm:$0xff]  ;;  %v21213_v24 = vpack.c.bf16 %v8861_v22, %v8859_v58 }
 0x83a   : > { %v8694_v44 = vmax.f32 %v25883_v54, 0.0  ;;  %21182 = vmatprep.subr.bf16.mxu0 %v21181_v33  ;;  %v8860_v33 = vld [vmem:[#allocation45 + $0x1f0] sm:$0xff]  ;;  %v8863_v54 = vld [vmem:[#allocation45 + $0x208] sm:$0xff] }
 0x83b   : > { %v8525_v7 = vpop.f32.mrb[8].mxu1  ;;  %v8695_v52 = vmax.f32 %v25880_v27, 0.0 }
 0x83c   : > { %v25886_v25 = vadd.f32 %v25877_v32, %v8525_v7  ;;  %v8527_v31 = vpop.f32.mrb[9].mxu1  ;;  %v8828_v7 = vld [vmem:[#allocation45 + $0xf0] sm:$0xff] }
 0x83d   : > { %v25889_v49 = vadd.f32 %v25877_v32, %v8527_v31  ;;  %v8831_v31 = vld [vmem:[#allocation45 + $0x108] sm:$0xff] }
 0x83e   : > { %v8696_v12 = vmax.f32 %v25886_v25, 0.0  ;;  %v25893_v40 = vpop.f32.mrb[6].mxu0 }
 0x83f   : > { %v8697_v37 = vmax.f32 %v25889_v49, 0.0  ;;  %v25897_v55 = vpop.f32.mrb[7].mxu0 }
 0x840   : > { %v22306_v34 = vpack.i.bf16 %v8696_v12, %v8695_v52  ;;  %v25917_v56 = vadd.f32 %v25877_v32, %v25897_v55 }
 0x841   : > { %v22311_v63 = vpack.i.bf16 %v8694_v44, %v8697_v37 }
 0x842   : > { %22307 = vrot.lane.b32.xlu1 %v22306_v34, %s27066_s17  ;;  %v25908_v53 = vpop.f32.mrb[10].mxu1  ;;  %v8833_v34 = vld [vmem:[#allocation45 + $0x118] sm:$0xff]  ;;  %v8699_v55 = vmax.f32 %v25917_v56, 0.0  ;;  %v8876_v56 = vld [vmem:[#allocation45 + $0x270] sm:$0xff] }
 0x843   : > { %22312 = vrot.lane.b32.xlu0 %v22311_v63, %s27066_s17  ;;  %v25911_v39 = vpop.f32.mrb[11].mxu1  ;;  %v21183_v63 = vpack.c.bf16 %v8828_v7, %v8826_v29  ;;  %v21185_v4 = vpack.c.bf16 %v8833_v34, %v8831_v31  ;;  %v21215_v7 = vpack.c.bf16 %v8860_v33, %v8858_v61  ;;  %v8692_v46 = vadd.f32 %v25877_v32, %v25908_v53  ;;  %v8875_v33 = vld [vmem:[#allocation45 + $0x268] sm:$0xff] }
 0x844   : > { %v8693_v27 = vadd.f32 %v25877_v32, %v25911_v39 }
 0x845   : > { %21184 = vmatpush1.bf16.msra.mxu0 %v21183_v63 }
 0x846   : > { %21186 = vmatprep.subr.bf16.mxu0 %v21185_v4  ;;  %v8690_v4 = vadd.f32 %v25877_v32, %v25893_v40 }
 0x848   : > { %v8698_v1 = vmax.f32 %v8690_v4, 0.0 }
 0x849   : > { %21188 = vmatpush1.bf16.msra.mxu0 %v21187_v47 }
 0x84a   : > { %21190 = vmatprep.subr.bf16.mxu0 %v21189_v38  ;;  %v22321_v25 = vpack.i.bf16 %v8699_v55, %v8698_v1 }
 0x84d   : > { %21192 = vmatpush1.bf16.msra.mxu0 %v21191_v17  ;;  %v8701_v17 = vmax.f32 %v8693_v27, 0.0  ;;  %v8885_v27 = vld [vmem:[#allocation45 + $0x2b8] sm:$0xff] }
 0x84e   : > { %21194 = vmatprep.subr.bf16.mxu0 %v21193_v23 }
 0x851   : > { %21196 = vmatpush1.bf16.msra.mxu0 %v21195_v36  ;;  %v8867_v36 = vld [vmem:[#allocation45 + $0x228] sm:$0xff] }
 0x852   : > { %21198 = vmatprep.subr.bf16.mxu0 %v21197_v11  ;;  %v8869_v11 = vld [vmem:[#allocation45 + $0x238] sm:$0xff] }
 0x853   : > { %v21221_v28 = vpack.c.bf16 %v8869_v11, %v8867_v36 }
 0x855   : > { %21200 = vmatpush1.bf16.msra.mxu0 %v21199_v30 }
 0x856   : > { %21202 = vmatprep.subr.bf16.mxu0 %v21201_v35  ;;  %v21219_v35 = vpack.c.bf16 %v8864_v21, %v8862_v60  ;;  %v8888_v60 = vld [vmem:[#allocation45 + $0x2d0] sm:$0xff]  ;;  %v8891_v21 = vld [vmem:[#allocation45 + $0x2e8] sm:$0xff] }
 0x859   : > { %21204 = vmatpush1.bf16.msra.mxu0 %v21203_v48  ;;  %v8868_v48 = vld [vmem:[#allocation45 + $0x230] sm:$0xff] }
 0x85a   : > { %21206 = vmatprep.subr.bf16.mxu0 %v21205_v16  ;;  %v8871_v16 = vld [vmem:[#allocation45 + $0x248] sm:$0xff] }
 0x85b   : > { %v21225_v61 = vpack.c.bf16 %v8873_v51, %v8871_v16  ;;  %v8898_v51 = vld [vmem:[#allocation45 + $0x320] sm:$0xff] }
 0x85d   : > { %21208 = vmatpush1.bf16.msra.mxu0 %v21207_v20 }
 0x85e   : > { %21210 = vmatprep.subr.bf16.mxu0 %v21209_v6  ;;  %v21223_v6 = vpack.c.bf16 %v8868_v48, %v8866_v43  ;;  %v8901_v43 = vld [vmem:[#allocation45 + $0x338] sm:$0xff] }
 0x861   : > { %21212 = vmatpush1.bf16.msra.mxu0 %v21211_v8  ;;  %v8872_v8 = vld [vmem:[#allocation45 + $0x250] sm:$0xff] }
 0x862   : > { %21214 = vmatprep.subr.bf16.mxu0 %v21213_v24 }
 0x865   : > { %21216 = vmatpush1.bf16.msra.mxu0 %v21215_v7 }
 0x8b4   : > { %v22308_v29 = vpop.permute.xlu1 %22307 }
 0x8b5   : > { %v22310_v31 = vunpack.i.h.bf16 %v22308_v29  ;;  %v22309_v34 = vunpack.i.l.bf16 %v22308_v29  ;;  %v22313_v63 = vpop.permute.xlu0 %22312  ;;  %v8877_v29 = vld [vmem:[#allocation45 + $0x278] sm:$0xff] }
 0x8b6   : > { %v22315_v59 = vunpack.i.h.bf16 %v22313_v63  ;;  %v22314_v14 = vunpack.i.l.bf16 %v22313_v63 }
 0x8b7   : > { %v8727_v9 = vsel %vm1928_vm9, %v22309_v34, %v22310_v31 }
 0x8b8   : > { %v8743_v47 = vmax.f32 %v8695_v52, %v8727_v9  ;;  %v8726_v38 = vsel %vm1928_vm9, %v22315_v59, %v22309_v34  ;;  %v8728_v26 = vsel %vm1928_vm9, %v22310_v31, %v22314_v14  ;;  %v21227_v31 = vpack.c.bf16 %v8872_v8, %v8870_v62  ;;  %v8902_v8 = vld [vmem:[#allocation45 + $0x340] sm:$0xff] }
 0x8b9   : > { %v25926_v50 = vmax.f32 %v8696_v12, %v8728_v26  ;;  %v8742_v40 = vmax.f32 %v8694_v44, %v8726_v38  ;;  %v8700_v12 = vmax.f32 %v8692_v46, 0.0  ;;  %v8865_v44 = vld [vmem:[#allocation45 + $0x218] sm:$0xff]  ;;  %v21229_v59 = vpack.c.bf16 %v8877_v29, %v8875_v33  ;;  %v8883_v46 = vld [vmem:[#allocation45 + $0x2a8] sm:$0xff]  ;;  %v8906_v29 = vld [vmem:[#allocation45 + $0x360] sm:$0xff] }
 0x8ba   : > { %v21217_v23 = vpack.c.bf16 %v8865_v44, %v8863_v54  ;;  %v8881_v38 = vld [vmem:[#allocation45 + $0x298] sm:$0xff]  ;;  %v8887_v54 = vld [vmem:[#allocation45 + $0x2c8] sm:$0xff] }
 0x8bb   : > { %8758 = vrot.lane.b32.xlu0 %v8742_v40, %s23586_s22  ;;  %v22316_v52 = vpack.i.bf16 %v25926_v50, %v8743_v47  ;;  %v22331_v3 = vpack.i.bf16 %v8701_v17, %v8700_v12  ;;  %v8889_v44 = vld [vmem:[#allocation45 + $0x2d8] sm:$0xff] }
 0x8bc   : > { %21218 = vmatprep.subr.bf16.mxu0 %v21217_v23 }
 0x8bd   : > { %22317 = vrot.lane.b32.xlu1 %v22316_v52, %s23586_s22 }
 0x8c1   : > { %22322 = vrot.lane.b32.xlu1 %v22321_v25, %s27066_s17  ;;  %v21237_v25 = vpack.c.bf16 %v8885_v27, %v8883_v46  ;;  %v8921_v46 = vld [vmem:[#allocation45 + $0x3d8] sm:$0xff] }
 0x8c5   : > { %22332 = vrot.lane.b32.xlu1 %v22331_v3, %s27066_s17  ;;  %v21241_v3 = vpack.c.bf16 %v8889_v44, %v8887_v54  ;;  %v8925_v54 = vld [vmem:[#allocation45 + $0x3f8] sm:$0xff] }
 0x92d   : > { %v8759_v2 = vpop.permute.xlu0 %8758 }
 0x92f   : > { %v25940_v53 = vpop.permute.xlu1 %22317 }
 0x930   : > { %v22320_v32 = vunpack.i.h.bf16 %v25940_v53  ;;  %v22319_v39 = vunpack.i.l.bf16 %v25940_v53  ;;  %v8932_v53 = vld [vmem:[#allocation45 + $0x430] sm:$0xff] }
 0x932   : > { %v8774_v5 = vsel %vm3089_vm12, %v8759_v2, %v22319_v39  ;;  %v8775_v18 = vsel %vm3089_vm12, %v22319_v39, %v22320_v32  ;;  %v8886_v39 = vld [vmem:[#allocation45 + $0x2c0] sm:$0xff]  ;;  %v8893_v2 = vld [vmem:[#allocation45 + $0x2f8] sm:$0xff] }
 0x933   : > { %v22323_v0 = vpop.permute.xlu1 %22322  ;;  %v8791_v13 = vmax.f32 %v8743_v47, %v8775_v18  ;;  %v8790_v30 = vmax.f32 %v8742_v40, %v8774_v5  ;;  %v8879_v47 = vld [vmem:[#allocation45 + $0x288] sm:$0xff]  ;;  %v21243_v36 = vpack.c.bf16 %v8888_v60, %v8886_v39  ;;  %v21245_v11 = vpack.c.bf16 %v8893_v2, %v8891_v21  ;;  %v8890_v5 = vld [vmem:[#allocation45 + $0x2e0] sm:$0xff]  ;;  %v8892_v18 = vld [vmem:[#allocation45 + $0x2f0] sm:$0xff] }
 0x934   : > { %v22325_v57 = vunpack.i.h.bf16 %v22323_v0  ;;  %v22324_v10 = vunpack.i.l.bf16 %v22323_v0  ;;  %v21233_v40 = vpack.c.bf16 %v8881_v38, %v8879_v47  ;;  %v8895_v0 = vld [vmem:[#allocation45 + $0x308] sm:$0xff]  ;;  %v8917_v47 = vld [vmem:[#allocation45 + $0x3b8] sm:$0xff]  ;;  %v8924_v39 = vld [vmem:[#allocation45 + $0x3f0] sm:$0xff] }
 0x935   : > { %9118 = vmatprep.mubr.f32.mxu0 %v8791_v13  ;;  %v8897_v13 = vld [vmem:[#allocation45 + $0x318] sm:$0xff]  ;;  %v8927_v60 = vld [vmem:[#allocation45 + $0x408] sm:$0xff] }
 0x936   : > { %v8729_v19 = vsel %vm1928_vm9, %v22314_v14, %v22324_v10  ;;  %v8730_v20 = vsel %vm1928_vm9, %v22324_v10, %v22325_v57  ;;  %9119 = vmatmul.mubr.f32.vlgmr.msra.gmra.mrb[8].mxu0 %v8790_v30  ;;  %v8874_v14 = vld [vmem:[#allocation45 + $0x260] sm:$0xff]  ;;  %v21247_v30 = vpack.c.bf16 %v8892_v18, %v8890_v5  ;;  %v8896_v10 = vld [vmem:[#allocation45 + $0x310] sm:$0xff]  ;;  %v8929_v21 = vld [vmem:[#allocation45 + $0x418] sm:$0xff] }
 0x937   : > { %v25952_v15 = vmax.f32 %v8697_v37, %v8729_v19  ;;  %v25954_v42 = vmax.f32 %v8698_v1, %v8730_v20  ;;  %v22333_v45 = vpop.permute.xlu1 %22332  ;;  %21220 = vmatpush1.bf16.msra.mxu0 %v21219_v35  ;;  %v21231_v26 = vpack.c.bf16 %v8876_v56, %v8874_v14  ;;  %v8878_v1 = vld [vmem:[#allocation45 + $0x280] sm:$0xff]  ;;  %v21249_v35 = vpack.c.bf16 %v8897_v13, %v8895_v0  ;;  %v8900_v19 = vld [vmem:[#allocation45 + $0x330] sm:$0xff]  ;;  %v8903_v20 = vld [vmem:[#allocation45 + $0x348] sm:$0xff] }
 0x938   : > { %v22335_v58 = vunpack.i.h.bf16 %v22333_v45  ;;  %v22334_v22 = vunpack.i.l.bf16 %v22333_v45  ;;  %21222 = vmatprep.subr.bf16.mxu0 %v21221_v28  ;;  %v8899_v28 = vld [vmem:[#allocation45 + $0x328] sm:$0xff]  ;;  %v8905_v45 = vld [vmem:[#allocation45 + $0x358] sm:$0xff]  ;;  %v8910_v14 = vld [vmem:[#allocation45 + $0x380] sm:$0xff] }
 0x939   : > { %v22326_v24 = vpack.i.bf16 %v25954_v42, %v25952_v15  ;;  %v21253_v16 = vpack.c.bf16 %v8901_v43, %v8899_v28  ;;  %v21257_v62 = vpack.c.bf16 %v8905_v45, %v8903_v20  ;;  %v8912_v56 = vld [vmem:[#allocation45 + $0x390] sm:$0xff]  ;;  %v8926_v0 = vld [vmem:[#allocation45 + $0x400] sm:$0xff] }
 0x93a   : > { %v8741_v49 = vsel %vm1928_vm9, %v22335_v58, 0.0  ;;  %v8731_v37 = vsel %vm1928_vm9, %v22325_v57, %v22334_v22  ;;  %v8732_v7 = vsel %vm1928_vm9, %v22334_v22, %v22335_v58  ;;  %v8894_v57 = vld [vmem:[#allocation45 + $0x300] sm:$0xff]  ;;  %v8904_v58 = vld [vmem:[#allocation45 + $0x350] sm:$0xff]  ;;  %v8907_v22 = vld [vmem:[#allocation45 + $0x368] sm:$0xff]  ;;  %v21267_v38 = vpack.c.bf16 %v8912_v56, %v8910_v14 }
 0x93b   : > { %v25961_v34 = vmax.f32 %v8701_v17, %v8741_v49  ;;  %v25963_v63 = vmax.f32 %v8699_v55, %v8731_v37  ;;  %v25965_v4 = vmax.f32 %v8700_v12, %v8732_v7  ;;  %22327 = vrot.lane.b32.xlu0 %v22326_v24, %s23586_s22  ;;  %21224 = vmatpush1.bf16.msra.mxu0 %v21223_v6  ;;  %v8880_v55 = vld [vmem:[#allocation45 + $0x290] sm:$0xff]  ;;  %v8882_v12 = vld [vmem:[#allocation45 + $0x2a0] sm:$0xff]  ;;  %v8911_v37 = vld [vmem:[#allocation45 + $0x388] sm:$0xff] }
 0x93c   : > { %21226 = vmatprep.subr.bf16.mxu0 %v21225_v61  ;;  %v21235_v52 = vpack.c.bf16 %v8880_v55, %v8878_v1  ;;  %v8884_v17 = vld [vmem:[#allocation45 + $0x2b0] sm:$0xff]  ;;  %v21251_v48 = vpack.c.bf16 %v8896_v10, %v8894_v57  ;;  %v21255_v6 = vpack.c.bf16 %v8900_v19, %v8898_v51  ;;  %v8909_v61 = vld [vmem:[#allocation45 + $0x378] sm:$0xff]  ;;  %v21259_v24 = vpack.c.bf16 %v8904_v58, %v8902_v8  ;;  %v8919_v55 = vld [vmem:[#allocation45 + $0x3c8] sm:$0xff] }
 0x93d   : > { %8772 = vrot.lane.b32.xlu1 %v25961_v34, %s23586_s22  ;;  %v22336_v9 = vpack.i.bf16 %v25965_v4, %v25963_v63  ;;  %v21239_v23 = vpack.c.bf16 %v8884_v17, %v8882_v12  ;;  %v21261_v33 = vpack.c.bf16 %v8909_v61, %v8907_v22  ;;  %v8908_v49 = vld [vmem:[#allocation45 + $0x370] sm:$0xff]  ;;  %v8913_v7 = vld [vmem:[#allocation45 + $0x398] sm:$0xff]  ;;  %v8923_v17 = vld [vmem:[#allocation45 + $0x3e8] sm:$0xff] }
 0x93e   : > { %v8916_v1 = vld [vmem:[#allocation45 + $0x3b0] sm:$0xff]  ;;  %v8930_v45 = vld [vmem:[#allocation45 + $0x420] sm:$0xff]  ;;  %v8939_v61 = vld [vmem:[#allocation45 + $0x468] sm:$0xff] }
 0x93f   : > { %22337 = vrot.lane.b32.xlu0 %v22336_v9, %s23586_s22  ;;  %21228 = vmatpush1.bf16.msra.mxu0 %v21227_v31  ;;  %v21263_v31 = vpack.c.bf16 %v8908_v49, %v8906_v29  ;;  %v8915_v9 = vld [vmem:[#allocation45 + $0x3a8] sm:$0xff]  ;;  %v8920_v12 = vld [vmem:[#allocation45 + $0x3d0] sm:$0xff]  ;;  %v8934_v58 = vld [vmem:[#allocation45 + $0x440] sm:$0xff] }
 0x940   : > { %21230 = vmatprep.subr.bf16.mxu0 %v21229_v59  ;;  %v21265_v59 = vpack.c.bf16 %v8913_v7, %v8911_v37  ;;  %v8928_v13 = vld [vmem:[#allocation45 + $0x410] sm:$0xff]  ;;  %v8938_v49 = vld [vmem:[#allocation45 + $0x460] sm:$0xff]  ;;  %v8943_v7 = vld [vmem:[#allocation45 + $0x488] sm:$0xff] }
 0x941   : > { %v8936_v22 = vld [vmem:[#allocation45 + $0x450] sm:$0xff]  ;;  %v8942_v14 = vld [vmem:[#allocation45 + $0x480] sm:$0xff] }
 0x942   : > { %v8940_v37 = vld [vmem:[#allocation45 + $0x470] sm:$0xff] }
 0x943   : > { %21232 = vmatpush1.bf16.msra.mxu0 %v21231_v26  ;;  %v21269_v26 = vpack.c.bf16 %v8917_v47, %v8915_v9  ;;  %v8944_v56 = vld [vmem:[#allocation45 + $0x490] sm:$0xff]  ;;  %v8947_v9 = vld [vmem:[#allocation45 + $0x4a8] sm:$0xff]  ;;  %v8949_v47 = vld [vmem:[#allocation45 + $0x4b8] sm:$0xff] }
 0x944   : > { %21234 = vmatprep.subr.bf16.mxu0 %v21233_v40  ;;  %v8914_v40 = vld [vmem:[#allocation45 + $0x3a0] sm:$0xff] }
 0x945   : > { %v21271_v27 = vpack.c.bf16 %v8916_v1, %v8914_v40  ;;  %v8946_v40 = vld [vmem:[#allocation45 + $0x4a0] sm:$0xff]  ;;  %v8948_v1 = vld [vmem:[#allocation45 + $0x4b0] sm:$0xff] }
 0x947   : > { %21236 = vmatpush1.bf16.msra.mxu0 %v21235_v52  ;;  %v21273_v52 = vpack.c.bf16 %v8921_v46, %v8919_v55  ;;  %v8951_v55 = vld [vmem:[#allocation45 + $0x4c8] sm:$0xff]  ;;  %v8953_v46 = vld [vmem:[#allocation45 + $0x4d8] sm:$0xff] }
 0x948   : > { %21238 = vmatprep.subr.bf16.mxu0 %v21237_v25  ;;  %v8918_v25 = vld [vmem:[#allocation45 + $0x3c0] sm:$0xff] }
 0x949   : > { %v21275_v44 = vpack.c.bf16 %v8920_v12, %v8918_v25  ;;  %v8950_v25 = vld [vmem:[#allocation45 + $0x4c0] sm:$0xff]  ;;  %v8952_v12 = vld [vmem:[#allocation45 + $0x4d0] sm:$0xff] }
 0x94b   : > { %21240 = vmatpush1.bf16.msra.mxu0 %v21239_v23  ;;  %v21277_v23 = vpack.c.bf16 %v8925_v54, %v8923_v17  ;;  %v8955_v17 = vld [vmem:[#allocation45 + $0x4e8] sm:$0xff]  ;;  %v8957_v54 = vld [vmem:[#allocation45 + $0x4f8] sm:$0xff] }
 0x94c   : > { %21242 = vmatprep.subr.bf16.mxu0 %v21241_v3  ;;  %v8922_v3 = vld [vmem:[#allocation45 + $0x3e0] sm:$0xff] }
 0x94d   : > { %v21279_v2 = vpack.c.bf16 %v8924_v39, %v8922_v3  ;;  %v8954_v3 = vld [vmem:[#allocation45 + $0x4e0] sm:$0xff]  ;;  %v8956_v39 = vld [vmem:[#allocation45 + $0x4f0] sm:$0xff] }
 0x94f   : > { %21244 = vmatpush1.bf16.msra.mxu0 %v21243_v36  ;;  %v21281_v36 = vpack.c.bf16 %v8929_v21, %v8927_v60  ;;  %v8959_v60 = vld [vmem:[#allocation45 + $0x508] sm:$0xff]  ;;  %v8961_v21 = vld [vmem:[#allocation45 + $0x518] sm:$0xff] }
 0x950   : > { %21246 = vmatprep.subr.bf16.mxu0 %v21245_v11 }
 0x953   : > { %21248 = vmatpush1.bf16.msra.mxu0 %v21247_v30  ;;  %v8931_v30 = vld [vmem:[#allocation45 + $0x428] sm:$0xff] }
 0x954   : > { %21250 = vmatprep.subr.bf16.mxu0 %v21249_v35  ;;  %v8933_v35 = vld [vmem:[#allocation45 + $0x438] sm:$0xff] }
 0x955   : > { %v21285_v20 = vpack.c.bf16 %v8933_v35, %v8931_v30  ;;  %v8965_v30 = vld [vmem:[#allocation45 + $0x538] sm:$0xff] }
 0x957   : > { %21252 = vmatpush1.bf16.msra.mxu0 %v21251_v48 }
 0x958   : > { %21254 = vmatprep.subr.bf16.mxu0 %v21253_v16  ;;  %v21283_v16 = vpack.c.bf16 %v8928_v13, %v8926_v0  ;;  %v8960_v0 = vld [vmem:[#allocation45 + $0x510] sm:$0xff]  ;;  %v8963_v13 = vld [vmem:[#allocation45 + $0x528] sm:$0xff] }
 0x95b   : > { %21256 = vmatpush1.bf16.msra.mxu0 %v21255_v6  ;;  %v8937_v6 = vld [vmem:[#allocation45 + $0x458] sm:$0xff] }
 0x95c   : > { %21258 = vmatprep.subr.bf16.mxu0 %v21257_v62  ;;  %v21287_v62 = vpack.c.bf16 %v8932_v53, %v8930_v45  ;;  %v8966_v53 = vld [vmem:[#allocation45 + $0x540] sm:$0xff] }
 0x95f   : > { %21260 = vmatpush1.bf16.msra.mxu0 %v21259_v24  ;;  %v8941_v24 = vld [vmem:[#allocation45 + $0x478] sm:$0xff] }
 0x960   : > { %21262 = vmatprep.subr.bf16.mxu0 %v21261_v33  ;;  %v21291_v33 = vpack.c.bf16 %v8936_v22, %v8934_v58  ;;  %v21293_v29 = vpack.c.bf16 %v8941_v24, %v8939_v61  ;;  %v8972_v58 = vld [vmem:[#allocation45 + $0x570] sm:$0xff]  ;;  %v8975_v22 = vld [vmem:[#allocation45 + $0x588] sm:$0xff]  ;;  %v8977_v61 = vld [vmem:[#allocation45 + $0x598] sm:$0xff] }
 0x963   : > { %21264 = vmatpush1.bf16.msra.mxu0 %v21263_v31  ;;  %v8945_v31 = vld [vmem:[#allocation45 + $0x498] sm:$0xff] }
 0x964   : > { %21266 = vmatprep.subr.bf16.mxu0 %v21265_v59  ;;  %v21295_v59 = vpack.c.bf16 %v8940_v37, %v8938_v49  ;;  %v8976_v49 = vld [vmem:[#allocation45 + $0x590] sm:$0xff]  ;;  %v8979_v37 = vld [vmem:[#allocation45 + $0x5a8] sm:$0xff] }
 0x967   : > { %21268 = vmatpush1.bf16.msra.mxu0 %v21267_v38  ;;  %v21299_v38 = vpack.c.bf16 %v8944_v56, %v8942_v14  ;;  %v8980_v14 = vld [vmem:[#allocation45 + $0x5b0] sm:$0xff]  ;;  %v8983_v56 = vld [vmem:[#allocation45 + $0x5c8] sm:$0xff] }
 0x968   : > { %21270 = vmatprep.subr.bf16.mxu0 %v21269_v26  ;;  %v21301_v26 = vpack.c.bf16 %v8949_v47, %v8947_v9  ;;  %v8985_v9 = vld [vmem:[#allocation45 + $0x5d8] sm:$0xff] }
 0x96b   : > { %21272 = vmatpush1.bf16.msra.mxu0 %v21271_v27  ;;  %v21303_v27 = vpack.c.bf16 %v8948_v1, %v8946_v40  ;;  %v8984_v40 = vld [vmem:[#allocation45 + $0x5d0] sm:$0xff]  ;;  %v8987_v1 = vld [vmem:[#allocation45 + $0x5e8] sm:$0xff] }
 0x96c   : > { %21274 = vmatprep.subr.bf16.mxu0 %v21273_v52  ;;  %v21305_v52 = vpack.c.bf16 %v8953_v46, %v8951_v55  ;;  %v8989_v55 = vld [vmem:[#allocation45 + $0x5f8] sm:$0xff] }
 0x96f   : > { %21276 = vmatpush1.bf16.msra.mxu0 %v21275_v44  ;;  %v21307_v44 = vpack.c.bf16 %v8952_v12, %v8950_v25  ;;  %v8988_v25 = vld [vmem:[#allocation45 + $0x5f0] sm:$0xff]  ;;  %v8991_v12 = vld [vmem:[#allocation45 + $0x608] sm:$0xff] }
 0x970   : > { %21278 = vmatprep.subr.bf16.mxu0 %v21277_v23  ;;  %v21309_v23 = vpack.c.bf16 %v8957_v54, %v8955_v17  ;;  %v8993_v17 = vld [vmem:[#allocation45 + $0x618] sm:$0xff] }
 0x973   : > { %21280 = vmatpush1.bf16.msra.mxu0 %v21279_v2  ;;  %v21311_v2 = vpack.c.bf16 %v8956_v39, %v8954_v3  ;;  %v8990_v3 = vld [vmem:[#allocation45 + $0x600] sm:$0xff]  ;;  %v8992_v39 = vld [vmem:[#allocation45 + $0x610] sm:$0xff] }
 0x974   : > { %21282 = vmatprep.subr.bf16.mxu0 %v21281_v36  ;;  %v21313_v36 = vpack.c.bf16 %v8961_v21, %v8959_v60  ;;  %v8995_v21 = vld [vmem:[#allocation45 + $0x628] sm:$0xff] }
 0x9ad   : > { %v25973_v11 = vpop.permute.xlu0 %22327 }
 0x9ae   : > { %v22330_v5 = vunpack.i.h.bf16 %v25973_v11  ;;  %v22329_v18 = vunpack.i.l.bf16 %v25973_v11 }
 0x9af   : > { %v25995_v54 = vpop.permute.xlu1 %8772 }
 0x9b0   : > { %v8776_v57 = vsel %vm3089_vm12, %v22320_v32, %v22329_v18  ;;  %v8777_v10 = vsel %vm3089_vm12, %v22329_v18, %v22330_v5  ;;  %v8935_v32 = vld [vmem:[#allocation45 + $0x448] sm:$0xff]  ;;  %v8958_v18 = vld [vmem:[#allocation45 + $0x500] sm:$0xff] }
 0x9b1   : > { %v25983_v28 = vpop.permute.xlu0 %22337  ;;  %v8793_v43 = vmax.f32 %v25952_v15, %v8777_v10  ;;  %v8792_v48 = vmax.f32 %v25926_v50, %v8776_v57  ;;  %v21289_v8 = vpack.c.bf16 %v8937_v6, %v8935_v32  ;;  %v21315_v35 = vpack.c.bf16 %v8960_v0, %v8958_v18  ;;  %v8962_v10 = vld [vmem:[#allocation45 + $0x520] sm:$0xff]  ;;  %v8968_v32 = vld [vmem:[#allocation45 + $0x550] sm:$0xff]  ;;  %v8971_v6 = vld [vmem:[#allocation45 + $0x568] sm:$0xff] }
 0x9b2   : > { %v22340_v51 = vunpack.i.h.bf16 %v25983_v28  ;;  %v22339_v19 = vunpack.i.l.bf16 %v25983_v28  ;;  %v21317_v57 = vpack.c.bf16 %v8965_v30, %v8963_v13  ;;  %v21347_v18 = vpack.c.bf16 %v8992_v39, %v8990_v3  ;;  %v8994_v30 = vld [vmem:[#allocation45 + $0x620] sm:$0xff]  ;;  %v9028_v3 = vld [vmem:[#allocation45 + $0x730] sm:$0xff]  ;;  %v9031_v39 = vld [vmem:[#allocation45 + $0x748] sm:$0xff] }
 0x9b3   : > { %9189 = vmatprep.mubr.f32.mxu0 %v8793_v43  ;;  %v8964_v43 = vld [vmem:[#allocation45 + $0x530] sm:$0xff] }
 0x9b4   : > { %9190 = vmatmul.mubr.f32.vlgmr.msra.gmra.mrb[8].mxu0 %v8792_v48  ;;  %v8779_v15 = vsel %vm3089_vm12, %v22339_v19, %v22340_v51  ;;  %v8967_v48 = vld [vmem:[#allocation45 + $0x548] sm:$0xff]  ;;  %v8778_v60 = vsel %vm3089_vm12, %v22330_v5, %v22339_v19  ;;  %v8998_v19 = vld [vmem:[#allocation45 + $0x640] sm:$0xff] }
 0x9b5   : > { %21284 = vmatpush1.bf16.msra.mxu0 %v21283_v16  ;;  %v8795_v50 = vmax.f32 %v25963_v63, %v8779_v15  ;;  %v21297_v63 = vpack.c.bf16 %v8945_v31, %v8943_v7  ;;  %v8969_v16 = vld [vmem:[#allocation45 + $0x558] sm:$0xff]  ;;  %v8794_v0 = vmax.f32 %v25954_v42, %v8778_v60 }
 0x9b6   : > { %21286 = vmatprep.subr.bf16.mxu0 %v21285_v20  ;;  %v21319_v20 = vpack.c.bf16 %v8964_v43, %v8962_v10  ;;  %v21321_v45 = vpack.c.bf16 %v8969_v16, %v8967_v48  ;;  %v8973_v15 = vld [vmem:[#allocation45 + $0x578] sm:$0xff]  ;;  %v8999_v10 = vld [vmem:[#allocation45 + $0x648] sm:$0xff]  ;;  %v9000_v48 = vld [vmem:[#allocation45 + $0x650] sm:$0xff] }
 0x9b7   : > { %9260 = vmatprep.mubr.f32.mxu0 %v8795_v50  ;;  %v21323_v50 = vpack.c.bf16 %v8968_v32, %v8966_v53  ;;  %v8981_v7 = vld [vmem:[#allocation45 + $0x5b8] sm:$0xff]  ;;  %v9003_v16 = vld [vmem:[#allocation45 + $0x668] sm:$0xff]  ;;  %v21355_v42 = vpack.c.bf16 %v9000_v48, %v8998_v19  ;;  %v9002_v53 = vld [vmem:[#allocation45 + $0x660] sm:$0xff] }
 0x9b8   : > { %v9001_v43 = vld [vmem:[#allocation45 + $0x658] sm:$0xff]  ;;  %v9004_v32 = vld [vmem:[#allocation45 + $0x670] sm:$0xff]  ;;  %v9038_v48 = vld [vmem:[#allocation45 + $0x780] sm:$0xff] }
 0x9b9   : > { %21288 = vmatpush1.bf16.msra.mxu0 %v21287_v62  ;;  %v21325_v62 = vpack.c.bf16 %v8973_v15, %v8971_v6  ;;  %v21353_v5 = vpack.c.bf16 %v9001_v43, %v8999_v10  ;;  %v9007_v6 = vld [vmem:[#allocation45 + $0x688] sm:$0xff]  ;;  %v21359_v15 = vpack.c.bf16 %v9004_v32, %v9002_v53  ;;  %v9033_v60 = vld [vmem:[#allocation45 + $0x758] sm:$0xff]  ;;  %v9036_v10 = vld [vmem:[#allocation45 + $0x770] sm:$0xff] }
 0x9ba   : > { %21290 = vmatprep.subr.bf16.mxu0 %v21289_v8  ;;  %v8970_v8 = vld [vmem:[#allocation45 + $0x560] sm:$0xff]  ;;  %v9039_v43 = vld [vmem:[#allocation45 + $0x788] sm:$0xff] }
 0x9bb   : > { %v21327_v24 = vpack.c.bf16 %v8972_v58, %v8970_v8  ;;  %v9008_v8 = vld [vmem:[#allocation45 + $0x690] sm:$0xff]  ;;  %v9011_v58 = vld [vmem:[#allocation45 + $0x6a8] sm:$0xff]  ;;  %v9042_v32 = vld [vmem:[#allocation45 + $0x7a0] sm:$0xff] }
 0x9bd   : > { %21292 = vmatpush1.bf16.msra.mxu0 %v21291_v33  ;;  %v21329_v33 = vpack.c.bf16 %v8977_v61, %v8975_v22  ;;  %v9013_v22 = vld [vmem:[#allocation45 + $0x6b8] sm:$0xff] }
 0x9be   : > { %21294 = vmatprep.subr.bf16.mxu0 %v21293_v29  ;;  %v8974_v29 = vld [vmem:[#allocation45 + $0x580] sm:$0xff] }
 0x9bf   : > { %v21331_v31 = vpack.c.bf16 %v8976_v49, %v8974_v29  ;;  %v9012_v29 = vld [vmem:[#allocation45 + $0x6b0] sm:$0xff]  ;;  %v9015_v49 = vld [vmem:[#allocation45 + $0x6c8] sm:$0xff] }
 0x9c1   : > { %21296 = vmatpush1.bf16.msra.mxu0 %v21295_v59  ;;  %v21333_v59 = vpack.c.bf16 %v8981_v7, %v8979_v37  ;;  %v9017_v37 = vld [vmem:[#allocation45 + $0x6d8] sm:$0xff] }
 0x9c2   : > { %21298 = vmatprep.subr.bf16.mxu0 %v21297_v63  ;;  %v8978_v63 = vld [vmem:[#allocation45 + $0x5a0] sm:$0xff] }
 0x9c3   : > { %v21335_v47 = vpack.c.bf16 %v8980_v14, %v8978_v63  ;;  %v9016_v63 = vld [vmem:[#allocation45 + $0x6d0] sm:$0xff]  ;;  %v9019_v14 = vld [vmem:[#allocation45 + $0x6e8] sm:$0xff] }
 0x9c5   : > { %21300 = vmatpush1.bf16.msra.mxu0 %v21299_v38  ;;  %v21337_v38 = vpack.c.bf16 %v8985_v9, %v8983_v56  ;;  %v9021_v56 = vld [vmem:[#allocation45 + $0x6f8] sm:$0xff] }
 0x9c6   : > { %21302 = vmatprep.subr.bf16.mxu0 %v21301_v26  ;;  %v8982_v26 = vld [vmem:[#allocation45 + $0x5c0] sm:$0xff] }
 0x9c7   : > { %v21339_v46 = vpack.c.bf16 %v8984_v40, %v8982_v26  ;;  %v9020_v26 = vld [vmem:[#allocation45 + $0x6f0] sm:$0xff]  ;;  %v9023_v40 = vld [vmem:[#allocation45 + $0x708] sm:$0xff] }
 0x9c9   : > { %21304 = vmatpush1.bf16.msra.mxu0 %v21303_v27  ;;  %v21341_v27 = vpack.c.bf16 %v8989_v55, %v8987_v1  ;;  %v9025_v1 = vld [vmem:[#allocation45 + $0x718] sm:$0xff] }
 0x9ca   : > { %21306 = vmatprep.subr.bf16.mxu0 %v21305_v52  ;;  %v8986_v52 = vld [vmem:[#allocation45 + $0x5e0] sm:$0xff] }
 0x9cd   : > { %21308 = vmatpush1.bf16.msra.mxu0 %v21307_v44  ;;  %v21343_v44 = vpack.c.bf16 %v8988_v25, %v8986_v52  ;;  %v9024_v52 = vld [vmem:[#allocation45 + $0x710] sm:$0xff]  ;;  %v9027_v25 = vld [vmem:[#allocation45 + $0x728] sm:$0xff] }
 0x9ce   : > { %21310 = vmatprep.subr.bf16.mxu0 %v21309_v23  ;;  %v21345_v23 = vpack.c.bf16 %v8993_v17, %v8991_v12  ;;  %v9029_v12 = vld [vmem:[#allocation45 + $0x738] sm:$0xff] }
 0x9d1   : > { %21312 = vmatpush1.bf16.msra.mxu0 %v21311_v2  ;;  %v8997_v2 = vld [vmem:[#allocation45 + $0x638] sm:$0xff] }
 0x9d2   : > { %21314 = vmatprep.subr.bf16.mxu0 %v21313_v36  ;;  %v8789_v36 = vsel %vm3089_vm12, %v25995_v54, 0.0  ;;  %v21349_v13 = vpack.c.bf16 %v8997_v2, %v8995_v21  ;;  %v21385_v2 = vpack.c.bf16 %v9033_v60, %v9031_v39 }
 0x9d5   : > { %21316 = vmatpush1.bf16.msra.mxu0 %v21315_v35  ;;  %v8996_v35 = vld [vmem:[#allocation45 + $0x630] sm:$0xff] }
 0x9d6   : > { %21318 = vmatprep.subr.bf16.mxu0 %v21317_v57  ;;  %v8797_v57 = vmax.f32 %v25961_v34, %v8789_v36  ;;  %v21351_v11 = vpack.c.bf16 %v8996_v35, %v8994_v30  ;;  %v9009_v34 = vld [vmem:[#allocation45 + $0x698] sm:$0xff]  ;;  %v9030_v36 = vld [vmem:[#allocation45 + $0x740] sm:$0xff] }
 0x9d9   : > { %21320 = vmatpush1.bf16.msra.mxu0 %v21319_v20  ;;  %v9005_v20 = vld [vmem:[#allocation45 + $0x678] sm:$0xff] }
 0x9da   : > { %21322 = vmatprep.subr.bf16.mxu0 %v21321_v45  ;;  %v21357_v45 = vpack.c.bf16 %v9005_v20, %v9003_v16  ;;  %v9040_v16 = vld [vmem:[#allocation45 + $0x790] sm:$0xff]  ;;  %v9043_v20 = vld [vmem:[#allocation45 + $0x7a8] sm:$0xff] }
 0x9dd   : > { %21324 = vmatpush1.bf16.msra.mxu0 %v21323_v50  ;;  %v21361_v50 = vpack.c.bf16 %v9009_v34, %v9007_v6  ;;  %v9044_v6 = vld [vmem:[#allocation45 + $0x7b0] sm:$0xff]  ;;  %v9047_v34 = vld [vmem:[#allocation45 + $0x7c8] sm:$0xff] }
 0x9de   : > { %21326 = vmatprep.subr.bf16.mxu0 %v21325_v62  ;;  %v9006_v62 = vld [vmem:[#allocation45 + $0x680] sm:$0xff] }
 0x9df   : > { %v21363_v61 = vpack.c.bf16 %v9008_v8, %v9006_v62  ;;  %v9046_v8 = vld [vmem:[#allocation45 + $0x7c0] sm:$0xff] }
 0x9e1   : > { %21328 = vmatpush1.bf16.msra.mxu0 %v21327_v24  ;;  %v21365_v24 = vpack.c.bf16 %v9013_v22, %v9011_v58  ;;  %v9048_v58 = vld [vmem:[#allocation45 + $0x7d0] sm:$0xff]  ;;  %v9051_v22 = vld [vmem:[#allocation45 + $0x7e8] sm:$0xff] }
 0x9e2   : > { %21330 = vmatprep.subr.bf16.mxu0 %v21329_v33  ;;  %v9010_v33 = vld [vmem:[#allocation45 + $0x6a0] sm:$0xff] }
 0x9e3   : > { %v21367_v7 = vpack.c.bf16 %v9012_v29, %v9010_v33  ;;  %v9050_v29 = vld [vmem:[#allocation45 + $0x7e0] sm:$0xff] }
 0x9e5   : > { %21332 = vmatpush1.bf16.msra.mxu0 %v21331_v31  ;;  %v21369_v31 = vpack.c.bf16 %v9017_v37, %v9015_v49  ;;  %v9052_v49 = vld [vmem:[#allocation45 + $0x7f0] sm:$0xff] }
 0x9e6   : > { %21334 = vmatprep.subr.bf16.mxu0 %v21333_v59  ;;  %v9014_v59 = vld [vmem:[#allocation45 + $0x6c0] sm:$0xff]  ;;  %v21407_v37 = vpack.c.bf16 %v9052_v49, %v9050_v29 }
 0x9e7   : > { %v21371_v9 = vpack.c.bf16 %v9016_v63, %v9014_v59  ;;  %v9367_v59 = vld [vmem:[#allocation40 + $0x1] ss:$8 sm:$0x3] }
 0x9e9   : > { %21336 = vmatpush1.bf16.msra.mxu0 %v21335_v47  ;;  %v21373_v47 = vpack.c.bf16 %v9021_v56, %v9019_v14  ;;  %v27244_v56 = vld [vmem:[#allocation96_spill] sm:$0xff] }
 0x9ea   : > { %21338 = vmatprep.subr.bf16.mxu0 %v21337_v38  ;;  %v9018_v38 = vld [vmem:[#allocation45 + $0x6e0] sm:$0xff] }
 0x9eb   : > { %v21375_v55 = vpack.c.bf16 %v9020_v26, %v9018_v38  ;;  %v9560_v26 = vld [vmem:[#allocation40 + $0x2] ss:$8 sm:$0x3] }
 0x9ec   : > { %v9565_v28 = vrot.slane %v9560_v26, %v27244_v56 }
 0x9ed   : > { %21340 = vmatpush1.bf16.msra.mxu0 %v21339_v46  ;;  %v21377_v46 = vpack.c.bf16 %v9025_v1, %v9023_v40  ;;  %v9885_v1 = vld [vmem:[#allocation40 + $0x5] ss:$8 sm:$0x3] }
 0x9ee   : > { %21342 = vmatprep.subr.bf16.mxu0 %v21341_v27  ;;  %v9022_v27 = vld [vmem:[#allocation45 + $0x700] sm:$0xff] }
 0x9ef   : > { %v21379_v17 = vpack.c.bf16 %v9024_v52, %v9022_v27  ;;  %v10002_v27 = vld [vmem:[#allocation40 + $0x6] ss:$8 sm:$0x3] }
 0x9f0   : > { %v10007_v52 = vrot.slane %v10002_v27, %v27244_v56 }
 0x9f1   : > { %21344 = vmatpush1.bf16.msra.mxu0 %v21343_v44  ;;  %v21381_v44 = vpack.c.bf16 %v9029_v12, %v9027_v25  ;;  %v10117_v12 = vld [vmem:[#allocation40 + $0x7] ss:$8 sm:$0x3] }
 0x9f2   : > { %21346 = vmatprep.subr.bf16.mxu0 %v21345_v23  ;;  %v9026_v23 = vld [vmem:[#allocation45 + $0x720] sm:$0xff] }
 0x9f3   : > { %v21383_v21 = vpack.c.bf16 %v9028_v3, %v9026_v23 }
 0x9f4   : > { %9261 = vmatmul.mubr.f32.vlgmr.msra.gmra.mrb[8].mxu0 %v8794_v0  ;;  %v9035_v0 = vld [vmem:[#allocation45 + $0x768] sm:$0xff] }
 0x9f5   : > { %21348 = vmatpush1.bf16.msra.mxu0 %v21347_v18  ;;  %9331 = vmatprep.mubr.f32.mxu0 %v8797_v57  ;;  %v9032_v18 = vld [vmem:[#allocation45 + $0x750] sm:$0xff]  ;;  %v9034_v57 = vld [vmem:[#allocation45 + $0x760] sm:$0xff] }
 0x9f6   : > { %21350 = vmatprep.subr.bf16.mxu0 %v21349_v13  ;;  %v9037_v13 = vld [vmem:[#allocation45 + $0x778] sm:$0xff]  ;;  %v21387_v30 = vpack.c.bf16 %v9032_v18, %v9030_v36 }
 0x9f7   : > { %v21389_v35 = vpack.c.bf16 %v9037_v13, %v9035_v0  ;;  %v10232_v18 = vld [vmem:[#allocation40 + $0x10] ss:$8 sm:$0x3] }
 0x9f9   : > { %21352 = vmatpush1.bf16.msra.mxu0 %v21351_v11  ;;  %v9041_v11 = vld [vmem:[#allocation45 + $0x798] sm:$0xff] }
 0x9fa   : > { %21354 = vmatprep.subr.bf16.mxu0 %v21353_v5  ;;  %v21391_v5 = vpack.c.bf16 %v9036_v10, %v9034_v57  ;;  %v21393_v19 = vpack.c.bf16 %v9041_v11, %v9039_v43  ;;  %v10237_v57 = vrot.slane %v10232_v18, %v27244_v56 }
 0x9fd   : > { %21356 = vmatpush1.bf16.msra.mxu0 %v21355_v42  ;;  %v9045_v42 = vld [vmem:[#allocation45 + $0x7b8] sm:$0xff] }
 0x9fe   : > { %21358 = vmatprep.subr.bf16.mxu0 %v21357_v45  ;;  %v21395_v45 = vpack.c.bf16 %v9040_v16, %v9038_v48  ;;  %v21397_v53 = vpack.c.bf16 %v9045_v42, %v9043_v20 }
 0xa01   : > { %21360 = vmatpush1.bf16.msra.mxu0 %v21359_v15  ;;  %v9049_v15 = vld [vmem:[#allocation45 + $0x7d8] sm:$0xff] }
 0xa02   : > { %21362 = vmatprep.subr.bf16.mxu0 %v21361_v50  ;;  %v21399_v50 = vpack.c.bf16 %v9044_v6, %v9042_v32  ;;  %v21401_v62 = vpack.c.bf16 %v9049_v15, %v9047_v34 }
 0xa05   : > { %21364 = vmatpush1.bf16.msra.mxu0 %v21363_v61  ;;  %v9053_v61 = vld [vmem:[#allocation45 + $0x7f8] sm:$0xff] }
 0xa06   : > { %21366 = vmatprep.subr.bf16.mxu0 %v21365_v24  ;;  %v21403_v24 = vpack.c.bf16 %v9048_v58, %v9046_v8  ;;  %v21405_v33 = vpack.c.bf16 %v9053_v61, %v9051_v22 }
 0xa09   : > { %21368 = vmatpush1.bf16.msra.mxu0 %v21367_v7  ;;  %v8780_v7 = vsel %vm3089_vm12, %v22340_v51, %v25995_v54  ;;  %v9675_v51 = vld [vmem:[#allocation40 + $0x3] ss:$8 sm:$0x3] }
 0xa0a   : > { %21370 = vmatprep.subr.bf16.mxu0 %v21369_v31  ;;  %v8796_v31 = vmax.f32 %v25965_v4, %v8780_v7  ;;  %v9680_v54 = vrot.slane %v9675_v51, %v27244_v56 }
 0xa0d   : > { %21372 = vmatpush1.bf16.msra.mxu0 %v21371_v9  ;;  %v9372_v9 = vrot.slane %v9367_v59, %v27244_v56 }
 0xa0e   : > { %21374 = vmatprep.subr.bf16.mxu0 %v21373_v47  ;;  %v27245_v47 = vld [vmem:[#allocation97_spill] sm:$0xff] }
 0xa0f   : > { %v9376_v38 = vrot.slane %v9367_v59, %v27245_v47  ;;  %v9569_v4 = vrot.slane %v9560_v26, %v27245_v47  ;;  %v9684_v40 = vrot.slane %v9675_v51, %v27245_v47  ;;  %v10011_v25 = vrot.slane %v10002_v27, %v27245_v47 }
 0xa11   : > { %21376 = vmatpush1.bf16.msra.mxu0 %v21375_v55  ;;  %v9890_v55 = vrot.slane %v9885_v1, %v27244_v56 }
 0xa12   : > { %21378 = vmatprep.subr.bf16.mxu0 %v21377_v46  ;;  %v9894_v46 = vrot.slane %v9885_v1, %v27245_v47 }
 0xa15   : > { %21380 = vmatpush1.bf16.msra.mxu0 %v21379_v17  ;;  %v10122_v17 = vrot.slane %v10117_v12, %v27244_v56 }
 0xa16   : > { %21382 = vmatprep.subr.bf16.mxu0 %v21381_v44  ;;  %v10126_v44 = vrot.slane %v10117_v12, %v27245_v47 }
 0xa19   : > { %21384 = vmatpush1.bf16.msra.mxu0 %v21383_v21 }
 0xa1a   : > { %21386 = vmatprep.subr.bf16.mxu0 %v21385_v2 }
 0xa1d   : > { %21388 = vmatpush1.bf16.msra.mxu0 %v21387_v30 }
 0xa1e   : > { %21390 = vmatprep.subr.bf16.mxu0 %v21389_v35 }
 0xa21   : > { %21392 = vmatpush1.bf16.msra.mxu0 %v21391_v5  ;;  %v10241_v5 = vrot.slane %v10232_v18, %v27245_v47 }
 0xa22   : > { %21394 = vmatprep.subr.bf16.mxu0 %v21393_v19 }
 0xa25   : > { %21396 = vmatpush1.bf16.msra.mxu0 %v21395_v45 }
 0xa26   : > { %21398 = vmatprep.subr.bf16.mxu0 %v21397_v53 }
 0xa29   : > { %21400 = vmatpush1.bf16.msra.mxu0 %v21399_v50 }
 0xa2a   : > { %21402 = vmatprep.subr.bf16.mxu0 %v21401_v62 }
 0xa2d   : > { %21404 = vmatpush1.bf16.msra.mxu0 %v21403_v24 }
 0xa2e   : > { %21406 = vmatprep.subr.bf16.mxu0 %v21405_v33 }
 0xa31   : > { %21408 = vmatpush1.bf16.msra.mxu0 %v21407_v37 }
 0xa34   : > { %9332 = vmatmul.mubr.f32.vlgmr.msra.gmra.mrb[8].mxu0 %v8796_v31 }
 0xb07   : > { %v9333_v63 = vpop.f32.mrb[8].mxu0 }
 0xb08   : > { %9340 = vrot.lane.b32.xlu0 %v9333_v63, %s23592_s3  ;;  %v9335_v14 = vpop.f32.mrb[9].mxu0 }
 0xb09   : > { %9342 = vrot.lane.b32.xlu1 %v9335_v14, %s23592_s3 }
 0xb0c   : > { %9377 = vrot.lane.b32.xlu0 %v9372_v9, %s27055_s18  ;;  %v9351_v9 = vld [vmem:[#allocation40] ss:$8 sm:$0x3] }
 0xb0d   : > { %9379 = vrot.lane.b32.xlu1 %v9376_v38, %s27055_s18 }
 0xb10   : > { %9570 = vrot.lane.b32.xlu0 %v9565_v28, %s27049_s26  ;;  %v26164_v28 = vrot.slane %v9351_v9, %v27245_v47 }
 0xb11   : > { %9572 = vrot.lane.b32.xlu1 %v9569_v4, %s27049_s26  ;;  %s27246_s26 = smov 32   ;;  %v26167_v4 = vrot.slane %v9351_v9, %v27244_v56 }
 0xb14   : > { %9685 = vrot.lane.b32.xlu0 %v9680_v54, %s27054_s12 }
 0xb15   : > { %9687 = vrot.lane.b32.xlu1 %v9684_v40, %s27054_s12  ;;  %s27248_s12 = sld [smem:[#allocation70_spill]] }
 0xb18   : > { %9895 = vrot.lane.b32.xlu0 %v9890_v55, %s27053_s16 }
 0xb19   : > { %9897 = vrot.lane.b32.xlu1 %v9894_v46, %s27053_s16  ;;  %s27057_s16 = smov 110  }
 0xb1b   : > { %v20100_v55 = vld [vmem:[%s27248_s12 + $0x8] sm:$0xff] }
 0xb1c   : > { %10012 = vrot.lane.b32.xlu0 %v10007_v52, %s27246_s26 }
 0xb1d   : > { %10014 = vrot.lane.b32.xlu1 %v10011_v25, %s27246_s26  ;;  %s27062_s26 = smov 112  }
 0xb20   : > { %10127 = vrot.lane.b32.xlu0 %v10122_v17, %s23575_s1 }
 0xb21   : > { %10129 = vrot.lane.b32.xlu1 %v10126_v44, %s23575_s1  ;;  %s27247_s1 = smov 34   ;;  %v10346_v44 = vld [vmem:[#allocation7] sm:$0xff] }
 0xb7a   : > { %v9341_v23 = vpop.permute.xlu0 %9340 }
 0xb7b   : > { %v9343_v3 = vpop.permute.xlu1 %9342  ;;  %v26038_v39 = vsel %vm9344_vm8, 0.0, %v9341_v23 }
 0xb7c   : > { %v26043_v21 = vsel %vm9344_vm8, %v9343_v3, 0.0  ;;  %v26058_v30 = vsel %vm9344_vm8, %v9341_v23, %v9343_v3  ;;  %v9363_v47 = vmul.f32 %v26167_v4, %v26038_v39 }
 0xb7d   : > { %v9364_v46 = vmul.f32 %v26164_v28, %v26058_v30 }
 0xb7e   : > { %v26040_v60 = vpop.permute.xlu0 %9377 }
 0xb7f   : > { %v9385_v2 = vmul.f32 %v26040_v60, %v26038_v39  ;;  %v26047_v36 = vpop.permute.xlu1 %9379 }
 0xb80   : > { %v26052_v0 = vsel %vm27051_vm1, %v26040_v60, %v26047_v36  ;;  %v9387_v13 = vmul.f32 %v26047_v36, %v26043_v21  ;;  %vm9689_vm1 = vcmask 130048  }
 0xb81   : > { %9393 = vrot.lane.b32.xlu0 %v9385_v2, %s27066_s17  ;;  %v9386_v10 = vmul.f32 %v26052_v0, %v26058_v30  ;;  %v9365_v2 = vld [vmem:[%s27248_s12] sm:$0xff] }
 0xb82   : > { %v26060_v35 = vpop.permute.xlu0 %9570  ;;  %9397 = vrot.lane.b32.xlu1 %v9387_v13, %s27066_s17 }
 0xb83   : > { %v26066_v43 = vpop.permute.xlu1 %9572  ;;  %v9578_v42 = vmul.f32 %v26060_v35, %v26038_v39 }
 0xb84   : > { %v26071_v11 = vsel %vm27052_vm4, %v26060_v35, %v26066_v43  ;;  %v9580_v20 = vmul.f32 %v26066_v43, %v26043_v21  ;;  %vm9899_vm4 = vcmask 146432  }
 0xb85   : > { %9395 = vrot.lane.b32.xlu0 %v9386_v10, %s27066_s17  ;;  %v9579_v19 = vmul.f32 %v26071_v11, %v26058_v30 }
 0xb86   : > { %10242 = vrot.lane.b32.xlu1 %v10237_v57, %s27247_s1  ;;  %v26078_v48 = vpop.permute.xlu0 %9685 }
 0xb87   : > { %v26080_v16 = vpop.permute.xlu1 %9687  ;;  %v9694_v6 = vmul.f32 %v26078_v48, %v26038_v39 }
 0xb88   : > { %v26091_v45 = vsel %vm9689_vm1, %v26078_v48, %v26080_v16  ;;  %v9696_v32 = vmul.f32 %v26080_v16, %v26043_v21 }
 0xb89   : > { %10244 = vrot.lane.b32.xlu0 %v10241_v5, %s27247_s1  ;;  %v9695_v53 = vmul.f32 %v26091_v45, %v26058_v30  ;;  %s27060_s1 = smov 111   ;;  %v20107_v5 = vld [vmem:[%s27248_s12 + $0x10] sm:$0xff] }
 0xb8a   : > { %9588 = vrot.lane.b32.xlu1 %v9579_v19, %s27064_s15  ;;  %v26103_v34 = vpop.permute.xlu0 %9895 }
 0xb8b   : > { %v26105_v15 = vpop.permute.xlu1 %9897  ;;  %v9904_v24 = vmul.f32 %v26103_v34, %v26038_v39 }
 0xb8c   : > { %v26112_v50 = vsel %vm9899_vm4, %v26103_v34, %v26105_v15  ;;  %v9906_v22 = vmul.f32 %v26105_v15, %v26043_v21  ;;  %vm9801_vm4 = vcmask 908288  }
 0xb8d   : > { %9590 = vrot.lane.b32.xlu0 %v9580_v20, %s27064_s15  ;;  %v9905_v58 = vmul.f32 %v26112_v50, %v26058_v30 }
 0xb8e   : > { %9586 = vrot.lane.b32.xlu1 %v9578_v42, %s27064_s15  ;;  %v26116_v62 = vpop.permute.xlu0 %10012 }
 0xb8f   : > { %v26118_v8 = vpop.permute.xlu1 %10014  ;;  %v10020_v7 = vmul.f32 %v26116_v62, %v26038_v39 }
 0xb90   : > { %v26129_v61 = vsel %vm3034_vm5, %v26116_v62, %v26118_v8  ;;  %v10022_v37 = vmul.f32 %v26118_v8, %v26043_v21  ;;  %vm9918_vm5 = vcmask 900096  }
 0xb91   : > { %9704 = vrot.lane.b32.xlu0 %v9695_v53, %s27062_s26  ;;  %v10021_v33 = vmul.f32 %v26129_v61, %v26058_v30 }
 0xb92   : > { %9706 = vrot.lane.b32.xlu1 %v9696_v32, %s27062_s26  ;;  %v26137_v29 = vpop.permute.xlu0 %10127 }
 0xb93   : > { %v26139_v49 = vpop.permute.xlu1 %10129  ;;  %v10135_v14 = vmul.f32 %v26137_v29, %v26038_v39 }
 0xb94   : > { %v26150_v31 = vsel %vm1748_vm0, %v26137_v29, %v26139_v49  ;;  %v10137_v63 = vmul.f32 %v26139_v49, %v26043_v21  ;;  %vm9708_vm0 = vcmask 916480  }
 0xb95   : > { %9702 = vrot.lane.b32.xlu0 %v9694_v6, %s27062_s26  ;;  %v10136_v59 = vmul.f32 %v26150_v31, %v26058_v30 }
 0xb96   : > { %9797 = vrot.lane.b32.xlu1 %v26058_v30, %s27060_s1 }
 0xb99   : > { %9799 = vrot.lane.b32.xlu0 %v26043_v21, %s27060_s1 }
 0xb9a   : > { %9795 = vrot.lane.b32.xlu1 %v26038_v39, %s27060_s1 }
 0xb9d   : > { %9914 = vrot.lane.b32.xlu0 %v9905_v58, %s27057_s16  ;;  %v20111_v58 = vld [vmem:[%s27248_s12 + $0x18] sm:$0xff] }
 0xb9e   : > { %9916 = vrot.lane.b32.xlu1 %v9906_v22, %s27057_s16 }
 0xba1   : > { %9912 = vrot.lane.b32.xlu0 %v9904_v24, %s27057_s16 }
 0xba2   : > { %10030 = vrot.lane.b32.xlu1 %v10021_v33, %s23586_s22 }
 0xba5   : > { %10032 = vrot.lane.b32.xlu0 %v10022_v37, %s23586_s22 }
 0xba6   : > { %10028 = vrot.lane.b32.xlu1 %v10020_v7, %s23586_s22  ;;  %v20115_v7 = vld [vmem:[%s27248_s12 + $0x20] sm:$0xff] }
 0xba9   : > { %10145 = vrot.lane.b32.xlu0 %v10136_v59, %s23587_s8 }
 0xbaa   : > { %10147 = vrot.lane.b32.xlu1 %v10137_v63, %s23587_s8 }
 0xbad   : > { %10143 = vrot.lane.b32.xlu0 %v10135_v14, %s23587_s8 }
 0xbf3   : > { %v9394_v38 = vpop.permute.xlu0 %9393 }
 0xbf4   : > { %v9398_v26 = vpop.permute.xlu1 %9397 }
 0xbf7   : > { %v9396_v51 = vpop.permute.xlu0 %9395 }
 0xbf8   : > { %v9399_v54 = vsel %vm1928_vm9, %v9394_v38, %v9396_v51  ;;  %v26170_v40 = vpop.permute.xlu1 %10242  ;;  %v9400_v1 = vsel %vm1928_vm9, %v9396_v51, %v9398_v26  ;;  %v20119_v38 = vld [vmem:[%s27248_s12 + $0x28] sm:$0xff] }
 0xbf9   : > { %20101 = vmatprep.subr.msk.mxu1 %vm5585_vm2, %v9400_v1 }
 0xbfa   : > { %20102 = vmatpush1.msk.msra.mxu1 %vm5585_vm2, %v9399_v54 }
 0xbfb   : > { %v26180_v56 = vpop.permute.xlu0 %10244  ;;  %20103 = vmatmul.mubr.msk.f32.vlgmr.msra.gmra.mrb[12].mxu1 %vm5581_vm10, %v20100_v55  ;;  %20104 = vmatprep.subr.msk.mxu1 %vm5585_vm2, %v9364_v46  ;;  %v20123_v46 = vld [vmem:[%s27248_s12 + $0x30] sm:$0xff] }
 0xbfc   : > { %v26187_v27 = vsel %vm3804_vm6, %v26170_v40, %v26180_v56  ;;  %v10252_v52 = vmul.f32 %v26180_v56, %v26043_v21  ;;  %20105 = vmatpush1.msk.msra.mxu1 %vm5585_vm2, %v9363_v47  ;;  %v9589_v25 = vpop.permute.xlu1 %9588  ;;  %9552 = vmatprep.mubr.f32.mxu1 %v27212_v41  ;;  %v10250_v21 = vmul.f32 %v26170_v40, %v26038_v39  ;;  %vm10389_vm6 = vcmask 64512  }
 0xbfd   : > { %v10251_v12 = vmul.f32 %v26187_v27, %v26058_v30 }
 0xbfe   : > { %10262 = vrot.lane.b32.xlu0 %v10252_v52, %s23588_s5  ;;  %v20127_v52 = vld [vmem:[%s27248_s12 + $0x38] sm:$0xff] }
 0xbff   : > { %v9591_v17 = vpop.permute.xlu0 %9590  ;;  %10260 = vrot.lane.b32.xlu1 %v10251_v12, %s23588_s5 }
 0xc00   : > { %v9593_v23 = vsel %vm2661_vm11, %v9589_v25, %v9591_v17  ;;  %v9587_v3 = vpop.permute.xlu1 %9586 }
 0xc01   : > { %v9592_v18 = vsel %vm2661_vm11, %v9587_v3, %v9589_v25  ;;  %20108 = vmatprep.subr.msk.mxu1 %vm5585_vm2, %v9593_v23  ;;  %v20131_v23 = vld [vmem:[%s27248_s12 + $0x40] sm:$0xff] }
 0xc02   : > { %10349 = vperm.xlu0 %22305, %v10346_v44  }
 0xc03   : > { %v9705_v13 = vpop.permute.xlu0 %9704  ;;  %20106 = vmatmul.mubr.msk.f32.vlgmr.msra.gmra.mrb[12].mxu1 %vm5581_vm10, %v9365_v2  ;;  %10258 = vrot.lane.b32.xlu1 %v10250_v21, %s23588_s5 }
 0xc04   : > { %20109 = vmatpush1.msk.msra.mxu1 %vm5585_vm2, %v9592_v18  ;;  %v9707_v30 = vpop.permute.xlu1 %9706  ;;  %9665 = vmatprep.mubr.f32.mxu1 %v27212_v41 }
 0xc05   : > { %v9710_v57 = vsel %vm9708_vm0, %v9705_v13, %v9707_v30 }
 0xc06   : > { %20112 = vmatprep.subr.msk.mxu1 %vm5585_vm2, %v9710_v57 }
 0xc07   : > { %v9703_v39 = vpop.permute.xlu0 %9702 }
 0xc08   : > { %v9798_v10 = vpop.permute.xlu1 %9797  ;;  %v9709_v19 = vsel %vm9708_vm0, %v9703_v39, %v9705_v13 }
 0xc0b   : > { %v9800_v20 = vpop.permute.xlu0 %9799  ;;  %20110 = vmatmul.mubr.msk.f32.vlgmr.msra.gmra.mrb[12].mxu1 %vm5581_vm10, %v20107_v5 }
 0xc0c   : > { %v9803_v42 = vsel %vm9801_vm4, %v9798_v10, %v9800_v20  ;;  %20113 = vmatpush1.msk.msra.mxu1 %vm5585_vm2, %v9709_v19  ;;  %v9796_v53 = vpop.permute.xlu1 %9795  ;;  %9782 = vmatprep.mubr.f32.mxu1 %v27212_v41 }
 0xc0d   : > { %20116 = vmatprep.subr.msk.mxu1 %vm5585_vm2, %v9803_v42  ;;  %v9802_v22 = vsel %vm9801_vm4, %v9796_v53, %v9798_v10 }
 0xc0f   : > { %v9915_v32 = vpop.permute.xlu0 %9914 }
 0xc10   : > { %v9917_v6 = vpop.permute.xlu1 %9916 }
 0xc11   : > { %v9920_v33 = vsel %vm9918_vm5, %v9915_v32, %v9917_v6 }
 0xc13   : > { %v9913_v24 = vpop.permute.xlu0 %9912  ;;  %20114 = vmatmul.mubr.msk.f32.vlgmr.msra.gmra.mrb[12].mxu1 %vm5581_vm10, %v20111_v58 }
 0xc14   : > { %20117 = vmatpush1.msk.msra.mxu1 %vm5585_vm2, %v9802_v22  ;;  %9875 = vmatprep.mubr.f32.mxu1 %v27212_v41  ;;  %v10031_v37 = vpop.permute.xlu1 %10030  ;;  %v9919_v63 = vsel %vm9918_vm5, %v9913_v24, %v9915_v32 }
 0xc15   : > { %20120 = vmatprep.subr.msk.mxu1 %vm5585_vm2, %v9920_v33 }
 0xc17   : > { %v10033_v59 = vpop.permute.xlu0 %10032 }
 0xc18   : > { %v10029_v14 = vpop.permute.xlu1 %10028  ;;  %v10035_v9 = vsel %vm3089_vm12, %v10031_v37, %v10033_v59 }
 0xc19   : > { %v10034_v54 = vsel %vm3089_vm12, %v10029_v14, %v10031_v37 }
 0xc1b   : > { %20118 = vmatmul.mubr.msk.f32.vlgmr.msra.gmra.mrb[12].mxu1 %vm5581_vm10, %v20115_v7  ;;  %v10146_v26 = vpop.permute.xlu0 %10145  ;;  %v10375_v7 = vld [vmem:[#allocation9 + $0x8] sm:$0xff] }
 0xc1c   : > { %20121 = vmatpush1.msk.msra.mxu1 %vm5585_vm2, %v9919_v63  ;;  %9992 = vmatprep.mubr.f32.mxu1 %v27212_v41  ;;  %v10148_v51 = vpop.permute.xlu1 %10147 }
 0xc1d   : > { %20124 = vmatprep.subr.msk.mxu1 %vm5585_vm2, %v10035_v9  ;;  %v10150_v1 = vsel %vm3431_vm13, %v10146_v26, %v10148_v51  ;;  %v10370_v51 = vld [vmem:[#allocation9] sm:$0xff] }
 0xc1f   : > { %v10144_v55 = vpop.permute.xlu0 %10143 }
 0xc20   : > { %v10149_v47 = vsel %vm3431_vm13, %v10144_v55, %v10146_v26 }
 0xc23   : > { %20122 = vmatmul.mubr.msk.f32.vlgmr.msra.gmra.mrb[12].mxu1 %vm5581_vm10, %v20119_v38 }
 0xc24   : > { %20125 = vmatpush1.msk.msra.mxu1 %vm5585_vm2, %v10034_v54  ;;  %10107 = vmatprep.mubr.f32.mxu1 %v27212_v41 }
 0xc25   : > { %20128 = vmatprep.subr.msk.mxu1 %vm5585_vm2, %v10150_v1 }
 0xc2b   : > { %20126 = vmatmul.mubr.msk.f32.vlgmr.msra.gmra.mrb[12].mxu1 %vm5581_vm10, %v20123_v46  ;;  %v10542_v46 = vld [vmem:[#allocation9 + $0x10] sm:$0xff] }
 0xc2c   : > { %20129 = vmatpush1.msk.msra.mxu1 %vm5585_vm2, %v10149_v47  ;;  %10222 = vmatprep.mubr.f32.mxu1 %v27212_v41 }
 0xc33   : > { %20130 = vmatmul.mubr.msk.f32.vlgmr.msra.gmra.mrb[12].mxu1 %vm5581_vm10, %v20127_v52 }
 0xc34   : > { %10337 = vmatprep.mubr.f32.mxu1 %v27212_v41 }
 0xc70   : > { %v10263_v25 = vpop.permute.xlu0 %10262 }
 0xc71   : > { %v10261_v12 = vpop.permute.xlu1 %10260 }
 0xc72   : > { %v10265_v17 = vsel %vm3859_vm14, %v10261_v12, %v10263_v25 }
 0xc73   : > { %20132 = vmatprep.subr.msk.mxu1 %vm5585_vm2, %v10265_v17 }
 0xc75   : > { %v10259_v44 = vpop.permute.xlu1 %10258 }
 0xc76   : > { %v10264_v3 = vsel %vm3859_vm14, %v10259_v44, %v10261_v12  ;;  %v10636_v44 = vld [vmem:[#allocation9 + $0x18] sm:$0xff] }
 0xc77   : > { %20133 = vmatpush1.msk.msra.mxu1 %vm5585_vm2, %v10264_v3 }
 0xc78   : > { %20134 = vmatmul.mubr.msk.f32.vlgmr.msra.gmra.mrb[12].mxu1 %vm5581_vm10, %v20131_v23 }
 0xc79   : > { %10457 = vmatprep.mubr.f32.mxu1 %v27212_v41 }
 0xc81   : > { %v10350_v2 = vpop.permute.xlu0 %10349 }
 0xd4b   : > { %v10339_v21 = vpop.f32.mrb[12].mxu1 }
 0xd4c   : > { %v10352_v18 = vadd.f32 %v10350_v2, %v10339_v21  ;;  %v10341_v13 = vpop.f32.mrb[13].mxu1 }
 0xd4d   : > { %v10353_v30 = vadd.f32 %v10350_v2, %v10341_v13  ;;  %v10727_v13 = vld [vmem:[#allocation9 + $0x20] sm:$0xff] }
 0xd4e   : > { %v10354_v57 = vmax.f32 %v10352_v18, 0.0 }
 0xd4f   : > { %v10355_v39 = vmax.f32 %v10353_v30, 0.0 }
 0xd50   : > { %10358 = vrot.lane.b32.xlu1 %v10354_v57, %s23592_s3 }
 0xd51   : > { %10360 = vrot.lane.b32.xlu0 %v10355_v39, %s23592_s3 }
 0xdc2   : > { %v10359_v10 = vpop.permute.xlu1 %10358 }
 0xdc3   : > { %v10361_v5 = vpop.permute.xlu0 %10360  ;;  %v10366_v32 = vsel %vm9344_vm8, 0.0, %v10359_v10 }
 0xdc4   : > { %v10362_v19 = vsel %vm9344_vm8, %v10359_v10, %v10361_v5  ;;  %v10367_v20 = vsel %vm9344_vm8, %v10361_v5, 0.0  ;;  %v10371_v58 = vmul.f32 %v10366_v32, %v26040_v60  ;;  %v10538_v22 = vmul.f32 %v10366_v32, %v26060_v35  ;;  %v10820_v5 = vld [vmem:[#allocation9 + $0x28] sm:$0xff] }
 0xdc5   : > { %v10373_v42 = vmul.f32 %v10367_v20, %v26047_v36  ;;  %v10372_v53 = vmul.f32 %v10362_v19, %v26052_v0  ;;  %v10539_v6 = vmul.f32 %v10362_v19, %v26071_v11  ;;  %v10540_v36 = vmul.f32 %v10367_v20, %v26066_v43 }
 0xdc6   : > { %v10634_v0 = vmul.f32 %v10367_v20, %v26080_v16  ;;  %v10633_v24 = vmul.f32 %v10362_v19, %v26091_v45  ;;  %v10632_v60 = vmul.f32 %v10366_v32, %v26078_v48  ;;  %v10818_v35 = vmul.f32 %v10367_v20, %v26105_v15 }
 0xdc7   : > { %10383 = vrot.lane.b32.xlu0 %v10373_v42, %s27066_s17  ;;  %10381 = vrot.lane.b32.xlu1 %v10372_v53, %s27066_s17  ;;  %v10817_v43 = vmul.f32 %v10362_v19, %v26112_v50  ;;  %v10911_v11 = vmul.f32 %v10362_v19, %v26129_v61  ;;  %v10816_v48 = vmul.f32 %v10366_v32, %v26103_v34  ;;  %vm16377_vm8 = vcmask 97280  }
 0xdc8   : > { %v10910_v16 = vmul.f32 %v10366_v32, %v26116_v62  ;;  %v10912_v45 = vmul.f32 %v10367_v20, %v26118_v8  ;;  %v11006_v15 = vmul.f32 %v10367_v20, %v26139_v49  ;;  %v11005_v50 = vmul.f32 %v10362_v19, %v26150_v31  ;;  %v11192_v49 = vld [vmem:[#allocation10] sm:$0xff] }
 0xdc9   : > { %v11099_v34 = vmul.f32 %v10362_v19, %v26187_v27  ;;  %v11004_v61 = vmul.f32 %v10366_v32, %v26137_v29  ;;  %v11098_v62 = vmul.f32 %v10366_v32, %v26170_v40  ;;  %v11100_v8 = vmul.f32 %v10367_v20, %v26180_v56 }
 0xdca   : > { %v10369_v40 = vmul.f32 %v10362_v19, %v26164_v28  ;;  %v10368_v56 = vmul.f32 %v10366_v32, %v26167_v4 }
 0xdcb   : > { %10548 = vrot.lane.b32.xlu0 %v10539_v6, %s27064_s15  ;;  %10379 = vrot.lane.b32.xlu1 %v10371_v58, %s27066_s17 }
 0xdcf   : > { %10546 = vrot.lane.b32.xlu0 %v10538_v22, %s27064_s15  ;;  %10550 = vrot.lane.b32.xlu1 %v10540_v36, %s27064_s15  ;;  %s27253_s15 = smov 2  }
 0xdd3   : > { %10644 = vrot.lane.b32.xlu0 %v10634_v0, %s27062_s26  ;;  %10642 = vrot.lane.b32.xlu1 %v10633_v24, %s27062_s26  ;;  %v11008_v24 = vld [vmem:[#allocation9 + $0x38] sm:$0xff] }
 0xdd7   : > { %10732 = vrot.lane.b32.xlu0 %v10362_v19, %s27060_s1  ;;  %10640 = vrot.lane.b32.xlu1 %v10632_v60, %s27062_s26 }
 0xddb   : > { %10730 = vrot.lane.b32.xlu0 %v10366_v32, %s27060_s1  ;;  %10734 = vrot.lane.b32.xlu1 %v10367_v20, %s27060_s1  ;;  %v10914_v32 = vld [vmem:[#allocation9 + $0x30] sm:$0xff] }
 0xddf   : > { %10828 = vrot.lane.b32.xlu0 %v10818_v35, %s27057_s16  ;;  %10826 = vrot.lane.b32.xlu1 %v10817_v43, %s27057_s16  ;;  %v11102_v35 = vld [vmem:[#allocation9 + $0x40] sm:$0xff] }
 0xde3   : > { %10920 = vrot.lane.b32.xlu0 %v10911_v11, %s23586_s22  ;;  %10824 = vrot.lane.b32.xlu1 %v10816_v48, %s27057_s16  ;;  %s27252_s16 = smov 18  }
 0xde7   : > { %10918 = vrot.lane.b32.xlu0 %v10910_v16, %s23586_s22  ;;  %10922 = vrot.lane.b32.xlu1 %v10912_v45, %s23586_s22  ;;  %s27249_s22 = sld [smem:[#allocation91_spill]] }
 0xdeb   : > { %11016 = vrot.lane.b32.xlu0 %v11006_v15, %s23587_s8  ;;  %11014 = vrot.lane.b32.xlu1 %v11005_v50, %s23587_s8 }
 0xded   : > { %v11242_v15 = vld [vmem:[%s27249_s22 + $0x80] sm:$0xff]  ;;  %v11243_v50 = vld [vmem:[%s27249_s22 + $0x88] sm:$0xff] }
 0xdef   : > { %11108 = vrot.lane.b32.xlu0 %v11099_v34, %s23588_s5  ;;  %11012 = vrot.lane.b32.xlu1 %v11004_v61, %s23587_s8  ;;  %v11226_v34 = vld [vmem:[%s27249_s22] sm:$0xff]  ;;  %s27059_s8 = smov 8  }
 0xdf3   : > { %11106 = vrot.lane.b32.xlu0 %v11098_v62, %s23588_s5  ;;  %11110 = vrot.lane.b32.xlu1 %v11100_v8, %s23588_s5  ;;  %v21409_v62 = vpack.c.bf16 %v11243_v50, %v11242_v15  ;;  %v11227_v8 = vld [vmem:[%s27249_s22 + $0x8] sm:$0xff]  ;;  %s27250_s5 = sld [smem:[#allocation95_spill]] }
 0xdf7   : > { %11195 = vperm.xlu1 %22341, %v11192_v49   ;;  %v11244_v49 = vld [vmem:[%s27249_s22 + $0x90] sm:$0xff] }
 0xe39   : > { %v10384_v31 = vpop.permute.xlu0 %10383  ;;  %v10382_v33 = vpop.permute.xlu1 %10381 }
 0xe3a   : > { %v10386_v27 = vsel %vm1928_vm9, %v10382_v33, %v10384_v31  ;;  %v11245_v31 = vld [vmem:[%s27249_s22 + $0x98] sm:$0xff] }
 0xe3b   : > { %10393 = vmatprep.subr.mxu1 %v10386_v27  ;;  %v21411_v27 = vpack.c.bf16 %v11227_v8, %v11226_v34  ;;  %v20155_v8 = vld [vmem:[#allocation42 + $0x6] ss:$0 sm:$0xff] }
 0xe3d   : > { %v10549_v29 = vpop.permute.xlu0 %10548  ;;  %v10380_v37 = vpop.permute.xlu1 %10379 }
 0xe3e   : > { %v10385_v59 = vsel %vm1928_vm9, %v10380_v37, %v10382_v33  ;;  %v11228_v37 = vld [vmem:[%s27249_s22 + $0x10] sm:$0xff] }
 0xe3f   : > { %10394 = vmatpush1.msra.mxu1 %v10385_v59  ;;  %v11246_v59 = vld [vmem:[%s27249_s22 + $0xa0] sm:$0xff] }
 0xe40   : > { %20135 = vmatmul.mubr.msk.f32.vlgmr.msra.gmra.mrb[14].mxu1 %vm10389_vm6, %v10375_v7  ;;  %10467 = vmatprep.subr.mxu1 %v10369_v40  ;;  %v11229_v7 = vld [vmem:[%s27249_s22 + $0x18] sm:$0xff]  ;;  %v11247_v40 = vld [vmem:[%s27249_s22 + $0xa8] sm:$0xff] }
 0xe41   : > { %v10547_v63 = vpop.permute.xlu0 %10546  ;;  %v10551_v14 = vpop.permute.xlu1 %10550  ;;  %10468 = vmatpush1.msra.mxu1 %v10368_v56  ;;  %10531 = vmatprep.mubr.f32.mxu1 %v27212_v41 }
 0xe42   : > { %v10553_v9 = vsel %vm2661_vm11, %v10549_v29, %v10551_v14  ;;  %v10552_v54 = vsel %vm2661_vm11, %v10547_v63, %v10549_v29  ;;  %v21413_v29 = vpack.c.bf16 %v11245_v31, %v11244_v49  ;;  %v21415_v63 = vpack.c.bf16 %v11229_v7, %v11228_v37  ;;  %v20159_v49 = vld [vmem:[#allocation42 + $0x8] ss:$0 sm:$0xff]  ;;  %v20153_v37 = vld [vmem:[#allocation42 + $0x5] ss:$0 sm:$0xff]  ;;  %v20157_v7 = vld [vmem:[#allocation42 + $0x7] ss:$0 sm:$0xff] }
 0xe43   : > { %10559 = vmatprep.subr.mxu1 %v10553_v9  ;;  %v21417_v14 = vpack.c.bf16 %v11247_v40, %v11246_v59  ;;  %v11230_v9 = vld [vmem:[%s27249_s22 + $0x20] sm:$0xff]  ;;  %vm11333_vm11 = vcmask 72704  }
 0xe45   : > { %v10645_v38 = vpop.permute.xlu0 %10644  ;;  %v10643_v26 = vpop.permute.xlu1 %10642 }
 0xe46   : > { %v10647_v1 = vsel %vm9708_vm0, %v10643_v26, %v10645_v38  ;;  %v11231_v38 = vld [vmem:[%s27249_s22 + $0x28] sm:$0xff] }
 0xe48   : > { %20136 = vmatmul.mubr.msk.f32.vlgmr.msra.gmra.mrb[14].mxu1 %vm10389_vm6, %v10370_v51  ;;  %v11249_v51 = vld [vmem:[%s27249_s22 + $0xb8] sm:$0xff] }
 0xe49   : > { %10560 = vmatpush1.msra.mxu1 %v10552_v54  ;;  %v10733_v28 = vpop.permute.xlu0 %10732  ;;  %v10641_v4 = vpop.permute.xlu1 %10640  ;;  %10623 = vmatprep.mubr.f32.mxu1 %v27212_v41  ;;  %v21419_v54 = vpack.c.bf16 %v11231_v38, %v11230_v9 }
 0xe4a   : > { %10653 = vmatprep.subr.mxu1 %v10647_v1  ;;  %v10646_v52 = vsel %vm9708_vm0, %v10641_v4, %v10643_v26  ;;  %v11248_v26 = vld [vmem:[%s27249_s22 + $0xb0] sm:$0xff]  ;;  %v11233_v1 = vld [vmem:[%s27249_s22 + $0x38] sm:$0xff] }
 0xe4b   : > { %v11232_v4 = vld [vmem:[%s27249_s22 + $0x30] sm:$0xff] }
 0xe4d   : > { %v10735_v55 = vpop.permute.xlu1 %10734  ;;  %v10731_v47 = vpop.permute.xlu0 %10730 }
 0xe4e   : > { %v10737_v12 = vsel %vm9801_vm4, %v10733_v28, %v10735_v55  ;;  %v10736_v3 = vsel %vm9801_vm4, %v10731_v47, %v10733_v28  ;;  %v21421_v28 = vpack.c.bf16 %v11249_v51, %v11248_v26  ;;  %v11250_v55 = vld [vmem:[%s27249_s22 + $0xc0] sm:$0xff]  ;;  %v21423_v47 = vpack.c.bf16 %v11233_v1, %v11232_v4 }
 0xe50   : > { %20137 = vmatmul.mubr.msk.f32.vlgmr.msra.gmra.mrb[14].mxu1 %vm10389_vm6, %v10542_v46  ;;  %v11251_v46 = vld [vmem:[%s27249_s22 + $0xc8] sm:$0xff] }
 0xe51   : > { %10654 = vmatpush1.msra.mxu1 %v10646_v52  ;;  %v10827_v25 = vpop.permute.xlu1 %10826  ;;  %10717 = vmatprep.mubr.f32.mxu1 %v27212_v41  ;;  %v10829_v17 = vpop.permute.xlu0 %10828  ;;  %v21425_v52 = vpack.c.bf16 %v11251_v46, %v11250_v55 }
 0xe52   : > { %10743 = vmatprep.subr.mxu1 %v10737_v12  ;;  %v10831_v2 = vsel %vm9918_vm5, %v10827_v25, %v10829_v17  ;;  %v11235_v12 = vld [vmem:[%s27249_s22 + $0x48] sm:$0xff]  ;;  %v11252_v17 = vld [vmem:[%s27249_s22 + $0xd0] sm:$0xff] }
 0xe55   : > { %v10825_v23 = vpop.permute.xlu1 %10824  ;;  %v10921_v21 = vpop.permute.xlu0 %10920 }
 0xe56   : > { %v10830_v30 = vsel %vm9918_vm5, %v10825_v23, %v10827_v25  ;;  %v11234_v25 = vld [vmem:[%s27249_s22 + $0x40] sm:$0xff] }
 0xe57   : > { %v21427_v23 = vpack.c.bf16 %v11235_v12, %v11234_v25  ;;  %v12126_v25 = vld [vmem:[#allocation13] sm:$0xff]  ;;  %v26436_v12 = vld [vmem:[#allocation42] ss:$0 sm:$0xff] }
 0xe58   : > { %20138 = vmatmul.mubr.msk.f32.vlgmr.msra.gmra.mrb[14].mxu1 %vm10389_vm6, %v10636_v44  ;;  %v11253_v44 = vld [vmem:[%s27249_s22 + $0xd8] sm:$0xff] }
 0xe59   : > { %10744 = vmatpush1.msra.mxu1 %v10736_v3  ;;  %10807 = vmatprep.mubr.f32.mxu1 %v27212_v41  ;;  %v10923_v18 = vpop.permute.xlu1 %10922  ;;  %v10919_v57 = vpop.permute.xlu0 %10918  ;;  %v21429_v3 = vpack.c.bf16 %v11253_v44, %v11252_v17  ;;  %v11355_v17 = vld [vmem:[#allocation12 + $0x8] sm:$0xff] }
 0xe5a   : > { %10837 = vmatprep.subr.mxu1 %v10831_v2  ;;  %v10925_v39 = vsel %vm3089_vm12, %v10921_v21, %v10923_v18  ;;  %v10924_v20 = vsel %vm3089_vm12, %v10919_v57, %v10921_v21  ;;  %v11236_v2 = vld [vmem:[%s27249_s22 + $0x50] sm:$0xff]  ;;  %v11237_v21 = vld [vmem:[%s27249_s22 + $0x58] sm:$0xff]  ;;  %v11254_v18 = vld [vmem:[%s27249_s22 + $0xe0] sm:$0xff]  ;;  %vm11335_vm12 = vcmask 596992  }
 0xe5d   : > { %v11015_v10 = vpop.permute.xlu1 %11014  ;;  %v11017_v19 = vpop.permute.xlu0 %11016 }
 0xe5e   : > { %v11019_v53 = vsel %vm3431_vm13, %v11015_v10, %v11017_v19  ;;  %v11256_v19 = vld [vmem:[%s27249_s22 + $0xf0] sm:$0xff] }
 0xe60   : > { %20139 = vmatmul.mubr.msk.f32.vlgmr.msra.gmra.mrb[14].mxu1 %vm10389_vm6, %v10727_v13  ;;  %v11255_v13 = vld [vmem:[%s27249_s22 + $0xe8] sm:$0xff] }
 0xe61   : > { %10838 = vmatpush1.msra.mxu1 %v10830_v30  ;;  %10901 = vmatprep.mubr.f32.mxu1 %v27212_v41  ;;  %v11013_v42 = vpop.permute.xlu1 %11012  ;;  %v11109_v58 = vpop.permute.xlu0 %11108  ;;  %v21431_v30 = vpack.c.bf16 %v11237_v21, %v11236_v2  ;;  %v21433_v57 = vpack.c.bf16 %v11255_v13, %v11254_v18  ;;  %v11517_v21 = vld [vmem:[#allocation12 + $0x10] sm:$0xff]  ;;  %v11607_v13 = vld [vmem:[#allocation12 + $0x18] sm:$0xff] }
 0xe62   : > { %10931 = vmatprep.subr.mxu1 %v10925_v39  ;;  %v11018_v22 = vsel %vm3431_vm13, %v11013_v42, %v11015_v10  ;;  %v11238_v39 = vld [vmem:[%s27249_s22 + $0x60] sm:$0xff]  ;;  %v11239_v10 = vld [vmem:[%s27249_s22 + $0x68] sm:$0xff]  ;;  %v11240_v42 = vld [vmem:[%s27249_s22 + $0x70] sm:$0xff]  ;;  %vm13614_vm13 = vcmask 457728  }
 0xe65   : > { %v11111_v6 = vpop.permute.xlu1 %11110  ;;  %v11107_v0 = vpop.permute.xlu0 %11106 }
 0xe66   : > { %v11113_v36 = vsel %vm3859_vm14, %v11109_v58, %v11111_v6  ;;  %v11112_v60 = vsel %vm3859_vm14, %v11107_v0, %v11109_v58  ;;  %vm13705_vm14 = vcmask 171008  }
 0xe68   : > { %20140 = vmatmul.mubr.msk.f32.vlgmr.msra.gmra.mrb[14].mxu1 %vm10389_vm6, %v10820_v5  ;;  %v21435_v5 = vpack.c.bf16 %v11239_v10, %v11238_v39  ;;  %v11777_v10 = vld [vmem:[#allocation12 + $0x28] sm:$0xff] }
 0xe69   : > { %10932 = vmatpush1.msra.mxu1 %v10924_v20  ;;  %10995 = vmatprep.mubr.f32.mxu1 %v27212_v41  ;;  %v11257_v20 = vld [vmem:[%s27249_s22 + $0xf8] sm:$0xff] }
 0xe6a   : > { %11025 = vmatprep.subr.mxu1 %v11019_v53  ;;  %v21437_v53 = vpack.c.bf16 %v11257_v20, %v11256_v19  ;;  %v11867_v19 = vld [vmem:[#allocation12 + $0x30] sm:$0xff] }
 0xe70   : > { %20141 = vmatmul.mubr.msk.f32.vlgmr.msra.gmra.mrb[14].mxu1 %vm10389_vm6, %v10914_v32  ;;  %v11241_v32 = vld [vmem:[%s27249_s22 + $0x78] sm:$0xff] }
 0xe71   : > { %11026 = vmatpush1.msra.mxu1 %v11018_v22  ;;  %11089 = vmatprep.mubr.f32.mxu1 %v27212_v41  ;;  %v21439_v6 = vpack.c.bf16 %v11241_v32, %v11240_v42  ;;  %v11957_v42 = vld [vmem:[#allocation12 + $0x38] sm:$0xff]  ;;  %v12047_v32 = vld [vmem:[#allocation12 + $0x40] sm:$0xff] }
 0xe72   : > { %11119 = vmatprep.subr.mxu1 %v11113_v36 }
 0xe76   : > { %v11196_v43 = vpop.permute.xlu1 %11195 }
 0xe78   : > { %20142 = vmatmul.mubr.msk.f32.vlgmr.msra.gmra.mrb[14].mxu1 %vm10389_vm6, %v11008_v24 }
 0xe79   : > { %11120 = vmatpush1.msra.mxu1 %v11112_v60  ;;  %11183 = vmatprep.mubr.f32.mxu1 %v27212_v41 }
 0xe7a   : > { %21410 = vmatprep.subr.bf16.mxu1 %v21409_v62 }
 0xe80   : > { %20143 = vmatmul.mubr.msk.f32.vlgmr.msra.gmra.mrb[14].mxu1 %vm10389_vm6, %v11102_v35 }
 0xe81   : > { %21412 = vmatpush3.bf16.msra.mxu1 %v21411_v27 }
 0xe82   : > { %21414 = vmatprep.subr.bf16.mxu1 %v21413_v29  ;;  %v20148_v29 = vld [vmem:[#allocation42 + $0x2] ss:$0 sm:$0xff] }
 0xe85   : > { %21416 = vmatpush3.bf16.msra.mxu1 %v21415_v63 }
 0xe86   : > { %21418 = vmatprep.subr.bf16.mxu1 %v21417_v14 }
 0xe89   : > { %21420 = vmatpush3.bf16.msra.mxu1 %v21419_v54 }
 0xe8a   : > { %21422 = vmatprep.subr.bf16.mxu1 %v21421_v28 }
 0xe8d   : > { %21424 = vmatpush3.bf16.msra.mxu1 %v21423_v47 }
 0xe8e   : > { %21426 = vmatprep.subr.bf16.mxu1 %v21425_v52 }
 0xe91   : > { %21428 = vmatpush3.bf16.msra.mxu1 %v21427_v23 }
 0xe92   : > { %21430 = vmatprep.subr.bf16.mxu1 %v21429_v3  ;;  %v11343_v3 = vld [vmem:[#allocation12] sm:$0xff] }
 0xe95   : > { %21432 = vmatpush3.bf16.msra.mxu1 %v21431_v30 }
 0xe96   : > { %21434 = vmatprep.subr.bf16.mxu1 %v21433_v57  ;;  %v11687_v57 = vld [vmem:[#allocation12 + $0x20] sm:$0xff] }
 0xe99   : > { %21436 = vmatpush3.bf16.msra.mxu1 %v21435_v5 }
 0xe9a   : > { %21438 = vmatprep.subr.bf16.mxu1 %v21437_v53 }
 0xe9d   : > { %21440 = vmatpush3.bf16.msra.mxu1 %v21439_v6 }
 0xe9e   : > { %20627 = vmatprep.subr.mxu1 %v27212_v41 }
 0xf53   : > { %v11185_v11 = vpop.f32.mrb[14].mxu1 }
 0xf54   : > { %v26337_v48 = vadd.f32 %v11196_v43, %v11185_v11  ;;  %v11187_v16 = vpop.f32.mrb[15].mxu1  ;;  %v20145_v11 = vld [vmem:[#allocation42 + $0x1] ss:$0 sm:$0xff] }
 0xf55   : > { %v26339_v45 = vadd.f32 %v11196_v43, %v11187_v16  ;;  %v20150_v16 = vld [vmem:[#allocation42 + $0x3] ss:$0 sm:$0xff] }
 0xf56   : > { %v11200_v61 = vmax.f32 %v26337_v48, 0.0 }
 0xf57   : > { %v11201_v33 = vmax.f32 %v26339_v45, 0.0 }
 0xf59   : > { %v22342_v56 = vpack.i.bf16 %v11200_v61, %v11201_v33 }
 0xf5b   : > { %22343 = vrot.lane.b32.xlu0 %v22342_v56, %s27066_s17  ;;  %s27068_s17 = smov 10  }
 0xfcd   : > { %v22344_v58 = vpop.permute.xlu0 %22343 }
 0xfce   : > { %v22346_v22 = vunpack.i.h.bf16 %v22344_v58  ;;  %v22345_v36 = vunpack.i.l.bf16 %v22344_v58 }
 0xfd0   : > { %v11208_v0 = vsel %vm1928_vm9, %v22346_v22, %v22345_v36  ;;  %v11211_v24 = vsel %vm1928_vm9, %v22345_v36, 0.0  ;;  %vm23601_vm9 = vmmov 0  }
 0xfd1   : > { %v11212_v60 = vmax.f32 %v11200_v61, %v11208_v0  ;;  %v11213_v35 = vmax.f32 %v11201_v33, %v11211_v24 }
 0xfd3   : > { %v22347_v43 = vpack.i.bf16 %v11212_v60, %v11213_v35 }
 0xfd5   : > { %22348 = vrot.lane.b32.xlu1 %v22347_v43, %s27062_s26  ;;  %s27074_s26 = smov 9  }
 0xfd9   : > { %11350 = vrot.lane.b32.xlu1 %v20145_v11, %s27055_s18  ;;  %s27251_s18 = smov 16  }
 0xfdd   : > { %11602 = vrot.lane.b32.xlu1 %v20150_v16, %s27059_s8  ;;  %s27069_s8 = sshll.u32 %s27275_s11, 3 }
 0xfde   : > { %s1700_s1 = scalar_lea.vmem %s27250_s5, %s27069_s8  ;;  %s27072_s5 = smov 118  }
 0xfdf   : > { %s27257_s8 = smov 111  }
 0xfe1   : > { %11862 = vrot.lane.b32.xlu1 %v20155_v8, %s27251_s18  ;;  %s27254_s18 = smov 127  }
 0xfe5   : > { %12042 = vrot.lane.b32.xlu1 %v20159_v49, %s27252_s16  ;;  %s27070_s16 = smov 120  }
0x1047   : > { %v22349_v15 = vpop.permute.xlu1 %22348 }
0x1048   : > { %v22351_v50 = vunpack.i.h.bf16 %v22349_v15  ;;  %v22350_v48 = vunpack.i.l.bf16 %v22349_v15 }
0x104a   : > { %v11220_v34 = vsel %vm9708_vm0, %v22351_v50, %v22350_v48  ;;  %v11223_v45 = vsel %vm9708_vm0, %v22350_v48, 0.0  ;;  %vm16475_vm0 = vcmask 56320  }
0x104b   : > { %v11225_v61 = vmax.f32 %v11213_v35, %v11223_v45  ;;  %v11224_v62 = vmax.f32 %v11212_v60, %v11220_v34  ;;  %v26405_v59 = vpop.permute.xlu1 %11350 }
0x104d   : > { %11322 = vmatprep.mubr.f32.mxu1 %v11225_v61 }
0x104e   : > { %11323 = vmatmul.mubr.f32.vlgmr.msra.gmra.mrb[16].mxu1 %v11224_v62 }
0x104f   : > { %20629 = vmatprep.mubr.msk.f32.mxu1 %vm23601_vm9, %v27212_v41  ;;  %v26408_v63 = vpop.permute.xlu1 %11602 }
0x1053   : > { %v26418_v54 = vpop.permute.xlu1 %11862 }
0x1057   : > { %v26429_v46 = vpop.permute.xlu1 %12042 }
0x1121   : > { %v20347_v31 = vpop.f32.mrb[16].mxu1 }
0x1122   : > { %v20348_v33 = vpop.f32.mrb[17].mxu1 }
0x1123   : > { %v20349_v27 = vadd.f32 %v20348_v33, %v20347_v31 }
0x1125   : > { %11328 = vst.msk [vmem:[%s1700_s1] sm:$0xff] %vm4232_vm7, %v20349_v27  ;;  %11330 = vrot.lane.b32.xlu0 %v20349_v27, %s27074_s26  ;;  %s27076_s1 = smov 119  }
0x1129   : > { %11512 = vrot.lane.b32.xlu0 %v20148_v29, %s27253_s15 }
0x112d   : > { %11772 = vrot.lane.b32.xlu0 %v20153_v37, %s27068_s17  ;;  %s27256_s17 = smov 112  }
0x1131   : > { %11952 = vrot.lane.b32.xlu0 %v20157_v7, %s23592_s3  ;;  %s27255_s3 = smov 126  }
0x1197   : > { %v11331_v40 = vpop.permute.xlu0 %11330 }
0x1198   : > { %v11334_v56 = vsel %vm11333_vm11, 0.0, %v11331_v40 }
0x1199   : > { %v11336_v14 = vsel %vm11335_vm12, %v11334_v56, 0.0 }
0x119a   : > { %v11353_v9 = vmul.f32 %v26405_v59, %v11336_v14  ;;  %v11605_v51 = vmul.f32 %v26408_v63, %v11336_v14  ;;  %v11865_v55 = vmul.f32 %v26418_v54, %v11336_v14  ;;  %v12045_v52 = vmul.f32 %v26429_v46, %v11336_v14 }
0x119b   : > { %v26412_v38 = vpop.permute.xlu0 %11512  ;;  %v11342_v23 = vmul.f32 %v26436_v12, %v11336_v14 }
0x119c   : > { %v11515_v26 = vmul.f32 %v26412_v38, %v11336_v14  ;;  %11357 = vrot.lane.b32.xlu0 %v11353_v9, %s27254_s18 }
0x119e   : > { %11519 = vrot.lane.b32.xlu1 %v11515_v26, %s27255_s3 }
0x119f   : > { %v26420_v28 = vpop.permute.xlu0 %11772 }
0x11a0   : > { %11609 = vrot.lane.b32.xlu0 %v11605_v51, %s27070_s16  ;;  %v11775_v4 = vmul.f32 %v26420_v28, %v11336_v14  ;;  %s27258_s16 = smov 110  }
0x11a2   : > { %11689 = vrot.lane.b32.xlu1 %v11336_v14, %s27076_s1 }
0x11a3   : > { %v26425_v1 = vpop.permute.xlu0 %11952 }
0x11a4   : > { %11779 = vrot.lane.b32.xlu0 %v11775_v4, %s27072_s5  ;;  %v11955_v47 = vmul.f32 %v26425_v1, %v11336_v14  ;;  %s27259_s5 = smov 120  }
0x11a6   : > { %11869 = vrot.lane.b32.xlu1 %v11865_v55, %s27256_s17 }
0x11a8   : > { %11959 = vrot.lane.b32.xlu0 %v11955_v47, %s27257_s8 }
0x11aa   : > { %12049 = vrot.lane.b32.xlu1 %v12045_v52, %s27258_s16 }
0x11ac   : > { %12129 = vperm.xlu0 %22305, %v12126_v25  }
0x120e   : > { %v11358_v44 = vpop.permute.xlu0 %11357 }
0x120f   : > { %20628 = vmatpush3.msra.mxu1 %v11358_v44 }
0x1210   : > { %20630 = vmatmul.mubr.msk.f32.vlgmr.msra.gmra.mrb[18].mxu1 %vm10389_vm6, %v11355_v17  ;;  %20632 = vmatprep.subr.mxu1 %v27212_v41  ;;  %v11520_v2 = vpop.permute.xlu1 %11519 }
0x1211   : > { %20633 = vmatpush3.msra.mxu1 %v11342_v23  ;;  %20634 = vmatprep.mubr.msk.f32.mxu1 %vm23601_vm9, %v27212_v41  ;;  %v12861_v23 = vld [vmem:[#allocation16] sm:$0xff] }
0x1212   : > { %20637 = vmatprep.subr.mxu1 %v27212_v41  ;;  %v11610_v18 = vpop.permute.xlu0 %11609 }
0x1214   : > { %20635 = vmatmul.mubr.msk.f32.vlgmr.msra.gmra.mrb[20].mxu1 %vm10389_vm6, %v11343_v3  ;;  %v11690_v30 = vpop.permute.xlu1 %11689  ;;  %v12144_v3 = vld [vmem:[#allocation15 + $0x8] sm:$0xff] }
0x1215   : > { %20638 = vmatpush3.msra.mxu1 %v11520_v2  ;;  %20639 = vmatprep.mubr.msk.f32.mxu1 %vm23601_vm9, %v27212_v41 }
0x1216   : > { %20642 = vmatprep.subr.mxu1 %v27212_v41  ;;  %v11780_v39 = vpop.permute.xlu0 %11779 }
0x1218   : > { %20640 = vmatmul.mubr.msk.f32.vlgmr.msra.gmra.mrb[22].mxu1 %vm10389_vm6, %v11517_v21  ;;  %v11870_v5 = vpop.permute.xlu1 %11869 }
0x1219   : > { %20643 = vmatpush3.msra.mxu1 %v11610_v18  ;;  %20644 = vmatprep.mubr.msk.f32.mxu1 %vm23601_vm9, %v27212_v41  ;;  %v12141_v18 = vld [vmem:[#allocation15] sm:$0xff] }
0x121a   : > { %20647 = vmatprep.subr.mxu1 %v27212_v41  ;;  %v11960_v20 = vpop.permute.xlu0 %11959 }
0x121c   : > { %20645 = vmatmul.mubr.msk.f32.vlgmr.msra.gmra.mrb[24].mxu1 %vm10389_vm6, %v11607_v13  ;;  %v12050_v53 = vpop.permute.xlu1 %12049 }
0x121d   : > { %20648 = vmatpush3.msra.mxu1 %v11690_v30  ;;  %20649 = vmatprep.mubr.msk.f32.mxu1 %vm23601_vm9, %v27212_v41  ;;  %v12297_v30 = vld [vmem:[#allocation15 + $0x10] sm:$0xff] }
0x121e   : > { %20652 = vmatprep.subr.mxu1 %v27212_v41 }
0x1220   : > { %20650 = vmatmul.mubr.msk.f32.vlgmr.msra.gmra.mrb[26].mxu1 %vm10389_vm6, %v11687_v57 }
0x1221   : > { %20653 = vmatpush3.msra.mxu1 %v11780_v39  ;;  %20654 = vmatprep.mubr.msk.f32.mxu1 %vm23601_vm9, %v27212_v41  ;;  %v12378_v39 = vld [vmem:[#allocation15 + $0x18] sm:$0xff] }
0x1222   : > { %20657 = vmatprep.subr.mxu1 %v27212_v41 }
0x1224   : > { %20655 = vmatmul.mubr.msk.f32.vlgmr.msra.gmra.mrb[28].mxu1 %vm10389_vm6, %v11777_v10 }
0x1225   : > { %20658 = vmatpush3.msra.mxu1 %v11870_v5  ;;  %20659 = vmatprep.mubr.msk.f32.mxu1 %vm23601_vm9, %v27212_v41  ;;  %v12458_v5 = vld [vmem:[#allocation15 + $0x20] sm:$0xff] }
0x1226   : > { %20662 = vmatprep.subr.mxu1 %v27212_v41 }
0x1228   : > { %20660 = vmatmul.mubr.msk.f32.vlgmr.msra.gmra.mrb[30].mxu1 %vm10389_vm6, %v11867_v19 }
0x1229   : > { %20663 = vmatpush3.msra.mxu1 %v11960_v20  ;;  %20664 = vmatprep.mubr.msk.f32.mxu1 %vm23601_vm9, %v27212_v41  ;;  %v12539_v20 = vld [vmem:[#allocation15 + $0x28] sm:$0xff] }
0x122a   : > { %20667 = vmatprep.subr.mxu1 %v27212_v41 }
0x122b   : > { %v12130_v40 = vpop.permute.xlu0 %12129 }
0x122c   : > { %20665 = vmatmul.mubr.msk.f32.vlgmr.msra.gmra.mrb[32].mxu1 %vm10389_vm6, %v11957_v42 }
0x122d   : > { %20668 = vmatpush3.msra.mxu1 %v12050_v53  ;;  %20669 = vmatprep.mubr.msk.f32.mxu1 %vm23601_vm9, %v27212_v41  ;;  %v12620_v53 = vld [vmem:[#allocation15 + $0x30] sm:$0xff] }
0x122e   : > { %20672 = vmatprep.subr.mxu1 %v27212_v41 }
0x1230   : > { %20670 = vmatmul.mubr.msk.f32.vlgmr.msra.gmra.mrb[34].mxu1 %vm10389_vm6, %v12047_v32 }
0x1231   : > { %20674 = vmatprep.mubr.msk.f32.mxu1 %vm23601_vm9, %v27212_v41 }
0x12e3   : > { %v11429_v6 = vpop.f32.mrb[18].mxu1 }
0x12e4   : > { %v20631_v58 = vpop.f32.mrb[19].mxu1 }
0x12e7   : > { %v11502_v22 = vpop.f32.mrb[20].mxu1 }
0x12e8   : > { %v11503_v36 = vadd.f32 %v11502_v22, %v11429_v6  ;;  %v20636_v0 = vpop.f32.mrb[21].mxu1  ;;  %v12701_v6 = vld [vmem:[#allocation15 + $0x38] sm:$0xff]  ;;  %v12782_v22 = vld [vmem:[#allocation15 + $0x40] sm:$0xff] }
0x12eb   : > { %v11591_v24 = vpop.f32.mrb[22].mxu1 }
0x12ec   : > { %v11595_v60 = vadd.f32 %v11591_v24, %v11503_v36  ;;  %v20641_v35 = vpop.f32.mrb[23].mxu1 }
0x12ef   : > { %v11681_v43 = vpop.f32.mrb[24].mxu1 }
0x12f0   : > { %v11685_v11 = vadd.f32 %v11681_v43, %v11595_v60  ;;  %v20646_v16 = vpop.f32.mrb[25].mxu1 }
0x12f3   : > { %v11761_v15 = vpop.f32.mrb[26].mxu1 }
0x12f4   : > { %v11765_v50 = vadd.f32 %v11761_v15, %v11685_v11  ;;  %v20651_v48 = vpop.f32.mrb[27].mxu1 }
0x12f7   : > { %v11851_v34 = vpop.f32.mrb[28].mxu1 }
0x12f8   : > { %v11855_v45 = vadd.f32 %v11851_v34, %v11765_v50  ;;  %v20656_v61 = vpop.f32.mrb[29].mxu1 }
0x12fb   : > { %v11941_v62 = vpop.f32.mrb[30].mxu1 }
0x12fc   : > { %v11945_v8 = vadd.f32 %v11941_v62, %v11855_v45  ;;  %v20661_v49 = vpop.f32.mrb[31].mxu1 }
0x12ff   : > { %v12031_v31 = vpop.f32.mrb[32].mxu1 }
0x1300   : > { %v12035_v33 = vadd.f32 %v12031_v31, %v11945_v8  ;;  %v20666_v27 = vpop.f32.mrb[33].mxu1 }
0x1303   : > { %v12121_v29 = vpop.f32.mrb[34].mxu1 }
0x1304   : > { %v12125_v37 = vadd.f32 %v12121_v29, %v12035_v33  ;;  %v20671_v7 = vpop.f32.mrb[35].mxu1 }
0x1306   : > { %v12132_v56 = vadd.f32 %v12130_v40, %v12125_v37 }
0x1308   : > { %v12133_v14 = vmax.f32 %v12132_v56, 0.0 }
0x130a   : > { %12135 = vrot.lane.b32.xlu1 %v12133_v14, %s27074_s26  ;;  %s27260_s26 = smov 118  }
0x137c   : > { %v12136_v9 = vpop.permute.xlu1 %12135 }
0x137d   : > { %v12138_v26 = vsel %vm11333_vm11, 0.0, %v12136_v9 }
0x137e   : > { %v12139_v51 = vsel %vm11335_vm12, %v12138_v26, 0.0 }
0x137f   : > { %v12295_v4 = vmul.f32 %v12139_v51, %v26412_v38  ;;  %v12142_v55 = vmul.f32 %v12139_v51, %v26405_v59  ;;  %v12376_v47 = vmul.f32 %v12139_v51, %v26408_v63  ;;  %v12618_v52 = vmul.f32 %v12139_v51, %v26418_v54 }
0x1380   : > { %v12537_v25 = vmul.f32 %v12139_v51, %v26420_v28  ;;  %v12780_v17 = vmul.f32 %v12139_v51, %v26429_v46  ;;  %v12699_v44 = vmul.f32 %v12139_v51, %v26425_v1  ;;  %v12140_v21 = vmul.f32 %v26436_v12, %v12139_v51 }
0x1381   : > { %12299 = vrot.lane.b32.xlu1 %v12295_v4, %s27255_s3  ;;  %12146 = vrot.lane.b32.xlu0 %v12142_v55, %s27254_s18 }
0x1385   : > { %12460 = vrot.lane.b32.xlu1 %v12139_v51, %s27076_s1  ;;  %12380 = vrot.lane.b32.xlu0 %v12376_v47, %s27259_s5  ;;  %s27261_s1 = smov 9  }
0x1389   : > { %12622 = vrot.lane.b32.xlu1 %v12618_v52, %s27256_s17  ;;  %12541 = vrot.lane.b32.xlu0 %v12537_v25, %s27260_s26 }
0x138d   : > { %12784 = vrot.lane.b32.xlu1 %v12780_v17, %s27258_s16  ;;  %12703 = vrot.lane.b32.xlu0 %v12699_v44, %s27257_s8 }
0x1391   : > { %12864 = vperm.xlu0 %22305, %v12861_v23  }
0x13f3   : > { %v12147_v2 = vpop.permute.xlu0 %12146  ;;  %v12300_v13 = vpop.permute.xlu1 %12299 }
0x13f4   : > { %20673 = vmatpush3.msra.mxu1 %v12147_v2 }
0x13f5   : > { %20675 = vmatmul.mubr.msk.f32.vlgmr.msra.gmra.mrb[36].mxu1 %vm10389_vm6, %v12144_v3  ;;  %20677 = vmatprep.subr.mxu1 %v27212_v41  ;;  %v12879_v3 = vld [vmem:[#allocation18 + $0x8] sm:$0xff] }
0x13f6   : > { %20678 = vmatpush3.msra.mxu1 %v12140_v21  ;;  %20679 = vmatprep.mubr.msk.f32.mxu1 %vm23601_vm9, %v27212_v41  ;;  %v13113_v21 = vld [vmem:[#allocation18 + $0x18] sm:$0xff] }
0x13f7   : > { %20682 = vmatprep.subr.mxu1 %v27212_v41  ;;  %v12381_v57 = vpop.permute.xlu0 %12380  ;;  %v12461_v10 = vpop.permute.xlu1 %12460 }
0x13f9   : > { %20680 = vmatmul.mubr.msk.f32.vlgmr.msra.gmra.mrb[38].mxu1 %vm10389_vm6, %v12141_v18 }
0x13fa   : > { %20683 = vmatpush3.msra.mxu1 %v12300_v13  ;;  %20684 = vmatprep.mubr.msk.f32.mxu1 %vm23601_vm9, %v27212_v41  ;;  %v13193_v13 = vld [vmem:[#allocation18 + $0x20] sm:$0xff] }
0x13fb   : > { %20687 = vmatprep.subr.mxu1 %v27212_v41  ;;  %v12542_v19 = vpop.permute.xlu0 %12541  ;;  %v12623_v42 = vpop.permute.xlu1 %12622 }
0x13fd   : > { %20685 = vmatmul.mubr.msk.f32.vlgmr.msra.gmra.mrb[40].mxu1 %vm10389_vm6, %v12297_v30 }
0x13fe   : > { %20688 = vmatpush3.msra.mxu1 %v12381_v57  ;;  %20689 = vmatprep.mubr.msk.f32.mxu1 %vm23601_vm9, %v27212_v41  ;;  %v13274_v57 = vld [vmem:[#allocation18 + $0x28] sm:$0xff] }
0x13ff   : > { %20692 = vmatprep.subr.mxu1 %v27212_v41  ;;  %v12704_v32 = vpop.permute.xlu0 %12703  ;;  %v12785_v58 = vpop.permute.xlu1 %12784 }
0x1401   : > { %20690 = vmatmul.mubr.msk.f32.vlgmr.msra.gmra.mrb[42].mxu1 %vm10389_vm6, %v12378_v39 }
0x1402   : > { %20693 = vmatpush3.msra.mxu1 %v12461_v10  ;;  %20694 = vmatprep.mubr.msk.f32.mxu1 %vm23601_vm9, %v27212_v41  ;;  %v13355_v10 = vld [vmem:[#allocation18 + $0x30] sm:$0xff] }
0x1403   : > { %20697 = vmatprep.subr.mxu1 %v27212_v41 }
0x1405   : > { %20695 = vmatmul.mubr.msk.f32.vlgmr.msra.gmra.mrb[44].mxu1 %vm10389_vm6, %v12458_v5 }
0x1406   : > { %20698 = vmatpush3.msra.mxu1 %v12542_v19  ;;  %20699 = vmatprep.mubr.msk.f32.mxu1 %vm23601_vm9, %v27212_v41  ;;  %v13436_v19 = vld [vmem:[#allocation18 + $0x38] sm:$0xff] }
0x1407   : > { %20702 = vmatprep.subr.mxu1 %v27212_v41 }
0x1409   : > { %20700 = vmatmul.mubr.msk.f32.vlgmr.msra.gmra.mrb[46].mxu1 %vm10389_vm6, %v12539_v20 }
0x140a   : > { %20703 = vmatpush3.msra.mxu1 %v12623_v42  ;;  %20704 = vmatprep.mubr.msk.f32.mxu1 %vm23601_vm9, %v27212_v41  ;;  %v13517_v42 = vld [vmem:[#allocation18 + $0x40] sm:$0xff] }
0x140b   : > { %20707 = vmatprep.subr.mxu1 %v27212_v41 }
0x140d   : > { %20705 = vmatmul.mubr.msk.f32.vlgmr.msra.gmra.mrb[48].mxu1 %vm10389_vm6, %v12620_v53 }
0x140e   : > { %20708 = vmatpush3.msra.mxu1 %v12704_v32  ;;  %20709 = vmatprep.mubr.msk.f32.mxu1 %vm23601_vm9, %v27212_v41 }
0x140f   : > { %20712 = vmatprep.subr.mxu1 %v27212_v41 }
0x1410   : > { %v12865_v9 = vpop.permute.xlu0 %12864 }
0x1411   : > { %20710 = vmatmul.mubr.msk.f32.vlgmr.msra.gmra.mrb[50].mxu1 %vm10389_vm6, %v12701_v6 }
0x1412   : > { %20713 = vmatpush3.msra.mxu1 %v12785_v58  ;;  %20714 = vmatprep.mubr.msk.f32.mxu1 %vm23601_vm9, %v27212_v41 }
0x1413   : > { %20717 = vmatprep.subr.mxu1 %v27212_v41 }
0x1415   : > { %20715 = vmatmul.mubr.msk.f32.vlgmr.msra.gmra.mrb[52].mxu1 %vm10389_vm6, %v12782_v22 }
0x1416   : > { %20719 = vmatprep.mubr.msk.f32.mxu1 %vm23601_vm9, %v27212_v41 }
0x14c8   : > { %v12218_v36 = vpop.f32.mrb[36].mxu1 }
0x14c9   : > { %v20676_v0 = vpop.f32.mrb[37].mxu1 }
0x14cc   : > { %v12291_v24 = vpop.f32.mrb[38].mxu1 }
0x14cd   : > { %v12292_v60 = vadd.f32 %v12291_v24, %v12218_v36  ;;  %v20681_v35 = vpop.f32.mrb[39].mxu1 }
0x14d0   : > { %v12371_v43 = vpop.f32.mrb[40].mxu1 }
0x14d1   : > { %v12375_v11 = vadd.f32 %v12371_v43, %v12292_v60  ;;  %v20686_v16 = vpop.f32.mrb[41].mxu1 }
0x14d4   : > { %v12452_v15 = vpop.f32.mrb[42].mxu1 }
0x14d5   : > { %v12456_v50 = vadd.f32 %v12452_v15, %v12375_v11  ;;  %v20691_v48 = vpop.f32.mrb[43].mxu1 }
0x14d8   : > { %v12532_v34 = vpop.f32.mrb[44].mxu1 }
0x14d9   : > { %v12536_v45 = vadd.f32 %v12532_v34, %v12456_v50  ;;  %v20696_v61 = vpop.f32.mrb[45].mxu1 }
0x14dc   : > { %v12613_v62 = vpop.f32.mrb[46].mxu1 }
0x14dd   : > { %v12617_v8 = vadd.f32 %v12613_v62, %v12536_v45  ;;  %v20701_v49 = vpop.f32.mrb[47].mxu1 }
0x14e0   : > { %v12694_v31 = vpop.f32.mrb[48].mxu1 }
0x14e1   : > { %v12698_v33 = vadd.f32 %v12694_v31, %v12617_v8  ;;  %v20706_v27 = vpop.f32.mrb[49].mxu1  ;;  %v13617_v31 = vld [vmem:[#allocation46] sm:$0xff] }
0x14e2   : > { %v13619_v27 = vld [vmem:[#allocation46 + $0x10] sm:$0xff] }
0x14e4   : > { %v12775_v29 = vpop.f32.mrb[50].mxu1 }
0x14e5   : > { %v12779_v37 = vadd.f32 %v12775_v29, %v12698_v33  ;;  %v20711_v7 = vpop.f32.mrb[51].mxu1  ;;  %v13618_v33 = vld [vmem:[#allocation46 + $0x8] sm:$0xff]  ;;  %v23605_v29 = vmov 0.0|0.0  }
0x14e6   : > { %v13620_v7 = vld [vmem:[#allocation46 + $0x18] sm:$0xff] }
0x14e8   : > { %v12856_v40 = vpop.f32.mrb[52].mxu1 }
0x14e9   : > { %v12860_v56 = vadd.f32 %v12856_v40, %v12779_v37  ;;  %v20716_v14 = vpop.f32.mrb[53].mxu1  ;;  %v21442_v37 = vpack.c.bf16 %v13618_v33, %v13617_v31  ;;  %v14005_v31 = vld [vmem:[#allocation21 + $0x30] sm:$0xff] }
0x14eb   : > { %v12867_v26 = vadd.f32 %v12865_v9, %v12860_v56  ;;  %v21445_v56 = vpack.c.bf16 %v13620_v7, %v13619_v27  ;;  %v14006_v27 = vld [vmem:[#allocation21 + $0x38] sm:$0xff]  ;;  %v14096_v7 = vld [vmem:[#allocation21 + $0x48] sm:$0xff] }
0x14ed   : > { %v12868_v51 = vmax.f32 %v12867_v26, 0.0  ;;  %v13621_v26 = vld [vmem:[#allocation46 + $0x20] sm:$0xff] }
0x14ef   : > { %12870 = vrot.lane.b32.xlu1 %v12868_v51, %s27261_s1  ;;  %v13622_v51 = vld [vmem:[#allocation46 + $0x28] sm:$0xff] }
0x1561   : > { %v12871_v4 = vpop.permute.xlu1 %12870 }
0x1562   : > { %v12873_v55 = vsel %vm11333_vm11, 0.0, %v12871_v4 }
0x1563   : > { %v12874_v47 = vsel %vm11335_vm12, %v12873_v55, 0.0 }
0x1564   : > { %v13030_v52 = vmul.f32 %v12874_v47, %v26412_v38  ;;  %v12877_v25 = vmul.f32 %v12874_v47, %v26405_v59  ;;  %v13111_v17 = vmul.f32 %v12874_v47, %v26408_v63  ;;  %v13353_v44 = vmul.f32 %v12874_v47, %v26418_v54  ;;  %v13596_v63 = vld [vmem:[#allocation19] sm:$0xff] }
0x1565   : > { %v13272_v23 = vmul.f32 %v12874_v47, %v26420_v28  ;;  %v13515_v59 = vmul.f32 %v12874_v47, %v26429_v46  ;;  %v13434_v38 = vmul.f32 %v12874_v47, %v26425_v1  ;;  %v12875_v54 = vmul.f32 %v26436_v12, %v12874_v47  ;;  %v12876_v28 = vld [vmem:[#allocation18] sm:$0xff]  ;;  %v13032_v46 = vld [vmem:[#allocation18 + $0x10] sm:$0xff] }
0x1566   : > { %13034 = vrot.lane.b32.xlu1 %v13030_v52, %s27255_s3  ;;  %12881 = vrot.lane.b32.xlu0 %v12877_v25, %s27254_s18  ;;  %v13623_v25 = vld [vmem:[#allocation46 + $0x30] sm:$0xff] }
0x156a   : > { %13195 = vrot.lane.b32.xlu1 %v12874_v47, %s27262_s0  ;;  %13115 = vrot.lane.b32.xlu0 %v13111_v17, %s27259_s5  ;;  %v21448_v47 = vpack.c.bf16 %v13622_v51, %v13621_v26  ;;  %v13624_v17 = vld [vmem:[#allocation46 + $0x38] sm:$0xff]  ;;  %v14296_v51 = vld [vmem:[#allocation21 + $0x68] sm:$0xff] }
0x156e   : > { %13357 = vrot.lane.b32.xlu1 %v13353_v44, %s27256_s17  ;;  %13276 = vrot.lane.b32.xlu0 %v13272_v23, %s27260_s26  ;;  %v21451_v44 = vpack.c.bf16 %v13624_v17, %v13623_v25  ;;  %s27263_s17 = smov 1   ;;  %v14496_v25 = vld [vmem:[#allocation21 + $0x88] sm:$0xff] }
0x1572   : > { %13519 = vrot.lane.b32.xlu1 %v13515_v59, %s27258_s16  ;;  %13438 = vrot.lane.b32.xlu0 %v13434_v38, %s27257_s8  ;;  %s27082_s8 = smov 4   ;;  %s27264_s16 = smov 8  }
0x1576   : > { %13599 = vperm.xlu0 %22305, %v13596_v63   ;;  %v20181_v63 = vld [vmem:[#allocation43 + $0x1] ss:$0 sm:$0xff] }
0x15d8   : > { %v12882_v2 = vpop.permute.xlu0 %12881  ;;  %v13035_v1 = vpop.permute.xlu1 %13034 }
0x15d9   : > { %20718 = vmatpush3.msra.mxu1 %v12882_v2 }
0x15da   : > { %20720 = vmatmul.mubr.msk.f32.vlgmr.msra.gmra.mrb[54].mxu1 %vm10389_vm6, %v12879_v3  ;;  %20722 = vmatprep.subr.mxu1 %v27212_v41  ;;  %v20189_v3 = vld [vmem:[#allocation43 + $0x3] ss:$0 sm:$0xff] }
0x15db   : > { %20723 = vmatpush3.msra.mxu1 %v12875_v54  ;;  %20724 = vmatprep.mubr.msk.f32.mxu1 %vm23601_vm9, %v27212_v41 }
0x15dc   : > { %20727 = vmatprep.subr.mxu1 %v27212_v41  ;;  %v13116_v12 = vpop.permute.xlu0 %13115  ;;  %v13196_v18 = vpop.permute.xlu1 %13195 }
0x15de   : > { %20725 = vmatmul.mubr.msk.f32.vlgmr.msra.gmra.mrb[56].mxu1 %vm10389_vm6, %v12876_v28 }
0x15df   : > { %20728 = vmatpush3.msra.mxu1 %v13035_v1  ;;  %20729 = vmatprep.mubr.msk.f32.mxu1 %vm23601_vm9, %v27212_v41  ;;  %v20197_v1 = vld [vmem:[#allocation43 + $0x6] ss:$0 sm:$0xff] }
0x15e0   : > { %20732 = vmatprep.subr.mxu1 %v27212_v41  ;;  %v13277_v30 = vpop.permute.xlu0 %13276  ;;  %v13358_v39 = vpop.permute.xlu1 %13357 }
0x15e2   : > { %20730 = vmatmul.mubr.msk.f32.vlgmr.msra.gmra.mrb[58].mxu1 %vm10389_vm6, %v13032_v46 }
0x15e3   : > { %20733 = vmatpush3.msra.mxu1 %v13116_v12  ;;  %20734 = vmatprep.mubr.msk.f32.mxu1 %vm23601_vm9, %v27212_v41 }
0x15e4   : > { %20737 = vmatprep.subr.mxu1 %v27212_v41  ;;  %v13439_v5 = vpop.permute.xlu0 %13438  ;;  %v13520_v20 = vpop.permute.xlu1 %13519 }
0x15e6   : > { %20735 = vmatmul.mubr.msk.f32.vlgmr.msra.gmra.mrb[60].mxu1 %vm10389_vm6, %v13113_v21  ;;  %v20186_v21 = vld [vmem:[#allocation43 + $0x2] ss:$0 sm:$0xff] }
0x15e7   : > { %20738 = vmatpush3.msra.mxu1 %v13196_v18  ;;  %20739 = vmatprep.mubr.msk.f32.mxu1 %vm23601_vm9, %v27212_v41  ;;  %v20194_v18 = vld [vmem:[#allocation43 + $0x5] ss:$0 sm:$0xff] }
0x15e8   : > { %20742 = vmatprep.subr.mxu1 %v27212_v41 }
0x15ea   : > { %20740 = vmatmul.mubr.msk.f32.vlgmr.msra.gmra.mrb[62].mxu1 %vm10389_vm6, %v13193_v13  ;;  %v20200_v13 = vld [vmem:[#allocation43 + $0x7] ss:$0 sm:$0xff] }
0x15eb   : > { %20743 = vmatpush3.msra.mxu1 %v13277_v30  ;;  %20744 = vmatprep.mubr.msk.f32.mxu1 %vm23601_vm9, %v27212_v41  ;;  %v20203_v30 = vld [vmem:[#allocation43 + $0x8] ss:$0 sm:$0xff] }
0x15ec   : > { %20747 = vmatprep.subr.mxu1 %v27212_v41 }
0x15ee   : > { %20745 = vmatmul.mubr.msk.f32.vlgmr.msra.gmra.mrb[64].mxu1 %vm10389_vm6, %v13274_v57  ;;  %v13726_v57 = vld [vmem:[#allocation21 + $0x10] sm:$0xff] }
0x15ef   : > { %20748 = vmatpush3.msra.mxu1 %v13358_v39  ;;  %20749 = vmatprep.mubr.msk.f32.mxu1 %vm23601_vm9, %v27212_v41 }
0x15f0   : > { %20752 = vmatprep.subr.mxu1 %v27212_v41 }
0x15f2   : > { %20750 = vmatmul.mubr.msk.f32.vlgmr.msra.gmra.mrb[66].mxu1 %vm10389_vm6, %v13355_v10 }
0x15f3   : > { %20753 = vmatpush3.msra.mxu1 %v13439_v5  ;;  %20754 = vmatprep.mubr.msk.f32.mxu1 %vm23601_vm9, %v27212_v41 }
0x15f4   : > { %20757 = vmatprep.subr.mxu1 %v27212_v41 }
0x15f5   : > { %v13600_v4 = vpop.permute.xlu0 %13599 }
0x15f6   : > { %20755 = vmatmul.mubr.msk.f32.vlgmr.msra.gmra.mrb[68].mxu1 %vm10389_vm6, %v13436_v19 }
0x15f7   : > { %20758 = vmatpush3.msra.mxu1 %v13520_v20  ;;  %20759 = vmatprep.mubr.msk.f32.mxu1 %vm23601_vm9, %v27212_v41 }
0x15f8   : > { %21441 = vmatprep.subr.bf16.mxu1 %v23605_v29 }
0x15fa   : > { %20760 = vmatmul.mubr.msk.f32.vlgmr.msra.gmra.mrb[70].mxu1 %vm10389_vm6, %v13517_v42 }
0x15fb   : > { %20778 = vmatprep.mubr.msk.f32.mxu1 %vm23601_vm9, %v27212_v41  ;;  %21443 = vmatpush3.bf16.msra.mxu1 %v21442_v37 }
0x15fc   : > { %21444 = vmatprep.subr.bf16.mxu1 %v23605_v29 }
0x15ff   : > { %21446 = vmatpush3.bf16.msra.mxu1 %v21445_v56 }
0x1600   : > { %21447 = vmatprep.subr.bf16.mxu1 %v23605_v29 }
0x1603   : > { %21449 = vmatpush3.bf16.msra.mxu1 %v21448_v47  ;;  %v14396_v47 = vld [vmem:[#allocation21 + $0x78] sm:$0xff] }
0x1604   : > { %21450 = vmatprep.subr.bf16.mxu1 %v23605_v29  ;;  %v14095_v29 = vld [vmem:[#allocation21 + $0x40] sm:$0xff] }
0x1607   : > { %21452 = vmatpush3.bf16.msra.mxu1 %v21451_v44 }
0x16ad   : > { %v12953_v53 = vpop.f32.mrb[54].mxu1 }
0x16ae   : > { %v20721_v32 = vpop.f32.mrb[55].mxu1 }
0x16b1   : > { %v13026_v6 = vpop.f32.mrb[56].mxu1 }
0x16b2   : > { %v13027_v58 = vadd.f32 %v13026_v6, %v12953_v53  ;;  %v20726_v22 = vpop.f32.mrb[57].mxu1 }
0x16b5   : > { %v13106_v36 = vpop.f32.mrb[58].mxu1 }
0x16b6   : > { %v13110_v0 = vadd.f32 %v13106_v36, %v13027_v58  ;;  %v20731_v24 = vpop.f32.mrb[59].mxu1 }
0x16b9   : > { %v13187_v60 = vpop.f32.mrb[60].mxu1 }
0x16ba   : > { %v13191_v35 = vadd.f32 %v13187_v60, %v13110_v0  ;;  %v20736_v43 = vpop.f32.mrb[61].mxu1 }
0x16bb   : > { %v14584_v43 = vld [vmem:[#allocation22] sm:$0xff] }
0x16bd   : > { %v13267_v11 = vpop.f32.mrb[62].mxu1 }
0x16be   : > { %v13271_v16 = vadd.f32 %v13267_v11, %v13191_v35  ;;  %v20741_v15 = vpop.f32.mrb[63].mxu1 }
0x16bf   : > { %v26632_v15 = vld [vmem:[#allocation43] ss:$0 sm:$0xff] }
0x16c1   : > { %v13348_v50 = vpop.f32.mrb[64].mxu1 }
0x16c2   : > { %v13352_v48 = vadd.f32 %v13348_v50, %v13271_v16  ;;  %v20746_v34 = vpop.f32.mrb[65].mxu1  ;;  %v14585_v16 = vld [vmem:[#allocation22 + $0x8] sm:$0xff] }
0x16c5   : > { %v13429_v45 = vpop.f32.mrb[66].mxu1 }
0x16c6   : > { %v13433_v61 = vadd.f32 %v13429_v45, %v13352_v48  ;;  %v20751_v41 = vpop.f32.mrb[67].mxu1  ;;  %v13727_v48 = vld [vmem:[#allocation21 + $0x18] sm:$0xff]  ;;  %v13713_v45 = vld [vmem:[#allocation21] sm:$0xff] }
0x16c7   : > { %v13714_v41 = vld [vmem:[#allocation21 + $0x8] sm:$0xff] }
0x16c9   : > { %v13510_v62 = vpop.f32.mrb[68].mxu1 }
0x16ca   : > { %v13514_v8 = vadd.f32 %v13510_v62, %v13433_v61  ;;  %v20756_v49 = vpop.f32.mrb[69].mxu1  ;;  %v13905_v62 = vld [vmem:[#allocation21 + $0x20] sm:$0xff] }
0x16cb   : > { %v13906_v49 = vld [vmem:[#allocation21 + $0x28] sm:$0xff] }
0x16cd   : > { %v13591_v40 = vpop.f32.mrb[70].mxu1 }
0x16ce   : > { %v13595_v14 = vadd.f32 %v13591_v40, %v13514_v8  ;;  %v20761_v9 = vpop.f32.mrb[71].mxu1  ;;  %v14195_v40 = vld [vmem:[#allocation21 + $0x50] sm:$0xff] }
0x16cf   : > { %v14295_v9 = vld [vmem:[#allocation21 + $0x60] sm:$0xff] }
0x16d0   : > { %v13602_v55 = vadd.f32 %v13600_v4, %v13595_v14  ;;  %v14196_v14 = vld [vmem:[#allocation21 + $0x58] sm:$0xff]  ;;  %v14395_v4 = vld [vmem:[#allocation21 + $0x70] sm:$0xff] }
0x16d2   : > { %v13603_v52 = vmax.f32 %v13602_v55, 0.0 }
0x16d4   : > { %13605 = vrot.lane.b32.xlu1 %v13603_v52, %s27254_s18 }
0x1746   : > { %v13606_v23 = vpop.permute.xlu1 %13605 }
0x1747   : > { %v13608_v59 = vsel %vm4714_vm15, %v13606_v23, 0.0  ;;  %vm16364_vm15 = vcmask 121856  }
0x1748   : > { %v13609_v38 = vmax.f32 %v13603_v52, %v13608_v59  ;;  %v14495_v52 = vld [vmem:[#allocation21 + $0x80] sm:$0xff] }
0x174a   : > { %13611 = vrot.lane.b32.xlu0 %v13609_v38, %s27259_s5 }
0x174e   : > { %13721 = vrot.lane.b32.xlu0 %v20181_v63, %s27263_s17 }
0x1752   : > { %14000 = vrot.lane.b32.xlu0 %v20189_v3, %s27082_s8  ;;  %s23608_s8 = smov 6  }
0x1756   : > { %14290 = vrot.lane.b32.xlu0 %v20197_v1, %s27264_s16  ;;  %s27266_s16 = smov 10  }
0x17bc   : > { %v13612_v2 = vpop.permute.xlu0 %13611 }
0x17bd   : > { %v13615_v54 = vsel %vm13614_vm13, %v13612_v2, 0.0 }
0x17be   : > { %v13616_v28 = vmax.f32 %v13609_v38, %v13615_v54 }
0x17c0   : > { %20779 = vmatmul.mubr.msk.f32.vlgmr.msra.gmra.mrb[72].mxu1 %vm4232_vm7, %v13616_v28  ;;  %v26601_v39 = vpop.permute.xlu0 %13721  ;;  %vm13703_vm7 = vcmask 39936  }
0x17c1   : > { %20783 = vmatprep.mubr.msk.f32.mxu1 %vm10389_vm6, %v13726_v57 }
0x17c4   : > { %v26604_v19 = vpop.permute.xlu0 %14000 }
0x17c8   : > { %v26619_v36 = vpop.permute.xlu0 %14290 }
0x1893   : > { %v13694_v46 = vpop.f32.mrb[72].mxu1 }
0x1894   : > { %13698 = vst.msk [vmem:[%s1704_s6] sm:$0xff] %vm9689_vm1, %v13694_v46  ;;  %13700 = vrot.lane.b32.xlu1 %v13694_v46, %s23607_s10  ;;  %v20780_v12 = vpop.f32.mrb[73].mxu1  ;;  %s23610_s6 = smov 122   ;;  %v14619_v46 = vld [vmem:[#allocation24 + $0x10] sm:$0xff] }
0x1895   : > { %20830 = vmatprep.mubr.msk.f32.mxu0 %vm9689_vm1, %v14619_v46  ;;  %v14891_v46 = vld [vmem:[#allocation24 + $0x38] sm:$0xff] }
0x1898   : > { %13900 = vrot.lane.b32.xlu1 %v20186_v21, %s27253_s15 }
0x189c   : > { %14190 = vrot.lane.b32.xlu1 %v20194_v18, %s23608_s8 }
0x18a0   : > { %14390 = vrot.lane.b32.xlu1 %v20200_v13, %s27261_s1  ;;  %s23611_s1 = smov 123  }
0x18a4   : > { %14490 = vrot.lane.b32.xlu1 %v20203_v30, %s27266_s16  ;;  %s27268_s16 = smov 4  }
0x1906   : > { %v13701_v10 = vpop.permute.xlu1 %13700 }
0x1907   : > { %v13704_v5 = vsel %vm13703_vm7, 0.0, %v13701_v10 }
0x1908   : > { %v13706_v20 = vsel %vm13705_vm14, %v13704_v5, 0.0 }
0x1909   : > { %v14003_v42 = vmul.f32 %v26604_v19, %v13706_v20  ;;  %v13724_v53 = vmul.f32 %v26601_v39, %v13706_v20  ;;  %v14293_v60 = vmul.f32 %v26619_v36, %v13706_v20  ;;  %v13712_v34 = vmul.f32 %v26632_v15, %v13706_v20 }
0x190a   : > { %v26609_v32 = vpop.permute.xlu1 %13900 }
0x190b   : > { %14008 = vrot.lane.b32.xlu1 %v14003_v42, %s23609_s2  ;;  %13729 = vrot.lane.b32.xlu0 %v13724_v53, %s27254_s18  ;;  %v13903_v6 = vmul.f32 %v26609_v32, %v13706_v20 }
0x190e   : > { %v26614_v58 = vpop.permute.xlu1 %14190 }
0x190f   : > { %13908 = vrot.lane.b32.xlu0 %v13903_v6, %s27255_s3  ;;  %v14193_v22 = vmul.f32 %v26614_v58, %v13706_v20 }
0x1911   : > { %14198 = vrot.lane.b32.xlu1 %v14193_v22, %s23610_s6 }
0x1912   : > { %v26621_v0 = vpop.permute.xlu1 %14390 }
0x1913   : > { %14098 = vrot.lane.b32.xlu0 %v13706_v20, %s23611_s1  ;;  %v14393_v24 = vmul.f32 %v26621_v0, %v13706_v20 }
0x1915   : > { %14398 = vrot.lane.b32.xlu1 %v14393_v24, %s27262_s0 }
0x1916   : > { %v26627_v35 = vpop.permute.xlu1 %14490 }
0x1917   : > { %14298 = vrot.lane.b32.xlu0 %v14293_v60, %s27259_s5  ;;  %v14493_v11 = vmul.f32 %v26627_v35, %v13706_v20 }
0x1919   : > { %14588 = vperm.xlu1 %22341, %v14584_v43  }
0x191b   : > { %14498 = vrot.lane.b32.xlu0 %v14493_v11, %s27260_s26 }
0x191f   : > { %14593 = vperm.xlu0 %22305, %v14585_v16  }
0x197d   : > { %v13730_v50 = vpop.permute.xlu0 %13729  ;;  %v14009_v8 = vpop.permute.xlu1 %14008 }
0x197e   : > { %20781 = vmatprep.subr.mxu1 %v13730_v50 }
0x197f   : > { %20782 = vmatpush3.msra.mxu1 %v13730_v50 }
0x1980   : > { %20784 = vmatmul.mubr.msk.f32.vlgmr.msra.gmra.mrb[74].mxu1 %vm10389_vm6, %v13727_v48  ;;  %20786 = vmatprep.subr.mxu1 %v13712_v34 }
0x1981   : > { %20787 = vmatpush3.msra.mxu1 %v13712_v34  ;;  %v13909_v61 = vpop.permute.xlu0 %13908  ;;  %20788 = vmatprep.mubr.msk.f32.mxu1 %vm10389_vm6, %v13713_v45 }
0x1982   : > { %20791 = vmatprep.subr.mxu1 %v13909_v61 }
0x1983   : > { %v14199_v37 = vpop.permute.xlu1 %14198 }
0x1985   : > { %v14099_v33 = vpop.permute.xlu0 %14098 }
0x1987   : > { %v14399_v26 = vpop.permute.xlu1 %14398 }
0x1988   : > { %20789 = vmatmul.mubr.msk.f32.vlgmr.msra.gmra.mrb[74].mxu1 %vm10389_vm6, %v13714_v41 }
0x1989   : > { %20792 = vmatpush3.msra.mxu1 %v13909_v61  ;;  %20793 = vmatprep.mubr.msk.f32.mxu1 %vm10389_vm6, %v13905_v62  ;;  %v14299_v56 = vpop.permute.xlu0 %14298 }
0x198a   : > { %20796 = vmatprep.subr.mxu1 %v14009_v8 }
0x198d   : > { %v14499_v55 = vpop.permute.xlu0 %14498 }
0x1990   : > { %20794 = vmatmul.mubr.msk.f32.vlgmr.msra.gmra.mrb[74].mxu1 %vm10389_vm6, %v13906_v49 }
0x1991   : > { %20797 = vmatpush3.msra.mxu1 %v14009_v8  ;;  %20798 = vmatprep.mubr.msk.f32.mxu1 %vm10389_vm6, %v14005_v31 }
0x1992   : > { %20801 = vmatprep.subr.mxu1 %v14099_v33 }
0x1998   : > { %20799 = vmatmul.mubr.msk.f32.vlgmr.msra.gmra.mrb[74].mxu1 %vm10389_vm6, %v14006_v27  ;;  %v14589_v23 = vpop.permute.xlu1 %14588  ;;  %v15461_v27 = vld [vmem:[#allocation25] sm:$0xff] }
0x1999   : > { %20802 = vmatpush3.msra.mxu1 %v14099_v33  ;;  %20803 = vmatprep.mubr.msk.f32.mxu1 %vm10389_vm6, %v14095_v29  ;;  %v15462_v33 = vld [vmem:[#allocation25 + $0x8] sm:$0xff] }
0x199a   : > { %20806 = vmatprep.subr.mxu1 %v14199_v37 }
0x199e   : > { %v14594_v17 = vpop.permute.xlu0 %14593 }
0x19a0   : > { %20804 = vmatmul.mubr.msk.f32.vlgmr.msra.gmra.mrb[74].mxu1 %vm10389_vm6, %v14096_v7 }
0x19a1   : > { %20807 = vmatpush3.msra.mxu1 %v14199_v37  ;;  %20808 = vmatprep.mubr.msk.f32.mxu1 %vm10389_vm6, %v14195_v40 }
0x19a2   : > { %20811 = vmatprep.subr.mxu1 %v14299_v56 }
0x19a8   : > { %20809 = vmatmul.mubr.msk.f32.vlgmr.msra.gmra.mrb[74].mxu1 %vm10389_vm6, %v14196_v14 }
0x19a9   : > { %20812 = vmatpush3.msra.mxu1 %v14299_v56  ;;  %20813 = vmatprep.mubr.msk.f32.mxu1 %vm10389_vm6, %v14295_v9 }
0x19aa   : > { %20816 = vmatprep.subr.mxu1 %v14399_v26 }
0x19b0   : > { %20814 = vmatmul.mubr.msk.f32.vlgmr.msra.gmra.mrb[74].mxu1 %vm10389_vm6, %v14296_v51  ;;  %v14614_v51 = vld [vmem:[#allocation24] sm:$0xff] }
0x19b1   : > { %20817 = vmatpush3.msra.mxu1 %v14399_v26  ;;  %20818 = vmatprep.mubr.msk.f32.mxu1 %vm10389_vm6, %v14395_v4  ;;  %v14620_v26 = vld [vmem:[#allocation24 + $0x18] sm:$0xff] }
0x19b2   : > { %20821 = vmatprep.subr.mxu1 %v14499_v55 }
0x19b8   : > { %20819 = vmatmul.mubr.msk.f32.vlgmr.msra.gmra.mrb[74].mxu1 %vm10389_vm6, %v14396_v47 }
0x19b9   : > { %20822 = vmatpush3.msra.mxu1 %v14499_v55  ;;  %20823 = vmatprep.mubr.msk.f32.mxu1 %vm10389_vm6, %v14495_v52 }
0x19c0   : > { %20824 = vmatmul.mubr.msk.f32.vlgmr.msra.gmra.mrb[74].mxu1 %vm10389_vm6, %v14496_v25  ;;  %v14615_v25 = vld [vmem:[#allocation24 + $0x8] sm:$0xff] }
0x1a93   : > { %v20825_v44 = vpop.f32.mrb[74].mxu1 }
0x1a94   : > { %v14597_v59 = vadd.f32 %v20825_v44, %v14594_v17  ;;  %v14573_v38 = vpop.f32.mrb[75].mxu1  ;;  %v14794_v17 = vld [vmem:[#allocation24 + $0x20] sm:$0xff] }
0x1a95   : > { %v14596_v63 = vadd.f32 %v14589_v23, %v14573_v38 }
0x1a96   : > { %v14599_v3 = vmax.f32 %v14597_v59, 0.0 }
0x1a97   : > { %v14598_v2 = vmax.f32 %v14596_v63, 0.0  ;;  %v14795_v63 = vld [vmem:[#allocation24 + $0x28] sm:$0xff] }
0x1a98   : > { %14604 = vrot.lane.b32.xlu0 %v14599_v3, %s23607_s10  ;;  %v14890_v3 = vld [vmem:[#allocation24 + $0x30] sm:$0xff] }
0x1a99   : > { %14602 = vrot.lane.b32.xlu1 %v14598_v2, %s23607_s10 }
0x1b0a   : > { %v14605_v54 = vpop.permute.xlu0 %14604 }
0x1b0b   : > { %v14609_v28 = vsel %vm13703_vm7, 0.0, %v14605_v54  ;;  %v14603_v1 = vpop.permute.xlu1 %14602 }
0x1b0c   : > { %v14611_v12 = vsel %vm13705_vm14, %v14609_v28, 0.0  ;;  %v14608_v21 = vsel %vm13703_vm7, 0.0, %v14603_v1 }
0x1b0d   : > { %v14610_v18 = vsel %vm13705_vm14, %v14608_v21, 0.0  ;;  %v14792_v13 = vmul.f32 %v14611_v12, %v26609_v32  ;;  %v14617_v30 = vmul.f32 %v14611_v12, %v26601_v39  ;;  %v14888_v53 = vmul.f32 %v14611_v12, %v26604_v19 }
0x1b0e   : > { %v14791_v57 = vmul.f32 %v14610_v18, %v26609_v32  ;;  %v14616_v10 = vmul.f32 %v14610_v18, %v26601_v39  ;;  %v14887_v42 = vmul.f32 %v14610_v18, %v26604_v19  ;;  %v14612_v6 = vmul.f32 %v26632_v15, %v14610_v18 }
0x1b0f   : > { %v14613_v22 = vmul.f32 %v26632_v15, %v14611_v12  ;;  %v22367_v24 = vpack.i.bf16 %v14611_v12, %v14610_v18  ;;  %v15173_v60 = vmul.f32 %v14610_v18, %v26619_v36  ;;  %v15174_v43 = vmul.f32 %v14611_v12, %v26619_v36 }
0x1b10   : > { %v22357_v5 = vpack.i.bf16 %v14792_v13, %v14791_v57  ;;  %v22352_v20 = vpack.i.bf16 %v14617_v30, %v14616_v10  ;;  %v22362_v11 = vpack.i.bf16 %v14888_v53, %v14887_v42  ;;  %v15077_v16 = vmul.f32 %v14610_v18, %v26614_v58  ;;  %v14985_v57 = vld [vmem:[#allocation24 + $0x48] sm:$0xff]  ;;  %v15080_v10 = vld [vmem:[#allocation24 + $0x50] sm:$0xff] }
0x1b11   : > { %v15078_v50 = vmul.f32 %v14611_v12, %v26614_v58  ;;  %v21457_v48 = vpack.c.bf16 %v14613_v22, %v14612_v6  ;;  %v22377_v34 = vpack.i.bf16 %v15174_v43, %v15173_v60  ;;  %v15365_v45 = vmul.f32 %v14610_v18, %v26627_v35  ;;  %v15081_v6 = vld [vmem:[#allocation24 + $0x58] sm:$0xff]  ;;  %v15176_v22 = vld [vmem:[#allocation24 + $0x60] sm:$0xff] }
0x1b12   : > { %22358 = vrot.lane.b32.xlu0 %v22357_v5, %s27255_s3  ;;  %22353 = vrot.lane.b32.xlu1 %v22352_v20, %s27254_s18  ;;  %v15366_v41 = vmul.f32 %v14611_v12, %v26627_v35  ;;  %v15269_v62 = vmul.f32 %v14610_v18, %v26621_v0  ;;  %v15270_v8 = vmul.f32 %v14611_v12, %v26621_v0  ;;  %v14984_v12 = vld [vmem:[#allocation24 + $0x40] sm:$0xff] }
0x1b13   : > { %v22372_v61 = vpack.i.bf16 %v15078_v50, %v15077_v16  ;;  %v15177_v16 = vld [vmem:[#allocation24 + $0x68] sm:$0xff]  ;;  %v15272_v50 = vld [vmem:[#allocation24 + $0x70] sm:$0xff] }
0x1b14   : > { %v22387_v49 = vpack.i.bf16 %v15366_v41, %v15365_v45  ;;  %v22382_v31 = vpack.i.bf16 %v15270_v8, %v15269_v62  ;;  %v15368_v45 = vld [vmem:[#allocation24 + $0x80] sm:$0xff] }
0x1b16   : > { %22368 = vrot.lane.b32.xlu0 %v22367_v24, %s23611_s1  ;;  %22363 = vrot.lane.b32.xlu1 %v22362_v11, %s23609_s2 }
0x1b1a   : > { %22378 = vrot.lane.b32.xlu0 %v22377_v34, %s27259_s5  ;;  %22373 = vrot.lane.b32.xlu1 %v22372_v61, %s23610_s6  ;;  %v15273_v34 = vld [vmem:[#allocation24 + $0x78] sm:$0xff]  ;;  %v15369_v61 = vld [vmem:[#allocation24 + $0x88] sm:$0xff] }
0x1b1e   : > { %22388 = vrot.lane.b32.xlu0 %v22387_v49, %s27260_s26  ;;  %22383 = vrot.lane.b32.xlu1 %v22382_v31, %s27262_s0 }
0x1b22   : > { %15470 = vperm.xlu0 %22305, %v15462_v33   ;;  %15465 = vperm.xlu1 %22341, %v15461_v27  }
0x1b84   : > { %v22354_v29 = vpop.permute.xlu1 %22353  ;;  %v22359_v40 = vpop.permute.xlu0 %22358 }
0x1b85   : > { %v22356_v37 = vunpack.i.h.bf16 %v22354_v29  ;;  %v22355_v7 = vunpack.i.l.bf16 %v22354_v29  ;;  %v22361_v14 = vunpack.i.h.bf16 %v22359_v40  ;;  %v22360_v9 = vunpack.i.l.bf16 %v22359_v40 }
0x1b87   : > { %v21453_v56 = vpack.c.bf16 %v22356_v37, %v22355_v7  ;;  %v21461_v4 = vpack.c.bf16 %v22361_v14, %v22360_v9 }
0x1b88   : > { %v22364_v55 = vpop.permute.xlu1 %22363  ;;  %v22369_v23 = vpop.permute.xlu0 %22368 }
0x1b89   : > { %21454 = vmatprep.subr.bf16.mxu0 %v21453_v56  ;;  %v22366_v47 = vunpack.i.h.bf16 %v22364_v55  ;;  %v22365_v52 = vunpack.i.l.bf16 %v22364_v55  ;;  %v22371_v59 = vunpack.i.h.bf16 %v22369_v23  ;;  %v22370_v38 = vunpack.i.l.bf16 %v22369_v23 }
0x1b8a   : > { %21456 = vmatpush3.bf16.msra.mxu0 %v21453_v56  ;;  %v15496_v56 = vld [vmem:[#allocation27 + $0x10] sm:$0xff] }
0x1b8b   : > { %21458 = vmatprep.subr.bf16.mxu0 %v21457_v48  ;;  %v21465_v44 = vpack.c.bf16 %v22366_v47, %v22365_v52  ;;  %v21469_v2 = vpack.c.bf16 %v22371_v59, %v22370_v38  ;;  %20893 = vmatprep.mubr.msk.f32.mxu1 %vm9689_vm1, %v15496_v56 }
0x1b8c   : > { %v22374_v54 = vpop.permute.xlu1 %22373  ;;  %v22379_v18 = vpop.permute.xlu0 %22378 }
0x1b8d   : > { %20831 = vmatmul.mubr.msk.f32.vlgmr.msra.gmra.mrb[10].mxu0 %vm9689_vm1, %v14620_v26  ;;  %v22376_v28 = vunpack.i.h.bf16 %v22374_v54  ;;  %v22375_v1 = vunpack.i.l.bf16 %v22374_v54  ;;  %v22381_v13 = vunpack.i.h.bf16 %v22379_v18  ;;  %v22380_v30 = vunpack.i.l.bf16 %v22379_v18  ;;  %v16338_v18 = vld [vmem:[#allocation28] sm:$0xff] }
0x1b8e   : > { %21460 = vmatpush3.bf16.msra.mxu0 %v21457_v48  ;;  %20837 = vmatprep.mubr.msk.f32.mxu0 %vm9689_vm1, %v14614_v51 }
0x1b8f   : > { %21462 = vmatprep.subr.bf16.mxu0 %v21461_v4  ;;  %v21473_v21 = vpack.c.bf16 %v22376_v28, %v22375_v1  ;;  %v21477_v5 = vpack.c.bf16 %v22381_v13, %v22380_v30 }
0x1b90   : > { %v22384_v20 = vpop.permute.xlu1 %22383  ;;  %v22389_v60 = vpop.permute.xlu0 %22388 }
0x1b91   : > { %v22386_v42 = vunpack.i.h.bf16 %v22384_v20  ;;  %v22385_v53 = vunpack.i.l.bf16 %v22384_v20  ;;  %v22391_v43 = vunpack.i.h.bf16 %v22389_v60  ;;  %v22390_v11 = vunpack.i.l.bf16 %v22389_v60  ;;  %v15497_v20 = vld [vmem:[#allocation27 + $0x18] sm:$0xff]  ;;  %v15492_v60 = vld [vmem:[#allocation27 + $0x8] sm:$0xff] }
0x1b93   : > { %v21481_v24 = vpack.c.bf16 %v22386_v42, %v22385_v53  ;;  %v21485_v48 = vpack.c.bf16 %v22391_v43, %v22390_v11  ;;  %v15491_v42 = vld [vmem:[#allocation27] sm:$0xff] }
0x1b94   : > { %v15671_v43 = vld [vmem:[#allocation27 + $0x20] sm:$0xff] }
0x1b95   : > { %20838 = vmatmul.mubr.msk.f32.vlgmr.msra.gmra.mrb[10].mxu0 %vm9689_vm1, %v14615_v25 }
0x1b96   : > { %21464 = vmatpush3.bf16.msra.mxu0 %v21461_v4  ;;  %20844 = vmatprep.mubr.msk.f32.mxu0 %vm9689_vm1, %v14794_v17 }
0x1b97   : > { %21466 = vmatprep.subr.bf16.mxu0 %v21465_v44 }
0x1b9d   : > { %20845 = vmatmul.mubr.msk.f32.vlgmr.msra.gmra.mrb[10].mxu0 %vm9689_vm1, %v14795_v63 }
0x1b9e   : > { %21468 = vmatpush3.bf16.msra.mxu0 %v21465_v44  ;;  %20851 = vmatprep.mubr.msk.f32.mxu0 %vm9689_vm1, %v14890_v3 }
0x1b9f   : > { %21470 = vmatprep.subr.bf16.mxu0 %v21469_v2 }
0x1ba1   : > { %v15471_v41 = vpop.permute.xlu0 %15470  ;;  %v15466_v8 = vpop.permute.xlu1 %15465 }
0x1ba5   : > { %20852 = vmatmul.mubr.msk.f32.vlgmr.msra.gmra.mrb[10].mxu0 %vm9689_vm1, %v14891_v46 }
0x1ba6   : > { %21472 = vmatpush3.bf16.msra.mxu0 %v21469_v2  ;;  %20858 = vmatprep.mubr.msk.f32.mxu0 %vm9689_vm1, %v14984_v12 }
0x1ba7   : > { %21474 = vmatprep.subr.bf16.mxu0 %v21473_v21 }
0x1bad   : > { %20859 = vmatmul.mubr.msk.f32.vlgmr.msra.gmra.mrb[10].mxu0 %vm9689_vm1, %v14985_v57 }
0x1bae   : > { %21476 = vmatpush3.bf16.msra.mxu0 %v21473_v21  ;;  %20865 = vmatprep.mubr.msk.f32.mxu0 %vm9689_vm1, %v15080_v10  ;;  %v16339_v21 = vld [vmem:[#allocation28 + $0x8] sm:$0xff] }
0x1baf   : > { %21478 = vmatprep.subr.bf16.mxu0 %v21477_v5 }
0x1bb5   : > { %20866 = vmatmul.mubr.msk.f32.vlgmr.msra.gmra.mrb[10].mxu0 %vm9689_vm1, %v15081_v6 }
0x1bb6   : > { %21480 = vmatpush3.bf16.msra.mxu0 %v21477_v5  ;;  %20872 = vmatprep.mubr.msk.f32.mxu0 %vm9689_vm1, %v15176_v22 }
0x1bb7   : > { %21482 = vmatprep.subr.bf16.mxu0 %v21481_v24 }
0x1bbd   : > { %20873 = vmatmul.mubr.msk.f32.vlgmr.msra.gmra.mrb[10].mxu0 %vm9689_vm1, %v15177_v16 }
0x1bbe   : > { %21484 = vmatpush3.bf16.msra.mxu0 %v21481_v24  ;;  %20879 = vmatprep.mubr.msk.f32.mxu0 %vm9689_vm1, %v15272_v50 }
0x1bbf   : > { %21486 = vmatprep.subr.bf16.mxu0 %v21485_v48 }
0x1bc5   : > { %20880 = vmatmul.mubr.msk.f32.vlgmr.msra.gmra.mrb[10].mxu0 %vm9689_vm1, %v15273_v34  ;;  %v15672_v34 = vld [vmem:[#allocation27 + $0x28] sm:$0xff] }
0x1bc6   : > { %21488 = vmatpush3.bf16.msra.mxu0 %v21485_v48  ;;  %20886 = vmatprep.mubr.msk.f32.mxu0 %vm9689_vm1, %v15368_v45  ;;  %v15767_v45 = vld [vmem:[#allocation27 + $0x30] sm:$0xff] }
0x1bcd   : > { %20887 = vmatmul.mubr.msk.f32.vlgmr.msra.gmra.mrb[10].mxu0 %vm9689_vm1, %v15369_v61 }
0x1ca0   : > { %v20888_v62 = vpop.f32.mrb[10].mxu0 }
0x1ca1   : > { %v15474_v49 = vadd.f32 %v20888_v62, %v15471_v41  ;;  %v15450_v31 = vpop.f32.mrb[11].mxu0 }
0x1ca2   : > { %v15473_v33 = vadd.f32 %v15466_v8, %v15450_v31  ;;  %v15861_v31 = vld [vmem:[#allocation27 + $0x40] sm:$0xff] }
0x1ca3   : > { %v15476_v27 = vmax.f32 %v15474_v49, 0.0  ;;  %v15768_v49 = vld [vmem:[#allocation27 + $0x38] sm:$0xff] }
0x1ca4   : > { %v15475_v29 = vmax.f32 %v15473_v33, 0.0 }
0x1ca5   : > { %15481 = vrot.lane.b32.xlu0 %v15476_v27, %s23607_s10 }
0x1ca6   : > { %15479 = vrot.lane.b32.xlu1 %v15475_v29, %s23607_s10 }
0x1d17   : > { %v15482_v37 = vpop.permute.xlu0 %15481 }
0x1d18   : > { %v15486_v7 = vsel %vm13703_vm7, 0.0, %v15482_v37  ;;  %v15480_v40 = vpop.permute.xlu1 %15479 }
0x1d19   : > { %v15488_v14 = vsel %vm13705_vm14, %v15486_v7, 0.0  ;;  %v15485_v9 = vsel %vm13703_vm7, 0.0, %v15480_v40  ;;  %v15862_v7 = vld [vmem:[#allocation27 + $0x48] sm:$0xff]  ;;  %v15957_v40 = vld [vmem:[#allocation27 + $0x50] sm:$0xff] }
0x1d1a   : > { %v15487_v26 = vsel %vm13705_vm14, %v15485_v9, 0.0  ;;  %v15669_v51 = vmul.f32 %v15488_v14, %v26609_v32  ;;  %v15494_v4 = vmul.f32 %v15488_v14, %v26601_v39  ;;  %v15765_v44 = vmul.f32 %v15488_v14, %v26604_v19 }
0x1d1b   : > { %v15668_v55 = vmul.f32 %v15487_v26, %v26609_v32  ;;  %v15493_v47 = vmul.f32 %v15487_v26, %v26601_v39  ;;  %v15764_v17 = vmul.f32 %v15487_v26, %v26604_v19  ;;  %v15489_v23 = vmul.f32 %v26632_v15, %v15487_v26 }
0x1d1c   : > { %v15490_v59 = vmul.f32 %v26632_v15, %v15488_v14  ;;  %v22407_v38 = vpack.i.bf16 %v15488_v14, %v15487_v26  ;;  %v16050_v63 = vmul.f32 %v15487_v26, %v26619_v36  ;;  %v16051_v32 = vmul.f32 %v15488_v14, %v26619_v36 }
0x1d1d   : > { %v22397_v52 = vpack.i.bf16 %v15669_v51, %v15668_v55  ;;  %v22392_v25 = vpack.i.bf16 %v15494_v4, %v15493_v47  ;;  %v22402_v39 = vpack.i.bf16 %v15765_v44, %v15764_v17  ;;  %v15954_v3 = vmul.f32 %v15487_v26, %v26614_v58  ;;  %v15958_v51 = vld [vmem:[#allocation27 + $0x58] sm:$0xff]  ;;  %v16053_v4 = vld [vmem:[#allocation27 + $0x60] sm:$0xff]  ;;  %v16054_v17 = vld [vmem:[#allocation27 + $0x68] sm:$0xff] }
0x1d1e   : > { %v15955_v2 = vmul.f32 %v15488_v14, %v26614_v58  ;;  %v21493_v54 = vpack.c.bf16 %v15490_v59, %v15489_v23  ;;  %v22417_v19 = vpack.i.bf16 %v16051_v32, %v16050_v63  ;;  %v16242_v28 = vmul.f32 %v15487_v26, %v26627_v35  ;;  %v16149_v44 = vld [vmem:[#allocation27 + $0x70] sm:$0xff]  ;;  %v16150_v59 = vld [vmem:[#allocation27 + $0x78] sm:$0xff]  ;;  %v16246_v63 = vld [vmem:[#allocation27 + $0x88] sm:$0xff] }
0x1d1f   : > { %22398 = vrot.lane.b32.xlu0 %v22397_v52, %s27255_s3  ;;  %22393 = vrot.lane.b32.xlu1 %v22392_v25, %s27254_s18  ;;  %v16243_v15 = vmul.f32 %v15488_v14, %v26627_v35  ;;  %v16146_v46 = vmul.f32 %v15487_v26, %v26621_v0  ;;  %v16147_v36 = vmul.f32 %v15488_v14, %v26621_v0 }
0x1d20   : > { %v22412_v1 = vpack.i.bf16 %v15955_v2, %v15954_v3 }
0x1d21   : > { %v22427_v58 = vpack.i.bf16 %v16243_v15, %v16242_v28  ;;  %v22422_v12 = vpack.i.bf16 %v16147_v36, %v16146_v46  ;;  %v16382_v15 = vld [vmem:[#allocation48] sm:$0xff]  ;;  %v16383_v46 = vld [vmem:[#allocation48 + $0x8] sm:$0xff] }
0x1d22   : > { %v21525_v36 = vpack.c.bf16 %v16383_v46, %v16382_v15  ;;  %v17396_v46 = vld [vmem:[#allocation31 + $0x8] sm:$0xff] }
0x1d23   : > { %22408 = vrot.lane.b32.xlu0 %v22407_v38, %s23611_s1  ;;  %22403 = vrot.lane.b32.xlu1 %v22402_v39, %s23609_s2  ;;  %v16245_v38 = vld [vmem:[#allocation27 + $0x80] sm:$0xff] }
0x1d24   : > { %21526 = vmatprep.subr.bf16.mxu0 %v21525_v36 }
0x1d25   : > { %21528 = vmatpush3.bf16.msra.mxu0 %v21525_v36 }
0x1d27   : > { %22418 = vrot.lane.b32.xlu0 %v22417_v19, %s27259_s5  ;;  %22413 = vrot.lane.b32.xlu1 %v22412_v1, %s23610_s6  ;;  %s23612_s5 = smov 3  }
0x1d2b   : > { %22428 = vrot.lane.b32.xlu0 %v22427_v58, %s27260_s26  ;;  %22423 = vrot.lane.b32.xlu1 %v22422_v12, %s27262_s0  ;;  %s26749_s0 = sshll.u32 %s27275_s11, 4  ;;  %s27267_s11 = sld [smem:[#allocation89_spill]] }
0x1d2c   : > { %s1709_s26 = scalar_lea.vmem %s23817_s9, %s26749_s0 }
0x1d2f   : > { %16347 = vperm.xlu0 %22305, %v16339_v21   ;;  %16342 = vperm.xlu1 %22341, %v16338_v18  }
0x1d91   : > { %v22394_v13 = vpop.permute.xlu1 %22393  ;;  %v22399_v57 = vpop.permute.xlu0 %22398 }
0x1d92   : > { %v22396_v35 = vunpack.i.h.bf16 %v22394_v13  ;;  %v22395_v30 = vunpack.i.l.bf16 %v22394_v13  ;;  %v22401_v0 = vunpack.i.h.bf16 %v22399_v57  ;;  %v22400_v5 = vunpack.i.l.bf16 %v22399_v57 }
0x1d94   : > { %v21489_v10 = vpack.c.bf16 %v22396_v35, %v22395_v30  ;;  %v21497_v53 = vpack.c.bf16 %v22401_v0, %v22400_v5 }
0x1d95   : > { %v22404_v6 = vpop.permute.xlu1 %22403  ;;  %v22409_v16 = vpop.permute.xlu0 %22408 }
0x1d96   : > { %21490 = vmatprep.subr.bf16.mxu1 %v21489_v10  ;;  %v22406_v22 = vunpack.i.h.bf16 %v22404_v6  ;;  %v22405_v24 = vunpack.i.l.bf16 %v22404_v6  ;;  %v22411_v50 = vunpack.i.h.bf16 %v22409_v16  ;;  %v22410_v48 = vunpack.i.l.bf16 %v22409_v16  ;;  %v20250_v6 = vld [vmem:[%s27267_s11 + $0x2] ss:$0 sm:$0xff]  ;;  %v20267_v16 = vld [vmem:[%s27267_s11 + $0x8] ss:$0 sm:$0xff] }
0x1d97   : > { %21492 = vmatpush3.bf16.msra.mxu1 %v21489_v10 }
0x1d98   : > { %21494 = vmatprep.subr.bf16.mxu1 %v21493_v54  ;;  %v21501_v11 = vpack.c.bf16 %v22406_v22, %v22405_v24  ;;  %v21505_v61 = vpack.c.bf16 %v22411_v50, %v22410_v48  ;;  %v20245_v22 = vld [vmem:[%s27267_s11 + $0x1] ss:$0 sm:$0xff]  ;;  %v20258_v24 = vld [vmem:[%s27267_s11 + $0x5] ss:$0 sm:$0xff]  ;;  %v26778_v48 = vld [vmem:[%s27267_s11] ss:$0 sm:$0xff] }
0x1d99   : > { %v22414_v41 = vpop.permute.xlu1 %22413  ;;  %v22419_v27 = vpop.permute.xlu0 %22418 }
0x1d9a   : > { %20894 = vmatmul.mubr.msk.f32.vlgmr.msra.gmra.mrb[76].mxu1 %vm9689_vm1, %v15497_v20  ;;  %v22416_v62 = vunpack.i.h.bf16 %v22414_v41  ;;  %v22415_v8 = vunpack.i.l.bf16 %v22414_v41  ;;  %v22421_v29 = vunpack.i.h.bf16 %v22419_v27  ;;  %v22420_v37 = vunpack.i.l.bf16 %v22419_v27 }
0x1d9b   : > { %21496 = vmatpush3.bf16.msra.mxu1 %v21493_v54  ;;  %20900 = vmatprep.mubr.msk.f32.mxu1 %vm9689_vm1, %v15491_v42 }
0x1d9c   : > { %21498 = vmatprep.subr.bf16.mxu1 %v21497_v53  ;;  %v21509_v33 = vpack.c.bf16 %v22416_v62, %v22415_v8  ;;  %v21513_v56 = vpack.c.bf16 %v22421_v29, %v22420_v37 }
0x1d9d   : > { %v22424_v14 = vpop.permute.xlu1 %22423  ;;  %v22429_v47 = vpop.permute.xlu0 %22428 }
0x1d9e   : > { %v22426_v9 = vunpack.i.h.bf16 %v22424_v14  ;;  %v22425_v26 = vunpack.i.l.bf16 %v22424_v14  ;;  %v22431_v52 = vunpack.i.h.bf16 %v22429_v47  ;;  %v22430_v25 = vunpack.i.l.bf16 %v22429_v47 }
0x1da0   : > { %v21517_v55 = vpack.c.bf16 %v22426_v9, %v22425_v26  ;;  %v21521_v23 = vpack.c.bf16 %v22431_v52, %v22430_v25 }
0x1da2   : > { %20901 = vmatmul.mubr.msk.f32.vlgmr.msra.gmra.mrb[76].mxu1 %vm9689_vm1, %v15492_v60  ;;  %v20253_v60 = vld [vmem:[%s27267_s11 + $0x3] ss:$0 sm:$0xff] }
0x1da3   : > { %21500 = vmatpush3.bf16.msra.mxu1 %v21497_v53  ;;  %20907 = vmatprep.mubr.msk.f32.mxu1 %vm9689_vm1, %v15671_v43  ;;  %v20264_v43 = vld [vmem:[%s27267_s11 + $0x7] ss:$0 sm:$0xff] }
0x1da4   : > { %21502 = vmatprep.subr.bf16.mxu1 %v21501_v11 }
0x1daa   : > { %20908 = vmatmul.mubr.msk.f32.vlgmr.msra.gmra.mrb[76].mxu1 %vm9689_vm1, %v15672_v34 }
0x1dab   : > { %21504 = vmatpush3.bf16.msra.mxu1 %v21501_v11  ;;  %20914 = vmatprep.mubr.msk.f32.mxu1 %vm9689_vm1, %v15767_v45  ;;  %v20261_v11 = vld [vmem:[%s27267_s11 + $0x6] ss:$0 sm:$0xff] }
0x1dac   : > { %21506 = vmatprep.subr.bf16.mxu1 %v21505_v61 }
0x1dae   : > { %v16348_v32 = vpop.permute.xlu0 %16347  ;;  %v16343_v3 = vpop.permute.xlu1 %16342 }
0x1db2   : > { %20915 = vmatmul.mubr.msk.f32.vlgmr.msra.gmra.mrb[76].mxu1 %vm9689_vm1, %v15768_v49  ;;  %v16499_v49 = vld [vmem:[#allocation30 + $0x10] sm:$0xff] }
0x1db3   : > { %21508 = vmatpush3.bf16.msra.mxu1 %v21505_v61  ;;  %20921 = vmatprep.mubr.msk.f32.mxu1 %vm9689_vm1, %v15861_v31 }
0x1db4   : > { %21510 = vmatprep.subr.bf16.mxu1 %v21509_v33 }
0x1dba   : > { %20922 = vmatmul.mubr.msk.f32.vlgmr.msra.gmra.mrb[76].mxu1 %vm9689_vm1, %v15862_v7 }
0x1dbb   : > { %21512 = vmatpush3.bf16.msra.mxu1 %v21509_v33  ;;  %20928 = vmatprep.mubr.msk.f32.mxu1 %vm9689_vm1, %v15957_v40 }
0x1dbc   : > { %21514 = vmatprep.subr.bf16.mxu1 %v21513_v56 }
0x1dc2   : > { %20929 = vmatmul.mubr.msk.f32.vlgmr.msra.gmra.mrb[76].mxu1 %vm9689_vm1, %v15958_v51 }
0x1dc3   : > { %21516 = vmatpush3.bf16.msra.mxu1 %v21513_v56  ;;  %20935 = vmatprep.mubr.msk.f32.mxu1 %vm9689_vm1, %v16053_v4 }
0x1dc4   : > { %21518 = vmatprep.subr.bf16.mxu1 %v21517_v55 }
0x1dca   : > { %20936 = vmatmul.mubr.msk.f32.vlgmr.msra.gmra.mrb[76].mxu1 %vm9689_vm1, %v16054_v17 }
0x1dcb   : > { %21520 = vmatpush3.bf16.msra.mxu1 %v21517_v55  ;;  %20942 = vmatprep.mubr.msk.f32.mxu1 %vm9689_vm1, %v16149_v44 }
0x1dcc   : > { %21522 = vmatprep.subr.bf16.mxu1 %v21521_v23 }
0x1dd2   : > { %20943 = vmatmul.mubr.msk.f32.vlgmr.msra.gmra.mrb[76].mxu1 %vm9689_vm1, %v16150_v59 }
0x1dd3   : > { %21524 = vmatpush3.bf16.msra.mxu1 %v21521_v23  ;;  %20949 = vmatprep.mubr.msk.f32.mxu1 %vm9689_vm1, %v16245_v38 }
0x1dda   : > { %20950 = vmatmul.mubr.msk.f32.vlgmr.msra.gmra.mrb[76].mxu1 %vm9689_vm1, %v16246_v63 }
0x1ead   : > { %v20951_v39 = vpop.f32.mrb[76].mxu1 }
0x1eae   : > { %v16351_v2 = vadd.f32 %v20951_v39, %v16348_v32  ;;  %v16327_v54 = vpop.f32.mrb[77].mxu1 }
0x1eaf   : > { %v16350_v19 = vadd.f32 %v16343_v3, %v16327_v54 }
0x1eb0   : > { %v16353_v28 = vmax.f32 %v16351_v2, 0.0 }
0x1eb1   : > { %v16352_v1 = vmax.f32 %v16350_v19, 0.0 }
0x1eb2   : > { %16355 = vst.msk [vmem:[%s1709_s26 + $0x8] sm:$0xff] %vm9689_vm1, %v16353_v28  ;;  %16360 = vrot.lane.b32.xlu0 %v16353_v28, %s27254_s18 }
0x1eb3   : > { %16354 = vst.msk [vmem:[%s1709_s26] sm:$0xff] %vm9689_vm1, %v16352_v1  ;;  %16358 = vrot.lane.b32.xlu1 %v16352_v1, %s27254_s18 }
0x1f24   : > { %v16361_v58 = vpop.permute.xlu0 %16360 }
0x1f25   : > { %v16366_v12 = vsel %vm16364_vm15, %v16361_v58, 0.0  ;;  %v16359_v21 = vpop.permute.xlu1 %16358 }
0x1f26   : > { %v16368_v18 = vmax.f32 %v16353_v28, %v16366_v12  ;;  %v16365_v13 = vsel %vm16364_vm15, %v16359_v21, 0.0 }
0x1f27   : > { %v16367_v35 = vmax.f32 %v16352_v1, %v16365_v13  ;;  %v17395_v1 = vld [vmem:[#allocation31] sm:$0xff] }
0x1f28   : > { %16373 = vrot.lane.b32.xlu0 %v16368_v18, %s23609_s2 }
0x1f29   : > { %16371 = vrot.lane.b32.xlu1 %v16367_v35, %s23609_s2 }
0x1f9a   : > { %v16374_v30 = vpop.permute.xlu0 %16373 }
0x1f9b   : > { %v16379_v57 = vsel %vm16377_vm8, %v16374_v30, 0.0  ;;  %v16372_v10 = vpop.permute.xlu1 %16371  ;;  %v16500_v30 = vld [vmem:[#allocation30 + $0x18] sm:$0xff] }
0x1f9c   : > { %v16378_v0 = vsel %vm16377_vm8, %v16372_v10, 0.0  ;;  %v16381_v20 = vmax.f32 %v16368_v18, %v16379_v57  ;;  %v16485_v57 = vld [vmem:[#allocation30] sm:$0xff] }
0x1f9d   : > { %v16380_v5 = vmax.f32 %v16367_v35, %v16378_v0 }
0x1f9f   : > { %20956 = vmatprep.mubr.msk.f32.mxu0 %vm9689_vm1, %v16380_v5 }
0x1fa0   : > { %20957 = vmatmul.mubr.msk.f32.vlgmr.msra.gmra.mrb[12].mxu0 %vm9689_vm1, %v16381_v20 }
0x1fa1   : > { %20963 = vmatprep.mubr.msk.f32.mxu0 %vm9689_vm1, %v16499_v49 }
0x2073   : > { %v20958_v42 = vpop.f32.mrb[12].mxu0 }
0x2074   : > { %16469 = vrot.lane.b32.xlu0 %v20958_v42, %s23612_s5  ;;  %v16456_v53 = vpop.f32.mrb[13].mxu0  ;;  %v16486_v42 = vld [vmem:[#allocation30 + $0x8] sm:$0xff] }
0x2075   : > { %16467 = vrot.lane.b32.xlu1 %v16456_v53, %s23612_s5  ;;  %v16683_v53 = vld [vmem:[#allocation30 + $0x20] sm:$0xff] }
0x2078   : > { %16677 = vrot.lane.b32.xlu0 %v20250_v6, %s27253_s15 }
0x2079   : > { %16493 = vrot.lane.b32.xlu1 %v20245_v22, %s27263_s17  ;;  %s1714_s17 = scalar_lea.vmem %s23822_s21, %s26749_s0 }
0x207c   : > { %16981 = vrot.lane.b32.xlu0 %v20258_v24, %s27268_s16 }
0x207d   : > { %16782 = vrot.lane.b32.xlu1 %v20253_v60, %s27253_s15  ;;  %s27269_s15 = sld [smem:[#allocation94_spill]] }
0x2080   : > { %17191 = vrot.lane.b32.xlu0 %v20264_v43, %s23607_s10  ;;  %s23613_s10 = smov 125   ;;  %v16684_v43 = vld [vmem:[#allocation30 + $0x28] sm:$0xff] }
0x2081   : > { %17086 = vrot.lane.b32.xlu1 %v20261_v11, %s27268_s16  ;;  %v16788_v11 = vld [vmem:[#allocation30 + $0x30] sm:$0xff] }
0x2084   : > { %17296 = vrot.lane.b32.xlu0 %v20267_v16, %s23608_s8 }
0x20e6   : > { %v16470_v50 = vpop.permute.xlu0 %16469 }
0x20e7   : > { %v16474_v34 = vsel %vm1937_vm3, 0.0, %v16470_v50  ;;  %v16468_v45 = vpop.permute.xlu1 %16467 }
0x20e8   : > { %v16477_v61 = vsel %vm16475_vm0, %v16474_v34, 0.0  ;;  %v16473_v41 = vsel %vm1937_vm3, 0.0, %v16468_v45 }
0x20e9   : > { %v16476_v62 = vsel %vm16475_vm0, %v16473_v41, 0.0  ;;  %v16484_v8 = vmul.f32 %v26778_v48, %v16477_v61  ;;  %v16882_v41 = vld [vmem:[#allocation30 + $0x40] sm:$0xff] }
0x20ea   : > { %v26785_v31 = vpop.permute.xlu0 %16677  ;;  %v16483_v33 = vmul.f32 %v26778_v48, %v16476_v62  ;;  %v22447_v23 = vpack.i.bf16 %v16477_v61, %v16476_v62 }
0x20eb   : > { %v26789_v27 = vpop.permute.xlu1 %16493  ;;  %v16680_v14 = vmul.f32 %v26785_v31, %v16476_v62  ;;  %v16681_v9 = vmul.f32 %v26785_v31, %v16477_v61 }
0x20ec   : > { %v16496_v29 = vmul.f32 %v26789_v27, %v16476_v62  ;;  %v16497_v37 = vmul.f32 %v26789_v27, %v16477_v61  ;;  %v21533_v7 = vpack.c.bf16 %v16484_v8, %v16483_v33 }
0x20ed   : > { %v22437_v25 = vpack.i.bf16 %v16681_v9, %v16680_v14 }
0x20ee   : > { %v26793_v40 = vpop.permute.xlu0 %16981  ;;  %v22432_v56 = vpack.i.bf16 %v16497_v37, %v16496_v29  ;;  %v16883_v29 = vld [vmem:[#allocation30 + $0x48] sm:$0xff]  ;;  %v16987_v37 = vld [vmem:[#allocation30 + $0x50] sm:$0xff] }
0x20ef   : > { %v26797_v26 = vpop.permute.xlu1 %16782  ;;  %v16984_v55 = vmul.f32 %v26793_v40, %v16476_v62  ;;  %v16985_v47 = vmul.f32 %v26793_v40, %v16477_v61 }
0x20f0   : > { %22433 = vrot.lane.b32.xlu1 %v22432_v56, %s27254_s18  ;;  %v16785_v51 = vmul.f32 %v26797_v26, %v16476_v62  ;;  %v16786_v4 = vmul.f32 %v26797_v26, %v16477_v61 }
0x20f1   : > { %v22452_v59 = vpack.i.bf16 %v16985_v47, %v16984_v55 }
0x20f2   : > { %v26804_v52 = vpop.permute.xlu0 %17191  ;;  %v22442_v17 = vpack.i.bf16 %v16786_v4, %v16785_v51  ;;  %v16988_v51 = vld [vmem:[#allocation30 + $0x58] sm:$0xff]  ;;  %v17092_v4 = vld [vmem:[#allocation30 + $0x60] sm:$0xff] }
0x20f3   : > { %v26806_v44 = vpop.permute.xlu1 %17086  ;;  %v17194_v38 = vmul.f32 %v26804_v52, %v16476_v62  ;;  %v17195_v63 = vmul.f32 %v26804_v52, %v16477_v61 }
0x20f4   : > { %22438 = vrot.lane.b32.xlu1 %v22437_v25, %s27255_s3  ;;  %22443 = vrot.lane.b32.xlu0 %v22442_v17, %s27255_s3  ;;  %v17089_v32 = vmul.f32 %v26806_v44, %v16476_v62  ;;  %v17090_v39 = vmul.f32 %v26806_v44, %v16477_v61 }
0x20f5   : > { %v22462_v2 = vpack.i.bf16 %v17195_v63, %v17194_v38  ;;  %v17198_v63 = vld [vmem:[#allocation30 + $0x78] sm:$0xff] }
0x20f6   : > { %v26814_v3 = vpop.permute.xlu0 %17296  ;;  %v22457_v54 = vpack.i.bf16 %v17090_v39, %v17089_v32  ;;  %v17302_v32 = vld [vmem:[#allocation30 + $0x80] sm:$0xff]  ;;  %v17303_v39 = vld [vmem:[#allocation30 + $0x88] sm:$0xff] }
0x20f7   : > { %v17299_v19 = vmul.f32 %v26814_v3, %v16476_v62  ;;  %v17300_v28 = vmul.f32 %v26814_v3, %v16477_v61  ;;  %v16789_v61 = vld [vmem:[#allocation30 + $0x38] sm:$0xff] }
0x20f8   : > { %22448 = vrot.lane.b32.xlu1 %v22447_v23, %s23613_s10  ;;  %22453 = vrot.lane.b32.xlu0 %v22452_v59, %s23609_s2  ;;  %v17093_v23 = vld [vmem:[#allocation30 + $0x68] sm:$0xff]  ;;  %v17197_v59 = vld [vmem:[#allocation30 + $0x70] sm:$0xff] }
0x20f9   : > { %v22467_v15 = vpack.i.bf16 %v17300_v28, %v17299_v19 }
0x20fc   : > { %22463 = vrot.lane.b32.xlu0 %v22462_v2, %s23611_s1  ;;  %22458 = vrot.lane.b32.xlu1 %v22457_v54, %s23609_s2 }
0x2100   : > { %17399 = vperm.xlu0 %22305, %v17395_v1   ;;  %22468 = vrot.lane.b32.xlu1 %v22467_v15, %s23610_s6 }
0x2104   : > { %17404 = vperm.xlu1 %22341, %v17396_v46  }
0x2162   : > { %v22434_v36 = vpop.permute.xlu1 %22433 }
0x2163   : > { %v22436_v58 = vunpack.i.h.bf16 %v22434_v36  ;;  %v22435_v12 = vunpack.i.l.bf16 %v22434_v36 }
0x2165   : > { %v21529_v21 = vpack.c.bf16 %v22436_v58, %v22435_v12 }
0x2166   : > { %v22439_v18 = vpop.permute.xlu1 %22438  ;;  %v22444_v0 = vpop.permute.xlu0 %22443 }
0x2167   : > { %v22441_v13 = vunpack.i.h.bf16 %v22439_v18  ;;  %v22440_v35 = vunpack.i.l.bf16 %v22439_v18  ;;  %21530 = vmatprep.subr.bf16.mxu0 %v21529_v21  ;;  %v22446_v5 = vunpack.i.h.bf16 %v22444_v0  ;;  %v22445_v20 = vunpack.i.l.bf16 %v22444_v0  ;;  %v17430_v18 = vld [vmem:[#allocation33 + $0x10] sm:$0xff] }
0x2168   : > { %21532 = vmatpush3.bf16.msra.mxu0 %v21529_v21  ;;  %21026 = vmatprep.mubr.msk.f32.mxu1 %vm9689_vm1, %v17430_v18  ;;  %v17702_v18 = vld [vmem:[#allocation33 + $0x38] sm:$0xff] }
0x2169   : > { %21534 = vmatprep.subr.bf16.mxu0 %v21533_v7  ;;  %v21537_v10 = vpack.c.bf16 %v22441_v13, %v22440_v35  ;;  %v21541_v6 = vpack.c.bf16 %v22446_v5, %v22445_v20 }
0x216a   : > { %v22449_v22 = vpop.permute.xlu1 %22448  ;;  %v22454_v50 = vpop.permute.xlu0 %22453 }
0x216b   : > { %20964 = vmatmul.mubr.msk.f32.vlgmr.msra.gmra.mrb[14].mxu0 %vm9689_vm1, %v16500_v30  ;;  %v22451_v24 = vunpack.i.h.bf16 %v22449_v22  ;;  %v22450_v60 = vunpack.i.l.bf16 %v22449_v22  ;;  %v22456_v34 = vunpack.i.h.bf16 %v22454_v50  ;;  %v22455_v45 = vunpack.i.l.bf16 %v22454_v50 }
0x216c   : > { %21536 = vmatpush3.bf16.msra.mxu0 %v21533_v7  ;;  %20970 = vmatprep.mubr.msk.f32.mxu0 %vm9689_vm1, %v16485_v57 }
0x216d   : > { %21538 = vmatprep.subr.bf16.mxu0 %v21537_v10  ;;  %v21545_v16 = vpack.c.bf16 %v22451_v24, %v22450_v60  ;;  %v21549_v62 = vpack.c.bf16 %v22456_v34, %v22455_v45 }
0x216e   : > { %v22459_v8 = vpop.permute.xlu1 %22458  ;;  %v22464_v56 = vpop.permute.xlu0 %22463 }
0x216f   : > { %v22461_v49 = vunpack.i.h.bf16 %v22459_v8  ;;  %v22460_v33 = vunpack.i.l.bf16 %v22459_v8  ;;  %v22466_v14 = vunpack.i.h.bf16 %v22464_v56  ;;  %v22465_v9 = vunpack.i.l.bf16 %v22464_v56  ;;  %v18272_v56 = vld [vmem:[#allocation34] sm:$0xff] }
0x2171   : > { %v21553_v7 = vpack.c.bf16 %v22461_v49, %v22460_v33  ;;  %v21557_v55 = vpack.c.bf16 %v22466_v14, %v22465_v9 }
0x2172   : > { %v22469_v47 = vpop.permute.xlu1 %22468 }
0x2173   : > { %20971 = vmatmul.mubr.msk.f32.vlgmr.msra.gmra.mrb[14].mxu0 %vm9689_vm1, %v16486_v42  ;;  %v22471_v25 = vunpack.i.h.bf16 %v22469_v47  ;;  %v22470_v17 = vunpack.i.l.bf16 %v22469_v47 }
0x2174   : > { %21540 = vmatpush3.bf16.msra.mxu0 %v21537_v10  ;;  %20977 = vmatprep.mubr.msk.f32.mxu0 %vm9689_vm1, %v16683_v53 }
0x2175   : > { %21542 = vmatprep.subr.bf16.mxu0 %v21541_v6  ;;  %v21561_v38 = vpack.c.bf16 %v22471_v25, %v22470_v17  ;;  %v17431_v17 = vld [vmem:[#allocation33 + $0x18] sm:$0xff] }
0x217b   : > { %20978 = vmatmul.mubr.msk.f32.vlgmr.msra.gmra.mrb[14].mxu0 %vm9689_vm1, %v16684_v43 }
0x217c   : > { %21544 = vmatpush3.bf16.msra.mxu0 %v21541_v6  ;;  %20984 = vmatprep.mubr.msk.f32.mxu0 %vm9689_vm1, %v16788_v11 }
0x217d   : > { %21546 = vmatprep.subr.bf16.mxu0 %v21545_v16 }
0x217f   : > { %v17400_v19 = vpop.permute.xlu0 %17399 }
0x2183   : > { %20985 = vmatmul.mubr.msk.f32.vlgmr.msra.gmra.mrb[14].mxu0 %vm9689_vm1, %v16789_v61  ;;  %v17405_v2 = vpop.permute.xlu1 %17404 }
0x2184   : > { %21548 = vmatpush3.bf16.msra.mxu0 %v21545_v16  ;;  %20991 = vmatprep.mubr.msk.f32.mxu0 %vm9689_vm1, %v16882_v41 }
0x2185   : > { %21550 = vmatprep.subr.bf16.mxu0 %v21549_v62 }
0x218b   : > { %20992 = vmatmul.mubr.msk.f32.vlgmr.msra.gmra.mrb[14].mxu0 %vm9689_vm1, %v16883_v29 }
0x218c   : > { %21552 = vmatpush3.bf16.msra.mxu0 %v21549_v62  ;;  %20998 = vmatprep.mubr.msk.f32.mxu0 %vm9689_vm1, %v16987_v37 }
0x218d   : > { %21554 = vmatprep.subr.bf16.mxu0 %v21553_v7 }
0x2193   : > { %20999 = vmatmul.mubr.msk.f32.vlgmr.msra.gmra.mrb[14].mxu0 %vm9689_vm1, %v16988_v51 }
0x2194   : > { %21556 = vmatpush3.bf16.msra.mxu0 %v21553_v7  ;;  %21005 = vmatprep.mubr.msk.f32.mxu0 %vm9689_vm1, %v17092_v4  ;;  %v18273_v7 = vld [vmem:[#allocation34 + $0x8] sm:$0xff] }
0x2195   : > { %21558 = vmatprep.subr.bf16.mxu0 %v21557_v55 }
0x219b   : > { %21006 = vmatmul.mubr.msk.f32.vlgmr.msra.gmra.mrb[14].mxu0 %vm9689_vm1, %v17093_v23  ;;  %v17425_v23 = vld [vmem:[#allocation33] sm:$0xff] }
0x219c   : > { %21560 = vmatpush3.bf16.msra.mxu0 %v21557_v55  ;;  %21012 = vmatprep.mubr.msk.f32.mxu0 %vm9689_vm1, %v17197_v59 }
0x219d   : > { %21562 = vmatprep.subr.bf16.mxu0 %v21561_v38 }
0x21a3   : > { %21013 = vmatmul.mubr.msk.f32.vlgmr.msra.gmra.mrb[14].mxu0 %vm9689_vm1, %v17198_v63 }
0x21a4   : > { %21564 = vmatpush3.bf16.msra.mxu0 %v21561_v38  ;;  %21019 = vmatprep.mubr.msk.f32.mxu0 %vm9689_vm1, %v17302_v32 }
0x21ab   : > { %21020 = vmatmul.mubr.msk.f32.vlgmr.msra.gmra.mrb[14].mxu0 %vm9689_vm1, %v17303_v39  ;;  %v17426_v39 = vld [vmem:[#allocation33 + $0x8] sm:$0xff] }
0x227e   : > { %v21021_v54 = vpop.f32.mrb[14].mxu0 }
0x227f   : > { %v17408_v28 = vadd.f32 %v21021_v54, %v17405_v2  ;;  %v17384_v1 = vpop.f32.mrb[15].mxu0  ;;  %v17605_v2 = vld [vmem:[#allocation33 + $0x20] sm:$0xff] }
0x2280   : > { %v17407_v15 = vadd.f32 %v17400_v19, %v17384_v1 }
0x2281   : > { %v17410_v46 = vmax.f32 %v17408_v28, 0.0 }
0x2282   : > { %v17409_v36 = vmax.f32 %v17407_v15, 0.0  ;;  %v17606_v15 = vld [vmem:[#allocation33 + $0x28] sm:$0xff] }
0x2283   : > { %17415 = vrot.lane.b32.xlu1 %v17410_v46, %s23612_s5  ;;  %v17701_v46 = vld [vmem:[#allocation33 + $0x30] sm:$0xff] }
0x2284   : > { %17413 = vrot.lane.b32.xlu0 %v17409_v36, %s23612_s5 }
0x22f5   : > { %v17416_v58 = vpop.permute.xlu1 %17415 }
0x22f6   : > { %v17420_v12 = vsel %vm1937_vm3, 0.0, %v17416_v58  ;;  %v17414_v21 = vpop.permute.xlu0 %17413 }
0x22f7   : > { %v17422_v13 = vsel %vm16475_vm0, %v17420_v12, 0.0  ;;  %v17419_v35 = vsel %vm1937_vm3, 0.0, %v17414_v21 }
0x22f8   : > { %v17421_v30 = vsel %vm16475_vm0, %v17419_v35, 0.0  ;;  %v17603_v57 = vmul.f32 %v17422_v13, %v26785_v31  ;;  %v17428_v10 = vmul.f32 %v17422_v13, %v26789_v27  ;;  %v17699_v6 = vmul.f32 %v17422_v13, %v26797_v26 }
0x22f9   : > { %v17602_v0 = vmul.f32 %v17421_v30, %v26785_v31  ;;  %v17427_v5 = vmul.f32 %v17421_v30, %v26789_v27  ;;  %v17698_v53 = vmul.f32 %v17421_v30, %v26797_v26  ;;  %v17423_v22 = vmul.f32 %v26778_v48, %v17421_v30 }
0x22fa   : > { %v17424_v24 = vmul.f32 %v26778_v48, %v17422_v13  ;;  %v22487_v60 = vpack.i.bf16 %v17422_v13, %v17421_v30  ;;  %v17984_v43 = vmul.f32 %v17421_v30, %v26806_v44  ;;  %v17985_v11 = vmul.f32 %v17422_v13, %v26806_v44 }
0x22fb   : > { %v22477_v20 = vpack.i.bf16 %v17603_v57, %v17602_v0  ;;  %v22472_v42 = vpack.i.bf16 %v17428_v10, %v17427_v5  ;;  %v22482_v16 = vpack.i.bf16 %v17699_v6, %v17698_v53  ;;  %v17888_v50 = vmul.f32 %v17421_v30, %v26793_v40  ;;  %v17796_v0 = vld [vmem:[#allocation33 + $0x48] sm:$0xff]  ;;  %v17891_v5 = vld [vmem:[#allocation33 + $0x50] sm:$0xff] }
0x22fc   : > { %v17889_v34 = vmul.f32 %v17422_v13, %v26793_v40  ;;  %v21569_v45 = vpack.c.bf16 %v17424_v24, %v17423_v22  ;;  %v22497_v61 = vpack.i.bf16 %v17985_v11, %v17984_v43  ;;  %v18176_v41 = vmul.f32 %v17421_v30, %v26814_v3  ;;  %v17892_v22 = vld [vmem:[#allocation33 + $0x58] sm:$0xff]  ;;  %v17987_v24 = vld [vmem:[#allocation33 + $0x60] sm:$0xff] }
0x22fd   : > { %22478 = vrot.lane.b32.xlu1 %v22477_v20, %s27255_s3  ;;  %22473 = vrot.lane.b32.xlu0 %v22472_v42, %s27254_s18  ;;  %v18177_v8 = vmul.f32 %v17422_v13, %v26814_v3  ;;  %v18080_v49 = vmul.f32 %v17421_v30, %v26804_v52  ;;  %v18081_v33 = vmul.f32 %v17422_v13, %v26804_v52  ;;  %v17795_v13 = vld [vmem:[#allocation33 + $0x40] sm:$0xff] }
0x22fe   : > { %v22492_v62 = vpack.i.bf16 %v17889_v34, %v17888_v50  ;;  %v17988_v50 = vld [vmem:[#allocation33 + $0x68] sm:$0xff]  ;;  %v18083_v34 = vld [vmem:[#allocation33 + $0x70] sm:$0xff] }
0x22ff   : > { %v22507_v29 = vpack.i.bf16 %v18177_v8, %v18176_v41  ;;  %v22502_v37 = vpack.i.bf16 %v18081_v33, %v18080_v49  ;;  %v18179_v41 = vld [vmem:[#allocation33 + $0x80] sm:$0xff] }
0x2301   : > { %22488 = vrot.lane.b32.xlu1 %v22487_v60, %s23613_s10  ;;  %22483 = vrot.lane.b32.xlu0 %v22482_v16, %s27255_s3 }
0x2305   : > { %22498 = vrot.lane.b32.xlu1 %v22497_v61, %s23609_s2  ;;  %22493 = vrot.lane.b32.xlu0 %v22492_v62, %s23609_s2  ;;  %v18084_v61 = vld [vmem:[#allocation33 + $0x78] sm:$0xff]  ;;  %v18180_v62 = vld [vmem:[#allocation33 + $0x88] sm:$0xff] }
0x2309   : > { %22508 = vrot.lane.b32.xlu1 %v22507_v29, %s23610_s6  ;;  %22503 = vrot.lane.b32.xlu0 %v22502_v37, %s23611_s1 }
0x230d   : > { %18281 = vperm.xlu1 %22341, %v18273_v7   ;;  %18276 = vperm.xlu0 %22305, %v18272_v56  }
0x236f   : > { %v22474_v14 = vpop.permute.xlu0 %22473  ;;  %v22479_v4 = vpop.permute.xlu1 %22478 }
0x2370   : > { %v22476_v9 = vunpack.i.h.bf16 %v22474_v14  ;;  %v22475_v51 = vunpack.i.l.bf16 %v22474_v14  ;;  %v22481_v47 = vunpack.i.h.bf16 %v22479_v4  ;;  %v22480_v25 = vunpack.i.l.bf16 %v22479_v4 }
0x2372   : > { %v21565_v55 = vpack.c.bf16 %v22476_v9, %v22475_v51  ;;  %v21573_v59 = vpack.c.bf16 %v22481_v47, %v22480_v25 }
0x2373   : > { %v22484_v38 = vpop.permute.xlu0 %22483  ;;  %v22489_v19 = vpop.permute.xlu1 %22488 }
0x2374   : > { %21566 = vmatprep.subr.bf16.mxu1 %v21565_v55  ;;  %v22486_v63 = vunpack.i.h.bf16 %v22484_v38  ;;  %v22485_v32 = vunpack.i.l.bf16 %v22484_v38  ;;  %v22491_v28 = vunpack.i.h.bf16 %v22489_v19  ;;  %v22490_v1 = vunpack.i.l.bf16 %v22489_v19 }
0x2375   : > { %21568 = vmatpush3.bf16.msra.mxu1 %v21565_v55  ;;  %v18307_v55 = vld [vmem:[#allocation36 + $0x10] sm:$0xff] }
0x2376   : > { %21570 = vmatprep.subr.bf16.mxu1 %v21569_v45  ;;  %v21577_v54 = vpack.c.bf16 %v22486_v63, %v22485_v32  ;;  %v21581_v36 = vpack.c.bf16 %v22491_v28, %v22490_v1  ;;  %21089 = vmatprep.mubr.msk.f32.mxu0 %vm9689_vm1, %v18307_v55 }
0x2377   : > { %v22494_v58 = vpop.permute.xlu0 %22493  ;;  %v22499_v30 = vpop.permute.xlu1 %22498 }
0x2378   : > { %21027 = vmatmul.mubr.msk.f32.vlgmr.msra.gmra.mrb[78].mxu1 %vm9689_vm1, %v17431_v17  ;;  %v22496_v12 = vunpack.i.h.bf16 %v22494_v58  ;;  %v22495_v21 = vunpack.i.l.bf16 %v22494_v58  ;;  %v22501_v57 = vunpack.i.h.bf16 %v22499_v30  ;;  %v22500_v10 = vunpack.i.l.bf16 %v22499_v30  ;;  %v19149_v30 = vld [vmem:[#allocation37] sm:$0xff] }
0x2379   : > { %21572 = vmatpush3.bf16.msra.mxu1 %v21569_v45  ;;  %21033 = vmatprep.mubr.msk.f32.mxu1 %vm9689_vm1, %v17425_v23 }
0x237a   : > { %21574 = vmatprep.subr.bf16.mxu1 %v21573_v59  ;;  %v21585_v35 = vpack.c.bf16 %v22496_v12, %v22495_v21  ;;  %v21589_v20 = vpack.c.bf16 %v22501_v57, %v22500_v10 }
0x237b   : > { %v22504_v42 = vpop.permute.xlu0 %22503  ;;  %v22509_v43 = vpop.permute.xlu1 %22508 }
0x237c   : > { %v22506_v53 = vunpack.i.h.bf16 %v22504_v42  ;;  %v22505_v6 = vunpack.i.l.bf16 %v22504_v42  ;;  %v22511_v11 = vunpack.i.h.bf16 %v22509_v43  ;;  %v22510_v16 = vunpack.i.l.bf16 %v22509_v43  ;;  %v18308_v42 = vld [vmem:[#allocation36 + $0x18] sm:$0xff]  ;;  %v18303_v43 = vld [vmem:[#allocation36 + $0x8] sm:$0xff] }
0x237e   : > { %v21593_v60 = vpack.c.bf16 %v22506_v53, %v22505_v6  ;;  %v21597_v45 = vpack.c.bf16 %v22511_v11, %v22510_v16  ;;  %v18302_v53 = vld [vmem:[#allocation36] sm:$0xff] }
0x237f   : > { %v18482_v11 = vld [vmem:[#allocation36 + $0x20] sm:$0xff] }
0x2380   : > { %21034 = vmatmul.mubr.msk.f32.vlgmr.msra.gmra.mrb[78].mxu1 %vm9689_vm1, %v17426_v39 }
0x2381   : > { %21576 = vmatpush3.bf16.msra.mxu1 %v21573_v59  ;;  %21040 = vmatprep.mubr.msk.f32.mxu1 %vm9689_vm1, %v17605_v2 }
0x2382   : > { %21578 = vmatprep.subr.bf16.mxu1 %v21577_v54 }
0x2388   : > { %21041 = vmatmul.mubr.msk.f32.vlgmr.msra.gmra.mrb[78].mxu1 %vm9689_vm1, %v17606_v15 }
0x2389   : > { %21580 = vmatpush3.bf16.msra.mxu1 %v21577_v54  ;;  %21047 = vmatprep.mubr.msk.f32.mxu1 %vm9689_vm1, %v17701_v46 }
0x238a   : > { %21582 = vmatprep.subr.bf16.mxu1 %v21581_v36 }
0x238c   : > { %v18282_v8 = vpop.permute.xlu1 %18281  ;;  %v18277_v33 = vpop.permute.xlu0 %18276 }
0x2390   : > { %21048 = vmatmul.mubr.msk.f32.vlgmr.msra.gmra.mrb[78].mxu1 %vm9689_vm1, %v17702_v18 }
0x2391   : > { %21584 = vmatpush3.bf16.msra.mxu1 %v21581_v36  ;;  %21054 = vmatprep.mubr.msk.f32.mxu1 %vm9689_vm1, %v17795_v13 }
0x2392   : > { %21586 = vmatprep.subr.bf16.mxu1 %v21585_v35 }
0x2398   : > { %21055 = vmatmul.mubr.msk.f32.vlgmr.msra.gmra.mrb[78].mxu1 %vm9689_vm1, %v17796_v0 }
0x2399   : > { %21588 = vmatpush3.bf16.msra.mxu1 %v21585_v35  ;;  %21061 = vmatprep.mubr.msk.f32.mxu1 %vm9689_vm1, %v17891_v5  ;;  %v19150_v35 = vld [vmem:[#allocation37 + $0x8] sm:$0xff] }
0x239a   : > { %21590 = vmatprep.subr.bf16.mxu1 %v21589_v20 }
0x23a0   : > { %21062 = vmatmul.mubr.msk.f32.vlgmr.msra.gmra.mrb[78].mxu1 %vm9689_vm1, %v17892_v22 }
0x23a1   : > { %21592 = vmatpush3.bf16.msra.mxu1 %v21589_v20  ;;  %21068 = vmatprep.mubr.msk.f32.mxu1 %vm9689_vm1, %v17987_v24 }
0x23a2   : > { %21594 = vmatprep.subr.bf16.mxu1 %v21593_v60 }
0x23a8   : > { %21069 = vmatmul.mubr.msk.f32.vlgmr.msra.gmra.mrb[78].mxu1 %vm9689_vm1, %v17988_v50 }
0x23a9   : > { %21596 = vmatpush3.bf16.msra.mxu1 %v21593_v60  ;;  %21075 = vmatprep.mubr.msk.f32.mxu1 %vm9689_vm1, %v18083_v34 }
0x23aa   : > { %21598 = vmatprep.subr.bf16.mxu1 %v21597_v45 }
0x23b0   : > { %21076 = vmatmul.mubr.msk.f32.vlgmr.msra.gmra.mrb[78].mxu1 %vm9689_vm1, %v18084_v61  ;;  %v18483_v61 = vld [vmem:[#allocation36 + $0x28] sm:$0xff] }
0x23b1   : > { %21600 = vmatpush3.bf16.msra.mxu1 %v21597_v45  ;;  %21082 = vmatprep.mubr.msk.f32.mxu1 %vm9689_vm1, %v18179_v41  ;;  %v18578_v41 = vld [vmem:[#allocation36 + $0x30] sm:$0xff] }
0x23b8   : > { %21083 = vmatmul.mubr.msk.f32.vlgmr.msra.gmra.mrb[78].mxu1 %vm9689_vm1, %v18180_v62 }
0x248b   : > { %v21084_v49 = vpop.f32.mrb[78].mxu1 }
0x248c   : > { %v18285_v29 = vadd.f32 %v21084_v49, %v18282_v8  ;;  %v18261_v37 = vpop.f32.mrb[79].mxu1 }
0x248d   : > { %v18284_v7 = vadd.f32 %v18277_v33, %v18261_v37  ;;  %v18672_v37 = vld [vmem:[#allocation36 + $0x40] sm:$0xff] }
0x248e   : > { %v18287_v56 = vmax.f32 %v18285_v29, 0.0  ;;  %v18579_v29 = vld [vmem:[#allocation36 + $0x38] sm:$0xff] }
0x248f   : > { %v18286_v14 = vmax.f32 %v18284_v7, 0.0 }
0x2490   : > { %18292 = vrot.lane.b32.xlu1 %v18287_v56, %s23612_s5 }
0x2491   : > { %18290 = vrot.lane.b32.xlu0 %v18286_v14, %s23612_s5 }
0x2502   : > { %v18293_v9 = vpop.permute.xlu1 %18292 }
0x2503   : > { %v18297_v51 = vsel %vm1937_vm3, 0.0, %v18293_v9  ;;  %v18291_v4 = vpop.permute.xlu0 %18290 }
0x2504   : > { %v18299_v47 = vsel %vm16475_vm0, %v18297_v51, 0.0  ;;  %v18296_v25 = vsel %vm1937_vm3, 0.0, %v18291_v4  ;;  %v18673_v51 = vld [vmem:[#allocation36 + $0x48] sm:$0xff]  ;;  %v18768_v4 = vld [vmem:[#allocation36 + $0x50] sm:$0xff] }
0x2505   : > { %v18298_v17 = vsel %vm16475_vm0, %v18296_v25, 0.0  ;;  %v18480_v23 = vmul.f32 %v18299_v47, %v26785_v31  ;;  %v18305_v59 = vmul.f32 %v18299_v47, %v26789_v27  ;;  %v18576_v54 = vmul.f32 %v18299_v47, %v26797_v26 }
0x2506   : > { %v18479_v38 = vmul.f32 %v18298_v17, %v26785_v31  ;;  %v18304_v63 = vmul.f32 %v18298_v17, %v26789_v27  ;;  %v18575_v2 = vmul.f32 %v18298_v17, %v26797_v26  ;;  %v18300_v19 = vmul.f32 %v26778_v48, %v18298_v17 }
0x2507   : > { %v18301_v28 = vmul.f32 %v26778_v48, %v18299_v47  ;;  %v22527_v1 = vpack.i.bf16 %v18299_v47, %v18298_v17  ;;  %v18861_v15 = vmul.f32 %v18298_v17, %v26806_v44  ;;  %v18862_v31 = vmul.f32 %v18299_v47, %v26806_v44 }
0x2508   : > { %v22517_v32 = vpack.i.bf16 %v18480_v23, %v18479_v38  ;;  %v22512_v39 = vpack.i.bf16 %v18305_v59, %v18304_v63  ;;  %v22522_v27 = vpack.i.bf16 %v18576_v54, %v18575_v2  ;;  %v18765_v46 = vmul.f32 %v18298_v17, %v26793_v40  ;;  %v18769_v23 = vld [vmem:[#allocation36 + $0x58] sm:$0xff]  ;;  %v18864_v59 = vld [vmem:[#allocation36 + $0x60] sm:$0xff]  ;;  %v18865_v2 = vld [vmem:[#allocation36 + $0x68] sm:$0xff] }
0x2509   : > { %v18766_v36 = vmul.f32 %v18299_v47, %v26793_v40  ;;  %v21605_v58 = vpack.c.bf16 %v18301_v28, %v18300_v19  ;;  %v22537_v26 = vpack.i.bf16 %v18862_v31, %v18861_v15  ;;  %v19053_v12 = vmul.f32 %v18298_v17, %v26814_v3  ;;  %v18960_v54 = vld [vmem:[#allocation36 + $0x70] sm:$0xff]  ;;  %v18961_v28 = vld [vmem:[#allocation36 + $0x78] sm:$0xff]  ;;  %v19057_v15 = vld [vmem:[#allocation36 + $0x88] sm:$0xff] }
0x250a   : > { %22518 = vrot.lane.b32.xlu1 %v22517_v32, %s27255_s3  ;;  %22513 = vrot.lane.b32.xlu0 %v22512_v39, %s27254_s18  ;;  %v19054_v48 = vmul.f32 %v18299_v47, %v26814_v3  ;;  %v18957_v18 = vmul.f32 %v18298_v17, %v26804_v52  ;;  %v18958_v44 = vmul.f32 %v18299_v47, %v26804_v52 }
0x250b   : > { %v22532_v21 = vpack.i.bf16 %v18766_v36, %v18765_v46 }
0x250c   : > { %v22547_v40 = vpack.i.bf16 %v19054_v48, %v19053_v12  ;;  %v22542_v13 = vpack.i.bf16 %v18958_v44, %v18957_v18  ;;  %v19191_v48 = vld [vmem:[%s27269_s15] sm:$0xf] }
0x250d   : > { %21148 = vmatprep.subr.msk.mxu1 %vm5585_vm2, %v19191_v48 }
0x250e   : > { %22528 = vrot.lane.b32.xlu1 %v22527_v1, %s23613_s10  ;;  %22523 = vrot.lane.b32.xlu0 %v22522_v27, %s27255_s3  ;;  %v19056_v1 = vld [vmem:[#allocation36 + $0x80] sm:$0xff] }
0x250f   : > { %21149 = vmatpush3.msk.msra.mxu1 %vm5585_vm2, %v19191_v48 }
0x2512   : > { %22538 = vrot.lane.b32.xlu1 %v22537_v26, %s23609_s2  ;;  %22533 = vrot.lane.b32.xlu0 %v22532_v21, %s23609_s2 }
0x2516   : > { %22548 = vrot.lane.b32.xlu1 %v22547_v40, %s23610_s6  ;;  %22543 = vrot.lane.b32.xlu0 %v22542_v13, %s23611_s1 }
0x251a   : > { %19158 = vperm.xlu1 %22341, %v19150_v35   ;;  %19153 = vperm.xlu0 %22305, %v19149_v30  }
0x257c   : > { %v22514_v57 = vpop.permute.xlu0 %22513  ;;  %v22519_v0 = vpop.permute.xlu1 %22518 }
0x257d   : > { %v22516_v3 = vunpack.i.h.bf16 %v22514_v57  ;;  %v22515_v10 = vunpack.i.l.bf16 %v22514_v57  ;;  %v22521_v52 = vunpack.i.h.bf16 %v22519_v0  ;;  %v22520_v20 = vunpack.i.l.bf16 %v22519_v0 }
0x257f   : > { %v21601_v5 = vpack.c.bf16 %v22516_v3, %v22515_v10  ;;  %v21609_v6 = vpack.c.bf16 %v22521_v52, %v22520_v20 }
0x2580   : > { %v22524_v22 = vpop.permute.xlu0 %22523  ;;  %v22529_v50 = vpop.permute.xlu1 %22528 }
0x2581   : > { %21602 = vmatprep.subr.bf16.mxu0 %v21601_v5  ;;  %v22526_v24 = vunpack.i.h.bf16 %v22524_v22  ;;  %v22525_v60 = vunpack.i.l.bf16 %v22524_v22  ;;  %v22531_v34 = vunpack.i.h.bf16 %v22529_v50  ;;  %v22530_v45 = vunpack.i.l.bf16 %v22529_v50 }
0x2582   : > { %21604 = vmatpush3.bf16.msra.mxu0 %v21601_v5 }
0x2583   : > { %21606 = vmatprep.subr.bf16.mxu0 %v21605_v58  ;;  %v21613_v16 = vpack.c.bf16 %v22526_v24, %v22525_v60  ;;  %v21617_v62 = vpack.c.bf16 %v22531_v34, %v22530_v45 }
0x2584   : > { %v22534_v8 = vpop.permute.xlu0 %22533  ;;  %v22539_v56 = vpop.permute.xlu1 %22538 }
0x2585   : > { %21090 = vmatmul.mubr.msk.f32.vlgmr.msra.gmra.mrb[16].mxu0 %vm9689_vm1, %v18308_v42  ;;  %v22536_v49 = vunpack.i.h.bf16 %v22534_v8  ;;  %v22535_v33 = vunpack.i.l.bf16 %v22534_v8  ;;  %v22541_v14 = vunpack.i.h.bf16 %v22539_v56  ;;  %v22540_v9 = vunpack.i.l.bf16 %v22539_v56 }
0x2586   : > { %21608 = vmatpush3.bf16.msra.mxu0 %v21605_v58  ;;  %21096 = vmatprep.mubr.msk.f32.mxu0 %vm9689_vm1, %v18302_v53 }
0x2587   : > { %21610 = vmatprep.subr.bf16.mxu0 %v21609_v6  ;;  %v21621_v7 = vpack.c.bf16 %v22536_v49, %v22535_v33  ;;  %v21625_v55 = vpack.c.bf16 %v22541_v14, %v22540_v9 }
0x2588   : > { %v22544_v47 = vpop.permute.xlu0 %22543  ;;  %v22549_v63 = vpop.permute.xlu1 %22548 }
0x2589   : > { %v22546_v25 = vunpack.i.h.bf16 %v22544_v47  ;;  %v22545_v17 = vunpack.i.l.bf16 %v22544_v47  ;;  %v22551_v32 = vunpack.i.h.bf16 %v22549_v63  ;;  %v22550_v39 = vunpack.i.l.bf16 %v22549_v63 }
0x258b   : > { %v21629_v38 = vpack.c.bf16 %v22546_v25, %v22545_v17  ;;  %v21633_v19 = vpack.c.bf16 %v22551_v32, %v22550_v39 }
0x258d   : > { %21097 = vmatmul.mubr.msk.f32.vlgmr.msra.gmra.mrb[16].mxu0 %vm9689_vm1, %v18303_v43 }
0x258e   : > { %21612 = vmatpush3.bf16.msra.mxu0 %v21609_v6  ;;  %21103 = vmatprep.mubr.msk.f32.mxu0 %vm9689_vm1, %v18482_v11 }
0x258f   : > { %21614 = vmatprep.subr.bf16.mxu0 %v21613_v16 }
0x2595   : > { %21104 = vmatmul.mubr.msk.f32.vlgmr.msra.gmra.mrb[16].mxu0 %vm9689_vm1, %v18483_v61 }
0x2596   : > { %21616 = vmatpush3.bf16.msra.mxu0 %v21613_v16  ;;  %21110 = vmatprep.mubr.msk.f32.mxu0 %vm9689_vm1, %v18578_v41 }
0x2597   : > { %21618 = vmatprep.subr.bf16.mxu0 %v21617_v62 }
0x2599   : > { %v19159_v31 = vpop.permute.xlu1 %19158  ;;  %v19154_v46 = vpop.permute.xlu0 %19153 }
0x259d   : > { %21111 = vmatmul.mubr.msk.f32.vlgmr.msra.gmra.mrb[16].mxu0 %vm9689_vm1, %v18579_v29 }
0x259e   : > { %21620 = vmatpush3.bf16.msra.mxu0 %v21617_v62  ;;  %21117 = vmatprep.mubr.msk.f32.mxu0 %vm9689_vm1, %v18672_v37 }
0x259f   : > { %21622 = vmatprep.subr.bf16.mxu0 %v21621_v7 }
0x25a5   : > { %21118 = vmatmul.mubr.msk.f32.vlgmr.msra.gmra.mrb[16].mxu0 %vm9689_vm1, %v18673_v51 }
0x25a6   : > { %21624 = vmatpush3.bf16.msra.mxu0 %v21621_v7  ;;  %21124 = vmatprep.mubr.msk.f32.mxu0 %vm9689_vm1, %v18768_v4 }
0x25a7   : > { %21626 = vmatprep.subr.bf16.mxu0 %v21625_v55 }
0x25ad   : > { %21125 = vmatmul.mubr.msk.f32.vlgmr.msra.gmra.mrb[16].mxu0 %vm9689_vm1, %v18769_v23 }
0x25ae   : > { %21628 = vmatpush3.bf16.msra.mxu0 %v21625_v55  ;;  %21131 = vmatprep.mubr.msk.f32.mxu0 %vm9689_vm1, %v18864_v59 }
0x25af   : > { %21630 = vmatprep.subr.bf16.mxu0 %v21629_v38 }
0x25b5   : > { %21132 = vmatmul.mubr.msk.f32.vlgmr.msra.gmra.mrb[16].mxu0 %vm9689_vm1, %v18865_v2 }
0x25b6   : > { %21632 = vmatpush3.bf16.msra.mxu0 %v21629_v38  ;;  %21138 = vmatprep.mubr.msk.f32.mxu0 %vm9689_vm1, %v18960_v54 }
0x25b7   : > { %21634 = vmatprep.subr.bf16.mxu0 %v21633_v19 }
0x25bd   : > { %21139 = vmatmul.mubr.msk.f32.vlgmr.msra.gmra.mrb[16].mxu0 %vm9689_vm1, %v18961_v28 }
0x25be   : > { %21636 = vmatpush3.bf16.msra.mxu0 %v21633_v19  ;;  %21145 = vmatprep.mubr.msk.f32.mxu0 %vm9689_vm1, %v19056_v1 }
0x25c5   : > { %21146 = vmatmul.mubr.msk.f32.vlgmr.msra.gmra.mrb[16].mxu0 %vm9689_vm1, %v19057_v15  ;;  %vm27270_vm1 = vcmask 15360  }
0x25c6   : > { %vm27271_vm4 = vmmov %vm27270_vm1 }
0x2698   : > { %v21147_v27 = vpop.f32.mrb[16].mxu0 }
0x2699   : > { %v19162_v36 = vadd.f32 %v21147_v27, %v19159_v31  ;;  %v19138_v58 = vpop.f32.mrb[17].mxu0 }
0x269a   : > { %v19161_v26 = vadd.f32 %v19154_v46, %v19138_v58 }
0x269b   : > { %v19164_v12 = vmax.f32 %v19162_v36, 0.0 }
0x269c   : > { %v19163_v21 = vmax.f32 %v19161_v26, 0.0 }
0x269d   : > { %19166 = vst.msk [vmem:[%s1714_s17 + $0x8] sm:$0xff] %vm5581_vm10, %v19164_v12  ;;  %19171 = vrot.lane.b32.xlu1 %v19164_v12, %s27254_s18 }
0x269e   : > { %19165 = vst.msk [vmem:[%s1714_s17] sm:$0xff] %vm5581_vm10, %v19163_v21  ;;  %19169 = vrot.lane.b32.xlu0 %v19163_v21, %s27254_s18  ;;  %s1719_s18 = scalar_lea.vmem %s23827_s4, %s26749_s0 }
0x270f   : > { %v19172_v18 = vpop.permute.xlu1 %19171 }
0x2710   : > { %v19176_v44 = vsel %vm1937_vm3, %v19172_v18, 0.0  ;;  %v19170_v40 = vpop.permute.xlu0 %19169 }
0x2711   : > { %v19178_v13 = vmax.f32 %v19164_v12, %v19176_v44  ;;  %v19175_v35 = vsel %vm1937_vm3, %v19170_v40, 0.0  ;;  %vm27272_vm3 = vcmask 7168  }
0x2712   : > { %v19177_v30 = vmax.f32 %v19163_v21, %v19175_v35  ;;  %vm27273_vm2 = vmmov %vm27272_vm3 }
0x2713   : > { %19183 = vrot.lane.b32.xlu1 %v19178_v13, %s27255_s3 }
0x2714   : > { %19181 = vrot.lane.b32.xlu0 %v19177_v30, %s27255_s3 }
0x2785   : > { %v19184_v57 = vpop.permute.xlu1 %19183 }
0x2786   : > { %v19188_v3 = vsel %vm27270_vm1, %v19184_v57, 0.0  ;;  %v19182_v10 = vpop.permute.xlu0 %19181 }
0x2787   : > { %v19187_v0 = vsel %vm27271_vm4, %v19182_v10, 0.0  ;;  %v19190_v52 = vmax.f32 %v19178_v13, %v19188_v3 }
0x2788   : > { %v19189_v5 = vmax.f32 %v19177_v30, %v19187_v0 }
0x278a   : > { %21150 = vmatprep.mubr.msk.f32.mxu1 %vm5581_vm10, %v19189_v5 }
0x278b   : > { %21151 = vmatmul.mubr.msk.f32.vlgmr.msra.gmra.mrb[80].mxu1 %vm5581_vm10, %v19190_v52 }
0x285e   : > { %v21152_v20 = vpop.f32.mrb[80].mxu1 }
0x285f   : > { %19277 = vst.msk [vmem:[%s1719_s18 + $0x8] sm:$0xff] %vm27272_vm3, %v21152_v20  ;;  %v19267_v42 = vpop.f32.mrb[81].mxu1 }
0x2860   : > { %19276 = vst.msk [vmem:[%s1719_s18] sm:$0xff] %vm27273_vm2, %v19267_v42 }
0x2861 PF: > { %s110_s7 = sadd.s32 1, %s23494_s7  }
0x2862   : > { %p107_p5 = scmp.ge.s32.totalorder %s110_s7, 4  }
0x2864   :  { %109 = sbr.rel (!%p107_p5) target bundleno = 91 (0x5b), region = 530 }
0x286b   :  { %19359 = vsyncpa [#allocation3], 1 }
0x286c   :  { %19361 = vsyncpa [#allocation3 + $0x1], 1 }
0x286d   :  { %19362 = vsyncpa [#allocation5], 1 }
0x286e   :  { %19363 = vsyncpa [#allocation8], 1 }
0x286f   :  { %19364 = vsyncpa [#allocation11], 1 }
0x2870   :  { %19365 = vsyncpa [#allocation14], 1 }
0x2871   :  { %19366 = vsyncpa [#allocation17], 1 }
0x2872   :  { %19367 = vsyncpa [#allocation20], 1 }
0x2873   :  { %19368 = vsyncpa [#allocation23], 1 }
0x2874   :  { %19369 = vsyncpa [#allocation26], 1 }
0x2875   :  { %19370 = vsyncpa [#allocation29], 1 }
0x2876   :  { %19371 = vsyncpa [#allocation32], 1 }
0x2877   :  { %19372 = vsyncpa [#allocation35], 1 }
0x2878   :  { %19373 = vsyncpa [#allocation38], 1 }
0x2879   :  { %19374 = vsyncpa [#allocation41], 1 }
0x287a   :  { %19375 = vsyncpa [#allocation44], 1 }
0x287b   :  { %19376 = vsyncpa [#allocation47], 1 }

</bundles_post_ra>
